<compile_context>
chip_gen: v5e
topology: v5e:2x2
jax: 0.10.0
libtpu: 0.0.40
codegen_flags: <defaults>
</compile_context>

<pallas_src>
import functools

import jax
import jax.numpy as jnp
from jax import lax
from jax.experimental import pallas as pl
from jax.experimental.pallas import tpu as pltpu

BN_EPS = 1e-5


# ----------------------------------------------------------------------------
# Kernel: replay the folded prefix layers in VMEM from the raw input tile,
# apply the current layer's conv, and emit either Welford BN partials
# (+ running max/min for the global-feature layer) or the head output.
# ----------------------------------------------------------------------------
def _chain_kernel(*args, chain, mode):
    n_in = 1 + sum(1 + int(s["gbias"]) + 2 * int(s["replay"]) for s in chain)
    in_refs, out_refs = args[:n_in], args[n_in:]

    it = iter(in_refs)
    x_ref = next(it)
    h = x_ref[0]                                            # (TM, Cin) f32

    z = None
    for step in chain:
        w_ref = next(it)
        gb_ref = next(it) if step["gbias"] else None
        if step["vpu"]:
            # Tiny contraction dim (in_channels == 3): a few VPU broadcast-FMAs
            # instead of padding a 3-deep contraction to a full MXU pass.
            w = w_ref[...]
            z = h[:, 0:1] * w[0:1, :]
            for k in range(1, h.shape[-1]):
                z = z + h[:, k:k + 1] * w[k:k + 1, :]
        else:
            # bf16 MXU matmul, f32 accumulation.
            z = jnp.dot(h.astype(jnp.bfloat16), w_ref[...],
                        preferred_element_type=jnp.float32)
        if gb_ref is not None:
            # Per-batch global-feature bias (split-concat trick) or head bias.
            z = z + gb_ref[0]                               # (1, Cout)
        if step["replay"]:
            # Replayed layer: previously folded training-mode BN + ReLU,
            # feeding the next layer entirely in VMEM.
            scale_ref = next(it)
            shift_ref = next(it)
            h = jnp.maximum(z * scale_ref[...] + shift_ref[...], 0.0)

    if mode == "head":
        # Only per-point HBM write in the whole network.
        out_refs[0][0] = z.astype(out_refs[0].dtype)
        return

    # Welford/Chan BN partials per (batch, point-split) segment, accumulated
    # across the innermost ("arbitrary") point-tile axis.
    mean_ref, m2_ref = out_refs[0], out_refs[1]
    t = pl.program_id(2)
    tm = z.shape[0]

    @pl.when(t == 0)
    def _():
        mean_ref[...] = jnp.zeros(mean_ref.shape, mean_ref.dtype)
        m2_ref[...] = jnp.zeros(m2_ref.shape, m2_ref.dtype)

    mu_t = jnp.mean(z, axis=0, keepdims=True)               # (1, C)
    dev = z - mu_t
    m2_t = jnp.sum(dev * dev, axis=0, keepdims=True)        # (1, C)
    n_prev = (t * tm).astype(jnp.float32)                   # points seen so far
    n_new = n_prev + float(tm)
    delta = mu_t - mean_ref[0]
    mean_ref[...] += (delta * (float(tm) / n_new))[None]
    m2_ref[...] += (m2_t + delta * delta * (n_prev * (float(tm) / n_new)))[None]

    if mode == "global":
        # Running per-segment max/min of the pre-BN output (global feature).
        zmax_ref, zmin_ref = out_refs[2], out_refs[3]

        @pl.when(t == 0)
        def _():
            zmax_ref[...] = jnp.full(zmax_ref.shape, -jnp.inf, zmax_ref.dtype)
            zmin_ref[...] = jnp.full(zmin_ref.shape, jnp.inf, zmin_ref.dtype)

        zmax_ref[...] = jnp.maximum(zmax_ref[...],
                                    jnp.max(z, axis=0, keepdims=True)[None])
        zmin_ref[...] = jnp.minimum(zmin_ref[...],
                                    jnp.min(z, axis=0, keepdims=True)[None])


# ----------------------------------------------------------------------------
# pallas_call wrapper (one fused layer step with in-VMEM prefix replay)
# ----------------------------------------------------------------------------
def _vmem_limit_bytes(tm):
    # Derived from the actual block footprint (lane dim pads to 128 in VMEM):
    # 2x double-buffered input + 2x output blocks + generous headroom for the
    # replay-chain temporaries; capped at 32 MiB (v7x physical VMEM is 64 MiB).
    block = tm * 128 * 4
    need = 4 * block + 16 * block + (2 << 20)
    return int(max(16 << 20, min(need, 32 << 20)))


def _chain_call(x, prefix, final, *, mode, tm, P, out_dtype=jnp.float32):
    """prefix: replayed layers [{w, gb, vpu, scale, shift}], final: {w, gb, vpu}."""
    B, N, c_in = x.shape
    T = N // (P * tm)
    grid = (B, P, T)

    in_arrays = [x]
    in_specs = [pl.BlockSpec((1, tm, c_in), lambda b, p, t, T=T: (b, p * T + t, 0))]
    chain = []

    def add_step(step, replay):
        chain.append(dict(vpu=step["vpu"], gbias=step["gb"] is not None,
                          replay=replay))
        w = step["w"]
        in_arrays.append(w)
        in_specs.append(pl.BlockSpec(w.shape, lambda b, p, t: (0, 0)))
        if step["gb"] is not None:
            gb = step["gb"]
            in_arrays.append(gb)
            if gb.shape[0] == B:   # per-batch global-feature bias
                in_specs.append(pl.BlockSpec((1, 1, gb.shape[2]),
                                             lambda b, p, t: (b, 0, 0)))
            else:                  # shared head bias
                in_specs.append(pl.BlockSpec((1, 1, gb.shape[2]),
                                             lambda b, p, t: (0, 0, 0)))
        if replay:
            for arr in (step["scale"], step["shift"]):
                in_arrays.append(arr)
                in_specs.append(pl.BlockSpec(arr.shape, lambda b, p, t: (0, 0)))

    for step in prefix:
        add_step(step, True)
    add_step(final, False)

    cout = final["w"].shape[1]
    red_shape = jax.ShapeDtypeStruct((B * P, 1, cout), jnp.float32)
    red_spec = pl.BlockSpec((1, 1, cout), lambda b, p, t, P=P: (b * P + p, 0, 0))
    if mode == "stats":          # Welford mean / M2 partials
        out_shape, out_specs = (red_shape,) * 2, (red_spec,) * 2
    elif mode == "global":       # + running max / min (global-feature layer)
        out_shape, out_specs = (red_shape,) * 4, (red_spec,) * 4
    elif mode == "head":         # per-point logits, written once
        out_shape = jax.ShapeDtypeStruct((B, N, cout), out_dtype)
        out_specs = pl.BlockSpec((1, tm, cout), lambda b, p, t, T=T: (b, p * T + t, 0))
    else:
        raise ValueError(mode)

    return pl.pallas_call(
        functools.partial(_chain_kernel, chain=tuple(chain), mode=mode),
        grid=grid,
        in_specs=in_specs,
        out_specs=out_specs,
        out_shape=out_shape,
        compiler_params=pltpu.CompilerParams(
            # batch axis and point-split axis -> megacore parallel (v7x keeps
            # both TensorCores busy even for B == 1 / odd B); the innermost
            # point-tile axis carries the BN/max reductions ("arbitrary").
            dimension_semantics=("parallel", "parallel", "arbitrary"),
            vmem_limit_bytes=_vmem_limit_bytes(tm),
        ),
    )(*in_arrays)


# ----------------------------------------------------------------------------
# Host-side helpers
# ----------------------------------------------------------------------------
def _pick_point_tile(n, max_tile=2048):
    """Largest point-tile that divides N (multiple of 8 when tiling, else N)."""
    if n <= max_tile:
        return n
    start = max_tile - (max_tile % 8)
    for tm in range(start, 7, -8):
        if n % tm == 0:
            return tm
    # TODO(synk): pathological N with no multiple-of-8 divisor <= max_tile falls
    # back to a single tile; bound it against the VMEM budget for huge N.
    return n


def _pick_parallel_split(batch, num_tiles):
    """Second 'parallel' grid axis over points so both v7x TensorCores stay busy
    when B is 1 or odd; just a loop-order change on single-TC v5e/v6e."""
    if batch % 2 == 0 or num_tiles % 2 != 0:
        return 1
    return 2


def _fold_bn_welford(mean_seg, m2_seg, gamma, beta, n_seg, count):
    """Combine per-segment Welford partials (Chan's formula) into training-mode
    BatchNorm1d folded as y -> y*scale + shift (biased variance, eps=1e-5)."""
    mean_seg = mean_seg.reshape(mean_seg.shape[0], -1)      # (B*P, C)
    m2_seg = m2_seg.reshape(m2_seg.shape[0], -1)
    mean = jnp.mean(mean_seg, axis=0)                       # equal segment counts
    m2 = jnp.sum(m2_seg, axis=0) + n_seg * jnp.sum((mean_seg - mean) ** 2, axis=0)
    var = jnp.maximum(m2 / count, 0.0)
    scale = gamma.reshape(-1) * lax.rsqrt(var + BN_EPS)
    shift = beta.reshape(-1) - mean * scale
    return scale.reshape(1, -1), shift.reshape(1, -1)


# ----------------------------------------------------------------------------
# Parameter construction (deterministic, synthetic; mirrors the torch module)
# ----------------------------------------------------------------------------
def _init_layer(key, cin, cout):
    k1, k2, k3, k4 = jax.random.split(key, 4)
    return dict(
        wt=0.1 * jax.random.normal(k1, (cin, cout), jnp.float32),      # W^T
        b=0.1 * jax.random.normal(k2, (1, cout), jnp.float32),         # conv bias
        gamma=1.0 + 0.1 * jax.random.normal(k3, (1, cout), jnp.float32),
        beta=0.1 * jax.random.normal(k4, (1, cout), jnp.float32),
    )


def make_params(key, *, in_channels, feat_size, feat_layer_dims,
                classifier_layer_dims, num_classes):
    assert feat_layer_dims[0] == feat_layer_dims[1], (
        "upstream kaolin module only runs when feat_layer_dims[0] == feat_layer_dims[1]")
    feat_dims = [in_channels] + list(feat_layer_dims) + [feat_size]
    local_feat_size = feat_size + feat_layer_dims[1]
    cls_dims = [feat_size] + list(classifier_layer_dims)

    keys = jax.random.split(key, len(feat_dims) + len(cls_dims) + 1)
    ki = iter(keys)

    feat = [_init_layer(next(ki), feat_dims[i], feat_dims[i + 1])
            for i in range(len(feat_dims) - 1)]
    cls = [_init_layer(next(ki), local_feat_size, cls_dims[0])]
    for i in range(len(cls_dims) - 1):
        cls.append(_init_layer(next(ki), cls_dims[i], cls_dims[i + 1]))
    last = _init_layer(next(ki), cls_dims[-1], num_classes)
    return dict(feat=feat, cls=cls, last=last)


# ----------------------------------------------------------------------------
# Forward pass
# ----------------------------------------------------------------------------
def pointnet_segmenter_forward(params, x):
    """x: (B, N, D) pointcloud (transposed_input=False). Returns (B, N, num_classes)."""
    B, N, _ = x.shape
    tm = _pick_point_tile(N)
    assert N % tm == 0, (N, tm)
    P = _pick_parallel_split(B, N // tm)
    n_seg = N // P                      # points per (batch, point-split) segment
    count = B * N
    bf16 = jnp.bfloat16

    feat, cls, last = params["feat"], params["cls"], params["last"]

    def stats_call(prefix, w, gb=None, vpu=False, mode="stats"):
        return _chain_call(x, prefix, dict(w=w, gb=gb, vpu=vpu),
                           mode=mode, tm=tm, P=P)

    def fold(mean_seg, m2_seg, p):
        return _fold_bn_welford(mean_seg, m2_seg, p["gamma"], p["beta"], n_seg, count)

    # ---- PointNetFeatureExtractor (global_feat=False) ----
    # Layer 0 (in_channels -> feat_layer_dims[0]): VPU small-K path.  Its conv
    # bias cancels against BN mean subtraction and is dropped.
    p0 = feat[0]
    mean0, m20 = stats_call([], p0["wt"], vpu=True)
    scale0, shift0 = fold(mean0, m20, p0)
    feat0_step = dict(w=p0["wt"], gb=None, vpu=True, scale=scale0, shift=shift0)

    # Middle feature layers (BN + ReLU), each replaying the prefix in VMEM.
    feat_prefix = [feat0_step]
    for p in feat[1:-1]:
        w = p["wt"].astype(bf16)
        m, m2 = stats_call(feat_prefix, w)
        s, sh = fold(m, m2, p)
        feat_prefix.append(dict(w=w, gb=None, vpu=False, scale=s, shift=sh))

    # Last feature layer (-> feat_size): BN, no ReLU, immediately max-reduced
    # over points; per-point output never leaves VMEM.
    p = feat[-1]
    m, m2, zmax, zmin = stats_call(feat_prefix, p["wt"].astype(bf16), mode="global")
    s_g, sh_g = fold(m, m2, p)
    zmax = jnp.max(zmax.reshape(B, P, -1), axis=1)          # combine point splits
    zmin = jnp.min(zmin.reshape(B, P, -1), axis=1)
    # max over points of the affine BN output, from the pre-BN running max/min.
    g = jnp.where(s_g > 0, s_g * zmax, s_g * zmin) + sh_g   # (B, feat_size)
    feat_size = g.shape[-1]

    # ---- Segmentation head ----
    # torch concatenates (global_expanded, local_features) on channels; split
    # the first classifier weight so the concat is never materialized:
    #   z = local @ W_local + (g @ W_global)  broadcast over points.
    p = cls[0]
    w_global = p["wt"][:feat_size, :]
    w_local = p["wt"][feat_size:, :].astype(bf16)
    gbias = jnp.dot(g, w_global)[:, None, :]                # (B, 1, C1), tiny
    cls_prefix = [feat0_step]                               # local features = BN0+ReLU(feat0)
    m, m2 = stats_call(cls_prefix, w_local, gb=gbias)
    s, sh = fold(m, m2, p)
    cls_prefix.append(dict(w=w_local, gb=gbias, vpu=False, scale=s, shift=sh))

    for p in cls[1:]:                                       # remaining classifier layers
        w = p["wt"].astype(bf16)
        m, m2 = stats_call(cls_prefix, w)
        s, sh = fold(m, m2, p)
        cls_prefix.append(dict(w=w, gb=None, vpu=False, scale=s, shift=sh))

    # last_conv_layer: no BN, no activation; writes (B, N, num_classes) directly
    # (only per-point HBM write in the network; no padded block, no wrapper slice).
    num_classes = last["wt"].shape[1]
    head_bias = last["b"].reshape(1, 1, num_classes)
    out = _chain_call(x, cls_prefix,
                      dict(w=last["wt"].astype(bf16), gb=head_bias, vpu=False),
                      mode="head", tm=tm, P=P)
    return out                                               # (B, N, num_classes)


# ----------------------------------------------------------------------------
if __name__ == "__main__":
    in_channels = 3
    feat_size = 128
    feat_layer_dims = [32, 32]          # must satisfy [0] == [1]; see note at top
    classifier_layer_dims = [64, 32]
    num_classes = 4

    key = jax.random.PRNGKey(0)
    k_x, k_p, k_x2 = jax.random.split(key, 3)

    params = make_params(
        k_p,
        in_channels=in_channels,
        feat_size=feat_size,
        feat_layer_dims=feat_layer_dims,
        classifier_layer_dims=classifier_layer_dims,
        num_classes=num_classes,
    )

    fwd = jax.jit(pointnet_segmenter_forward)

    # Primary small example (B=2 -> batch-parallel megacore path, single tile).
    B, N = 2, 128
    x = jax.random.normal(k_x, (B, N, in_channels), jnp.float32)
    out = jax.block_until_ready(fwd(params, x))
    assert out.shape == (B, N, num_classes), out.shape
    assert bool(jnp.all(jnp.isfinite(out)))

    # Exercise the B=1 point-split (P=2) megacore path and multi-tile Welford
    # accumulation (tm=2048, two tiles per split).
    B2, N2 = 1, 8192
    x2 = jax.random.normal(k_x2, (B2, N2, in_channels), jnp.float32)
    out2 = jax.block_until_ready(fwd(params, x2))
    assert out2.shape == (B2, N2, num_classes), out2.shape
    assert bool(jnp.all(jnp.isfinite(out2)))

    print("KERNEL_OK")
</pallas_src>

<mosaic_0001>
module attributes {stable_mosaic.version = 11 : i64} {
  func.func @_chain_kernel(%arg0: i32, %arg1: i32, %arg2: i32, %arg3: memref<1x128x3xf32, #tpu.memory_space<vmem>>, %arg4: memref<3x32xf32, #tpu.memory_space<vmem>>, %arg5: memref<1x32xf32, #tpu.memory_space<vmem>>, %arg6: memref<1x32xf32, #tpu.memory_space<vmem>>, %arg7: memref<32x32xbf16, #tpu.memory_space<vmem>>, %arg8: memref<1x1x32xf32, #tpu.memory_space<vmem>>, %arg9: memref<1x1x32xf32, #tpu.memory_space<vmem>>) attributes {dimension_semantics = [#tpu.dimension_semantics<parallel>, #tpu.dimension_semantics<parallel>, #tpu.dimension_semantics<arbitrary>], iteration_bounds = array<i64: 2, 1, 1>, scalar_prefetch = 0 : i64, scratch_operands = 0 : i64, tpu.core_type = #tpu.core_type<tc>, window_params = [{transform_indices = @transform_0, window_bounds = array<i64: 1, 128, 3>}, {pipeline_mode = #tpu.pipeline_mode<synchronous>, transform_indices = @transform_1, window_bounds = array<i64: 3, 32>}, {pipeline_mode = #tpu.pipeline_mode<synchronous>, transform_indices = @transform_2, window_bounds = array<i64: 1, 32>}, {pipeline_mode = #tpu.pipeline_mode<synchronous>, transform_indices = @transform_3, window_bounds = array<i64: 1, 32>}, {pipeline_mode = #tpu.pipeline_mode<synchronous>, transform_indices = @transform_4, window_bounds = array<i64: 32, 32>}, {transform_indices = @transform_5, window_bounds = array<i64: 1, 1, 32>}, {transform_indices = @transform_6, window_bounds = array<i64: 1, 1, 32>}]} {
    %c0 = arith.constant 0 : index
    %c0_0 = arith.constant 0 : index
    %c0_1 = arith.constant 0 : index
    %0 = vector.load %arg3[%c0, %c0_0, %c0_1] : memref<1x128x3xf32, #tpu.memory_space<vmem>>, vector<1x128x3xf32>
    %1 = vector.shape_cast %0 : vector<1x128x3xf32> to vector<128x3xf32>
    %c0_2 = arith.constant 0 : index
    %c0_3 = arith.constant 0 : index
    %2 = vector.load %arg4[%c0_2, %c0_3] : memref<3x32xf32, #tpu.memory_space<vmem>>, vector<3x32xf32>
    %3 = vector.extract_strided_slice %1 {offsets = [0, 0], sizes = [128, 1], strides = [1, 1]} : vector<128x3xf32> to vector<128x1xf32>
    %4 = vector.extract_strided_slice %2 {offsets = [0, 0], sizes = [1, 32], strides = [1, 1]} : vector<3x32xf32> to vector<1x32xf32>
    %5 = vector.broadcast %3 : vector<128x1xf32> to vector<128x32xf32>
    %6 = vector.broadcast %4 : vector<1x32xf32> to vector<128x32xf32>
    %7 = arith.mulf %5, %6 : vector<128x32xf32>
    %8 = vector.extract_strided_slice %1 {offsets = [0, 1], sizes = [128, 1], strides = [1, 1]} : vector<128x3xf32> to vector<128x1xf32>
    %9 = vector.extract_strided_slice %2 {offsets = [1, 0], sizes = [1, 32], strides = [1, 1]} : vector<3x32xf32> to vector<1x32xf32>
    %10 = vector.broadcast %8 : vector<128x1xf32> to vector<128x32xf32>
    %11 = vector.broadcast %9 : vector<1x32xf32> to vector<128x32xf32>
    %12 = arith.mulf %10, %11 : vector<128x32xf32>
    %13 = arith.addf %7, %12 : vector<128x32xf32>
    %14 = vector.extract_strided_slice %1 {offsets = [0, 2], sizes = [128, 1], strides = [1, 1]} : vector<128x3xf32> to vector<128x1xf32>
    %15 = vector.extract_strided_slice %2 {offsets = [2, 0], sizes = [1, 32], strides = [1, 1]} : vector<3x32xf32> to vector<1x32xf32>
    %16 = vector.broadcast %14 : vector<128x1xf32> to vector<128x32xf32>
    %17 = vector.broadcast %15 : vector<1x32xf32> to vector<128x32xf32>
    %18 = arith.mulf %16, %17 : vector<128x32xf32>
    %19 = arith.addf %13, %18 : vector<128x32xf32>
    %c0_4 = arith.constant 0 : index
    %c0_5 = arith.constant 0 : index
    %20 = vector.load %arg5[%c0_4, %c0_5] : memref<1x32xf32, #tpu.memory_space<vmem>>, vector<1x32xf32>
    %21 = vector.broadcast %20 : vector<1x32xf32> to vector<128x32xf32>
    %22 = arith.mulf %19, %21 : vector<128x32xf32>
    %c0_6 = arith.constant 0 : index
    %c0_7 = arith.constant 0 : index
    %23 = vector.load %arg6[%c0_6, %c0_7] : memref<1x32xf32, #tpu.memory_space<vmem>>, vector<1x32xf32>
    %24 = vector.broadcast %23 : vector<1x32xf32> to vector<128x32xf32>
    %25 = arith.addf %22, %24 : vector<128x32xf32>
    %cst = arith.constant 0.000000e+00 : f32
    %26 = vector.broadcast %cst : f32 to vector<128x32xf32>
    %27 = arith.maximumf %25, %26 : vector<128x32xf32>
    %28 = arith.truncf %27 : vector<128x32xf32> to vector<128x32xbf16>
    %c0_8 = arith.constant 0 : index
    %c0_9 = arith.constant 0 : index
    %29 = vector.load %arg7[%c0_8, %c0_9] : memref<32x32xbf16, #tpu.memory_space<vmem>>, vector<32x32xbf16>
    %cst_10 = arith.constant dense<0.000000e+00> : vector<128x32xf32>
    %30 = tpu.matmul %28, %29, %cst_10 {dimension_numbers = #tpu.dot_dimension_numbers<[1], [0], [0], [1], [0, 0, 1, 1], [], []>} : vector<128x32xbf16>, vector<32x32xbf16>, vector<128x32xf32> -> vector<128x32xf32>
    %c0_i32 = arith.constant 0 : i32
    %31 = arith.cmpi eq, %arg2, %c0_i32 : i32
    %32 = arith.extui %31 : i1 to i32
    %c0_i32_11 = arith.constant 0 : i32
    %33 = arith.cmpi ne, %32, %c0_i32_11 : i32
    scf.if %33 {
      %cst_33 = arith.constant 0.000000e+00 : f32
      %66 = vector.broadcast %cst_33 : f32 to vector<1x1x32xf32>
      %c0_34 = arith.constant 0 : index
      %c0_35 = arith.constant 0 : index
      %c0_36 = arith.constant 0 : index
      %67 = vector.load %arg8[%c0_34, %c0_35, %c0_36] : memref<1x1x32xf32, #tpu.memory_space<vmem>>, vector<1x1x32xf32>
      tpu.vector_store %arg8[%c0_34, %c0_35, %c0_36], %66 {strides = array<i32>} : memref<1x1x32xf32, #tpu.memory_space<vmem>>, vector<1x1x32xf32>,
      %cst_37 = arith.constant 0.000000e+00 : f32
      %68 = vector.broadcast %cst_37 : f32 to vector<1x1x32xf32>
      %c0_38 = arith.constant 0 : index
      %c0_39 = arith.constant 0 : index
      %c0_40 = arith.constant 0 : index
      %69 = vector.load %arg9[%c0_38, %c0_39, %c0_40] : memref<1x1x32xf32, #tpu.memory_space<vmem>>, vector<1x1x32xf32>
      tpu.vector_store %arg9[%c0_38, %c0_39, %c0_40], %68 {strides = array<i32>} : memref<1x1x32xf32, #tpu.memory_space<vmem>>, vector<1x1x32xf32>,
    } else {
    }
    %cst_12 = arith.constant dense<0.000000e+00> : vector<32xf32>
    %34 = vector.multi_reduction <add>, %30, %cst_12 [0] : vector<128x32xf32> to vector<32xf32>
    %35 = vector.shape_cast %34 : vector<32xf32> to vector<1x32xf32>
    %cst_13 = arith.constant 1.280000e+02 : f32
    %36 = vector.broadcast %cst_13 : f32 to vector<1x32xf32>
    %37 = arith.divf %35, %36 : vector<1x32xf32>
    %38 = vector.broadcast %37 : vector<1x32xf32> to vector<128x32xf32>
    %39 = arith.subf %30, %38 : vector<128x32xf32>
    %40 = arith.mulf %39, %39 : vector<128x32xf32>
    %cst_14 = arith.constant dense<0.000000e+00> : vector<32xf32>
    %41 = vector.multi_reduction <add>, %40, %cst_14 [0] : vector<128x32xf32> to vector<32xf32>
    %42 = vector.shape_cast %41 : vector<32xf32> to vector<1x32xf32>
    %c128_i32 = arith.constant 128 : i32
    %43 = arith.muli %arg2, %c128_i32 : i32
    %44 = arith.sitofp %43 : i32 to f32
    %cst_15 = arith.constant 1.280000e+02 : f32
    %45 = arith.addf %44, %cst_15 : f32
    %c0_16 = arith.constant 0 : index
    %c0_17 = arith.constant 0 : index
    %c0_18 = arith.constant 0 : index
    %46 = vector.load %arg8[%c0_16, %c0_17, %c0_18] : memref<1x1x32xf32, #tpu.memory_space<vmem>>, vector<1x1x32xf32>
    %47 = vector.shape_cast %46 : vector<1x1x32xf32> to vector<1x32xf32>
    %48 = arith.subf %37, %47 : vector<1x32xf32>
    %c0_19 = arith.constant 0 : index
    %c0_20 = arith.constant 0 : index
    %c0_21 = arith.constant 0 : index
    %49 = vector.load %arg8[%c0_19, %c0_20, %c0_21] : memref<1x1x32xf32, #tpu.memory_space<vmem>>, vector<1x1x32xf32>
    %cst_22 = arith.constant 1.280000e+02 : f32
    %50 = arith.divf %cst_22, %45 : f32
    %51 = vector.broadcast %50 : f32 to vector<1x32xf32>
    %52 = arith.mulf %48, %51 : vector<1x32xf32>
    %53 = vector.shape_cast %52 : vector<1x32xf32> to vector<1x1x32xf32>
    %54 = arith.addf %49, %53 : vector<1x1x32xf32>
    %c0_23 = arith.constant 0 : index
    %c0_24 = arith.constant 0 : index
    %c0_25 = arith.constant 0 : index
    %55 = vector.load %arg8[%c0_23, %c0_24, %c0_25] : memref<1x1x32xf32, #tpu.memory_space<vmem>>, vector<1x1x32xf32>
    tpu.vector_store %arg8[%c0_23, %c0_24, %c0_25], %54 {strides = array<i32>} : memref<1x1x32xf32, #tpu.memory_space<vmem>>, vector<1x1x32xf32>,
    %c0_26 = arith.constant 0 : index
    %c0_27 = arith.constant 0 : index
    %c0_28 = arith.constant 0 : index
    %56 = vector.load %arg9[%c0_26, %c0_27, %c0_28] : memref<1x1x32xf32, #tpu.memory_space<vmem>>, vector<1x1x32xf32>
    %57 = arith.mulf %48, %48 : vector<1x32xf32>
    %cst_29 = arith.constant 1.280000e+02 : f32
    %58 = arith.divf %cst_29, %45 : f32
    %59 = arith.mulf %44, %58 : f32
    %60 = vector.broadcast %59 : f32 to vector<1x32xf32>
    %61 = arith.mulf %57, %60 : vector<1x32xf32>
    %62 = arith.addf %42, %61 : vector<1x32xf32>
    %63 = vector.shape_cast %62 : vector<1x32xf32> to vector<1x1x32xf32>
    %64 = arith.addf %56, %63 : vector<1x1x32xf32>
    %c0_30 = arith.constant 0 : index
    %c0_31 = arith.constant 0 : index
    %c0_32 = arith.constant 0 : index
    %65 = vector.load %arg9[%c0_30, %c0_31, %c0_32] : memref<1x1x32xf32, #tpu.memory_space<vmem>>, vector<1x1x32xf32>
    tpu.vector_store %arg9[%c0_30, %c0_31, %c0_32], %64 {strides = array<i32>} : memref<1x1x32xf32, #tpu.memory_space<vmem>>, vector<1x1x32xf32>,
    return
  }
  func.func @transform_0(%arg0: i32, %arg1: i32, %arg2: i32) -> (i32, i32, i32) {
    %c1_i32 = arith.constant 1 : i32
    %0 = arith.muli %arg1, %c1_i32 : i32
    %1 = arith.addi %0, %arg2 : i32
    %c0_i32 = arith.constant 0 : i32
    %c0_i32_0 = arith.constant 0 : i32
    return %arg0, %1, %c0_i32 : i32, i32, i32
  }
  func.func @transform_1(%arg0: i32, %arg1: i32, %arg2: i32) -> (i32, i32) {
    %c0_i32 = arith.constant 0 : i32
    %c0_i32_0 = arith.constant 0 : i32
    %c0_i32_1 = arith.constant 0 : i32
    return %c0_i32, %c0_i32_0 : i32, i32
  }
  func.func @transform_2(%arg0: i32, %arg1: i32, %arg2: i32) -> (i32, i32) {
    %c0_i32 = arith.constant 0 : i32
    %c0_i32_0 = arith.constant 0 : i32
    %c0_i32_1 = arith.constant 0 : i32
    return %c0_i32, %c0_i32_0 : i32, i32
  }
  func.func @transform_3(%arg0: i32, %arg1: i32, %arg2: i32) -> (i32, i32) {
    %c0_i32 = arith.constant 0 : i32
    %c0_i32_0 = arith.constant 0 : i32
    %c0_i32_1 = arith.constant 0 : i32
    return %c0_i32, %c0_i32_0 : i32, i32
  }
  func.func @transform_4(%arg0: i32, %arg1: i32, %arg2: i32) -> (i32, i32) {
    %c0_i32 = arith.constant 0 : i32
    %c0_i32_0 = arith.constant 0 : i32
    %c0_i32_1 = arith.constant 0 : i32
    return %c0_i32, %c0_i32_0 : i32, i32
  }
  func.func @transform_5(%arg0: i32, %arg1: i32, %arg2: i32) -> (i32, i32, i32) {
    %c1_i32 = arith.constant 1 : i32
    %0 = arith.muli %arg0, %c1_i32 : i32
    %1 = arith.addi %0, %arg1 : i32
    %c0_i32 = arith.constant 0 : i32
    %c0_i32_0 = arith.constant 0 : i32
    %c0_i32_1 = arith.constant 0 : i32
    return %1, %c0_i32, %c0_i32_0 : i32, i32, i32
  }
  func.func @transform_6(%arg0: i32, %arg1: i32, %arg2: i32) -> (i32, i32, i32) {
    %c1_i32 = arith.constant 1 : i32
    %0 = arith.muli %arg0, %c1_i32 : i32
    %1 = arith.addi %0, %arg1 : i32
    %c0_i32 = arith.constant 0 : i32
    %c0_i32_0 = arith.constant 0 : i32
    %c0_i32_1 = arith.constant 0 : i32
    return %1, %c0_i32, %c0_i32_0 : i32, i32, i32
  }
}

module attributes {stable_mosaic.version = 11 : i64} {
  func.func @_chain_kernel(%arg0: i32, %arg1: i32, %arg2: i32, %arg3: memref<1x128x3xf32, #tpu.memory_space<vmem>>, %arg4: memref<3x32xf32, #tpu.memory_space<vmem>>, %arg5: memref<1x32xf32, #tpu.memory_space<vmem>>, %arg6: memref<1x32xf32, #tpu.memory_space<vmem>>, %arg7: memref<32x32xbf16, #tpu.memory_space<vmem>>, %arg8: memref<1x32xf32, #tpu.memory_space<vmem>>, %arg9: memref<1x32xf32, #tpu.memory_space<vmem>>, %arg10: memref<32x128xbf16, #tpu.memory_space<vmem>>, %arg11: memref<1x1x128xf32, #tpu.memory_space<vmem>>, %arg12: memref<1x1x128xf32, #tpu.memory_space<vmem>>, %arg13: memref<1x1x128xf32, #tpu.memory_space<vmem>>, %arg14: memref<1x1x128xf32, #tpu.memory_space<vmem>>) attributes {dimension_semantics = [#tpu.dimension_semantics<parallel>, #tpu.dimension_semantics<parallel>, #tpu.dimension_semantics<arbitrary>], iteration_bounds = array<i64: 2, 1, 1>, scalar_prefetch = 0 : i64, scratch_operands = 0 : i64, tpu.core_type = #tpu.core_type<tc>, window_params = [{transform_indices = @transform_0, window_bounds = array<i64: 1, 128, 3>}, {pipeline_mode = #tpu.pipeline_mode<synchronous>, transform_indices = @transform_1, window_bounds = array<i64: 3, 32>}, {pipeline_mode = #tpu.pipeline_mode<synchronous>, transform_indices = @transform_2, window_bounds = array<i64: 1, 32>}, {pipeline_mode = #tpu.pipeline_mode<synchronous>, transform_indices = @transform_3, window_bounds = array<i64: 1, 32>}, {pipeline_mode = #tpu.pipeline_mode<synchronous>, transform_indices = @transform_4, window_bounds = array<i64: 32, 32>}, {pipeline_mode = #tpu.pipeline_mode<synchronous>, transform_indices = @transform_5, window_bounds = array<i64: 1, 32>}, {pipeline_mode = #tpu.pipeline_mode<synchronous>, transform_indices = @transform_6, window_bounds = array<i64: 1, 32>}, {pipeline_mode = #tpu.pipeline_mode<synchronous>, transform_indices = @transform_7, window_bounds = array<i64: 32, 128>}, {transform_indices = @transform_8, window_bounds = array<i64: 1, 1, 128>}, {transform_indices = @transform_9, window_bounds = array<i64: 1, 1, 128>}, {transform_indices = @transform_10, window_bounds = array<i64: 1, 1, 128>}, {transform_indices = @transform_11, window_bounds = array<i64: 1, 1, 128>}]} {
    %c0 = arith.constant 0 : index
    %c0_0 = arith.constant 0 : index
    %c0_1 = arith.constant 0 : index
    %0 = vector.load %arg3[%c0, %c0_0, %c0_1] : memref<1x128x3xf32, #tpu.memory_space<vmem>>, vector<1x128x3xf32>
    %1 = vector.shape_cast %0 : vector<1x128x3xf32> to vector<128x3xf32>
    %c0_2 = arith.constant 0 : index
    %c0_3 = arith.constant 0 : index
    %2 = vector.load %arg4[%c0_2, %c0_3] : memref<3x32xf32, #tpu.memory_space<vmem>>, vector<3x32xf32>
    %3 = vector.extract_strided_slice %1 {offsets = [0, 0], sizes = [128, 1], strides = [1, 1]} : vector<128x3xf32> to vector<128x1xf32>
    %4 = vector.extract_strided_slice %2 {offsets = [0, 0], sizes = [1, 32], strides = [1, 1]} : vector<3x32xf32> to vector<1x32xf32>
    %5 = vector.broadcast %3 : vector<128x1xf32> to vector<128x32xf32>
    %6 = vector.broadcast %4 : vector<1x32xf32> to vector<128x32xf32>
    %7 = arith.mulf %5, %6 : vector<128x32xf32>
    %8 = vector.extract_strided_slice %1 {offsets = [0, 1], sizes = [128, 1], strides = [1, 1]} : vector<128x3xf32> to vector<128x1xf32>
    %9 = vector.extract_strided_slice %2 {offsets = [1, 0], sizes = [1, 32], strides = [1, 1]} : vector<3x32xf32> to vector<1x32xf32>
    %10 = vector.broadcast %8 : vector<128x1xf32> to vector<128x32xf32>
    %11 = vector.broadcast %9 : vector<1x32xf32> to vector<128x32xf32>
    %12 = arith.mulf %10, %11 : vector<128x32xf32>
    %13 = arith.addf %7, %12 : vector<128x32xf32>
    %14 = vector.extract_strided_slice %1 {offsets = [0, 2], sizes = [128, 1], strides = [1, 1]} : vector<128x3xf32> to vector<128x1xf32>
    %15 = vector.extract_strided_slice %2 {offsets = [2, 0], sizes = [1, 32], strides = [1, 1]} : vector<3x32xf32> to vector<1x32xf32>
    %16 = vector.broadcast %14 : vector<128x1xf32> to vector<128x32xf32>
    %17 = vector.broadcast %15 : vector<1x32xf32> to vector<128x32xf32>
    %18 = arith.mulf %16, %17 : vector<128x32xf32>
    %19 = arith.addf %13, %18 : vector<128x32xf32>
    %c0_4 = arith.constant 0 : index
    %c0_5 = arith.constant 0 : index
    %20 = vector.load %arg5[%c0_4, %c0_5] : memref<1x32xf32, #tpu.memory_space<vmem>>, vector<1x32xf32>
    %21 = vector.broadcast %20 : vector<1x32xf32> to vector<128x32xf32>
    %22 = arith.mulf %19, %21 : vector<128x32xf32>
    %c0_6 = arith.constant 0 : index
    %c0_7 = arith.constant 0 : index
    %23 = vector.load %arg6[%c0_6, %c0_7] : memref<1x32xf32, #tpu.memory_space<vmem>>, vector<1x32xf32>
    %24 = vector.broadcast %23 : vector<1x32xf32> to vector<128x32xf32>
    %25 = arith.addf %22, %24 : vector<128x32xf32>
    %cst = arith.constant 0.000000e+00 : f32
    %26 = vector.broadcast %cst : f32 to vector<128x32xf32>
    %27 = arith.maximumf %25, %26 : vector<128x32xf32>
    %28 = arith.truncf %27 : vector<128x32xf32> to vector<128x32xbf16>
    %c0_8 = arith.constant 0 : index
    %c0_9 = arith.constant 0 : index
    %29 = vector.load %arg7[%c0_8, %c0_9] : memref<32x32xbf16, #tpu.memory_space<vmem>>, vector<32x32xbf16>
    %cst_10 = arith.constant dense<0.000000e+00> : vector<128x32xf32>
    %30 = tpu.matmul %28, %29, %cst_10 {dimension_numbers = #tpu.dot_dimension_numbers<[1], [0], [0], [1], [0, 0, 1, 1], [], []>} : vector<128x32xbf16>, vector<32x32xbf16>, vector<128x32xf32> -> vector<128x32xf32>
    %c0_11 = arith.constant 0 : index
    %c0_12 = arith.constant 0 : index
    %31 = vector.load %arg8[%c0_11, %c0_12] : memref<1x32xf32, #tpu.memory_space<vmem>>, vector<1x32xf32>
    %32 = vector.broadcast %31 : vector<1x32xf32> to vector<128x32xf32>
    %33 = arith.mulf %30, %32 : vector<128x32xf32>
    %c0_13 = arith.constant 0 : index
    %c0_14 = arith.constant 0 : index
    %34 = vector.load %arg9[%c0_13, %c0_14] : memref<1x32xf32, #tpu.memory_space<vmem>>, vector<1x32xf32>
    %35 = vector.broadcast %34 : vector<1x32xf32> to vector<128x32xf32>
    %36 = arith.addf %33, %35 : vector<128x32xf32>
    %cst_15 = arith.constant 0.000000e+00 : f32
    %37 = vector.broadcast %cst_15 : f32 to vector<128x32xf32>
    %38 = arith.maximumf %36, %37 : vector<128x32xf32>
    %39 = arith.truncf %38 : vector<128x32xf32> to vector<128x32xbf16>
    %c0_16 = arith.constant 0 : index
    %c0_17 = arith.constant 0 : index
    %40 = vector.load %arg10[%c0_16, %c0_17] : memref<32x128xbf16, #tpu.memory_space<vmem>>, vector<32x128xbf16>
    %cst_18 = arith.constant dense<0.000000e+00> : vector<128x128xf32>
    %41 = tpu.matmul %39, %40, %cst_18 {dimension_numbers = #tpu.dot_dimension_numbers<[1], [0], [0], [1], [0, 0, 1, 1], [], []>} : vector<128x32xbf16>, vector<32x128xbf16>, vector<128x128xf32> -> vector<128x128xf32>
    %c0_i32 = arith.constant 0 : i32
    %42 = arith.cmpi eq, %arg2, %c0_i32 : i32
    %43 = arith.extui %42 : i1 to i32
    %c0_i32_19 = arith.constant 0 : i32
    %44 = arith.cmpi ne, %43, %c0_i32_19 : i32
    scf.if %44 {
      %cst_57 = arith.constant 0.000000e+00 : f32
      %92 = vector.broadcast %cst_57 : f32 to vector<1x1x128xf32>
      %c0_58 = arith.constant 0 : index
      %c0_59 = arith.constant 0 : index
      %c0_60 = arith.constant 0 : index
      %93 = vector.load %arg11[%c0_58, %c0_59, %c0_60] : memref<1x1x128xf32, #tpu.memory_space<vmem>>, vector<1x1x128xf32>
      tpu.vector_store %arg11[%c0_58, %c0_59, %c0_60], %92 {strides = array<i32>} : memref<1x1x128xf32, #tpu.memory_space<vmem>>, vector<1x1x128xf32>,
      %cst_61 = arith.constant 0.000000e+00 : f32
      %94 = vector.broadcast %cst_61 : f32 to vector<1x1x128xf32>
      %c0_62 = arith.constant 0 : index
      %c0_63 = arith.constant 0 : index
      %c0_64 = arith.constant 0 : index
      %95 = vector.load %arg12[%c0_62, %c0_63, %c0_64] : memref<1x1x128xf32, #tpu.memory_space<vmem>>, vector<1x1x128xf32>
      tpu.vector_store %arg12[%c0_62, %c0_63, %c0_64], %94 {strides = array<i32>} : memref<1x1x128xf32, #tpu.memory_space<vmem>>, vector<1x1x128xf32>,
    } else {
    }
    %cst_20 = arith.constant dense<0.000000e+00> : vector<128xf32>
    %45 = vector.multi_reduction <add>, %41, %cst_20 [0] : vector<128x128xf32> to vector<128xf32>
    %46 = vector.shape_cast %45 : vector<128xf32> to vector<1x128xf32>
    %cst_21 = arith.constant 1.280000e+02 : f32
    %47 = vector.broadcast %cst_21 : f32 to vector<1x128xf32>
    %48 = arith.divf %46, %47 : vector<1x128xf32>
    %49 = vector.broadcast %48 : vector<1x128xf32> to vector<128x128xf32>
    %50 = arith.subf %41, %49 : vector<128x128xf32>
    %51 = arith.mulf %50, %50 : vector<128x128xf32>
    %cst_22 = arith.constant dense<0.000000e+00> : vector<128xf32>
    %52 = vector.multi_reduction <add>, %51, %cst_22 [0] : vector<128x128xf32> to vector<128xf32>
    %53 = vector.shape_cast %52 : vector<128xf32> to vector<1x128xf32>
    %c128_i32 = arith.constant 128 : i32
    %54 = arith.muli %arg2, %c128_i32 : i32
    %55 = arith.sitofp %54 : i32 to f32
    %cst_23 = arith.constant 1.280000e+02 : f32
    %56 = arith.addf %55, %cst_23 : f32
    %c0_24 = arith.constant 0 : index
    %c0_25 = arith.constant 0 : index
    %c0_26 = arith.constant 0 : index
    %57 = vector.load %arg11[%c0_24, %c0_25, %c0_26] : memref<1x1x128xf32, #tpu.memory_space<vmem>>, vector<1x1x128xf32>
    %58 = vector.shape_cast %57 : vector<1x1x128xf32> to vector<1x128xf32>
    %59 = arith.subf %48, %58 : vector<1x128xf32>
    %c0_27 = arith.constant 0 : index
    %c0_28 = arith.constant 0 : index
    %c0_29 = arith.constant 0 : index
    %60 = vector.load %arg11[%c0_27, %c0_28, %c0_29] : memref<1x1x128xf32, #tpu.memory_space<vmem>>, vector<1x1x128xf32>
    %cst_30 = arith.constant 1.280000e+02 : f32
    %61 = arith.divf %cst_30, %56 : f32
    %62 = vector.broadcast %61 : f32 to vector<1x128xf32>
    %63 = arith.mulf %59, %62 : vector<1x128xf32>
    %64 = vector.shape_cast %63 : vector<1x128xf32> to vector<1x1x128xf32>
    %65 = arith.addf %60, %64 : vector<1x1x128xf32>
    %c0_31 = arith.constant 0 : index
    %c0_32 = arith.constant 0 : index
    %c0_33 = arith.constant 0 : index
    %66 = vector.load %arg11[%c0_31, %c0_32, %c0_33] : memref<1x1x128xf32, #tpu.memory_space<vmem>>, vector<1x1x128xf32>
    tpu.vector_store %arg11[%c0_31, %c0_32, %c0_33], %65 {strides = array<i32>} : memref<1x1x128xf32, #tpu.memory_space<vmem>>, vector<1x1x128xf32>,
    %c0_34 = arith.constant 0 : index
    %c0_35 = arith.constant 0 : index
    %c0_36 = arith.constant 0 : index
    %67 = vector.load %arg12[%c0_34, %c0_35, %c0_36] : memref<1x1x128xf32, #tpu.memory_space<vmem>>, vector<1x1x128xf32>
    %68 = arith.mulf %59, %59 : vector<1x128xf32>
    %cst_37 = arith.constant 1.280000e+02 : f32
    %69 = arith.divf %cst_37, %56 : f32
    %70 = arith.mulf %55, %69 : f32
    %71 = vector.broadcast %70 : f32 to vector<1x128xf32>
    %72 = arith.mulf %68, %71 : vector<1x128xf32>
    %73 = arith.addf %53, %72 : vector<1x128xf32>
    %74 = vector.shape_cast %73 : vector<1x128xf32> to vector<1x1x128xf32>
    %75 = arith.addf %67, %74 : vector<1x1x128xf32>
    %c0_38 = arith.constant 0 : index
    %c0_39 = arith.constant 0 : index
    %c0_40 = arith.constant 0 : index
    %76 = vector.load %arg12[%c0_38, %c0_39, %c0_40] : memref<1x1x128xf32, #tpu.memory_space<vmem>>, vector<1x1x128xf32>
    tpu.vector_store %arg12[%c0_38, %c0_39, %c0_40], %75 {strides = array<i32>} : memref<1x1x128xf32, #tpu.memory_space<vmem>>, vector<1x1x128xf32>,
    %c0_i32_41 = arith.constant 0 : i32
    %77 = arith.cmpi eq, %arg2, %c0_i32_41 : i32
    %78 = arith.extui %77 : i1 to i32
    %c0_i32_42 = arith.constant 0 : i32
    %79 = arith.cmpi ne, %78, %c0_i32_42 : i32
    scf.if %79 {
      %cst_57 = arith.constant 0xFF800000 : f32
      %92 = vector.broadcast %cst_57 : f32 to vector<1x1x128xf32>
      %c0_58 = arith.constant 0 : index
      %c0_59 = arith.constant 0 : index
      %c0_60 = arith.constant 0 : index
      %93 = vector.load %arg13[%c0_58, %c0_59, %c0_60] : memref<1x1x128xf32, #tpu.memory_space<vmem>>, vector<1x1x128xf32>
      tpu.vector_store %arg13[%c0_58, %c0_59, %c0_60], %92 {strides = array<i32>} : memref<1x1x128xf32, #tpu.memory_space<vmem>>, vector<1x1x128xf32>,
      %cst_61 = arith.constant 0x7F800000 : f32
      %94 = vector.broadcast %cst_61 : f32 to vector<1x1x128xf32>
      %c0_62 = arith.constant 0 : index
      %c0_63 = arith.constant 0 : index
      %c0_64 = arith.constant 0 : index
      %95 = vector.load %arg14[%c0_62, %c0_63, %c0_64] : memref<1x1x128xf32, #tpu.memory_space<vmem>>, vector<1x1x128xf32>
      tpu.vector_store %arg14[%c0_62, %c0_63, %c0_64], %94 {strides = array<i32>} : memref<1x1x128xf32, #tpu.memory_space<vmem>>, vector<1x1x128xf32>,
    } else {
    }
    %c0_43 = arith.constant 0 : index
    %c0_44 = arith.constant 0 : index
    %c0_45 = arith.constant 0 : index
    %80 = vector.load %arg13[%c0_43, %c0_44, %c0_45] : memref<1x1x128xf32, #tpu.memory_space<vmem>>, vector<1x1x128xf32>
    %cst_46 = arith.constant dense<0xFF800000> : vector<128xf32>
    %81 = vector.multi_reduction <maximumf>, %41, %cst_46 [0] : vector<128x128xf32> to vector<128xf32>
    %82 = vector.shape_cast %81 : vector<128xf32> to vector<1x128xf32>
    %83 = vector.shape_cast %82 : vector<1x128xf32> to vector<1x1x128xf32>
    %84 = arith.maximumf %80, %83 : vector<1x1x128xf32>
    %c0_47 = arith.constant 0 : index
    %c0_48 = arith.constant 0 : index
    %c0_49 = arith.constant 0 : index
    %85 = vector.load %arg13[%c0_47, %c0_48, %c0_49] : memref<1x1x128xf32, #tpu.memory_space<vmem>>, vector<1x1x128xf32>
    tpu.vector_store %arg13[%c0_47, %c0_48, %c0_49], %84 {strides = array<i32>} : memref<1x1x128xf32, #tpu.memory_space<vmem>>, vector<1x1x128xf32>,
    %c0_50 = arith.constant 0 : index
    %c0_51 = arith.constant 0 : index
    %c0_52 = arith.constant 0 : index
    %86 = vector.load %arg14[%c0_50, %c0_51, %c0_52] : memref<1x1x128xf32, #tpu.memory_space<vmem>>, vector<1x1x128xf32>
    %cst_53 = arith.constant dense<0x7F800000> : vector<128xf32>
    %87 = vector.multi_reduction <minimumf>, %41, %cst_53 [0] : vector<128x128xf32> to vector<128xf32>
    %88 = vector.shape_cast %87 : vector<128xf32> to vector<1x128xf32>
    %89 = vector.shape_cast %88 : vector<1x128xf32> to vector<1x1x128xf32>
    %90 = arith.minimumf %86, %89 : vector<1x1x128xf32>
    %c0_54 = arith.constant 0 : index
    %c0_55 = arith.constant 0 : index
    %c0_56 = arith.constant 0 : index
    %91 = vector.load %arg14[%c0_54, %c0_55, %c0_56] : memref<1x1x128xf32, #tpu.memory_space<vmem>>, vector<1x1x128xf32>
    tpu.vector_store %arg14[%c0_54, %c0_55, %c0_56], %90 {strides = array<i32>} : memref<1x1x128xf32, #tpu.memory_space<vmem>>, vector<1x1x128xf32>,
    return
  }
  func.func @transform_0(%arg0: i32, %arg1: i32, %arg2: i32) -> (i32, i32, i32) {
    %c1_i32 = arith.constant 1 : i32
    %0 = arith.muli %arg1, %c1_i32 : i32
    %1 = arith.addi %0, %arg2 : i32
    %c0_i32 = arith.constant 0 : i32
    %c0_i32_0 = arith.constant 0 : i32
    return %arg0, %1, %c0_i32 : i32, i32, i32
  }
  func.func @transform_1(%arg0: i32, %arg1: i32, %arg2: i32) -> (i32, i32) {
    %c0_i32 = arith.constant 0 : i32
    %c0_i32_0 = arith.constant 0 : i32
    %c0_i32_1 = arith.constant 0 : i32
    return %c0_i32, %c0_i32_0 : i32, i32
  }
  func.func @transform_2(%arg0: i32, %arg1: i32, %arg2: i32) -> (i32, i32) {
    %c0_i32 = arith.constant 0 : i32
    %c0_i32_0 = arith.constant 0 : i32
    %c0_i32_1 = arith.constant 0 : i32
    return %c0_i32, %c0_i32_0 : i32, i32
  }
  func.func @transform_3(%arg0: i32, %arg1: i32, %arg2: i32) -> (i32, i32) {
    %c0_i32 = arith.constant 0 : i32
    %c0_i32_0 = arith.constant 0 : i32
    %c0_i32_1 = arith.constant 0 : i32
    return %c0_i32, %c0_i32_0 : i32, i32
  }
  func.func @transform_4(%arg0: i32, %arg1: i32, %arg2: i32) -> (i32, i32) {
    %c0_i32 = arith.constant 0 : i32
    %c0_i32_0 = arith.constant 0 : i32
    %c0_i32_1 = arith.constant 0 : i32
    return %c0_i32, %c0_i32_0 : i32, i32
  }
  func.func @transform_5(%arg0: i32, %arg1: i32, %arg2: i32) -> (i32, i32) {
    %c0_i32 = arith.constant 0 : i32
    %c0_i32_0 = arith.constant 0 : i32
    %c0_i32_1 = arith.constant 0 : i32
    return %c0_i32, %c0_i32_0 : i32, i32
  }
  func.func @transform_6(%arg0: i32, %arg1: i32, %arg2: i32) -> (i32, i32) {
    %c0_i32 = arith.constant 0 : i32
    %c0_i32_0 = arith.constant 0 : i32
    %c0_i32_1 = arith.constant 0 : i32
    return %c0_i32, %c0_i32_0 : i32, i32
  }
  func.func @transform_7(%arg0: i32, %arg1: i32, %arg2: i32) -> (i32, i32) {
    %c0_i32 = arith.constant 0 : i32
    %c0_i32_0 = arith.constant 0 : i32
    %c0_i32_1 = arith.constant 0 : i32
    return %c0_i32, %c0_i32_0 : i32, i32
  }
  func.func @transform_8(%arg0: i32, %arg1: i32, %arg2: i32) -> (i32, i32, i32) {
    %c1_i32 = arith.constant 1 : i32
    %0 = arith.muli %arg0, %c1_i32 : i32
    %1 = arith.addi %0, %arg1 : i32
    %c0_i32 = arith.constant 0 : i32
    %c0_i32_0 = arith.constant 0 : i32
    %c0_i32_1 = arith.constant 0 : i32
    return %1, %c0_i32, %c0_i32_0 : i32, i32, i32
  }
  func.func @transform_9(%arg0: i32, %arg1: i32, %arg2: i32) -> (i32, i32, i32) {
    %c1_i32 = arith.constant 1 : i32
    %0 = arith.muli %arg0, %c1_i32 : i32
    %1 = arith.addi %0, %arg1 : i32
    %c0_i32 = arith.constant 0 : i32
    %c0_i32_0 = arith.constant 0 : i32
    %c0_i32_1 = arith.constant 0 : i32
    return %1, %c0_i32, %c0_i32_0 : i32, i32, i32
  }
  func.func @transform_10(%arg0: i32, %arg1: i32, %arg2: i32) -> (i32, i32, i32) {
    %c1_i32 = arith.constant 1 : i32
    %0 = arith.muli %arg0, %c1_i32 : i32
    %1 = arith.addi %0, %arg1 : i32
    %c0_i32 = arith.constant 0 : i32
    %c0_i32_0 = arith.constant 0 : i32
    %c0_i32_1 = arith.constant 0 : i32
    return %1, %c0_i32, %c0_i32_0 : i32, i32, i32
  }
  func.func @transform_11(%arg0: i32, %arg1: i32, %arg2: i32) -> (i32, i32, i32) {
    %c1_i32 = arith.constant 1 : i32
    %0 = arith.muli %arg0, %c1_i32 : i32
    %1 = arith.addi %0, %arg1 : i32
    %c0_i32 = arith.constant 0 : i32
    %c0_i32_0 = arith.constant 0 : i32
    %c0_i32_1 = arith.constant 0 : i32
    return %1, %c0_i32, %c0_i32_0 : i32, i32, i32
  }
}

module attributes {stable_mosaic.version = 11 : i64} {
  func.func @_chain_kernel(%arg0: i32, %arg1: i32, %arg2: i32, %arg3: memref<1x128x3xf32, #tpu.memory_space<vmem>>, %arg4: memref<3x32xf32, #tpu.memory_space<vmem>>, %arg5: memref<1x1x32xf32, #tpu.memory_space<vmem>>, %arg6: memref<1x1x32xf32, #tpu.memory_space<vmem>>) attributes {dimension_semantics = [#tpu.dimension_semantics<parallel>, #tpu.dimension_semantics<parallel>, #tpu.dimension_semantics<arbitrary>], iteration_bounds = array<i64: 2, 1, 1>, scalar_prefetch = 0 : i64, scratch_operands = 0 : i64, tpu.core_type = #tpu.core_type<tc>, window_params = [{transform_indices = @transform_0, window_bounds = array<i64: 1, 128, 3>}, {pipeline_mode = #tpu.pipeline_mode<synchronous>, transform_indices = @transform_1, window_bounds = array<i64: 3, 32>}, {transform_indices = @transform_2, window_bounds = array<i64: 1, 1, 32>}, {transform_indices = @transform_3, window_bounds = array<i64: 1, 1, 32>}]} {
    %c0 = arith.constant 0 : index
    %c0_0 = arith.constant 0 : index
    %c0_1 = arith.constant 0 : index
    %0 = vector.load %arg3[%c0, %c0_0, %c0_1] : memref<1x128x3xf32, #tpu.memory_space<vmem>>, vector<1x128x3xf32>
    %1 = vector.shape_cast %0 : vector<1x128x3xf32> to vector<128x3xf32>
    %c0_2 = arith.constant 0 : index
    %c0_3 = arith.constant 0 : index
    %2 = vector.load %arg4[%c0_2, %c0_3] : memref<3x32xf32, #tpu.memory_space<vmem>>, vector<3x32xf32>
    %3 = vector.extract_strided_slice %1 {offsets = [0, 0], sizes = [128, 1], strides = [1, 1]} : vector<128x3xf32> to vector<128x1xf32>
    %4 = vector.extract_strided_slice %2 {offsets = [0, 0], sizes = [1, 32], strides = [1, 1]} : vector<3x32xf32> to vector<1x32xf32>
    %5 = vector.broadcast %3 : vector<128x1xf32> to vector<128x32xf32>
    %6 = vector.broadcast %4 : vector<1x32xf32> to vector<128x32xf32>
    %7 = arith.mulf %5, %6 : vector<128x32xf32>
    %8 = vector.extract_strided_slice %1 {offsets = [0, 1], sizes = [128, 1], strides = [1, 1]} : vector<128x3xf32> to vector<128x1xf32>
    %9 = vector.extract_strided_slice %2 {offsets = [1, 0], sizes = [1, 32], strides = [1, 1]} : vector<3x32xf32> to vector<1x32xf32>
    %10 = vector.broadcast %8 : vector<128x1xf32> to vector<128x32xf32>
    %11 = vector.broadcast %9 : vector<1x32xf32> to vector<128x32xf32>
    %12 = arith.mulf %10, %11 : vector<128x32xf32>
    %13 = arith.addf %7, %12 : vector<128x32xf32>
    %14 = vector.extract_strided_slice %1 {offsets = [0, 2], sizes = [128, 1], strides = [1, 1]} : vector<128x3xf32> to vector<128x1xf32>
    %15 = vector.extract_strided_slice %2 {offsets = [2, 0], sizes = [1, 32], strides = [1, 1]} : vector<3x32xf32> to vector<1x32xf32>
    %16 = vector.broadcast %14 : vector<128x1xf32> to vector<128x32xf32>
    %17 = vector.broadcast %15 : vector<1x32xf32> to vector<128x32xf32>
    %18 = arith.mulf %16, %17 : vector<128x32xf32>
    %19 = arith.addf %13, %18 : vector<128x32xf32>
    %c0_i32 = arith.constant 0 : i32
    %20 = arith.cmpi eq, %arg2, %c0_i32 : i32
    %21 = arith.extui %20 : i1 to i32
    %c0_i32_4 = arith.constant 0 : i32
    %22 = arith.cmpi ne, %21, %c0_i32_4 : i32
    scf.if %22 {
      %cst_25 = arith.constant 0.000000e+00 : f32
      %55 = vector.broadcast %cst_25 : f32 to vector<1x1x32xf32>
      %c0_26 = arith.constant 0 : index
      %c0_27 = arith.constant 0 : index
      %c0_28 = arith.constant 0 : index
      %56 = vector.load %arg5[%c0_26, %c0_27, %c0_28] : memref<1x1x32xf32, #tpu.memory_space<vmem>>, vector<1x1x32xf32>
      tpu.vector_store %arg5[%c0_26, %c0_27, %c0_28], %55 {strides = array<i32>} : memref<1x1x32xf32, #tpu.memory_space<vmem>>, vector<1x1x32xf32>,
      %cst_29 = arith.constant 0.000000e+00 : f32
      %57 = vector.broadcast %cst_29 : f32 to vector<1x1x32xf32>
      %c0_30 = arith.constant 0 : index
      %c0_31 = arith.constant 0 : index
      %c0_32 = arith.constant 0 : index
      %58 = vector.load %arg6[%c0_30, %c0_31, %c0_32] : memref<1x1x32xf32, #tpu.memory_space<vmem>>, vector<1x1x32xf32>
      tpu.vector_store %arg6[%c0_30, %c0_31, %c0_32], %57 {strides = array<i32>} : memref<1x1x32xf32, #tpu.memory_space<vmem>>, vector<1x1x32xf32>,
    } else {
    }
    %cst = arith.constant dense<0.000000e+00> : vector<32xf32>
    %23 = vector.multi_reduction <add>, %19, %cst [0] : vector<128x32xf32> to vector<32xf32>
    %24 = vector.shape_cast %23 : vector<32xf32> to vector<1x32xf32>
    %cst_5 = arith.constant 1.280000e+02 : f32
    %25 = vector.broadcast %cst_5 : f32 to vector<1x32xf32>
    %26 = arith.divf %24, %25 : vector<1x32xf32>
    %27 = vector.broadcast %26 : vector<1x32xf32> to vector<128x32xf32>
    %28 = arith.subf %19, %27 : vector<128x32xf32>
    %29 = arith.mulf %28, %28 : vector<128x32xf32>
    %cst_6 = arith.constant dense<0.000000e+00> : vector<32xf32>
    %30 = vector.multi_reduction <add>, %29, %cst_6 [0] : vector<128x32xf32> to vector<32xf32>
    %31 = vector.shape_cast %30 : vector<32xf32> to vector<1x32xf32>
    %c128_i32 = arith.constant 128 : i32
    %32 = arith.muli %arg2, %c128_i32 : i32
    %33 = arith.sitofp %32 : i32 to f32
    %cst_7 = arith.constant 1.280000e+02 : f32
    %34 = arith.addf %33, %cst_7 : f32
    %c0_8 = arith.constant 0 : index
    %c0_9 = arith.constant 0 : index
    %c0_10 = arith.constant 0 : index
    %35 = vector.load %arg5[%c0_8, %c0_9, %c0_10] : memref<1x1x32xf32, #tpu.memory_space<vmem>>, vector<1x1x32xf32>
    %36 = vector.shape_cast %35 : vector<1x1x32xf32> to vector<1x32xf32>
    %37 = arith.subf %26, %36 : vector<1x32xf32>
    %c0_11 = arith.constant 0 : index
    %c0_12 = arith.constant 0 : index
    %c0_13 = arith.constant 0 : index
    %38 = vector.load %arg5[%c0_11, %c0_12, %c0_13] : memref<1x1x32xf32, #tpu.memory_space<vmem>>, vector<1x1x32xf32>
    %cst_14 = arith.constant 1.280000e+02 : f32
    %39 = arith.divf %cst_14, %34 : f32
    %40 = vector.broadcast %39 : f32 to vector<1x32xf32>
    %41 = arith.mulf %37, %40 : vector<1x32xf32>
    %42 = vector.shape_cast %41 : vector<1x32xf32> to vector<1x1x32xf32>
    %43 = arith.addf %38, %42 : vector<1x1x32xf32>
    %c0_15 = arith.constant 0 : index
    %c0_16 = arith.constant 0 : index
    %c0_17 = arith.constant 0 : index
    %44 = vector.load %arg5[%c0_15, %c0_16, %c0_17] : memref<1x1x32xf32, #tpu.memory_space<vmem>>, vector<1x1x32xf32>
    tpu.vector_store %arg5[%c0_15, %c0_16, %c0_17], %43 {strides = array<i32>} : memref<1x1x32xf32, #tpu.memory_space<vmem>>, vector<1x1x32xf32>,
    %c0_18 = arith.constant 0 : index
    %c0_19 = arith.constant 0 : index
    %c0_20 = arith.constant 0 : index
    %45 = vector.load %arg6[%c0_18, %c0_19, %c0_20] : memref<1x1x32xf32, #tpu.memory_space<vmem>>, vector<1x1x32xf32>
    %46 = arith.mulf %37, %37 : vector<1x32xf32>
    %cst_21 = arith.constant 1.280000e+02 : f32
    %47 = arith.divf %cst_21, %34 : f32
    %48 = arith.mulf %33, %47 : f32
    %49 = vector.broadcast %48 : f32 to vector<1x32xf32>
    %50 = arith.mulf %46, %49 : vector<1x32xf32>
    %51 = arith.addf %31, %50 : vector<1x32xf32>
    %52 = vector.shape_cast %51 : vector<1x32xf32> to vector<1x1x32xf32>
    %53 = arith.addf %45, %52 : vector<1x1x32xf32>
    %c0_22 = arith.constant 0 : index
    %c0_23 = arith.constant 0 : index
    %c0_24 = arith.constant 0 : index
    %54 = vector.load %arg6[%c0_22, %c0_23, %c0_24] : memref<1x1x32xf32, #tpu.memory_space<vmem>>, vector<1x1x32xf32>
    tpu.vector_store %arg6[%c0_22, %c0_23, %c0_24], %53 {strides = array<i32>} : memref<1x1x32xf32, #tpu.memory_space<vmem>>, vector<1x1x32xf32>,
    return
  }
  func.func @transform_0(%arg0: i32, %arg1: i32, %arg2: i32) -> (i32, i32, i32) {
    %c1_i32 = arith.constant 1 : i32
    %0 = arith.muli %arg1, %c1_i32 : i32
    %1 = arith.addi %0, %arg2 : i32
    %c0_i32 = arith.constant 0 : i32
    %c0_i32_0 = arith.constant 0 : i32
    return %arg0, %1, %c0_i32 : i32, i32, i32
  }
  func.func @transform_1(%arg0: i32, %arg1: i32, %arg2: i32) -> (i32, i32) {
    %c0_i32 = arith.constant 0 : i32
    %c0_i32_0 = arith.constant 0 : i32
    %c0_i32_1 = arith.constant 0 : i32
    return %c0_i32, %c0_i32_0 : i32, i32
  }
  func.func @transform_2(%arg0: i32, %arg1: i32, %arg2: i32) -> (i32, i32, i32) {
    %c1_i32 = arith.constant 1 : i32
    %0 = arith.muli %arg0, %c1_i32 : i32
    %1 = arith.addi %0, %arg1 : i32
    %c0_i32 = arith.constant 0 : i32
    %c0_i32_0 = arith.constant 0 : i32
    %c0_i32_1 = arith.constant 0 : i32
    return %1, %c0_i32, %c0_i32_0 : i32, i32, i32
  }
  func.func @transform_3(%arg0: i32, %arg1: i32, %arg2: i32) -> (i32, i32, i32) {
    %c1_i32 = arith.constant 1 : i32
    %0 = arith.muli %arg0, %c1_i32 : i32
    %1 = arith.addi %0, %arg1 : i32
    %c0_i32 = arith.constant 0 : i32
    %c0_i32_0 = arith.constant 0 : i32
    %c0_i32_1 = arith.constant 0 : i32
    return %1, %c0_i32, %c0_i32_0 : i32, i32, i32
  }
}

module attributes {stable_mosaic.version = 11 : i64} {
  func.func @_chain_kernel(%arg0: i32, %arg1: i32, %arg2: i32, %arg3: memref<1x128x3xf32, #tpu.memory_space<vmem>>, %arg4: memref<3x32xf32, #tpu.memory_space<vmem>>, %arg5: memref<1x32xf32, #tpu.memory_space<vmem>>, %arg6: memref<1x32xf32, #tpu.memory_space<vmem>>, %arg7: memref<32x128xbf16, #tpu.memory_space<vmem>>, %arg8: memref<1x1x128xf32, #tpu.memory_space<vmem>>, %arg9: memref<1x1x128xf32, #tpu.memory_space<vmem>>, %arg10: memref<1x1x128xf32, #tpu.memory_space<vmem>>) attributes {dimension_semantics = [#tpu.dimension_semantics<parallel>, #tpu.dimension_semantics<parallel>, #tpu.dimension_semantics<arbitrary>], iteration_bounds = array<i64: 2, 1, 1>, scalar_prefetch = 0 : i64, scratch_operands = 0 : i64, tpu.core_type = #tpu.core_type<tc>, window_params = [{transform_indices = @transform_0, window_bounds = array<i64: 1, 128, 3>}, {pipeline_mode = #tpu.pipeline_mode<synchronous>, transform_indices = @transform_1, window_bounds = array<i64: 3, 32>}, {pipeline_mode = #tpu.pipeline_mode<synchronous>, transform_indices = @transform_2, window_bounds = array<i64: 1, 32>}, {pipeline_mode = #tpu.pipeline_mode<synchronous>, transform_indices = @transform_3, window_bounds = array<i64: 1, 32>}, {pipeline_mode = #tpu.pipeline_mode<synchronous>, transform_indices = @transform_4, window_bounds = array<i64: 32, 128>}, {transform_indices = @transform_5, window_bounds = array<i64: 1, 1, 128>}, {transform_indices = @transform_6, window_bounds = array<i64: 1, 1, 128>}, {transform_indices = @transform_7, window_bounds = array<i64: 1, 1, 128>}]} {
    %c0 = arith.constant 0 : index
    %c0_0 = arith.constant 0 : index
    %c0_1 = arith.constant 0 : index
    %0 = vector.load %arg3[%c0, %c0_0, %c0_1] : memref<1x128x3xf32, #tpu.memory_space<vmem>>, vector<1x128x3xf32>
    %1 = vector.shape_cast %0 : vector<1x128x3xf32> to vector<128x3xf32>
    %c0_2 = arith.constant 0 : index
    %c0_3 = arith.constant 0 : index
    %2 = vector.load %arg4[%c0_2, %c0_3] : memref<3x32xf32, #tpu.memory_space<vmem>>, vector<3x32xf32>
    %3 = vector.extract_strided_slice %1 {offsets = [0, 0], sizes = [128, 1], strides = [1, 1]} : vector<128x3xf32> to vector<128x1xf32>
    %4 = vector.extract_strided_slice %2 {offsets = [0, 0], sizes = [1, 32], strides = [1, 1]} : vector<3x32xf32> to vector<1x32xf32>
    %5 = vector.broadcast %3 : vector<128x1xf32> to vector<128x32xf32>
    %6 = vector.broadcast %4 : vector<1x32xf32> to vector<128x32xf32>
    %7 = arith.mulf %5, %6 : vector<128x32xf32>
    %8 = vector.extract_strided_slice %1 {offsets = [0, 1], sizes = [128, 1], strides = [1, 1]} : vector<128x3xf32> to vector<128x1xf32>
    %9 = vector.extract_strided_slice %2 {offsets = [1, 0], sizes = [1, 32], strides = [1, 1]} : vector<3x32xf32> to vector<1x32xf32>
    %10 = vector.broadcast %8 : vector<128x1xf32> to vector<128x32xf32>
    %11 = vector.broadcast %9 : vector<1x32xf32> to vector<128x32xf32>
    %12 = arith.mulf %10, %11 : vector<128x32xf32>
    %13 = arith.addf %7, %12 : vector<128x32xf32>
    %14 = vector.extract_strided_slice %1 {offsets = [0, 2], sizes = [128, 1], strides = [1, 1]} : vector<128x3xf32> to vector<128x1xf32>
    %15 = vector.extract_strided_slice %2 {offsets = [2, 0], sizes = [1, 32], strides = [1, 1]} : vector<3x32xf32> to vector<1x32xf32>
    %16 = vector.broadcast %14 : vector<128x1xf32> to vector<128x32xf32>
    %17 = vector.broadcast %15 : vector<1x32xf32> to vector<128x32xf32>
    %18 = arith.mulf %16, %17 : vector<128x32xf32>
    %19 = arith.addf %13, %18 : vector<128x32xf32>
    %c0_4 = arith.constant 0 : index
    %c0_5 = arith.constant 0 : index
    %20 = vector.load %arg5[%c0_4, %c0_5] : memref<1x32xf32, #tpu.memory_space<vmem>>, vector<1x32xf32>
    %21 = vector.broadcast %20 : vector<1x32xf32> to vector<128x32xf32>
    %22 = arith.mulf %19, %21 : vector<128x32xf32>
    %c0_6 = arith.constant 0 : index
    %c0_7 = arith.constant 0 : index
    %23 = vector.load %arg6[%c0_6, %c0_7] : memref<1x32xf32, #tpu.memory_space<vmem>>, vector<1x32xf32>
    %24 = vector.broadcast %23 : vector<1x32xf32> to vector<128x32xf32>
    %25 = arith.addf %22, %24 : vector<128x32xf32>
    %cst = arith.constant 0.000000e+00 : f32
    %26 = vector.broadcast %cst : f32 to vector<128x32xf32>
    %27 = arith.maximumf %25, %26 : vector<128x32xf32>
    %28 = arith.truncf %27 : vector<128x32xf32> to vector<128x32xbf16>
    %c0_8 = arith.constant 0 : index
    %c0_9 = arith.constant 0 : index
    %29 = vector.load %arg7[%c0_8, %c0_9] : memref<32x128xbf16, #tpu.memory_space<vmem>>, vector<32x128xbf16>
    %cst_10 = arith.constant dense<0.000000e+00> : vector<128x128xf32>
    %30 = tpu.matmul %28, %29, %cst_10 {dimension_numbers = #tpu.dot_dimension_numbers<[1], [0], [0], [1], [0, 0, 1, 1], [], []>} : vector<128x32xbf16>, vector<32x128xbf16>, vector<128x128xf32> -> vector<128x128xf32>
    %c0_11 = arith.constant 0 : index
    %c0_12 = arith.constant 0 : index
    %c0_13 = arith.constant 0 : index
    %31 = vector.load %arg8[%c0_11, %c0_12, %c0_13] : memref<1x1x128xf32, #tpu.memory_space<vmem>>, vector<1x1x128xf32>
    %32 = vector.shape_cast %31 : vector<1x1x128xf32> to vector<1x128xf32>
    %33 = vector.broadcast %32 : vector<1x128xf32> to vector<128x128xf32>
    %34 = arith.addf %30, %33 : vector<128x128xf32>
    %c0_i32 = arith.constant 0 : i32
    %35 = arith.cmpi eq, %arg2, %c0_i32 : i32
    %36 = arith.extui %35 : i1 to i32
    %c0_i32_14 = arith.constant 0 : i32
    %37 = arith.cmpi ne, %36, %c0_i32_14 : i32
    scf.if %37 {
      %cst_36 = arith.constant 0.000000e+00 : f32
      %70 = vector.broadcast %cst_36 : f32 to vector<1x1x128xf32>
      %c0_37 = arith.constant 0 : index
      %c0_38 = arith.constant 0 : index
      %c0_39 = arith.constant 0 : index
      %71 = vector.load %arg9[%c0_37, %c0_38, %c0_39] : memref<1x1x128xf32, #tpu.memory_space<vmem>>, vector<1x1x128xf32>
      tpu.vector_store %arg9[%c0_37, %c0_38, %c0_39], %70 {strides = array<i32>} : memref<1x1x128xf32, #tpu.memory_space<vmem>>, vector<1x1x128xf32>,
      %cst_40 = arith.constant 0.000000e+00 : f32
      %72 = vector.broadcast %cst_40 : f32 to vector<1x1x128xf32>
      %c0_41 = arith.constant 0 : index
      %c0_42 = arith.constant 0 : index
      %c0_43 = arith.constant 0 : index
      %73 = vector.load %arg10[%c0_41, %c0_42, %c0_43] : memref<1x1x128xf32, #tpu.memory_space<vmem>>, vector<1x1x128xf32>
      tpu.vector_store %arg10[%c0_41, %c0_42, %c0_43], %72 {strides = array<i32>} : memref<1x1x128xf32, #tpu.memory_space<vmem>>, vector<1x1x128xf32>,
    } else {
    }
    %cst_15 = arith.constant dense<0.000000e+00> : vector<128xf32>
    %38 = vector.multi_reduction <add>, %34, %cst_15 [0] : vector<128x128xf32> to vector<128xf32>
    %39 = vector.shape_cast %38 : vector<128xf32> to vector<1x128xf32>
    %cst_16 = arith.constant 1.280000e+02 : f32
    %40 = vector.broadcast %cst_16 : f32 to vector<1x128xf32>
    %41 = arith.divf %39, %40 : vector<1x128xf32>
    %42 = vector.broadcast %41 : vector<1x128xf32> to vector<128x128xf32>
    %43 = arith.subf %34, %42 : vector<128x128xf32>
    %44 = arith.mulf %43, %43 : vector<128x128xf32>
    %cst_17 = arith.constant dense<0.000000e+00> : vector<128xf32>
    %45 = vector.multi_reduction <add>, %44, %cst_17 [0] : vector<128x128xf32> to vector<128xf32>
    %46 = vector.shape_cast %45 : vector<128xf32> to vector<1x128xf32>
    %c128_i32 = arith.constant 128 : i32
    %47 = arith.muli %arg2, %c128_i32 : i32
    %48 = arith.sitofp %47 : i32 to f32
    %cst_18 = arith.constant 1.280000e+02 : f32
    %49 = arith.addf %48, %cst_18 : f32
    %c0_19 = arith.constant 0 : index
    %c0_20 = arith.constant 0 : index
    %c0_21 = arith.constant 0 : index
    %50 = vector.load %arg9[%c0_19, %c0_20, %c0_21] : memref<1x1x128xf32, #tpu.memory_space<vmem>>, vector<1x1x128xf32>
    %51 = vector.shape_cast %50 : vector<1x1x128xf32> to vector<1x128xf32>
    %52 = arith.subf %41, %51 : vector<1x128xf32>
    %c0_22 = arith.constant 0 : index
    %c0_23 = arith.constant 0 : index
    %c0_24 = arith.constant 0 : index
    %53 = vector.load %arg9[%c0_22, %c0_23, %c0_24] : memref<1x1x128xf32, #tpu.memory_space<vmem>>, vector<1x1x128xf32>
    %cst_25 = arith.constant 1.280000e+02 : f32
    %54 = arith.divf %cst_25, %49 : f32
    %55 = vector.broadcast %54 : f32 to vector<1x128xf32>
    %56 = arith.mulf %52, %55 : vector<1x128xf32>
    %57 = vector.shape_cast %56 : vector<1x128xf32> to vector<1x1x128xf32>
    %58 = arith.addf %53, %57 : vector<1x1x128xf32>
    %c0_26 = arith.constant 0 : index
    %c0_27 = arith.constant 0 : index
    %c0_28 = arith.constant 0 : index
    %59 = vector.load %arg9[%c0_26, %c0_27, %c0_28] : memref<1x1x128xf32, #tpu.memory_space<vmem>>, vector<1x1x128xf32>
    tpu.vector_store %arg9[%c0_26, %c0_27, %c0_28], %58 {strides = array<i32>} : memref<1x1x128xf32, #tpu.memory_space<vmem>>, vector<1x1x128xf32>,
    %c0_29 = arith.constant 0 : index
    %c0_30 = arith.constant 0 : index
    %c0_31 = arith.constant 0 : index
    %60 = vector.load %arg10[%c0_29, %c0_30, %c0_31] : memref<1x1x128xf32, #tpu.memory_space<vmem>>, vector<1x1x128xf32>
    %61 = arith.mulf %52, %52 : vector<1x128xf32>
    %cst_32 = arith.constant 1.280000e+02 : f32
    %62 = arith.divf %cst_32, %49 : f32
    %63 = arith.mulf %48, %62 : f32
    %64 = vector.broadcast %63 : f32 to vector<1x128xf32>
    %65 = arith.mulf %61, %64 : vector<1x128xf32>
    %66 = arith.addf %46, %65 : vector<1x128xf32>
    %67 = vector.shape_cast %66 : vector<1x128xf32> to vector<1x1x128xf32>
    %68 = arith.addf %60, %67 : vector<1x1x128xf32>
    %c0_33 = arith.constant 0 : index
    %c0_34 = arith.constant 0 : index
    %c0_35 = arith.constant 0 : index
    %69 = vector.load %arg10[%c0_33, %c0_34, %c0_35] : memref<1x1x128xf32, #tpu.memory_space<vmem>>, vector<1x1x128xf32>
    tpu.vector_store %arg10[%c0_33, %c0_34, %c0_35], %68 {strides = array<i32>} : memref<1x1x128xf32, #tpu.memory_space<vmem>>, vector<1x1x128xf32>,
    return
  }
  func.func @transform_0(%arg0: i32, %arg1: i32, %arg2: i32) -> (i32, i32, i32) {
    %c1_i32 = arith.constant 1 : i32
    %0 = arith.muli %arg1, %c1_i32 : i32
    %1 = arith.addi %0, %arg2 : i32
    %c0_i32 = arith.constant 0 : i32
    %c0_i32_0 = arith.constant 0 : i32
    return %arg0, %1, %c0_i32 : i32, i32, i32
  }
  func.func @transform_1(%arg0: i32, %arg1: i32, %arg2: i32) -> (i32, i32) {
    %c0_i32 = arith.constant 0 : i32
    %c0_i32_0 = arith.constant 0 : i32
    %c0_i32_1 = arith.constant 0 : i32
    return %c0_i32, %c0_i32_0 : i32, i32
  }
  func.func @transform_2(%arg0: i32, %arg1: i32, %arg2: i32) -> (i32, i32) {
    %c0_i32 = arith.constant 0 : i32
    %c0_i32_0 = arith.constant 0 : i32
    %c0_i32_1 = arith.constant 0 : i32
    return %c0_i32, %c0_i32_0 : i32, i32
  }
  func.func @transform_3(%arg0: i32, %arg1: i32, %arg2: i32) -> (i32, i32) {
    %c0_i32 = arith.constant 0 : i32
    %c0_i32_0 = arith.constant 0 : i32
    %c0_i32_1 = arith.constant 0 : i32
    return %c0_i32, %c0_i32_0 : i32, i32
  }
  func.func @transform_4(%arg0: i32, %arg1: i32, %arg2: i32) -> (i32, i32) {
    %c0_i32 = arith.constant 0 : i32
    %c0_i32_0 = arith.constant 0 : i32
    %c0_i32_1 = arith.constant 0 : i32
    return %c0_i32, %c0_i32_0 : i32, i32
  }
  func.func @transform_5(%arg0: i32, %arg1: i32, %arg2: i32) -> (i32, i32, i32) {
    %c0_i32 = arith.constant 0 : i32
    %c0_i32_0 = arith.constant 0 : i32
    %c0_i32_1 = arith.constant 0 : i32
    return %arg0, %c0_i32, %c0_i32_0 : i32, i32, i32
  }
  func.func @transform_6(%arg0: i32, %arg1: i32, %arg2: i32) -> (i32, i32, i32) {
    %c1_i32 = arith.constant 1 : i32
    %0 = arith.muli %arg0, %c1_i32 : i32
    %1 = arith.addi %0, %arg1 : i32
    %c0_i32 = arith.constant 0 : i32
    %c0_i32_0 = arith.constant 0 : i32
    %c0_i32_1 = arith.constant 0 : i32
    return %1, %c0_i32, %c0_i32_0 : i32, i32, i32
  }
  func.func @transform_7(%arg0: i32, %arg1: i32, %arg2: i32) -> (i32, i32, i32) {
    %c1_i32 = arith.constant 1 : i32
    %0 = arith.muli %arg0, %c1_i32 : i32
    %1 = arith.addi %0, %arg1 : i32
    %c0_i32 = arith.constant 0 : i32
    %c0_i32_0 = arith.constant 0 : i32
    %c0_i32_1 = arith.constant 0 : i32
    return %1, %c0_i32, %c0_i32_0 : i32, i32, i32
  }
}

module attributes {stable_mosaic.version = 11 : i64} {
  func.func @_chain_kernel(%arg0: i32, %arg1: i32, %arg2: i32, %arg3: memref<1x128x3xf32, #tpu.memory_space<vmem>>, %arg4: memref<3x32xf32, #tpu.memory_space<vmem>>, %arg5: memref<1x32xf32, #tpu.memory_space<vmem>>, %arg6: memref<1x32xf32, #tpu.memory_space<vmem>>, %arg7: memref<32x128xbf16, #tpu.memory_space<vmem>>, %arg8: memref<1x1x128xf32, #tpu.memory_space<vmem>>, %arg9: memref<1x128xf32, #tpu.memory_space<vmem>>, %arg10: memref<1x128xf32, #tpu.memory_space<vmem>>, %arg11: memref<128x64xbf16, #tpu.memory_space<vmem>>, %arg12: memref<1x1x64xf32, #tpu.memory_space<vmem>>, %arg13: memref<1x1x64xf32, #tpu.memory_space<vmem>>) attributes {dimension_semantics = [#tpu.dimension_semantics<parallel>, #tpu.dimension_semantics<parallel>, #tpu.dimension_semantics<arbitrary>], iteration_bounds = array<i64: 2, 1, 1>, scalar_prefetch = 0 : i64, scratch_operands = 0 : i64, tpu.core_type = #tpu.core_type<tc>, window_params = [{transform_indices = @transform_0, window_bounds = array<i64: 1, 128, 3>}, {pipeline_mode = #tpu.pipeline_mode<synchronous>, transform_indices = @transform_1, window_bounds = array<i64: 3, 32>}, {pipeline_mode = #tpu.pipeline_mode<synchronous>, transform_indices = @transform_2, window_bounds = array<i64: 1, 32>}, {pipeline_mode = #tpu.pipeline_mode<synchronous>, transform_indices = @transform_3, window_bounds = array<i64: 1, 32>}, {pipeline_mode = #tpu.pipeline_mode<synchronous>, transform_indices = @transform_4, window_bounds = array<i64: 32, 128>}, {transform_indices = @transform_5, window_bounds = array<i64: 1, 1, 128>}, {pipeline_mode = #tpu.pipeline_mode<synchronous>, transform_indices = @transform_6, window_bounds = array<i64: 1, 128>}, {pipeline_mode = #tpu.pipeline_mode<synchronous>, transform_indices = @transform_7, window_bounds = array<i64: 1, 128>}, {pipeline_mode = #tpu.pipeline_mode<synchronous>, transform_indices = @transform_8, window_bounds = array<i64: 128, 64>}, {transform_indices = @transform_9, window_bounds = array<i64: 1, 1, 64>}, {transform_indices = @transform_10, window_bounds = array<i64: 1, 1, 64>}]} {
    %c0 = arith.constant 0 : index
    %c0_0 = arith.constant 0 : index
    %c0_1 = arith.constant 0 : index
    %0 = vector.load %arg3[%c0, %c0_0, %c0_1] : memref<1x128x3xf32, #tpu.memory_space<vmem>>, vector<1x128x3xf32>
    %1 = vector.shape_cast %0 : vector<1x128x3xf32> to vector<128x3xf32>
    %c0_2 = arith.constant 0 : index
    %c0_3 = arith.constant 0 : index
    %2 = vector.load %arg4[%c0_2, %c0_3] : memref<3x32xf32, #tpu.memory_space<vmem>>, vector<3x32xf32>
    %3 = vector.extract_strided_slice %1 {offsets = [0, 0], sizes = [128, 1], strides = [1, 1]} : vector<128x3xf32> to vector<128x1xf32>
    %4 = vector.extract_strided_slice %2 {offsets = [0, 0], sizes = [1, 32], strides = [1, 1]} : vector<3x32xf32> to vector<1x32xf32>
    %5 = vector.broadcast %3 : vector<128x1xf32> to vector<128x32xf32>
    %6 = vector.broadcast %4 : vector<1x32xf32> to vector<128x32xf32>
    %7 = arith.mulf %5, %6 : vector<128x32xf32>
    %8 = vector.extract_strided_slice %1 {offsets = [0, 1], sizes = [128, 1], strides = [1, 1]} : vector<128x3xf32> to vector<128x1xf32>
    %9 = vector.extract_strided_slice %2 {offsets = [1, 0], sizes = [1, 32], strides = [1, 1]} : vector<3x32xf32> to vector<1x32xf32>
    %10 = vector.broadcast %8 : vector<128x1xf32> to vector<128x32xf32>
    %11 = vector.broadcast %9 : vector<1x32xf32> to vector<128x32xf32>
    %12 = arith.mulf %10, %11 : vector<128x32xf32>
    %13 = arith.addf %7, %12 : vector<128x32xf32>
    %14 = vector.extract_strided_slice %1 {offsets = [0, 2], sizes = [128, 1], strides = [1, 1]} : vector<128x3xf32> to vector<128x1xf32>
    %15 = vector.extract_strided_slice %2 {offsets = [2, 0], sizes = [1, 32], strides = [1, 1]} : vector<3x32xf32> to vector<1x32xf32>
    %16 = vector.broadcast %14 : vector<128x1xf32> to vector<128x32xf32>
    %17 = vector.broadcast %15 : vector<1x32xf32> to vector<128x32xf32>
    %18 = arith.mulf %16, %17 : vector<128x32xf32>
    %19 = arith.addf %13, %18 : vector<128x32xf32>
    %c0_4 = arith.constant 0 : index
    %c0_5 = arith.constant 0 : index
    %20 = vector.load %arg5[%c0_4, %c0_5] : memref<1x32xf32, #tpu.memory_space<vmem>>, vector<1x32xf32>
    %21 = vector.broadcast %20 : vector<1x32xf32> to vector<128x32xf32>
    %22 = arith.mulf %19, %21 : vector<128x32xf32>
    %c0_6 = arith.constant 0 : index
    %c0_7 = arith.constant 0 : index
    %23 = vector.load %arg6[%c0_6, %c0_7] : memref<1x32xf32, #tpu.memory_space<vmem>>, vector<1x32xf32>
    %24 = vector.broadcast %23 : vector<1x32xf32> to vector<128x32xf32>
    %25 = arith.addf %22, %24 : vector<128x32xf32>
    %cst = arith.constant 0.000000e+00 : f32
    %26 = vector.broadcast %cst : f32 to vector<128x32xf32>
    %27 = arith.maximumf %25, %26 : vector<128x32xf32>
    %28 = arith.truncf %27 : vector<128x32xf32> to vector<128x32xbf16>
    %c0_8 = arith.constant 0 : index
    %c0_9 = arith.constant 0 : index
    %29 = vector.load %arg7[%c0_8, %c0_9] : memref<32x128xbf16, #tpu.memory_space<vmem>>, vector<32x128xbf16>
    %cst_10 = arith.constant dense<0.000000e+00> : vector<128x128xf32>
    %30 = tpu.matmul %28, %29, %cst_10 {dimension_numbers = #tpu.dot_dimension_numbers<[1], [0], [0], [1], [0, 0, 1, 1], [], []>} : vector<128x32xbf16>, vector<32x128xbf16>, vector<128x128xf32> -> vector<128x128xf32>
    %c0_11 = arith.constant 0 : index
    %c0_12 = arith.constant 0 : index
    %c0_13 = arith.constant 0 : index
    %31 = vector.load %arg8[%c0_11, %c0_12, %c0_13] : memref<1x1x128xf32, #tpu.memory_space<vmem>>, vector<1x1x128xf32>
    %32 = vector.shape_cast %31 : vector<1x1x128xf32> to vector<1x128xf32>
    %33 = vector.broadcast %32 : vector<1x128xf32> to vector<128x128xf32>
    %34 = arith.addf %30, %33 : vector<128x128xf32>
    %c0_14 = arith.constant 0 : index
    %c0_15 = arith.constant 0 : index
    %35 = vector.load %arg9[%c0_14, %c0_15] : memref<1x128xf32, #tpu.memory_space<vmem>>, vector<1x128xf32>
    %36 = vector.broadcast %35 : vector<1x128xf32> to vector<128x128xf32>
    %37 = arith.mulf %34, %36 : vector<128x128xf32>
    %c0_16 = arith.constant 0 : index
    %c0_17 = arith.constant 0 : index
    %38 = vector.load %arg10[%c0_16, %c0_17] : memref<1x128xf32, #tpu.memory_space<vmem>>, vector<1x128xf32>
    %39 = vector.broadcast %38 : vector<1x128xf32> to vector<128x128xf32>
    %40 = arith.addf %37, %39 : vector<128x128xf32>
    %cst_18 = arith.constant 0.000000e+00 : f32
    %41 = vector.broadcast %cst_18 : f32 to vector<128x128xf32>
    %42 = arith.maximumf %40, %41 : vector<128x128xf32>
    %43 = arith.truncf %42 : vector<128x128xf32> to vector<128x128xbf16>
    %c0_19 = arith.constant 0 : index
    %c0_20 = arith.constant 0 : index
    %44 = vector.load %arg11[%c0_19, %c0_20] : memref<128x64xbf16, #tpu.memory_space<vmem>>, vector<128x64xbf16>
    %cst_21 = arith.constant dense<0.000000e+00> : vector<128x64xf32>
    %45 = tpu.matmul %43, %44, %cst_21 {dimension_numbers = #tpu.dot_dimension_numbers<[1], [0], [0], [1], [0, 0, 1, 1], [], []>} : vector<128x128xbf16>, vector<128x64xbf16>, vector<128x64xf32> -> vector<128x64xf32>
    %c0_i32 = arith.constant 0 : i32
    %46 = arith.cmpi eq, %arg2, %c0_i32 : i32
    %47 = arith.extui %46 : i1 to i32
    %c0_i32_22 = arith.constant 0 : i32
    %48 = arith.cmpi ne, %47, %c0_i32_22 : i32
    scf.if %48 {
      %cst_44 = arith.constant 0.000000e+00 : f32
      %81 = vector.broadcast %cst_44 : f32 to vector<1x1x64xf32>
      %c0_45 = arith.constant 0 : index
      %c0_46 = arith.constant 0 : index
      %c0_47 = arith.constant 0 : index
      %82 = vector.load %arg12[%c0_45, %c0_46, %c0_47] : memref<1x1x64xf32, #tpu.memory_space<vmem>>, vector<1x1x64xf32>
      tpu.vector_store %arg12[%c0_45, %c0_46, %c0_47], %81 {strides = array<i32>} : memref<1x1x64xf32, #tpu.memory_space<vmem>>, vector<1x1x64xf32>,
      %cst_48 = arith.constant 0.000000e+00 : f32
      %83 = vector.broadcast %cst_48 : f32 to vector<1x1x64xf32>
      %c0_49 = arith.constant 0 : index
      %c0_50 = arith.constant 0 : index
      %c0_51 = arith.constant 0 : index
      %84 = vector.load %arg13[%c0_49, %c0_50, %c0_51] : memref<1x1x64xf32, #tpu.memory_space<vmem>>, vector<1x1x64xf32>
      tpu.vector_store %arg13[%c0_49, %c0_50, %c0_51], %83 {strides = array<i32>} : memref<1x1x64xf32, #tpu.memory_space<vmem>>, vector<1x1x64xf32>,
    } else {
    }
    %cst_23 = arith.constant dense<0.000000e+00> : vector<64xf32>
    %49 = vector.multi_reduction <add>, %45, %cst_23 [0] : vector<128x64xf32> to vector<64xf32>
    %50 = vector.shape_cast %49 : vector<64xf32> to vector<1x64xf32>
    %cst_24 = arith.constant 1.280000e+02 : f32
    %51 = vector.broadcast %cst_24 : f32 to vector<1x64xf32>
    %52 = arith.divf %50, %51 : vector<1x64xf32>
    %53 = vector.broadcast %52 : vector<1x64xf32> to vector<128x64xf32>
    %54 = arith.subf %45, %53 : vector<128x64xf32>
    %55 = arith.mulf %54, %54 : vector<128x64xf32>
    %cst_25 = arith.constant dense<0.000000e+00> : vector<64xf32>
    %56 = vector.multi_reduction <add>, %55, %cst_25 [0] : vector<128x64xf32> to vector<64xf32>
    %57 = vector.shape_cast %56 : vector<64xf32> to vector<1x64xf32>
    %c128_i32 = arith.constant 128 : i32
    %58 = arith.muli %arg2, %c128_i32 : i32
    %59 = arith.sitofp %58 : i32 to f32
    %cst_26 = arith.constant 1.280000e+02 : f32
    %60 = arith.addf %59, %cst_26 : f32
    %c0_27 = arith.constant 0 : index
    %c0_28 = arith.constant 0 : index
    %c0_29 = arith.constant 0 : index
    %61 = vector.load %arg12[%c0_27, %c0_28, %c0_29] : memref<1x1x64xf32, #tpu.memory_space<vmem>>, vector<1x1x64xf32>
    %62 = vector.shape_cast %61 : vector<1x1x64xf32> to vector<1x64xf32>
    %63 = arith.subf %52, %62 : vector<1x64xf32>
    %c0_30 = arith.constant 0 : index
    %c0_31 = arith.constant 0 : index
    %c0_32 = arith.constant 0 : index
    %64 = vector.load %arg12[%c0_30, %c0_31, %c0_32] : memref<1x1x64xf32, #tpu.memory_space<vmem>>, vector<1x1x64xf32>
    %cst_33 = arith.constant 1.280000e+02 : f32
    %65 = arith.divf %cst_33, %60 : f32
    %66 = vector.broadcast %65 : f32 to vector<1x64xf32>
    %67 = arith.mulf %63, %66 : vector<1x64xf32>
    %68 = vector.shape_cast %67 : vector<1x64xf32> to vector<1x1x64xf32>
    %69 = arith.addf %64, %68 : vector<1x1x64xf32>
    %c0_34 = arith.constant 0 : index
    %c0_35 = arith.constant 0 : index
    %c0_36 = arith.constant 0 : index
    %70 = vector.load %arg12[%c0_34, %c0_35, %c0_36] : memref<1x1x64xf32, #tpu.memory_space<vmem>>, vector<1x1x64xf32>
    tpu.vector_store %arg12[%c0_34, %c0_35, %c0_36], %69 {strides = array<i32>} : memref<1x1x64xf32, #tpu.memory_space<vmem>>, vector<1x1x64xf32>,
    %c0_37 = arith.constant 0 : index
    %c0_38 = arith.constant 0 : index
    %c0_39 = arith.constant 0 : index
    %71 = vector.load %arg13[%c0_37, %c0_38, %c0_39] : memref<1x1x64xf32, #tpu.memory_space<vmem>>, vector<1x1x64xf32>
    %72 = arith.mulf %63, %63 : vector<1x64xf32>
    %cst_40 = arith.constant 1.280000e+02 : f32
    %73 = arith.divf %cst_40, %60 : f32
    %74 = arith.mulf %59, %73 : f32
    %75 = vector.broadcast %74 : f32 to vector<1x64xf32>
    %76 = arith.mulf %72, %75 : vector<1x64xf32>
    %77 = arith.addf %57, %76 : vector<1x64xf32>
    %78 = vector.shape_cast %77 : vector<1x64xf32> to vector<1x1x64xf32>
    %79 = arith.addf %71, %78 : vector<1x1x64xf32>
    %c0_41 = arith.constant 0 : index
    %c0_42 = arith.constant 0 : index
    %c0_43 = arith.constant 0 : index
    %80 = vector.load %arg13[%c0_41, %c0_42, %c0_43] : memref<1x1x64xf32, #tpu.memory_space<vmem>>, vector<1x1x64xf32>
    tpu.vector_store %arg13[%c0_41, %c0_42, %c0_43], %79 {strides = array<i32>} : memref<1x1x64xf32, #tpu.memory_space<vmem>>, vector<1x1x64xf32>,
    return
  }
  func.func @transform_0(%arg0: i32, %arg1: i32, %arg2: i32) -> (i32, i32, i32) {
    %c1_i32 = arith.constant 1 : i32
    %0 = arith.muli %arg1, %c1_i32 : i32
    %1 = arith.addi %0, %arg2 : i32
    %c0_i32 = arith.constant 0 : i32
    %c0_i32_0 = arith.constant 0 : i32
    return %arg0, %1, %c0_i32 : i32, i32, i32
  }
  func.func @transform_1(%arg0: i32, %arg1: i32, %arg2: i32) -> (i32, i32) {
    %c0_i32 = arith.constant 0 : i32
    %c0_i32_0 = arith.constant 0 : i32
    %c0_i32_1 = arith.constant 0 : i32
    return %c0_i32, %c0_i32_0 : i32, i32
  }
  func.func @transform_2(%arg0: i32, %arg1: i32, %arg2: i32) -> (i32, i32) {
    %c0_i32 = arith.constant 0 : i32
    %c0_i32_0 = arith.constant 0 : i32
    %c0_i32_1 = arith.constant 0 : i32
    return %c0_i32, %c0_i32_0 : i32, i32
  }
  func.func @transform_3(%arg0: i32, %arg1: i32, %arg2: i32) -> (i32, i32) {
    %c0_i32 = arith.constant 0 : i32
    %c0_i32_0 = arith.constant 0 : i32
    %c0_i32_1 = arith.constant 0 : i32
    return %c0_i32, %c0_i32_0 : i32, i32
  }
  func.func @transform_4(%arg0: i32, %arg1: i32, %arg2: i32) -> (i32, i32) {
    %c0_i32 = arith.constant 0 : i32
    %c0_i32_0 = arith.constant 0 : i32
    %c0_i32_1 = arith.constant 0 : i32
    return %c0_i32, %c0_i32_0 : i32, i32
  }
  func.func @transform_5(%arg0: i32, %arg1: i32, %arg2: i32) -> (i32, i32, i32) {
    %c0_i32 = arith.constant 0 : i32
    %c0_i32_0 = arith.constant 0 : i32
    %c0_i32_1 = arith.constant 0 : i32
    return %arg0, %c0_i32, %c0_i32_0 : i32, i32, i32
  }
  func.func @transform_6(%arg0: i32, %arg1: i32, %arg2: i32) -> (i32, i32) {
    %c0_i32 = arith.constant 0 : i32
    %c0_i32_0 = arith.constant 0 : i32
    %c0_i32_1 = arith.constant 0 : i32
    return %c0_i32, %c0_i32_0 : i32, i32
  }
  func.func @transform_7(%arg0: i32, %arg1: i32, %arg2: i32) -> (i32, i32) {
    %c0_i32 = arith.constant 0 : i32
    %c0_i32_0 = arith.constant 0 : i32
    %c0_i32_1 = arith.constant 0 : i32
    return %c0_i32, %c0_i32_0 : i32, i32
  }
  func.func @transform_8(%arg0: i32, %arg1: i32, %arg2: i32) -> (i32, i32) {
    %c0_i32 = arith.constant 0 : i32
    %c0_i32_0 = arith.constant 0 : i32
    %c0_i32_1 = arith.constant 0 : i32
    return %c0_i32, %c0_i32_0 : i32, i32
  }
  func.func @transform_9(%arg0: i32, %arg1: i32, %arg2: i32) -> (i32, i32, i32) {
    %c1_i32 = arith.constant 1 : i32
    %0 = arith.muli %arg0, %c1_i32 : i32
    %1 = arith.addi %0, %arg1 : i32
    %c0_i32 = arith.constant 0 : i32
    %c0_i32_0 = arith.constant 0 : i32
    %c0_i32_1 = arith.constant 0 : i32
    return %1, %c0_i32, %c0_i32_0 : i32, i32, i32
  }
  func.func @transform_10(%arg0: i32, %arg1: i32, %arg2: i32) -> (i32, i32, i32) {
    %c1_i32 = arith.constant 1 : i32
    %0 = arith.muli %arg0, %c1_i32 : i32
    %1 = arith.addi %0, %arg1 : i32
    %c0_i32 = arith.constant 0 : i32
    %c0_i32_0 = arith.constant 0 : i32
    %c0_i32_1 = arith.constant 0 : i32
    return %1, %c0_i32, %c0_i32_0 : i32, i32, i32
  }
}

module attributes {stable_mosaic.version = 11 : i64} {
  func.func @_chain_kernel(%arg0: i32, %arg1: i32, %arg2: i32, %arg3: memref<1x128x3xf32, #tpu.memory_space<vmem>>, %arg4: memref<3x32xf32, #tpu.memory_space<vmem>>, %arg5: memref<1x32xf32, #tpu.memory_space<vmem>>, %arg6: memref<1x32xf32, #tpu.memory_space<vmem>>, %arg7: memref<32x128xbf16, #tpu.memory_space<vmem>>, %arg8: memref<1x1x128xf32, #tpu.memory_space<vmem>>, %arg9: memref<1x128xf32, #tpu.memory_space<vmem>>, %arg10: memref<1x128xf32, #tpu.memory_space<vmem>>, %arg11: memref<128x64xbf16, #tpu.memory_space<vmem>>, %arg12: memref<1x64xf32, #tpu.memory_space<vmem>>, %arg13: memref<1x64xf32, #tpu.memory_space<vmem>>, %arg14: memref<64x32xbf16, #tpu.memory_space<vmem>>, %arg15: memref<1x1x32xf32, #tpu.memory_space<vmem>>, %arg16: memref<1x1x32xf32, #tpu.memory_space<vmem>>) attributes {dimension_semantics = [#tpu.dimension_semantics<parallel>, #tpu.dimension_semantics<parallel>, #tpu.dimension_semantics<arbitrary>], iteration_bounds = array<i64: 2, 1, 1>, scalar_prefetch = 0 : i64, scratch_operands = 0 : i64, tpu.core_type = #tpu.core_type<tc>, window_params = [{transform_indices = @transform_0, window_bounds = array<i64: 1, 128, 3>}, {pipeline_mode = #tpu.pipeline_mode<synchronous>, transform_indices = @transform_1, window_bounds = array<i64: 3, 32>}, {pipeline_mode = #tpu.pipeline_mode<synchronous>, transform_indices = @transform_2, window_bounds = array<i64: 1, 32>}, {pipeline_mode = #tpu.pipeline_mode<synchronous>, transform_indices = @transform_3, window_bounds = array<i64: 1, 32>}, {pipeline_mode = #tpu.pipeline_mode<synchronous>, transform_indices = @transform_4, window_bounds = array<i64: 32, 128>}, {transform_indices = @transform_5, window_bounds = array<i64: 1, 1, 128>}, {pipeline_mode = #tpu.pipeline_mode<synchronous>, transform_indices = @transform_6, window_bounds = array<i64: 1, 128>}, {pipeline_mode = #tpu.pipeline_mode<synchronous>, transform_indices = @transform_7, window_bounds = array<i64: 1, 128>}, {pipeline_mode = #tpu.pipeline_mode<synchronous>, transform_indices = @transform_8, window_bounds = array<i64: 128, 64>}, {pipeline_mode = #tpu.pipeline_mode<synchronous>, transform_indices = @transform_9, window_bounds = array<i64: 1, 64>}, {pipeline_mode = #tpu.pipeline_mode<synchronous>, transform_indices = @transform_10, window_bounds = array<i64: 1, 64>}, {pipeline_mode = #tpu.pipeline_mode<synchronous>, transform_indices = @transform_11, window_bounds = array<i64: 64, 32>}, {transform_indices = @transform_12, window_bounds = array<i64: 1, 1, 32>}, {transform_indices = @transform_13, window_bounds = array<i64: 1, 1, 32>}]} {
    %c0 = arith.constant 0 : index
    %c0_0 = arith.constant 0 : index
    %c0_1 = arith.constant 0 : index
    %0 = vector.load %arg3[%c0, %c0_0, %c0_1] : memref<1x128x3xf32, #tpu.memory_space<vmem>>, vector<1x128x3xf32>
    %1 = vector.shape_cast %0 : vector<1x128x3xf32> to vector<128x3xf32>
    %c0_2 = arith.constant 0 : index
    %c0_3 = arith.constant 0 : index
    %2 = vector.load %arg4[%c0_2, %c0_3] : memref<3x32xf32, #tpu.memory_space<vmem>>, vector<3x32xf32>
    %3 = vector.extract_strided_slice %1 {offsets = [0, 0], sizes = [128, 1], strides = [1, 1]} : vector<128x3xf32> to vector<128x1xf32>
    %4 = vector.extract_strided_slice %2 {offsets = [0, 0], sizes = [1, 32], strides = [1, 1]} : vector<3x32xf32> to vector<1x32xf32>
    %5 = vector.broadcast %3 : vector<128x1xf32> to vector<128x32xf32>
    %6 = vector.broadcast %4 : vector<1x32xf32> to vector<128x32xf32>
    %7 = arith.mulf %5, %6 : vector<128x32xf32>
    %8 = vector.extract_strided_slice %1 {offsets = [0, 1], sizes = [128, 1], strides = [1, 1]} : vector<128x3xf32> to vector<128x1xf32>
    %9 = vector.extract_strided_slice %2 {offsets = [1, 0], sizes = [1, 32], strides = [1, 1]} : vector<3x32xf32> to vector<1x32xf32>
    %10 = vector.broadcast %8 : vector<128x1xf32> to vector<128x32xf32>
    %11 = vector.broadcast %9 : vector<1x32xf32> to vector<128x32xf32>
    %12 = arith.mulf %10, %11 : vector<128x32xf32>
    %13 = arith.addf %7, %12 : vector<128x32xf32>
    %14 = vector.extract_strided_slice %1 {offsets = [0, 2], sizes = [128, 1], strides = [1, 1]} : vector<128x3xf32> to vector<128x1xf32>
    %15 = vector.extract_strided_slice %2 {offsets = [2, 0], sizes = [1, 32], strides = [1, 1]} : vector<3x32xf32> to vector<1x32xf32>
    %16 = vector.broadcast %14 : vector<128x1xf32> to vector<128x32xf32>
    %17 = vector.broadcast %15 : vector<1x32xf32> to vector<128x32xf32>
    %18 = arith.mulf %16, %17 : vector<128x32xf32>
    %19 = arith.addf %13, %18 : vector<128x32xf32>
    %c0_4 = arith.constant 0 : index
    %c0_5 = arith.constant 0 : index
    %20 = vector.load %arg5[%c0_4, %c0_5] : memref<1x32xf32, #tpu.memory_space<vmem>>, vector<1x32xf32>
    %21 = vector.broadcast %20 : vector<1x32xf32> to vector<128x32xf32>
    %22 = arith.mulf %19, %21 : vector<128x32xf32>
    %c0_6 = arith.constant 0 : index
    %c0_7 = arith.constant 0 : index
    %23 = vector.load %arg6[%c0_6, %c0_7] : memref<1x32xf32, #tpu.memory_space<vmem>>, vector<1x32xf32>
    %24 = vector.broadcast %23 : vector<1x32xf32> to vector<128x32xf32>
    %25 = arith.addf %22, %24 : vector<128x32xf32>
    %cst = arith.constant 0.000000e+00 : f32
    %26 = vector.broadcast %cst : f32 to vector<128x32xf32>
    %27 = arith.maximumf %25, %26 : vector<128x32xf32>
    %28 = arith.truncf %27 : vector<128x32xf32> to vector<128x32xbf16>
    %c0_8 = arith.constant 0 : index
    %c0_9 = arith.constant 0 : index
    %29 = vector.load %arg7[%c0_8, %c0_9] : memref<32x128xbf16, #tpu.memory_space<vmem>>, vector<32x128xbf16>
    %cst_10 = arith.constant dense<0.000000e+00> : vector<128x128xf32>
    %30 = tpu.matmul %28, %29, %cst_10 {dimension_numbers = #tpu.dot_dimension_numbers<[1], [0], [0], [1], [0, 0, 1, 1], [], []>} : vector<128x32xbf16>, vector<32x128xbf16>, vector<128x128xf32> -> vector<128x128xf32>
    %c0_11 = arith.constant 0 : index
    %c0_12 = arith.constant 0 : index
    %c0_13 = arith.constant 0 : index
    %31 = vector.load %arg8[%c0_11, %c0_12, %c0_13] : memref<1x1x128xf32, #tpu.memory_space<vmem>>, vector<1x1x128xf32>
    %32 = vector.shape_cast %31 : vector<1x1x128xf32> to vector<1x128xf32>
    %33 = vector.broadcast %32 : vector<1x128xf32> to vector<128x128xf32>
    %34 = arith.addf %30, %33 : vector<128x128xf32>
    %c0_14 = arith.constant 0 : index
    %c0_15 = arith.constant 0 : index
    %35 = vector.load %arg9[%c0_14, %c0_15] : memref<1x128xf32, #tpu.memory_space<vmem>>, vector<1x128xf32>
    %36 = vector.broadcast %35 : vector<1x128xf32> to vector<128x128xf32>
    %37 = arith.mulf %34, %36 : vector<128x128xf32>
    %c0_16 = arith.constant 0 : index
    %c0_17 = arith.constant 0 : index
    %38 = vector.load %arg10[%c0_16, %c0_17] : memref<1x128xf32, #tpu.memory_space<vmem>>, vector<1x128xf32>
    %39 = vector.broadcast %38 : vector<1x128xf32> to vector<128x128xf32>
    %40 = arith.addf %37, %39 : vector<128x128xf32>
    %cst_18 = arith.constant 0.000000e+00 : f32
    %41 = vector.broadcast %cst_18 : f32 to vector<128x128xf32>
    %42 = arith.maximumf %40, %41 : vector<128x128xf32>
    %43 = arith.truncf %42 : vector<128x128xf32> to vector<128x128xbf16>
    %c0_19 = arith.constant 0 : index
    %c0_20 = arith.constant 0 : index
    %44 = vector.load %arg11[%c0_19, %c0_20] : memref<128x64xbf16, #tpu.memory_space<vmem>>, vector<128x64xbf16>
    %cst_21 = arith.constant dense<0.000000e+00> : vector<128x64xf32>
    %45 = tpu.matmul %43, %44, %cst_21 {dimension_numbers = #tpu.dot_dimension_numbers<[1], [0], [0], [1], [0, 0, 1, 1], [], []>} : vector<128x128xbf16>, vector<128x64xbf16>, vector<128x64xf32> -> vector<128x64xf32>
    %c0_22 = arith.constant 0 : index
    %c0_23 = arith.constant 0 : index
    %46 = vector.load %arg12[%c0_22, %c0_23] : memref<1x64xf32, #tpu.memory_space<vmem>>, vector<1x64xf32>
    %47 = vector.broadcast %46 : vector<1x64xf32> to vector<128x64xf32>
    %48 = arith.mulf %45, %47 : vector<128x64xf32>
    %c0_24 = arith.constant 0 : index
    %c0_25 = arith.constant 0 : index
    %49 = vector.load %arg13[%c0_24, %c0_25] : memref<1x64xf32, #tpu.memory_space<vmem>>, vector<1x64xf32>
    %50 = vector.broadcast %49 : vector<1x64xf32> to vector<128x64xf32>
    %51 = arith.addf %48, %50 : vector<128x64xf32>
    %cst_26 = arith.constant 0.000000e+00 : f32
    %52 = vector.broadcast %cst_26 : f32 to vector<128x64xf32>
    %53 = arith.maximumf %51, %52 : vector<128x64xf32>
    %54 = arith.truncf %53 : vector<128x64xf32> to vector<128x64xbf16>
    %c0_27 = arith.constant 0 : index
    %c0_28 = arith.constant 0 : index
    %55 = vector.load %arg14[%c0_27, %c0_28] : memref<64x32xbf16, #tpu.memory_space<vmem>>, vector<64x32xbf16>
    %cst_29 = arith.constant dense<0.000000e+00> : vector<128x32xf32>
    %56 = tpu.matmul %54, %55, %cst_29 {dimension_numbers = #tpu.dot_dimension_numbers<[1], [0], [0], [1], [0, 0, 1, 1], [], []>} : vector<128x64xbf16>, vector<64x32xbf16>, vector<128x32xf32> -> vector<128x32xf32>
    %c0_i32 = arith.constant 0 : i32
    %57 = arith.cmpi eq, %arg2, %c0_i32 : i32
    %58 = arith.extui %57 : i1 to i32
    %c0_i32_30 = arith.constant 0 : i32
    %59 = arith.cmpi ne, %58, %c0_i32_30 : i32
    scf.if %59 {
      %cst_52 = arith.constant 0.000000e+00 : f32
      %92 = vector.broadcast %cst_52 : f32 to vector<1x1x32xf32>
      %c0_53 = arith.constant 0 : index
      %c0_54 = arith.constant 0 : index
      %c0_55 = arith.constant 0 : index
      %93 = vector.load %arg15[%c0_53, %c0_54, %c0_55] : memref<1x1x32xf32, #tpu.memory_space<vmem>>, vector<1x1x32xf32>
      tpu.vector_store %arg15[%c0_53, %c0_54, %c0_55], %92 {strides = array<i32>} : memref<1x1x32xf32, #tpu.memory_space<vmem>>, vector<1x1x32xf32>,
      %cst_56 = arith.constant 0.000000e+00 : f32
      %94 = vector.broadcast %cst_56 : f32 to vector<1x1x32xf32>
      %c0_57 = arith.constant 0 : index
      %c0_58 = arith.constant 0 : index
      %c0_59 = arith.constant 0 : index
      %95 = vector.load %arg16[%c0_57, %c0_58, %c0_59] : memref<1x1x32xf32, #tpu.memory_space<vmem>>, vector<1x1x32xf32>
      tpu.vector_store %arg16[%c0_57, %c0_58, %c0_59], %94 {strides = array<i32>} : memref<1x1x32xf32, #tpu.memory_space<vmem>>, vector<1x1x32xf32>,
    } else {
    }
    %cst_31 = arith.constant dense<0.000000e+00> : vector<32xf32>
    %60 = vector.multi_reduction <add>, %56, %cst_31 [0] : vector<128x32xf32> to vector<32xf32>
    %61 = vector.shape_cast %60 : vector<32xf32> to vector<1x32xf32>
    %cst_32 = arith.constant 1.280000e+02 : f32
    %62 = vector.broadcast %cst_32 : f32 to vector<1x32xf32>
    %63 = arith.divf %61, %62 : vector<1x32xf32>
    %64 = vector.broadcast %63 : vector<1x32xf32> to vector<128x32xf32>
    %65 = arith.subf %56, %64 : vector<128x32xf32>
    %66 = arith.mulf %65, %65 : vector<128x32xf32>
    %cst_33 = arith.constant dense<0.000000e+00> : vector<32xf32>
    %67 = vector.multi_reduction <add>, %66, %cst_33 [0] : vector<128x32xf32> to vector<32xf32>
    %68 = vector.shape_cast %67 : vector<32xf32> to vector<1x32xf32>
    %c128_i32 = arith.constant 128 : i32
    %69 = arith.muli %arg2, %c128_i32 : i32
    %70 = arith.sitofp %69 : i32 to f32
    %cst_34 = arith.constant 1.280000e+02 : f32
    %71 = arith.addf %70, %cst_34 : f32
    %c0_35 = arith.constant 0 : index
    %c0_36 = arith.constant 0 : index
    %c0_37 = arith.constant 0 : index
    %72 = vector.load %arg15[%c0_35, %c0_36, %c0_37] : memref<1x1x32xf32, #tpu.memory_space<vmem>>, vector<1x1x32xf32>
    %73 = vector.shape_cast %72 : vector<1x1x32xf32> to vector<1x32xf32>
    %74 = arith.subf %63, %73 : vector<1x32xf32>
    %c0_38 = arith.constant 0 : index
    %c0_39 = arith.constant 0 : index
    %c0_40 = arith.constant 0 : index
    %75 = vector.load %arg15[%c0_38, %c0_39, %c0_40] : memref<1x1x32xf32, #tpu.memory_space<vmem>>, vector<1x1x32xf32>
    %cst_41 = arith.constant 1.280000e+02 : f32
    %76 = arith.divf %cst_41, %71 : f32
    %77 = vector.broadcast %76 : f32 to vector<1x32xf32>
    %78 = arith.mulf %74, %77 : vector<1x32xf32>
    %79 = vector.shape_cast %78 : vector<1x32xf32> to vector<1x1x32xf32>
    %80 = arith.addf %75, %79 : vector<1x1x32xf32>
    %c0_42 = arith.constant 0 : index
    %c0_43 = arith.constant 0 : index
    %c0_44 = arith.constant 0 : index
    %81 = vector.load %arg15[%c0_42, %c0_43, %c0_44] : memref<1x1x32xf32, #tpu.memory_space<vmem>>, vector<1x1x32xf32>
    tpu.vector_store %arg15[%c0_42, %c0_43, %c0_44], %80 {strides = array<i32>} : memref<1x1x32xf32, #tpu.memory_space<vmem>>, vector<1x1x32xf32>,
    %c0_45 = arith.constant 0 : index
    %c0_46 = arith.constant 0 : index
    %c0_47 = arith.constant 0 : index
    %82 = vector.load %arg16[%c0_45, %c0_46, %c0_47] : memref<1x1x32xf32, #tpu.memory_space<vmem>>, vector<1x1x32xf32>
    %83 = arith.mulf %74, %74 : vector<1x32xf32>
    %cst_48 = arith.constant 1.280000e+02 : f32
    %84 = arith.divf %cst_48, %71 : f32
    %85 = arith.mulf %70, %84 : f32
    %86 = vector.broadcast %85 : f32 to vector<1x32xf32>
    %87 = arith.mulf %83, %86 : vector<1x32xf32>
    %88 = arith.addf %68, %87 : vector<1x32xf32>
    %89 = vector.shape_cast %88 : vector<1x32xf32> to vector<1x1x32xf32>
    %90 = arith.addf %82, %89 : vector<1x1x32xf32>
    %c0_49 = arith.constant 0 : index
    %c0_50 = arith.constant 0 : index
    %c0_51 = arith.constant 0 : index
    %91 = vector.load %arg16[%c0_49, %c0_50, %c0_51] : memref<1x1x32xf32, #tpu.memory_space<vmem>>, vector<1x1x32xf32>
    tpu.vector_store %arg16[%c0_49, %c0_50, %c0_51], %90 {strides = array<i32>} : memref<1x1x32xf32, #tpu.memory_space<vmem>>, vector<1x1x32xf32>,
    return
  }
  func.func @transform_0(%arg0: i32, %arg1: i32, %arg2: i32) -> (i32, i32, i32) {
    %c1_i32 = arith.constant 1 : i32
    %0 = arith.muli %arg1, %c1_i32 : i32
    %1 = arith.addi %0, %arg2 : i32
    %c0_i32 = arith.constant 0 : i32
    %c0_i32_0 = arith.constant 0 : i32
    return %arg0, %1, %c0_i32 : i32, i32, i32
  }
  func.func @transform_1(%arg0: i32, %arg1: i32, %arg2: i32) -> (i32, i32) {
    %c0_i32 = arith.constant 0 : i32
    %c0_i32_0 = arith.constant 0 : i32
    %c0_i32_1 = arith.constant 0 : i32
    return %c0_i32, %c0_i32_0 : i32, i32
  }
  func.func @transform_2(%arg0: i32, %arg1: i32, %arg2: i32) -> (i32, i32) {
    %c0_i32 = arith.constant 0 : i32
    %c0_i32_0 = arith.constant 0 : i32
    %c0_i32_1 = arith.constant 0 : i32
    return %c0_i32, %c0_i32_0 : i32, i32
  }
  func.func @transform_3(%arg0: i32, %arg1: i32, %arg2: i32) -> (i32, i32) {
    %c0_i32 = arith.constant 0 : i32
    %c0_i32_0 = arith.constant 0 : i32
    %c0_i32_1 = arith.constant 0 : i32
    return %c0_i32, %c0_i32_0 : i32, i32
  }
  func.func @transform_4(%arg0: i32, %arg1: i32, %arg2: i32) -> (i32, i32) {
    %c0_i32 = arith.constant 0 : i32
    %c0_i32_0 = arith.constant 0 : i32
    %c0_i32_1 = arith.constant 0 : i32
    return %c0_i32, %c0_i32_0 : i32, i32
  }
  func.func @transform_5(%arg0: i32, %arg1: i32, %arg2: i32) -> (i32, i32, i32) {
    %c0_i32 = arith.constant 0 : i32
    %c0_i32_0 = arith.constant 0 : i32
    %c0_i32_1 = arith.constant 0 : i32
    return %arg0, %c0_i32, %c0_i32_0 : i32, i32, i32
  }
  func.func @transform_6(%arg0: i32, %arg1: i32, %arg2: i32) -> (i32, i32) {
    %c0_i32 = arith.constant 0 : i32
    %c0_i32_0 = arith.constant 0 : i32
    %c0_i32_1 = arith.constant 0 : i32
    return %c0_i32, %c0_i32_0 : i32, i32
  }
  func.func @transform_7(%arg0: i32, %arg1: i32, %arg2: i32) -> (i32, i32) {
    %c0_i32 = arith.constant 0 : i32
    %c0_i32_0 = arith.constant 0 : i32
    %c0_i32_1 = arith.constant 0 : i32
    return %c0_i32, %c0_i32_0 : i32, i32
  }
  func.func @transform_8(%arg0: i32, %arg1: i32, %arg2: i32) -> (i32, i32) {
    %c0_i32 = arith.constant 0 : i32
    %c0_i32_0 = arith.constant 0 : i32
    %c0_i32_1 = arith.constant 0 : i32
    return %c0_i32, %c0_i32_0 : i32, i32
  }
  func.func @transform_9(%arg0: i32, %arg1: i32, %arg2: i32) -> (i32, i32) {
    %c0_i32 = arith.constant 0 : i32
    %c0_i32_0 = arith.constant 0 : i32
    %c0_i32_1 = arith.constant 0 : i32
    return %c0_i32, %c0_i32_0 : i32, i32
  }
  func.func @transform_10(%arg0: i32, %arg1: i32, %arg2: i32) -> (i32, i32) {
    %c0_i32 = arith.constant 0 : i32
    %c0_i32_0 = arith.constant 0 : i32
    %c0_i32_1 = arith.constant 0 : i32
    return %c0_i32, %c0_i32_0 : i32, i32
  }
  func.func @transform_11(%arg0: i32, %arg1: i32, %arg2: i32) -> (i32, i32) {
    %c0_i32 = arith.constant 0 : i32
    %c0_i32_0 = arith.constant 0 : i32
    %c0_i32_1 = arith.constant 0 : i32
    return %c0_i32, %c0_i32_0 : i32, i32
  }
  func.func @transform_12(%arg0: i32, %arg1: i32, %arg2: i32) -> (i32, i32, i32) {
    %c1_i32 = arith.constant 1 : i32
    %0 = arith.muli %arg0, %c1_i32 : i32
    %1 = arith.addi %0, %arg1 : i32
    %c0_i32 = arith.constant 0 : i32
    %c0_i32_0 = arith.constant 0 : i32
    %c0_i32_1 = arith.constant 0 : i32
    return %1, %c0_i32, %c0_i32_0 : i32, i32, i32
  }
  func.func @transform_13(%arg0: i32, %arg1: i32, %arg2: i32) -> (i32, i32, i32) {
    %c1_i32 = arith.constant 1 : i32
    %0 = arith.muli %arg0, %c1_i32 : i32
    %1 = arith.addi %0, %arg1 : i32
    %c0_i32 = arith.constant 0 : i32
    %c0_i32_0 = arith.constant 0 : i32
    %c0_i32_1 = arith.constant 0 : i32
    return %1, %c0_i32, %c0_i32_0 : i32, i32, i32
  }
}

module attributes {stable_mosaic.version = 11 : i64} {
  func.func @_chain_kernel(%arg0: i32, %arg1: i32, %arg2: i32, %arg3: memref<1x128x3xf32, #tpu.memory_space<vmem>>, %arg4: memref<3x32xf32, #tpu.memory_space<vmem>>, %arg5: memref<1x32xf32, #tpu.memory_space<vmem>>, %arg6: memref<1x32xf32, #tpu.memory_space<vmem>>, %arg7: memref<32x128xbf16, #tpu.memory_space<vmem>>, %arg8: memref<1x1x128xf32, #tpu.memory_space<vmem>>, %arg9: memref<1x128xf32, #tpu.memory_space<vmem>>, %arg10: memref<1x128xf32, #tpu.memory_space<vmem>>, %arg11: memref<128x64xbf16, #tpu.memory_space<vmem>>, %arg12: memref<1x64xf32, #tpu.memory_space<vmem>>, %arg13: memref<1x64xf32, #tpu.memory_space<vmem>>, %arg14: memref<64x32xbf16, #tpu.memory_space<vmem>>, %arg15: memref<1x32xf32, #tpu.memory_space<vmem>>, %arg16: memref<1x32xf32, #tpu.memory_space<vmem>>, %arg17: memref<32x4xbf16, #tpu.memory_space<vmem>>, %arg18: memref<1x1x4xf32, #tpu.memory_space<vmem>>, %arg19: memref<1x128x4xf32, #tpu.memory_space<vmem>>) attributes {dimension_semantics = [#tpu.dimension_semantics<parallel>, #tpu.dimension_semantics<parallel>, #tpu.dimension_semantics<arbitrary>], iteration_bounds = array<i64: 2, 1, 1>, scalar_prefetch = 0 : i64, scratch_operands = 0 : i64, tpu.core_type = #tpu.core_type<tc>, window_params = [{transform_indices = @transform_0, window_bounds = array<i64: 1, 128, 3>}, {pipeline_mode = #tpu.pipeline_mode<synchronous>, transform_indices = @transform_1, window_bounds = array<i64: 3, 32>}, {pipeline_mode = #tpu.pipeline_mode<synchronous>, transform_indices = @transform_2, window_bounds = array<i64: 1, 32>}, {pipeline_mode = #tpu.pipeline_mode<synchronous>, transform_indices = @transform_3, window_bounds = array<i64: 1, 32>}, {pipeline_mode = #tpu.pipeline_mode<synchronous>, transform_indices = @transform_4, window_bounds = array<i64: 32, 128>}, {transform_indices = @transform_5, window_bounds = array<i64: 1, 1, 128>}, {pipeline_mode = #tpu.pipeline_mode<synchronous>, transform_indices = @transform_6, window_bounds = array<i64: 1, 128>}, {pipeline_mode = #tpu.pipeline_mode<synchronous>, transform_indices = @transform_7, window_bounds = array<i64: 1, 128>}, {pipeline_mode = #tpu.pipeline_mode<synchronous>, transform_indices = @transform_8, window_bounds = array<i64: 128, 64>}, {pipeline_mode = #tpu.pipeline_mode<synchronous>, transform_indices = @transform_9, window_bounds = array<i64: 1, 64>}, {pipeline_mode = #tpu.pipeline_mode<synchronous>, transform_indices = @transform_10, window_bounds = array<i64: 1, 64>}, {pipeline_mode = #tpu.pipeline_mode<synchronous>, transform_indices = @transform_11, window_bounds = array<i64: 64, 32>}, {pipeline_mode = #tpu.pipeline_mode<synchronous>, transform_indices = @transform_12, window_bounds = array<i64: 1, 32>}, {pipeline_mode = #tpu.pipeline_mode<synchronous>, transform_indices = @transform_13, window_bounds = array<i64: 1, 32>}, {pipeline_mode = #tpu.pipeline_mode<synchronous>, transform_indices = @transform_14, window_bounds = array<i64: 32, 4>}, {pipeline_mode = #tpu.pipeline_mode<synchronous>, transform_indices = @transform_15, window_bounds = array<i64: 1, 1, 4>}, {transform_indices = @transform_16, window_bounds = array<i64: 1, 128, 4>}]} {
    %c0 = arith.constant 0 : index
    %c0_0 = arith.constant 0 : index
    %c0_1 = arith.constant 0 : index
    %0 = vector.load %arg3[%c0, %c0_0, %c0_1] : memref<1x128x3xf32, #tpu.memory_space<vmem>>, vector<1x128x3xf32>
    %1 = vector.shape_cast %0 : vector<1x128x3xf32> to vector<128x3xf32>
    %c0_2 = arith.constant 0 : index
    %c0_3 = arith.constant 0 : index
    %2 = vector.load %arg4[%c0_2, %c0_3] : memref<3x32xf32, #tpu.memory_space<vmem>>, vector<3x32xf32>
    %3 = vector.extract_strided_slice %1 {offsets = [0, 0], sizes = [128, 1], strides = [1, 1]} : vector<128x3xf32> to vector<128x1xf32>
    %4 = vector.extract_strided_slice %2 {offsets = [0, 0], sizes = [1, 32], strides = [1, 1]} : vector<3x32xf32> to vector<1x32xf32>
    %5 = vector.broadcast %3 : vector<128x1xf32> to vector<128x32xf32>
    %6 = vector.broadcast %4 : vector<1x32xf32> to vector<128x32xf32>
    %7 = arith.mulf %5, %6 : vector<128x32xf32>
    %8 = vector.extract_strided_slice %1 {offsets = [0, 1], sizes = [128, 1], strides = [1, 1]} : vector<128x3xf32> to vector<128x1xf32>
    %9 = vector.extract_strided_slice %2 {offsets = [1, 0], sizes = [1, 32], strides = [1, 1]} : vector<3x32xf32> to vector<1x32xf32>
    %10 = vector.broadcast %8 : vector<128x1xf32> to vector<128x32xf32>
    %11 = vector.broadcast %9 : vector<1x32xf32> to vector<128x32xf32>
    %12 = arith.mulf %10, %11 : vector<128x32xf32>
    %13 = arith.addf %7, %12 : vector<128x32xf32>
    %14 = vector.extract_strided_slice %1 {offsets = [0, 2], sizes = [128, 1], strides = [1, 1]} : vector<128x3xf32> to vector<128x1xf32>
    %15 = vector.extract_strided_slice %2 {offsets = [2, 0], sizes = [1, 32], strides = [1, 1]} : vector<3x32xf32> to vector<1x32xf32>
    %16 = vector.broadcast %14 : vector<128x1xf32> to vector<128x32xf32>
    %17 = vector.broadcast %15 : vector<1x32xf32> to vector<128x32xf32>
    %18 = arith.mulf %16, %17 : vector<128x32xf32>
    %19 = arith.addf %13, %18 : vector<128x32xf32>
    %c0_4 = arith.constant 0 : index
    %c0_5 = arith.constant 0 : index
    %20 = vector.load %arg5[%c0_4, %c0_5] : memref<1x32xf32, #tpu.memory_space<vmem>>, vector<1x32xf32>
    %21 = vector.broadcast %20 : vector<1x32xf32> to vector<128x32xf32>
    %22 = arith.mulf %19, %21 : vector<128x32xf32>
    %c0_6 = arith.constant 0 : index
    %c0_7 = arith.constant 0 : index
    %23 = vector.load %arg6[%c0_6, %c0_7] : memref<1x32xf32, #tpu.memory_space<vmem>>, vector<1x32xf32>
    %24 = vector.broadcast %23 : vector<1x32xf32> to vector<128x32xf32>
    %25 = arith.addf %22, %24 : vector<128x32xf32>
    %cst = arith.constant 0.000000e+00 : f32
    %26 = vector.broadcast %cst : f32 to vector<128x32xf32>
    %27 = arith.maximumf %25, %26 : vector<128x32xf32>
    %28 = arith.truncf %27 : vector<128x32xf32> to vector<128x32xbf16>
    %c0_8 = arith.constant 0 : index
    %c0_9 = arith.constant 0 : index
    %29 = vector.load %arg7[%c0_8, %c0_9] : memref<32x128xbf16, #tpu.memory_space<vmem>>, vector<32x128xbf16>
    %cst_10 = arith.constant dense<0.000000e+00> : vector<128x128xf32>
    %30 = tpu.matmul %28, %29, %cst_10 {dimension_numbers = #tpu.dot_dimension_numbers<[1], [0], [0], [1], [0, 0, 1, 1], [], []>} : vector<128x32xbf16>, vector<32x128xbf16>, vector<128x128xf32> -> vector<128x128xf32>
    %c0_11 = arith.constant 0 : index
    %c0_12 = arith.constant 0 : index
    %c0_13 = arith.constant 0 : index
    %31 = vector.load %arg8[%c0_11, %c0_12, %c0_13] : memref<1x1x128xf32, #tpu.memory_space<vmem>>, vector<1x1x128xf32>
    %32 = vector.shape_cast %31 : vector<1x1x128xf32> to vector<1x128xf32>
    %33 = vector.broadcast %32 : vector<1x128xf32> to vector<128x128xf32>
    %34 = arith.addf %30, %33 : vector<128x128xf32>
    %c0_14 = arith.constant 0 : index
    %c0_15 = arith.constant 0 : index
    %35 = vector.load %arg9[%c0_14, %c0_15] : memref<1x128xf32, #tpu.memory_space<vmem>>, vector<1x128xf32>
    %36 = vector.broadcast %35 : vector<1x128xf32> to vector<128x128xf32>
    %37 = arith.mulf %34, %36 : vector<128x128xf32>
    %c0_16 = arith.constant 0 : index
    %c0_17 = arith.constant 0 : index
    %38 = vector.load %arg10[%c0_16, %c0_17] : memref<1x128xf32, #tpu.memory_space<vmem>>, vector<1x128xf32>
    %39 = vector.broadcast %38 : vector<1x128xf32> to vector<128x128xf32>
    %40 = arith.addf %37, %39 : vector<128x128xf32>
    %cst_18 = arith.constant 0.000000e+00 : f32
    %41 = vector.broadcast %cst_18 : f32 to vector<128x128xf32>
    %42 = arith.maximumf %40, %41 : vector<128x128xf32>
    %43 = arith.truncf %42 : vector<128x128xf32> to vector<128x128xbf16>
    %c0_19 = arith.constant 0 : index
    %c0_20 = arith.constant 0 : index
    %44 = vector.load %arg11[%c0_19, %c0_20] : memref<128x64xbf16, #tpu.memory_space<vmem>>, vector<128x64xbf16>
    %cst_21 = arith.constant dense<0.000000e+00> : vector<128x64xf32>
    %45 = tpu.matmul %43, %44, %cst_21 {dimension_numbers = #tpu.dot_dimension_numbers<[1], [0], [0], [1], [0, 0, 1, 1], [], []>} : vector<128x128xbf16>, vector<128x64xbf16>, vector<128x64xf32> -> vector<128x64xf32>
    %c0_22 = arith.constant 0 : index
    %c0_23 = arith.constant 0 : index
    %46 = vector.load %arg12[%c0_22, %c0_23] : memref<1x64xf32, #tpu.memory_space<vmem>>, vector<1x64xf32>
    %47 = vector.broadcast %46 : vector<1x64xf32> to vector<128x64xf32>
    %48 = arith.mulf %45, %47 : vector<128x64xf32>
    %c0_24 = arith.constant 0 : index
    %c0_25 = arith.constant 0 : index
    %49 = vector.load %arg13[%c0_24, %c0_25] : memref<1x64xf32, #tpu.memory_space<vmem>>, vector<1x64xf32>
    %50 = vector.broadcast %49 : vector<1x64xf32> to vector<128x64xf32>
    %51 = arith.addf %48, %50 : vector<128x64xf32>
    %cst_26 = arith.constant 0.000000e+00 : f32
    %52 = vector.broadcast %cst_26 : f32 to vector<128x64xf32>
    %53 = arith.maximumf %51, %52 : vector<128x64xf32>
    %54 = arith.truncf %53 : vector<128x64xf32> to vector<128x64xbf16>
    %c0_27 = arith.constant 0 : index
    %c0_28 = arith.constant 0 : index
    %55 = vector.load %arg14[%c0_27, %c0_28] : memref<64x32xbf16, #tpu.memory_space<vmem>>, vector<64x32xbf16>
    %cst_29 = arith.constant dense<0.000000e+00> : vector<128x32xf32>
    %56 = tpu.matmul %54, %55, %cst_29 {dimension_numbers = #tpu.dot_dimension_numbers<[1], [0], [0], [1], [0, 0, 1, 1], [], []>} : vector<128x64xbf16>, vector<64x32xbf16>, vector<128x32xf32> -> vector<128x32xf32>
    %c0_30 = arith.constant 0 : index
    %c0_31 = arith.constant 0 : index
    %57 = vector.load %arg15[%c0_30, %c0_31] : memref<1x32xf32, #tpu.memory_space<vmem>>, vector<1x32xf32>
    %58 = vector.broadcast %57 : vector<1x32xf32> to vector<128x32xf32>
    %59 = arith.mulf %56, %58 : vector<128x32xf32>
    %c0_32 = arith.constant 0 : index
    %c0_33 = arith.constant 0 : index
    %60 = vector.load %arg16[%c0_32, %c0_33] : memref<1x32xf32, #tpu.memory_space<vmem>>, vector<1x32xf32>
    %61 = vector.broadcast %60 : vector<1x32xf32> to vector<128x32xf32>
    %62 = arith.addf %59, %61 : vector<128x32xf32>
    %cst_34 = arith.constant 0.000000e+00 : f32
    %63 = vector.broadcast %cst_34 : f32 to vector<128x32xf32>
    %64 = arith.maximumf %62, %63 : vector<128x32xf32>
    %65 = arith.truncf %64 : vector<128x32xf32> to vector<128x32xbf16>
    %c0_35 = arith.constant 0 : index
    %c0_36 = arith.constant 0 : index
    %66 = vector.load %arg17[%c0_35, %c0_36] : memref<32x4xbf16, #tpu.memory_space<vmem>>, vector<32x4xbf16>
    %cst_37 = arith.constant dense<0.000000e+00> : vector<128x4xf32>
    %67 = tpu.matmul %65, %66, %cst_37 {dimension_numbers = #tpu.dot_dimension_numbers<[1], [0], [0], [1], [0, 0, 1, 1], [], []>} : vector<128x32xbf16>, vector<32x4xbf16>, vector<128x4xf32> -> vector<128x4xf32>
    %c0_38 = arith.constant 0 : index
    %c0_39 = arith.constant 0 : index
    %c0_40 = arith.constant 0 : index
    %68 = vector.load %arg18[%c0_38, %c0_39, %c0_40] : memref<1x1x4xf32, #tpu.memory_space<vmem>>, vector<1x1x4xf32>
    %69 = vector.shape_cast %68 : vector<1x1x4xf32> to vector<1x4xf32>
    %70 = vector.broadcast %69 : vector<1x4xf32> to vector<128x4xf32>
    %71 = arith.addf %67, %70 : vector<128x4xf32>
    %c0_41 = arith.constant 0 : index
    %c0_42 = arith.constant 0 : index
    %c0_43 = arith.constant 0 : index
    %72 = vector.load %arg19[%c0_41, %c0_42, %c0_43] : memref<1x128x4xf32, #tpu.memory_space<vmem>>, vector<1x128x4xf32>
    %73 = vector.shape_cast %72 : vector<1x128x4xf32> to vector<128x4xf32>
    %74 = vector.shape_cast %71 : vector<128x4xf32> to vector<1x128x4xf32>
    tpu.vector_store %arg19[%c0_41, %c0_42, %c0_43], %74 {strides = array<i32>} : memref<1x128x4xf32, #tpu.memory_space<vmem>>, vector<1x128x4xf32>,
    return
  }
  func.func @transform_0(%arg0: i32, %arg1: i32, %arg2: i32) -> (i32, i32, i32) {
    %c1_i32 = arith.constant 1 : i32
    %0 = arith.muli %arg1, %c1_i32 : i32
    %1 = arith.addi %0, %arg2 : i32
    %c0_i32 = arith.constant 0 : i32
    %c0_i32_0 = arith.constant 0 : i32
    return %arg0, %1, %c0_i32 : i32, i32, i32
  }
  func.func @transform_1(%arg0: i32, %arg1: i32, %arg2: i32) -> (i32, i32) {
    %c0_i32 = arith.constant 0 : i32
    %c0_i32_0 = arith.constant 0 : i32
    %c0_i32_1 = arith.constant 0 : i32
    return %c0_i32, %c0_i32_0 : i32, i32
  }
  func.func @transform_2(%arg0: i32, %arg1: i32, %arg2: i32) -> (i32, i32) {
    %c0_i32 = arith.constant 0 : i32
    %c0_i32_0 = arith.constant 0 : i32
    %c0_i32_1 = arith.constant 0 : i32
    return %c0_i32, %c0_i32_0 : i32, i32
  }
  func.func @transform_3(%arg0: i32, %arg1: i32, %arg2: i32) -> (i32, i32) {
    %c0_i32 = arith.constant 0 : i32
    %c0_i32_0 = arith.constant 0 : i32
    %c0_i32_1 = arith.constant 0 : i32
    return %c0_i32, %c0_i32_0 : i32, i32
  }
  func.func @transform_4(%arg0: i32, %arg1: i32, %arg2: i32) -> (i32, i32) {
    %c0_i32 = arith.constant 0 : i32
    %c0_i32_0 = arith.constant 0 : i32
    %c0_i32_1 = arith.constant 0 : i32
    return %c0_i32, %c0_i32_0 : i32, i32
  }
  func.func @transform_5(%arg0: i32, %arg1: i32, %arg2: i32) -> (i32, i32, i32) {
    %c0_i32 = arith.constant 0 : i32
    %c0_i32_0 = arith.constant 0 : i32
    %c0_i32_1 = arith.constant 0 : i32
    return %arg0, %c0_i32, %c0_i32_0 : i32, i32, i32
  }
  func.func @transform_6(%arg0: i32, %arg1: i32, %arg2: i32) -> (i32, i32) {
    %c0_i32 = arith.constant 0 : i32
    %c0_i32_0 = arith.constant 0 : i32
    %c0_i32_1 = arith.constant 0 : i32
    return %c0_i32, %c0_i32_0 : i32, i32
  }
  func.func @transform_7(%arg0: i32, %arg1: i32, %arg2: i32) -> (i32, i32) {
    %c0_i32 = arith.constant 0 : i32
    %c0_i32_0 = arith.constant 0 : i32
    %c0_i32_1 = arith.constant 0 : i32
    return %c0_i32, %c0_i32_0 : i32, i32
  }
  func.func @transform_8(%arg0: i32, %arg1: i32, %arg2: i32) -> (i32, i32) {
    %c0_i32 = arith.constant 0 : i32
    %c0_i32_0 = arith.constant 0 : i32
    %c0_i32_1 = arith.constant 0 : i32
    return %c0_i32, %c0_i32_0 : i32, i32
  }
  func.func @transform_9(%arg0: i32, %arg1: i32, %arg2: i32) -> (i32, i32) {
    %c0_i32 = arith.constant 0 : i32
    %c0_i32_0 = arith.constant 0 : i32
    %c0_i32_1 = arith.constant 0 : i32
    return %c0_i32, %c0_i32_0 : i32, i32
  }
  func.func @transform_10(%arg0: i32, %arg1: i32, %arg2: i32) -> (i32, i32) {
    %c0_i32 = arith.constant 0 : i32
    %c0_i32_0 = arith.constant 0 : i32
    %c0_i32_1 = arith.constant 0 : i32
    return %c0_i32, %c0_i32_0 : i32, i32
  }
  func.func @transform_11(%arg0: i32, %arg1: i32, %arg2: i32) -> (i32, i32) {
    %c0_i32 = arith.constant 0 : i32
    %c0_i32_0 = arith.constant 0 : i32
    %c0_i32_1 = arith.constant 0 : i32
    return %c0_i32, %c0_i32_0 : i32, i32
  }
  func.func @transform_12(%arg0: i32, %arg1: i32, %arg2: i32) -> (i32, i32) {
    %c0_i32 = arith.constant 0 : i32
    %c0_i32_0 = arith.constant 0 : i32
    %c0_i32_1 = arith.constant 0 : i32
    return %c0_i32, %c0_i32_0 : i32, i32
  }
  func.func @transform_13(%arg0: i32, %arg1: i32, %arg2: i32) -> (i32, i32) {
    %c0_i32 = arith.constant 0 : i32
    %c0_i32_0 = arith.constant 0 : i32
    %c0_i32_1 = arith.constant 0 : i32
    return %c0_i32, %c0_i32_0 : i32, i32
  }
  func.func @transform_14(%arg0: i32, %arg1: i32, %arg2: i32) -> (i32, i32) {
    %c0_i32 = arith.constant 0 : i32
    %c0_i32_0 = arith.constant 0 : i32
    %c0_i32_1 = arith.constant 0 : i32
    return %c0_i32, %c0_i32_0 : i32, i32
  }
  func.func @transform_15(%arg0: i32, %arg1: i32, %arg2: i32) -> (i32, i32, i32) {
    %c0_i32 = arith.constant 0 : i32
    %c0_i32_0 = arith.constant 0 : i32
    %c0_i32_1 = arith.constant 0 : i32
    %c0_i32_2 = arith.constant 0 : i32
    return %c0_i32, %c0_i32_0, %c0_i32_1 : i32, i32, i32
  }
  func.func @transform_16(%arg0: i32, %arg1: i32, %arg2: i32) -> (i32, i32, i32) {
    %c1_i32 = arith.constant 1 : i32
    %0 = arith.muli %arg1, %c1_i32 : i32
    %1 = arith.addi %0, %arg2 : i32
    %c0_i32 = arith.constant 0 : i32
    %c0_i32_0 = arith.constant 0 : i32
    return %arg0, %1, %c0_i32 : i32, i32, i32
  }
}

</mosaic_0001>

<bundles_post_ra>
// kernel: pointnet_segmenter_forward.8
= control target key start
LH: loop header
LB: loop body
LE: loop exit
PB: predicated region body
PF: predicated region fallthrough
CT: control target
= control target key end

     0   :  { %s1192_s21 = smov 0   ;;  %s1194_s22 = smov 0   ;;  %s1538_s0 = inlined_call_operand.vmem [shape: f32[2,128,3], index: 0, kind: input, shape index: {}]   ;;  %s1539_s1 = inlined_call_operand.vmem [shape: f32[3,32], index: 1, kind: input, shape index: {}]   ;;  %s1540_s2 = inlined_call_operand.vmem [shape: f32[1,32], index: 2, kind: input, shape index: {}]   ;;  %s1541_s3 = inlined_call_operand.vmem [shape: f32[1,32], index: 3, kind: input, shape index: {}]   ;;  %s1542_s4 = inlined_call_operand.vmem [shape: bf16[32,32], index: 4, kind: input, shape index: {}]   ;;  %s1543_s5 = inlined_call_operand.vmem [shape: f32[2,1,32], index: 5, kind: output, shape index: {0}]   ;;  %s1544_s6 = inlined_call_operand.vmem [shape: f32[2,1,32], index: 6, kind: output, shape index: {1}]  }
   0x1   :  { %s1196_s23 = smov 0  }
   0x2 LB: > { %s36_s24 = sadd.s32 1, %s1146_s22  ;;  %p1028_p0 = scmp.ge.s32.totalorder %s1150_s23, 1  ;;  %s1150_s23 = sphi %s1196_s23, %s17_s23   ;;  %s1146_s22 = sphi %s1194_s22, %s1546_s22   ;;  %s1142_s21 = sphi %s1192_s21, %s1545_s21  }
   0x3   : > { %p38_p1 = scmp.ge.s32.totalorder %s36_s24, 2  ;;  %p249_p2 = scmp.lt.s32.totalorder %s1150_s23, 3 }
   0x5   : > { %s1548_s24 = smov (%p38_p1, %s36_s24), 0  ;;  %p250_p3 = pnand %p1028_p0, %p249_p2 }
   0x6   : > { %p289_p4 = scmp.lt.s32.totalorder (!%p250_p3), %s1142_s21, 1 }
   0x7   : > { %253 = sbr.rel (%p250_p3) target bundleno = 512 (0x200), region = 40 }
   0xc   : > { %v1152_v0 = vmov 1   ;;  %v1153_v1 = vmov 2   ;;  %s1550_s21 = smov (!%p289_p4, %s1142_s21), 1  ;;  %v1154_v7 = vmov 0   ;;  %v1051_v23 = vld [vmem:[%s1542_s4 + $0x8] sm:$0xff]  ;;  %v1050_v25 = vld [vmem:[%s1542_s4] sm:$0xff] }
   0xd   : > { %1093 = vset.pattern.permute.xlu0 %v1152_v0  ;;  %1089 = vset.pattern.permute.xlu1 %v1152_v0  ;;  %s1049_s25 = sshll.u32 %s1550_s21, 7  ;;  %v326_v28 = vld [vmem:[%s1539_s1] sm:$0x7]  ;;  %vm698_vm0 = vcmask 261120   ;;  %s1453_s17 = scalar_lea.vmem %s1543_s5, %s1550_s21  ;;  %vm776_vm2 = vcmask 253952  }
   0xe   : > { %1090 = vset.pattern.permute.xlu2 %v1153_v1  ;;  %s1219_s28 = scalar_lea.vmem %s1538_s0, %s1049_s25  ;;  %729 = vmatpush.bf16.msra.mxu0 %v1051_v23  ;;  %v1286_v30 = vperm.slane %v326_v28, 1  ;;  %v1288_v31 = vperm.slane %v326_v28, 0  ;;  %v1290_v33 = vperm.slane %v326_v28, 2  ;;  %v1300_v40 = vld [vmem:[%s1540_s2] ss:$0 sm:$0xff]  ;;  %s1463_s20 = scalar_lea.vmem %s1544_s6, %s1550_s21 }
   0xf   : > { %v315_v2 = vld [vmem:[%s1219_s28 + $0x28] sm:$0xff]  ;;  %v310_v3 = vld [vmem:[%s1219_s28] sm:$0xff]  ;;  %v313_v10 = vld [vmem:[%s1219_s28 + $0x18] sm:$0xff]  ;;  %1053 = vmatpush.bf16.msra.mxu2 %v1051_v23  ;;  %1052 = vmatpush.bf16.msra.mxu1 %v1051_v23 }
  0x10   : > { %445 = vperm.xlu0 %1093, %v315_v2   ;;  %425 = vperm.xlu1 %1089, %v310_v3   ;;  %v322_v4 = vld [vmem:[%s1219_s28 + $0x60] sm:$0xff]  ;;  %v311_v5 = vld [vmem:[%s1219_s28 + $0x8] sm:$0xff]  ;;  %v1238_v11 = vld [vmem:[%s1219_s28 + $0x50] sm:$0xff] }
  0x11   : > { %522 = vperm.xlu2 %1090, %v310_v3   ;;  %v314_v6 = vld [vmem:[%s1219_s28 + $0x20] sm:$0xff]  ;;  %v319_v9 = vld [vmem:[%s1219_s28 + $0x48] sm:$0xff]  ;;  %v312_v12 = vld [vmem:[%s1219_s28 + $0x10] sm:$0xff]  ;;  %1054 = vmatpush.bf16.msra.mxu3 %v1051_v23 }
  0x12   : > { %v318_v8 = vld [vmem:[%s1219_s28 + $0x40] sm:$0xff]  ;;  %v323_v13 = vld [vmem:[%s1219_s28 + $0x68] sm:$0xff]  ;;  %v317_v14 = vld [vmem:[%s1219_s28 + $0x38] sm:$0xff]  ;;  %730 = vmatpush.bf16.msra.mxu0 %v1050_v25 }
  0x13   : > { %v316_v16 = vld [vmem:[%s1219_s28 + $0x30] sm:$0xff]  ;;  %v321_v20 = vld [vmem:[%s1219_s28 + $0x58] sm:$0xff]  ;;  %1056 = vmatpush.bf16.msra.mxu2 %v1050_v25  ;;  %1055 = vmatpush.bf16.msra.mxu1 %v1050_v25  ;;  %v1313_v50 = vld [vmem:[%s1541_s3] ss:$0 sm:$0xff] }
  0x14   : > { %v1262_v19 = vld [vmem:[%s1219_s28 + $0x70] sm:$0xff]  ;;  %v325_v46 = vld [vmem:[%s1219_s28 + $0x78] sm:$0xff] }
  0x15   : > { %1057 = vmatpush.bf16.msra.mxu3 %v1050_v25 }
  0x18   : > { %473 = vperm.xlu0 %1093, %v322_v4   ;;  %429 = vperm.xlu1 %1089, %v311_v5  }
  0x19   : > { %526 = vperm.xlu2 %1090, %v311_v5  }
  0x20   : > { %1104 = vset.pattern.permute.xlu0 %v1154_v7  ;;  %1091 = vset.pattern.permute.xlu1 %v1154_v7 }
  0x21   : > { %329 = vperm.xlu0 %1104, %v310_v3   ;;  %1092 = vset.pattern.permute.xlu2 %v1152_v0 }
  0x22   : > { %354 = vperm.xlu1 %1091, %v315_v2   ;;  %441 = vperm.xlu2 %1092, %v314_v6  }
  0x29   : > { %334 = vperm.xlu0 %1104, %v311_v5  }
  0x2a   : > { %369 = vperm.xlu1 %1091, %v318_v8   ;;  %1094 = vset.pattern.permute.xlu2 %v1154_v7 }
  0x2b   : > { %374 = vperm.xlu2 %1094, %v319_v9  }
  0x31   : > { %349 = vperm.xlu0 %1104, %v314_v6  }
  0x32   : > { %1095 = vset.pattern.permute.xlu1 %v1152_v0 }
  0x33   : > { %457 = vperm.xlu1 %1095, %v318_v8   ;;  %1096 = vset.pattern.permute.xlu2 %v1152_v0 }
  0x34   : > { %461 = vperm.xlu2 %1096, %v319_v9  }
  0x39   : > { %344 = vperm.xlu0 %1104, %v313_v10  }
  0x3b   : > { %1097 = vset.pattern.permute.xlu1 %v1153_v1 }
  0x3c   : > { %542 = vperm.xlu1 %1097, %v315_v2   ;;  %1098 = vset.pattern.permute.xlu2 %v1153_v1 }
  0x3d   : > { %554 = vperm.xlu2 %1098, %v318_v8  }
  0x41   : > { %379 = vperm.xlu0 %1104, %v1238_v11  }
  0x44   : > { %558 = vperm.xlu1 %1097, %v319_v9  }
  0x45   : > { %1099 = vset.pattern.permute.xlu2 %v1154_v7 }
  0x46   : > { %339 = vperm.xlu2 %1099, %v312_v12  }
  0x49   : > { %1112 = vset.pattern.permute.xlu0 %v1153_v1 }
  0x4a   : > { %538 = vperm.xlu0 %1112, %v314_v6  }
  0x4c   : > { %1100 = vset.pattern.permute.xlu1 %v1152_v0 }
  0x4d   : > { %433 = vperm.xlu1 %1100, %v312_v12  }
  0x4e   : > { %1101 = vset.pattern.permute.xlu2 %v1152_v0 }
  0x4f   : > { %437 = vperm.xlu2 %1101, %v313_v10  }
  0x52   : > { %574 = vperm.xlu0 %1112, %v323_v13  }
  0x55   : > { %1102 = vset.pattern.permute.xlu1 %v1154_v7 }
  0x56   : > { %389 = vperm.xlu1 %1102, %v322_v4  }
  0x57   : > { %1103 = vset.pattern.permute.xlu2 %v1154_v7 }
  0x58   : > { %394 = vperm.xlu2 %1103, %v323_v13  }
  0x5a   : > { %550 = vperm.xlu0 %1112, %v317_v14  }
  0x5e   : > { %1105 = vset.pattern.permute.xlu1 %v1152_v0 }
  0x5f   : > { %477 = vperm.xlu1 %1105, %v323_v13  }
  0x60   : > { %1106 = vset.pattern.permute.xlu2 %v1153_v1 }
  0x61   : > { %530 = vperm.xlu2 %1106, %v312_v12  }
  0x62   : > { %1119 = vset.pattern.permute.xlu0 %v1152_v0 }
  0x63   : > { %481 = vperm.xlu0 %1119, %v1262_v19  }
  0x67   : > { %1107 = vset.pattern.permute.xlu1 %v1153_v1 }
  0x68   : > { %534 = vperm.xlu1 %1107, %v313_v10  }
  0x69   : > { %570 = vperm.xlu2 %1106, %v322_v4  }
  0x6b   : > { %v523_v15 = vpop.permute.xlu2 %522  ;;  %1123 = vset.pattern.permute.xlu0 %v1153_v1 }
  0x6c   : > { %v586_v39 = vmul.f32 %v1290_v33, %v523_v15 }
  0x70   : > { %1108 = vset.pattern.permute.xlu1 %v1154_v7 }
  0x71   : > { %359 = vperm.xlu1 %1108, %v316_v16   ;;  %1109 = vset.pattern.permute.xlu2 %v1154_v7 }
  0x72   : > { %364 = vperm.xlu2 %1109, %v317_v14  }
  0x73   : > { %v527_v17 = vpop.permute.xlu2 %526 }
  0x74   : > { %v587_v47 = vmul.f32 %v1290_v33, %v527_v17 }
  0x79   : > { %1110 = vset.pattern.permute.xlu1 %v1152_v0 }
  0x7a   : > { %449 = vperm.xlu1 %1110, %v316_v16   ;;  %1111 = vset.pattern.permute.xlu2 %v1152_v0 }
  0x7b   : > { %453 = vperm.xlu2 %1111, %v317_v14  }
  0x7c   : > { %v1259_v18 = vpop.permute.xlu2 %441 }
  0x82   : > { %1113 = vset.pattern.permute.xlu1 %v1154_v7  ;;  %v426_v21 = vpop.permute.xlu1 %425  ;;  %v1267_v22 = vpop.permute.xlu0 %445 }
  0x83   : > { %384 = vperm.xlu1 %1113, %v321_v20   ;;  %465 = vperm.xlu2 %1111, %v1238_v11   ;;  %v489_v34 = vmul.f32 %v1286_v30, %v426_v21  ;;  %v494_v5 = vmul.f32 %v1286_v30, %v1267_v22  ;;  %v493_v21 = vmul.f32 %v1286_v30, %v1259_v18 }
  0x85   : > { %v1273_v24 = vpop.permute.xlu2 %374 }
  0x8a   : > { %v430_v26 = vpop.permute.xlu1 %429  ;;  %v1279_v27 = vpop.permute.xlu0 %473 }
  0x8b   : > { %1114 = vset.pattern.permute.xlu1 %v1152_v0  ;;  %1115 = vset.pattern.permute.xlu2 %v1153_v1  ;;  %v490_v43 = vmul.f32 %v1286_v30, %v430_v26 }
  0x8c   : > { %469 = vperm.xlu1 %1114, %v321_v20   ;;  %546 = vperm.xlu2 %1115, %v316_v16  }
  0x8e   : > { %v462_v29 = vpop.permute.xlu2 %461 }
  0x8f   : > { %v498_v9 = vmul.f32 %v1286_v30, %v462_v29 }
  0x93   : > { %v330_v32 = vpop.permute.xlu0 %329 }
  0x94   : > { %v408_v35 = vmul.f32 %v1288_v31, %v330_v32  ;;  %1116 = vset.pattern.permute.xlu1 %v1153_v1  ;;  %v355_v36 = vpop.permute.xlu1 %354  ;;  %566 = vperm.xlu2 %1115, %v321_v20  }
  0x95   : > { %562 = vperm.xlu1 %1116, %v1238_v11   ;;  %v413_v8 = vmul.f32 %v1288_v31, %v355_v36 }
  0x96   : > { %v505_v37 = vadd.f32 %v489_v34, %v408_v35 }
  0x97   : > { %v555_v38 = vpop.permute.xlu2 %554  ;;  %v510_v14 = vadd.f32 %v494_v5, %v413_v8 }
  0x98   : > { %v602_v41 = vadd.f32 %v586_v39, %v505_v37 }
  0x9a   : > { %v622_v48 = vmul.f32 %v1300_v40, %v602_v41 }
  0x9b   : > { %v335_v42 = vpop.permute.xlu0 %334 }
  0x9c   : > { %v409_v44 = vmul.f32 %v1288_v31, %v335_v42  ;;  %v370_v45 = vpop.permute.xlu1 %369  ;;  %1118 = vset.pattern.permute.xlu2 %v1154_v7  ;;  %v642_v54 = vadd.f32 %v1313_v50, %v622_v48 }
  0x9d   : > { %1117 = vset.pattern.permute.xlu1 %v1154_v7  ;;  %404 = vperm.xlu2 %1118, %v325_v46   ;;  %v416_v2 = vmul.f32 %v1288_v31, %v370_v45  ;;  %v417_v7 = vmul.f32 %v1288_v31, %v1273_v24 }
  0x9e   : > { %v506_v49 = vadd.f32 %v490_v43, %v409_v44  ;;  %399 = vperm.xlu1 %1117, %v1262_v19   ;;  %v658_v58 = vmax.f32 %v642_v54, 0.0 }
  0xa0   : > { %v603_v51 = vadd.f32 %v587_v47, %v506_v49  ;;  %v1315_v52 = vpop.permute.xlu2 %339 }
  0xa1   : > { %v410_v54 = vmul.f32 %v1288_v31, %v1315_v52 }
  0xa2   : > { %v623_v53 = vmul.f32 %v1300_v40, %v603_v51 }
  0xa3   : > { %v350_v55 = vpop.permute.xlu0 %349 }
  0xa4   : > { %v643_v56 = vadd.f32 %v1313_v50, %v623_v53  ;;  %v412_v17 = vmul.f32 %v1288_v31, %v350_v55 }
  0xa5   : > { %v458_v57 = vpop.permute.xlu1 %457  ;;  %1121 = vset.pattern.permute.xlu2 %v1153_v1 }
  0xa6   : > { %1120 = vset.pattern.permute.xlu1 %v1152_v0  ;;  %v659_v59 = vmax.f32 %v643_v56, 0.0  ;;  %578 = vperm.xlu2 %1121, %v1262_v19   ;;  %v497_v62 = vmul.f32 %v1286_v30, %v458_v57  ;;  %v594_v0 = vmul.f32 %v1290_v33, %v555_v38  ;;  %v509_v26 = vadd.f32 %v493_v21, %v412_v17 }
  0xa7   : > { %485 = vperm.xlu1 %1120, %v325_v46  }
  0xa8   : > { %v674_v60 = vpack.c.bf16 %v659_v59, %v658_v58  ;;  %v513_v4 = vadd.f32 %v497_v62, %v416_v2 }
  0xa9   : > { %v1323_v61 = vpop.permute.xlu2 %437 }
  0xaa   : > { %1039 = vmatmul.msk.bf16.vlgmr.msra.gmra.mxu0 %vm698_vm0, %v674_v60  ;;  %v610_v10 = vadd.f32 %v594_v0, %v513_v4  ;;  %v492_v5 = vmul.f32 %v1286_v30, %v1323_v61 }
  0xab   : > { %v1327_v63 = vpop.permute.xlu0 %344 }
  0xac   : > { %v630_v15 = vmul.f32 %v1300_v40, %v610_v10  ;;  %v411_v52 = vmul.f32 %v1288_v31, %v1327_v63 }
  0xae   : > { %v543_v3 = vpop.permute.xlu1 %542  ;;  %v650_v24 = vadd.f32 %v1313_v50, %v630_v15 }
  0xaf   : > { %1122 = vset.pattern.permute.xlu1 %v1153_v1  ;;  %v591_v12 = vmul.f32 %v1290_v33, %v543_v3  ;;  %v514_v1 = vadd.f32 %v498_v9, %v417_v7 }
  0xb0   : > { %582 = vperm.xlu1 %1122, %v325_v46   ;;  %v666_v36 = vmax.f32 %v650_v24, 0.0  ;;  %v501_v46 = vmul.f32 %v1286_v30, %v1279_v27 }
  0xb1   : > { %v607_v19 = vadd.f32 %v591_v12, %v510_v14 }
  0xb2   : > { %v395_v6 = vpop.permute.xlu2 %394 }
  0xb3   : > { %v1338_v11 = vpop.permute.xlu0 %379  ;;  %v627_v28 = vmul.f32 %v1300_v40, %v607_v19  ;;  %v421_v57 = vmul.f32 %v1288_v31, %v395_v6 }
  0xb5   : > { %v647_v39 = vadd.f32 %v1313_v50, %v627_v28 }
  0xb6   : > { %v559_v13 = vpop.permute.xlu1 %558 }
  0xb7   : > { %v595_v16 = vmul.f32 %v1290_v33, %v559_v13  ;;  %v663_v44 = vmax.f32 %v647_v39, 0.0  ;;  %v508_v13 = vadd.f32 %v492_v5, %v411_v52 }
  0xb9   : > { %v611_v20 = vadd.f32 %v595_v16, %v514_v1 }
  0xbb   : > { %v631_v22 = vmul.f32 %v1300_v40, %v611_v20  ;;  %v531_v23 = vpop.permute.xlu2 %530 }
  0xbc   : > { %v539_v25 = vpop.permute.xlu0 %538  ;;  %v588_v62 = vmul.f32 %v1290_v33, %v531_v23 }
  0xbd   : > { %v590_v29 = vmul.f32 %v1290_v33, %v539_v25  ;;  %v651_v32 = vadd.f32 %v1313_v50, %v631_v22 }
  0xbf   : > { %v606_v34 = vadd.f32 %v590_v29, %v509_v26  ;;  %v434_v35 = vpop.permute.xlu1 %433  ;;  %v667_v37 = vmax.f32 %v651_v32, 0.0 }
  0xc0   : > { %v491_v55 = vmul.f32 %v1286_v30, %v434_v35 }
  0xc1   : > { %v626_v38 = vmul.f32 %v1300_v40, %v606_v34  ;;  %v678_v18 = vpack.c.bf16 %v667_v37, %v666_v36 }
  0xc2   : > { %v507_v2 = vadd.f32 %v491_v55, %v410_v54 }
  0xc3   : > { %1043 = vmatmul.msk.bf16.vlgmr.msra.gmra.mxu2 %vm698_vm0, %v678_v18  ;;  %v646_v41 = vadd.f32 %v1313_v50, %v626_v38  ;;  %v571_v42 = vpop.permute.xlu2 %570 }
  0xc4   : > { %v598_v49 = vmul.f32 %v1290_v33, %v571_v42  ;;  %v575_v56 = vpop.permute.xlu0 %574  ;;  %v604_v6 = vadd.f32 %v588_v62, %v507_v2 }
  0xc5   : > { %v662_v43 = vmax.f32 %v646_v41, 0.0  ;;  %v599_v60 = vmul.f32 %v1290_v33, %v575_v56 }
  0xc6   : > { %v624_v14 = vmul.f32 %v1300_v40, %v604_v6 }
  0xc7   : > { %v676_v45 = vpack.c.bf16 %v663_v44, %v662_v43 }
  0xc8   : > { %v390_v47 = vpop.permute.xlu1 %389  ;;  %v644_v19 = vadd.f32 %v1313_v50, %v624_v14 }
  0xc9   : > { %v420_v48 = vmul.f32 %v1288_v31, %v390_v47  ;;  %1041 = vmatmul.msk.bf16.vlgmr.msra.gmra.mxu1 %vm698_vm0, %v676_v45 }
  0xca   : > { %v660_v26 = vmax.f32 %v644_v19, 0.0 }
  0xcb   : > { %v517_v51 = vadd.f32 %v501_v46, %v420_v48 }
  0xcc   : > { %v365_v53 = vpop.permute.xlu2 %364  ;;  %v551_v24 = vpop.permute.xlu0 %550 }
  0xcd   : > { %v614_v58 = vadd.f32 %v598_v49, %v517_v51  ;;  %v415_v20 = vmul.f32 %v1288_v31, %v365_v53  ;;  %v593_v34 = vmul.f32 %v1290_v33, %v551_v24 }
  0xcf   : > { %v634_v3 = vmul.f32 %v1300_v40, %v614_v58 }
  0xd1   : > { %v478_v59 = vpop.permute.xlu1 %477  ;;  %v654_v9 = vadd.f32 %v1313_v50, %v634_v3 }
  0xd2   : > { %v502_v27 = vmul.f32 %v1286_v30, %v478_v59  ;;  %v418_v59 = vmul.f32 %v1288_v31, %v1338_v11 }
  0xd3   : > { %v670_v15 = vmax.f32 %v654_v9, 0.0 }
  0xd4   : > { %v518_v0 = vadd.f32 %v502_v27, %v421_v57 }
  0xd5   : > { %v454_v8 = vpop.permute.xlu2 %453 }
  0xd6   : > { %v615_v4 = vadd.f32 %v599_v60, %v518_v0  ;;  %v496_v21 = vmul.f32 %v1286_v30, %v454_v8 }
  0xd8   : > { %v635_v7 = vmul.f32 %v1300_v40, %v615_v4  ;;  %v512_v29 = vadd.f32 %v496_v21, %v415_v20 }
  0xda   : > { %v535_v10 = vpop.permute.xlu1 %534  ;;  %v655_v12 = vadd.f32 %v1313_v50, %v635_v7  ;;  %v609_v35 = vadd.f32 %v593_v34, %v512_v29 }
  0xdb   : > { %v589_v1 = vmul.f32 %v1290_v33, %v535_v10 }
  0xdc   : > { %v671_v16 = vmax.f32 %v655_v12, 0.0  ;;  %v629_v39 = vmul.f32 %v1300_v40, %v609_v35  ;;  %v482_v12 = vpop.permute.xlu0 %481 }
  0xdd   : > { %v605_v63 = vadd.f32 %v589_v1, %v508_v13  ;;  %v466_v23 = vpop.permute.xlu2 %465  ;;  %v503_v13 = vmul.f32 %v1286_v30, %v482_v12 }
  0xde   : > { %v680_v17 = vpack.c.bf16 %v671_v16, %v670_v15  ;;  %v649_v44 = vadd.f32 %v1313_v50, %v629_v39  ;;  %v499_v27 = vmul.f32 %v1286_v30, %v466_v23 }
  0xdf   : > { %v625_v61 = vmul.f32 %v1300_v40, %v605_v63 }
  0xe0   : > { %1045 = vmatmul.msk.bf16.vlgmr.msra.gmra.mxu3 %vm698_vm0, %v680_v17  ;;  %v665_v48 = vmax.f32 %v649_v44, 0.0  ;;  %v515_v2 = vadd.f32 %v499_v27, %v418_v59 }
  0xe1   : > { %v645_v22 = vadd.f32 %v1313_v50, %v625_v61 }
  0xe3   : > { %v360_v25 = vpop.permute.xlu1 %359  ;;  %v661_v28 = vmax.f32 %v645_v22, 0.0 }
  0xe4   : > { %v414_v38 = vmul.f32 %v1288_v31, %v360_v25 }
  0xe5   : > { %v675_v32 = vpack.c.bf16 %v661_v28, %v660_v26 }
  0xe6   : > { %v547_v36 = vpop.permute.xlu2 %546 }
  0xe7   : > { %1040 = vmatmul.msk.bf16.gmra.mxu0 %vm698_vm0, %v675_v32  ;;  %v592_v41 = vmul.f32 %v1290_v33, %v547_v36 }
  0xec   : > { %v450_v37 = vpop.permute.xlu1 %449 }
  0xed   : > { %v495_v18 = vmul.f32 %v1286_v30, %v450_v37 }
  0xee   : > { %v567_v53 = vpop.permute.xlu2 %566 }
  0xef   : > { %v511_v42 = vadd.f32 %v495_v18, %v414_v38  ;;  %v597_v57 = vmul.f32 %v1290_v33, %v567_v53 }
  0xf1   : > { %v608_v43 = vadd.f32 %v592_v41, %v511_v42 }
  0xf3   : > { %v628_v45 = vmul.f32 %v1300_v40, %v608_v43 }
  0xf5   : > { %v385_v46 = vpop.permute.xlu1 %384  ;;  %v648_v47 = vadd.f32 %v1313_v50, %v628_v45 }
  0xf6   : > { %v419_v55 = vmul.f32 %v1288_v31, %v385_v46 }
  0xf7   : > { %v664_v49 = vmax.f32 %v648_v47, 0.0  ;;  %v405_v6 = vpop.permute.xlu2 %404 }
  0xf8   : > { %v423_v17 = vmul.f32 %v1288_v31, %v405_v6 }
  0xf9   : > { %v677_v51 = vpack.c.bf16 %v665_v48, %v664_v49 }
  0xfb   : > { %1042 = vmatmul.msk.bf16.gmra.mxu1 %vm698_vm0, %v677_v51 }
  0xfe   : > { %v470_v54 = vpop.permute.xlu1 %469 }
  0xff   : > { %v500_v56 = vmul.f32 %v1286_v30, %v470_v54 }
 0x100   : > { %v579_v1 = vpop.permute.xlu2 %578 }
 0x101   : > { %v516_v58 = vadd.f32 %v500_v56, %v419_v55  ;;  %v600_v63 = vmul.f32 %v1290_v33, %v579_v1 }
 0x103   : > { %v613_v60 = vadd.f32 %v597_v57, %v516_v58 }
 0x105   : > { %v633_v3 = vmul.f32 %v1300_v40, %v613_v60 }
 0x107   : > { %v563_v62 = vpop.permute.xlu1 %562  ;;  %v653_v5 = vadd.f32 %v1313_v50, %v633_v3 }
 0x108   : > { %v596_v0 = vmul.f32 %v1290_v33, %v563_v62 }
 0x109   : > { %v669_v11 = vmax.f32 %v653_v5, 0.0 }
 0x10a   : > { %v612_v4 = vadd.f32 %v596_v0, %v515_v2 }
 0x10c   : > { %v632_v52 = vmul.f32 %v1300_v40, %v612_v4 }
 0x10e   : > { %v652_v7 = vadd.f32 %v1313_v50, %v632_v52 }
 0x110   : > { %v400_v8 = vpop.permute.xlu1 %399  ;;  %v668_v9 = vmax.f32 %v652_v7, 0.0 }
 0x111   : > { %v422_v14 = vmul.f32 %v1288_v31, %v400_v8  ;;  %v1155_v31 = vmov 128.0  }
 0x112   : > { %v679_v10 = vpack.c.bf16 %v669_v11, %v668_v9  ;;  %1126 = vrcp.f32 %v1155_v31  ;;  %v1156_v11 = vmov 0.0  }
 0x113   : > { %v519_v16 = vadd.f32 %v503_v13, %v422_v14  ;;  %777 = vst.msk [vmem:[%s1453_s17] sm:$0x1] %vm776_vm2, %v1156_v11 }
 0x114   : > { %1044 = vmatmul.msk.bf16.gmra.mxu2 %vm698_vm0, %v679_v10  ;;  %778 = vst.msk [vmem:[%s1463_s20] sm:$0x1] %vm776_vm2, %v1156_v11 }
 0x115   : > { %v616_v61 = vadd.f32 %v600_v63, %v519_v16 }
 0x117   : > { %v636_v21 = vmul.f32 %v1300_v40, %v616_v61 }
 0x119   : > { %v486_v15 = vpop.permute.xlu1 %485  ;;  %v656_v26 = vadd.f32 %v1313_v50, %v636_v21 }
 0x11a   : > { %v504_v19 = vmul.f32 %v1286_v30, %v486_v15  ;;  %v1127_v30 = vpop.eup %1126 }
 0x11b   : > { %v672_v29 = vmax.f32 %v656_v26, 0.0  ;;  %v817_v35 = vmul.f32 128.0, %v1127_v30  ;;  %vm821_vm1 = vweird.f32 %v1127_v30 }
 0x11c   : > { %v520_v22 = vadd.f32 %v504_v19, %v423_v17 }
 0x11d   : > { %v818_v36 = vsub.f32 1.0, %v817_v35 }
 0x11f   : > { %v819_v37 = vmul.f32 %v1127_v30, %v818_v36 }
 0x122   : > { %v583_v20 = vpop.permute.xlu1 %582 }
 0x123   : > { %v601_v23 = vmul.f32 %v1290_v33, %v583_v20  ;;  %v820_v33 = vadd.f32 %v1127_v30, %v819_v37 }
 0x125   : > { %v617_v24 = vadd.f32 %v601_v23, %v520_v22 }
 0x127   : > { %v637_v25 = vmul.f32 %v1300_v40, %v617_v24  ;;  %v1416_v38 = vpop.f32.mrf.mxu0  ;;  %v822_v40 = vsel %vm821_vm1, %v1127_v30, %v820_v33 }
 0x128   : > { %1058 = vpush %v822_v40  ;;  %v779_v45 = vsel %vm698_vm0, %v1416_v38, 0.0 }
 0x129   : > { %v657_v28 = vadd.f32 %v1313_v50, %v637_v25 }
 0x12b   : > { %v673_v32 = vmax.f32 %v657_v28, 0.0 }
 0x12d   : > { %v681_v34 = vpack.c.bf16 %v673_v32, %v672_v29 }
 0x12f   : > { %1046 = vmatmul.msk.bf16.gmra.mxu3 %vm698_vm0, %v681_v34  ;;  %v734_v18 = vpop.f32.mrf.mxu0 }
 0x130   : > { %v780_v43 = vsel %vm698_vm0, %v734_v18, 0.0 }
 0x131   : > { %v781_v47 = vadd.f32 %v780_v43, %v779_v45 }
 0x146   : > { %v1418_v39 = vpop.f32.mrf.mxu1  ;;  %v1422_v42 = vpop.f32.mrf.mxu2 }
 0x147   : > { %v786_v55 = vsel %vm698_vm0, %v1418_v39, 0.0  ;;  %v794_v4 = vsel %vm698_vm0, %v1422_v42, 0.0 }
 0x14e   : > { %v1420_v41 = vpop.f32.mrf.mxu1  ;;  %v1431_v53 = vpop.f32.mrf.mxu2 }
 0x14f   : > { %v788_v58 = vsel %vm698_vm0, %v1420_v41, 0.0  ;;  %v796_v7 = vsel %vm698_vm0, %v1431_v53, 0.0 }
 0x159   : > { %s1488_s21 = spop %1058 }
 0x15a   : > { %s914_s25 = smul.f32 128.0, %s1488_s21 }
 0x15c   : > { %s922_s26 = smul.f32 0.0, %s914_s25 }
 0x163   : > { %v1441_v27 = vpop.f32.mrf.mxu3 }
 0x164   : > { %v737_v50 = vpop.f32.mrf.mxu0  ;;  %v802_v1 = vsel %vm698_vm0, %v1441_v27, 0.0 }
 0x165   : > { %v782_v46 = vsel %vm698_vm0, %v737_v50, 0.0 }
 0x166   : > { %v783_v51 = vadd.f32 %v782_v46, %v781_v47 }
 0x16b   : > { %v1455_v5 = vpop.f32.mrf.mxu3 }
 0x16c   : > { %v739_v44 = vpop.f32.mrf.mxu0  ;;  %v804_v16 = vsel %vm698_vm0, %v1455_v5, 0.0 }
 0x16d   : > { %v784_v49 = vsel %vm698_vm0, %v739_v44, 0.0 }
 0x16e   : > { %v785_v54 = vadd.f32 %v784_v49, %v783_v51  ;;  %v915_v51 = vstv %s914_s25 }
 0x170   : > { %v787_v56 = vadd.f32 %v786_v55, %v785_v54 }
 0x172   : > { %v789_v60 = vadd.f32 %v788_v58, %v787_v56 }
 0x178   : > { %v1428_v48 = vpop.f32.mrf.mxu1 }
 0x179   : > { %v790_v59 = vsel %vm698_vm0, %v1428_v48, 0.0 }
 0x17a   : > { %v791_v3 = vadd.f32 %v790_v59, %v789_v60 }
 0x180   : > { %v1435_v57 = vpop.f32.mrf.mxu1 }
 0x181   : > { %v792_v2 = vsel %vm698_vm0, %v1435_v57, 0.0 }
 0x182   : > { %v793_v0 = vadd.f32 %v792_v2, %v791_v3 }
 0x184   : > { %v795_v52 = vadd.f32 %v794_v4, %v793_v0 }
 0x186   : > { %v797_v9 = vadd.f32 %v796_v7, %v795_v52 }
 0x197   : > { %v1443_v62 = vpop.f32.mrf.mxu2 }
 0x198   : > { %v798_v8 = vsel %vm698_vm0, %v1443_v62, 0.0 }
 0x199   : > { %v799_v12 = vadd.f32 %v798_v8, %v797_v9 }
 0x19f   : > { %v1457_v6 = vpop.f32.mrf.mxu2 }
 0x1a0   : > { %v800_v10 = vsel %vm698_vm0, %v1457_v6, 0.0 }
 0x1a1   : > { %v801_v13 = vadd.f32 %v800_v10, %v799_v12 }
 0x1a3   : > { %v803_v15 = vadd.f32 %v802_v1, %v801_v13 }
 0x1a5   : > { %v805_v17 = vadd.f32 %v804_v16, %v803_v15 }
 0x1b2   : > { %v1475_v14 = vpop.f32.mrf.mxu3 }
 0x1b3   : > { %v806_v63 = vsel %vm698_vm0, %v1475_v14, 0.0 }
 0x1b4   : > { %v807_v61 = vadd.f32 %v806_v63, %v805_v17 }
 0x1ba   : > { %v1483_v19 = vpop.f32.mrf.mxu3 }
 0x1bb   : > { %v808_v20 = vsel %vm698_vm0, %v1483_v19, 0.0 }
 0x1bc   : > { %v809_v21 = vadd.f32 %v808_v20, %v807_v61 }
 0x1be   : > { %v810_v22 = vrot.slane %v809_v21, 4 }
 0x1c0   : > { %v811_v23 = vadd.f32 %v810_v22, %v809_v21 }
 0x1c2   : > { %v812_v24 = vrot.slane %v811_v23, 2 }
 0x1c4   : > { %v813_v25 = vadd.f32 %v812_v24, %v811_v23 }
 0x1c6   : > { %v814_v26 = vrot.slane %v813_v25, 1 }
 0x1c8   : > { %v815_v28 = vadd.f32 %v814_v26, %v813_v25 }
 0x1ca   : > { %v823_v29 = vmul.f32 %v822_v40, %v815_v28 }
 0x1cc   : > { %v824_v32 = vsub.f32 %v1416_v38, %v823_v29  ;;  %v825_v34 = vsub.f32 %v734_v18, %v823_v29  ;;  %v826_v31 = vsub.f32 %v737_v50, %v823_v29  ;;  %v827_v30 = vsub.f32 %v739_v44, %v823_v29  ;;  %v896_v50 = vld [vmem:[%s1453_s17] sm:$0x1] }
 0x1cd   : > { %v828_v37 = vsub.f32 %v1418_v39, %v823_v29  ;;  %v829_v43 = vsub.f32 %v1420_v41, %v823_v29  ;;  %v830_v44 = vsub.f32 %v1428_v48, %v823_v29  ;;  %v831_v39 = vsub.f32 %v1435_v57, %v823_v29 }
 0x1ce   : > { %v840_v35 = vmul.f32 %v824_v32, %v824_v32  ;;  %v841_v36 = vmul.f32 %v825_v34, %v825_v34  ;;  %v842_v33 = vmul.f32 %v826_v31, %v826_v31  ;;  %v843_v45 = vmul.f32 %v827_v30, %v827_v30 }
 0x1cf   : > { %v844_v46 = vmul.f32 %v828_v37, %v828_v37  ;;  %v845_v54 = vmul.f32 %v829_v43, %v829_v43  ;;  %v897_v55 = vsub.f32 %v823_v29, %v896_v50  ;;  %v832_v58 = vsub.f32 %v1422_v42, %v823_v29 }
 0x1d0   : > { %v856_v40 = vsel %vm698_vm0, %v840_v35, 0.0  ;;  %v857_v38 = vsel %vm698_vm0, %v841_v36, 0.0  ;;  %v859_v47 = vsel %vm698_vm0, %v842_v33, 0.0  ;;  %v861_v41 = vsel %vm698_vm0, %v843_v45, 0.0 }
 0x1d1   : > { %v858_v18 = vadd.f32 %v857_v38, %v856_v40  ;;  %v846_v59 = vmul.f32 %v830_v44, %v830_v44  ;;  %v863_v60 = vsel %vm698_vm0, %v844_v46, 0.0  ;;  %v916_v48 = vmul.f32 %v915_v51, %v897_v55 }
 0x1d2   : > { %v833_v3 = vsub.f32 %v1431_v53, %v823_v29  ;;  %v847_v0 = vmul.f32 %v831_v39, %v831_v39  ;;  %v865_v4 = vsel %vm698_vm0, %v845_v54, 0.0  ;;  %v834_v7 = vsub.f32 %v1443_v62, %v823_v29 }
 0x1d3   : > { %v860_v49 = vadd.f32 %v859_v47, %v858_v18  ;;  %v917_v52 = vadd.f32 %v916_v48, %v896_v50  ;;  %v848_v8 = vmul.f32 %v832_v58, %v832_v58  ;;  %v867_v9 = vsel %vm698_vm0, %v846_v59, 0.0  ;;  %v920_v50 = vld [vmem:[%s1463_s20] sm:$0x1] }
 0x1d4   : > { %v835_v11 = vsub.f32 %v1457_v6, %v823_v29  ;;  %v849_v10 = vmul.f32 %v833_v3, %v833_v3  ;;  %v869_v12 = vsel %vm698_vm0, %v847_v0, 0.0  ;;  %v836_v53 = vsub.f32 %v1441_v27, %v823_v29 }
 0x1d5   : > { %v862_v56 = vadd.f32 %v861_v41, %v860_v49  ;;  %919 = vst.msk [vmem:[%s1453_s17] sm:$0x1] %vm776_vm2, %v917_v52  ;;  %v850_v1 = vmul.f32 %v834_v7, %v834_v7  ;;  %v871_v15 = vsel %vm698_vm0, %v848_v8, 0.0  ;;  %v837_v62 = vsub.f32 %v1455_v5, %v823_v29 }
 0x1d6   : > { %v851_v63 = vmul.f32 %v835_v11, %v835_v11  ;;  %v873_v17 = vsel %vm698_vm0, %v849_v10, 0.0  ;;  %v838_v20 = vsub.f32 %v1475_v14, %v823_v29  ;;  %v852_v21 = vmul.f32 %v836_v53, %v836_v53 }
 0x1d7   : > { %v864_v2 = vadd.f32 %v863_v60, %v862_v56  ;;  %v875_v6 = vsel %vm698_vm0, %v850_v1, 0.0  ;;  %v839_v23 = vsub.f32 %v1483_v19, %v823_v29  ;;  %v853_v27 = vmul.f32 %v837_v62, %v837_v62 }
 0x1d8   : > { %v877_v24 = vsel %vm698_vm0, %v851_v63, 0.0  ;;  %v854_v26 = vmul.f32 %v838_v20, %v838_v20  ;;  %v879_v5 = vsel %vm698_vm0, %v852_v21, 0.0  ;;  %v921_v43 = vmul.f32 %v897_v55, %v897_v55 }
 0x1d9   : > { %v866_v57 = vadd.f32 %v865_v4, %v864_v2  ;;  %v855_v32 = vmul.f32 %v839_v23, %v839_v23  ;;  %v881_v34 = vsel %vm698_vm0, %v853_v27, 0.0  ;;  %v923_v45 = vstv %s922_s26 }
 0x1da   : > { %v883_v31 = vsel %vm698_vm0, %v854_v26, 0.0  ;;  %v924_v18 = vmul.f32 %v923_v45, %v921_v43 }
 0x1db   : > { %v868_v42 = vadd.f32 %v867_v9, %v866_v57  ;;  %v885_v19 = vsel %vm698_vm0, %v855_v32, 0.0 }
 0x1dd   : > { %v870_v13 = vadd.f32 %v869_v12, %v868_v42 }
 0x1df   : > { %v872_v16 = vadd.f32 %v871_v15, %v870_v13 }
 0x1e1   : > { %v874_v61 = vadd.f32 %v873_v17, %v872_v16 }
 0x1e3   : > { %v876_v22 = vadd.f32 %v875_v6, %v874_v61 }
 0x1e5   : > { %v878_v25 = vadd.f32 %v877_v24, %v876_v22 }
 0x1e7   : > { %v880_v28 = vadd.f32 %v879_v5, %v878_v25 }
 0x1e9   : > { %v882_v14 = vadd.f32 %v881_v34, %v880_v28 }
 0x1eb   : > { %v884_v30 = vadd.f32 %v883_v31, %v882_v14 }
 0x1ed   : > { %v886_v29 = vadd.f32 %v885_v19, %v884_v30 }
 0x1ef   : > { %v887_v35 = vrot.slane %v886_v29, 4 }
 0x1f1   : > { %v888_v36 = vadd.f32 %v887_v35, %v886_v29 }
 0x1f3   : > { %v889_v37 = vrot.slane %v888_v36, 2 }
 0x1f5   : > { %v890_v33 = vadd.f32 %v889_v37, %v888_v36 }
 0x1f7   : > { %v891_v40 = vrot.slane %v890_v33, 1 }
 0x1f9   : > { %v892_v38 = vadd.f32 %v891_v40, %v890_v33 }
 0x1fb   : > { %v925_v44 = vadd.f32 %v924_v18, %v892_v38 }
 0x1fd   : > { %v926_v46 = vadd.f32 %v925_v44, %v920_v50 }
 0x1ff   : > { %927 = vst.msk [vmem:[%s1463_s20] sm:$0x1] %vm776_vm2, %v926_v46 }
 0x200 PF: > { %s17_s23 = sadd.s32 1, %s1150_s23   ;;  %s1545_s21 = smov %s1146_s22 }
 0x201   : > { %p14_p5 = scmp.ge.s32.totalorder %s17_s23, 4   ;;  %s1546_s22 = smov %s1548_s24 }
 0x203   :  { %16 = sbr.rel (!%p14_p5) target bundleno = 2 (0x2), region = 86 }

// kernel: pointnet_segmenter_forward.7
= control target key start
LH: loop header
LB: loop body
LE: loop exit
PB: predicated region body
PF: predicated region fallthrough
CT: control target
= control target key end

     0   :  { %s897_s12 = smov 0   ;;  %s899_s13 = smov 0   ;;  %s1165_s0 = inlined_call_operand.vmem [shape: f32[2,128,3], index: 0, kind: input, shape index: {}]   ;;  %s1166_s1 = inlined_call_operand.vmem [shape: f32[3,32], index: 1, kind: input, shape index: {}]   ;;  %s1167_s2 = inlined_call_operand.vmem [shape: f32[2,1,32], index: 2, kind: output, shape index: {0}]   ;;  %s1168_s3 = inlined_call_operand.vmem [shape: f32[2,1,32], index: 3, kind: output, shape index: {1}]  }
   0x1   :  { %s901_s14 = smov 0  }
   0x2 LB: > { %s33_s15 = sadd.s32 1, %s866_s13  ;;  %p793_p0 = scmp.ge.s32.totalorder %s870_s14, 1  ;;  %s870_s14 = sphi %s901_s14, %s14_s14   ;;  %s866_s13 = sphi %s899_s13, %s1170_s13   ;;  %s862_s12 = sphi %s897_s12, %s1169_s12  }
   0x3   : > { %p35_p1 = scmp.ge.s32.totalorder %s33_s15, 2  ;;  %p174_p2 = scmp.lt.s32.totalorder %s870_s14, 3 }
   0x5   : > { %s1172_s15 = smov (%p35_p1, %s33_s15), 0  ;;  %p175_p3 = pnand %p793_p0, %p174_p2 }
   0x6   : > { %p208_p4 = scmp.lt.s32.totalorder (!%p175_p3), %s862_s12, 1 }
   0x7   : > { %178 = sbr.rel (%p175_p3) target bundleno = 343 (0x157), region = 28 }
   0xc   : > { %v872_v0 = vmov 0   ;;  %s1174_s12 = smov (!%p208_p4, %s862_s12), 1  ;;  %v873_v17 = vmov 1   ;;  %v874_v18 = vmov 2   ;;  %v875_v45 = vmov 128.0  }
   0xd   : > { %832 = vset.pattern.permute.xlu2 %v872_v0  ;;  %831 = vset.pattern.permute.xlu1 %v872_v0  ;;  %s798_s16 = sshll.u32 %s1174_s12, 7  ;;  %846 = vrcp.f32 %v875_v45  ;;  %v244_v46 = vld [vmem:[%s1166_s1] sm:$0x7]  ;;  %vm543_vm1 = vcmask 261120   ;;  %s1087_s24 = scalar_lea.vmem %s1167_s2, %s1174_s12  ;;  %vm540_vm2 = vcmask 253952  }
   0xe   : > { %830 = vset.pattern.permute.xlu0 %v872_v0  ;;  %s921_s19 = scalar_lea.vmem %s1165_s0, %s798_s16  ;;  %v973_v49 = vperm.slane %v244_v46, 1  ;;  %v977_v53 = vperm.slane %v244_v46, 0  ;;  %v980_v55 = vperm.slane %v244_v46, 2  ;;  %s1094_s27 = scalar_lea.vmem %s1168_s3, %s1174_s12 }
   0xf   : > { %v232_v1 = vld [vmem:[%s921_s19 + $0x20] sm:$0xff]  ;;  %v230_v2 = vld [vmem:[%s921_s19 + $0x10] sm:$0xff]  ;;  %v233_v4 = vld [vmem:[%s921_s19 + $0x28] sm:$0xff] }
  0x10   : > { %v228_v3 = vld [vmem:[%s921_s19] sm:$0xff]  ;;  %267 = vperm.xlu2 %832, %v232_v1   ;;  %257 = vperm.xlu1 %831, %v230_v2   ;;  %v231_v5 = vld [vmem:[%s921_s19 + $0x18] sm:$0xff]  ;;  %v229_v6 = vld [vmem:[%s921_s19 + $0x8] sm:$0xff] }
  0x11   : > { %247 = vperm.xlu0 %830, %v228_v3   ;;  %v236_v7 = vld [vmem:[%s921_s19 + $0x40] sm:$0xff]  ;;  %v235_v8 = vld [vmem:[%s921_s19 + $0x38] sm:$0xff]  ;;  %v234_v9 = vld [vmem:[%s921_s19 + $0x30] sm:$0xff] }
  0x12   : > { %v239_v10 = vld [vmem:[%s921_s19 + $0x58] sm:$0xff]  ;;  %v238_v11 = vld [vmem:[%s921_s19 + $0x50] sm:$0xff]  ;;  %v237_v12 = vld [vmem:[%s921_s19 + $0x48] sm:$0xff] }
  0x13   : > { %v936_v13 = vld [vmem:[%s921_s19 + $0x70] sm:$0xff]  ;;  %v241_v14 = vld [vmem:[%s921_s19 + $0x68] sm:$0xff]  ;;  %v240_v15 = vld [vmem:[%s921_s19 + $0x60] sm:$0xff]  ;;  %v847_v48 = vpop.eup %846 }
  0x14   : > { %v243_v16 = vld [vmem:[%s921_s19 + $0x78] sm:$0xff]  ;;  %v582_v52 = vmul.f32 128.0, %v847_v48  ;;  %vm586_vm0 = vweird.f32 %v847_v48 }
  0x16   : > { %v583_v56 = vsub.f32 1.0, %v582_v52 }
  0x18   : > { %272 = vperm.xlu2 %832, %v233_v4   ;;  %262 = vperm.xlu1 %831, %v231_v5   ;;  %v584_v58 = vmul.f32 %v847_v48, %v583_v56 }
  0x19   : > { %252 = vperm.xlu0 %830, %v229_v6  }
  0x20   : > { %287 = vperm.xlu2 %832, %v236_v7   ;;  %282 = vperm.xlu1 %831, %v235_v8  }
  0x21   : > { %277 = vperm.xlu0 %830, %v234_v9  }
  0x28   : > { %302 = vperm.xlu2 %832, %v239_v10   ;;  %297 = vperm.xlu1 %831, %v238_v11  }
  0x29   : > { %292 = vperm.xlu0 %830, %v237_v12  }
  0x30   : > { %317 = vperm.xlu2 %832, %v936_v13   ;;  %312 = vperm.xlu1 %831, %v241_v14  }
  0x31   : > { %307 = vperm.xlu0 %830, %v240_v15  }
  0x38   : > { %834 = vset.pattern.permute.xlu2 %v873_v17  ;;  %833 = vset.pattern.permute.xlu1 %v873_v17 }
  0x39   : > { %322 = vperm.xlu0 %830, %v243_v16   ;;  %347 = vperm.xlu2 %834, %v229_v6  }
  0x3a   : > { %343 = vperm.xlu1 %833, %v228_v3  }
  0x41   : > { %835 = vset.pattern.permute.xlu0 %v873_v17  ;;  %359 = vperm.xlu2 %834, %v232_v1  }
  0x42   : > { %355 = vperm.xlu1 %833, %v231_v5   ;;  %351 = vperm.xlu0 %835, %v230_v2  }
  0x49   : > { %367 = vperm.xlu2 %834, %v234_v9  }
  0x4a   : > { %363 = vperm.xlu1 %833, %v233_v4   ;;  %371 = vperm.xlu0 %835, %v235_v8  }
  0x51   : > { %836 = vset.pattern.permute.xlu2 %v874_v18 }
  0x52   : > { %375 = vperm.xlu1 %833, %v236_v7   ;;  %387 = vperm.xlu0 %835, %v239_v10  }
  0x53   : > { %440 = vperm.xlu2 %836, %v228_v3  }
  0x5a   : > { %837 = vset.pattern.permute.xlu1 %v874_v18  ;;  %841 = vset.pattern.permute.xlu0 %v874_v18 }
  0x5b   : > { %452 = vperm.xlu2 %836, %v231_v5   ;;  %448 = vperm.xlu1 %837, %v230_v2  }
  0x5c   : > { %444 = vperm.xlu0 %841, %v229_v6  }
  0x63   : > { %460 = vperm.xlu2 %836, %v233_v4   ;;  %456 = vperm.xlu1 %837, %v232_v1   ;;  %v585_v1 = vadd.f32 %v847_v48, %v584_v58 }
  0x64   : > { %464 = vperm.xlu0 %841, %v234_v9  }
  0x65   : > { %v990_v5 = vsel %vm586_vm0, %v847_v48, %v585_v1 }
  0x66   : > { %799 = vpush %v990_v5 }
  0x6a   : > { %v942_v19 = vpop.permute.xlu2 %267 }
  0x6b   : > { %838 = vset.pattern.permute.xlu2 %v873_v17  ;;  %468 = vperm.xlu1 %837, %v235_v8  }
  0x6c   : > { %472 = vperm.xlu0 %841, %v236_v7   ;;  %379 = vperm.xlu2 %838, %v237_v12  }
  0x72   : > { %v944_v20 = vpop.permute.xlu2 %272 }
  0x73   : > { %839 = vset.pattern.permute.xlu1 %v873_v17 }
  0x74   : > { %488 = vperm.xlu0 %841, %v240_v15   ;;  %840 = vset.pattern.permute.xlu2 %v874_v18 }
  0x75   : > { %383 = vperm.xlu1 %839, %v238_v11   ;;  %476 = vperm.xlu2 %840, %v237_v12  }
  0x7a   : > { %v946_v21 = vpop.permute.xlu2 %287 }
  0x7b   : > { %v334_v1 = vmul.f32 %v977_v53, %v946_v21 }
  0x7c   : > { %500 = vperm.xlu0 %841, %v243_v16  }
  0x7d   : > { %842 = vset.pattern.permute.xlu1 %v874_v18  ;;  %843 = vset.pattern.permute.xlu2 %v873_v17 }
  0x7e   : > { %480 = vperm.xlu1 %842, %v238_v11   ;;  %391 = vperm.xlu2 %843, %v240_v15  }
  0x82   : > { %v948_v22 = vpop.permute.xlu2 %302  ;;  %v258_v23 = vpop.permute.xlu1 %257 }
  0x83   : > { %v248_v24 = vpop.permute.xlu0 %247  ;;  %v328_v2 = vmul.f32 %v977_v53, %v258_v23 }
  0x84   : > { %v326_v57 = vmul.f32 %v977_v53, %v248_v24  ;;  %v330_v24 = vmul.f32 %v977_v53, %v942_v19 }
  0x86   : > { %484 = vperm.xlu1 %842, %v239_v10   ;;  %395 = vperm.xlu2 %843, %v241_v14  }
  0x8a   : > { %v950_v25 = vpop.permute.xlu2 %317  ;;  %v263_v26 = vpop.permute.xlu1 %262 }
  0x8b   : > { %v253_v27 = vpop.permute.xlu0 %252  ;;  %v329_v3 = vmul.f32 %v977_v53, %v263_v26 }
  0x8c   : > { %v327_v59 = vmul.f32 %v977_v53, %v253_v27 }
  0x8e   : > { %844 = vset.pattern.permute.xlu1 %v873_v17  ;;  %845 = vset.pattern.permute.xlu2 %v874_v18  ;;  %v331_v18 = vmul.f32 %v977_v53, %v944_v20 }
  0x8f   : > { %399 = vperm.xlu1 %844, %v936_v13   ;;  %492 = vperm.xlu2 %845, %v241_v14  }
  0x92   : > { %v953_v28 = vpop.permute.xlu1 %282 }
  0x93   : > { %v955_v29 = vpop.permute.xlu0 %277  ;;  %v348_v30 = vpop.permute.xlu2 %347 }
  0x94   : > { %v408_v60 = vmul.f32 %v973_v49, %v348_v30  ;;  %v332_v19 = vmul.f32 %v977_v53, %v955_v29 }
  0x96   : > { %v424_v6 = vadd.f32 %v408_v60, %v327_v59 }
  0x97   : > { %403 = vperm.xlu1 %844, %v243_v16   ;;  %496 = vperm.xlu2 %845, %v936_v13   ;;  %s1126_s28 = spop %799 }
  0x98   : > { %s679_s29 = smul.f32 128.0, %s1126_s28 }
  0x9a   : > { %v958_v31 = vpop.permute.xlu1 %297  ;;  %s687_s30 = smul.f32 0.0, %s679_s29 }
  0x9b   : > { %v960_v32 = vpop.permute.xlu0 %292  ;;  %v360_v33 = vpop.permute.xlu2 %359 }
  0x9c   : > { %v411_v23 = vmul.f32 %v973_v49, %v360_v33 }
  0xa2   : > { %v962_v34 = vpop.permute.xlu1 %312 }
  0xa3   : > { %v964_v35 = vpop.permute.xlu0 %307  ;;  %v368_v36 = vpop.permute.xlu2 %367 }
  0xab   : > { %v966_v37 = vpop.permute.xlu0 %322 }
  0xac   : > { %v344_v38 = vpop.permute.xlu1 %343 }
  0xad   : > { %v441_v39 = vpop.permute.xlu2 %440  ;;  %v407_v54 = vmul.f32 %v973_v49, %v344_v38  ;;  %v413_v38 = vmul.f32 %v973_v49, %v368_v36 }
  0xae   : > { %v504_v62 = vmul.f32 %v980_v55, %v441_v39 }
  0xaf   : > { %v423_v61 = vadd.f32 %v407_v54, %v326_v57  ;;  %v429_v52 = vadd.f32 %v413_v38, %v332_v19 }
  0xb1   : > { %v992_v7 = vadd.f32 %v504_v62, %v423_v61  ;;  %v333_v62 = vmul.f32 %v977_v53, %v953_v28 }
  0xb3   : > { %v544_v26 = vsel %vm543_vm1, %v992_v7, 0.0 }
  0xb4   : > { %v356_v40 = vpop.permute.xlu1 %355  ;;  %v352_v41 = vpop.permute.xlu0 %351 }
  0xb5   : > { %v453_v42 = vpop.permute.xlu2 %452  ;;  %v410_v63 = vmul.f32 %v973_v49, %v356_v40  ;;  %v409_v0 = vmul.f32 %v973_v49, %v352_v41 }
  0xb6   : > { %v507_v13 = vmul.f32 %v980_v55, %v453_v42  ;;  %v427_v42 = vadd.f32 %v411_v23, %v330_v24 }
  0xb7   : > { %v426_v11 = vadd.f32 %v410_v63, %v329_v3  ;;  %v425_v12 = vadd.f32 %v409_v0, %v328_v2 }
  0xb9   : > { %v1010_v27 = vadd.f32 %v507_v13, %v426_v11 }
  0xbb   : > { %v549_v48 = vsel %vm543_vm1, %v1010_v27, 0.0 }
  0xbc   : > { %v364_v43 = vpop.permute.xlu1 %363  ;;  %v968_v44 = vpop.permute.xlu0 %371 }
  0xbd   : > { %v461_v47 = vpop.permute.xlu2 %460  ;;  %v412_v15 = vmul.f32 %v973_v49, %v364_v43  ;;  %v414_v29 = vmul.f32 %v973_v49, %v968_v44  ;;  %v335_v44 = vmul.f32 %v977_v53, %v960_v32 }
  0xbe   : > { %v509_v40 = vmul.f32 %v980_v55, %v461_v47 }
  0xbf   : > { %v428_v39 = vadd.f32 %v412_v15, %v331_v18 }
  0xc1   : > { %v1024_v47 = vadd.f32 %v509_v40, %v428_v39 }
  0xc3   : > { %v553_v63 = vsel %vm543_vm1, %v1024_v47, 0.0 }
  0xc4   : > { %v376_v50 = vpop.permute.xlu1 %375  ;;  %v975_v51 = vpop.permute.xlu0 %387 }
  0xc5   : > { %v415_v60 = vmul.f32 %v973_v49, %v376_v50 }
  0xc6   : > { %v380_v8 = vpop.permute.xlu2 %379 }
  0xc7   : > { %v416_v0 = vmul.f32 %v973_v49, %v380_v8 }
  0xcd   : > { %v449_v4 = vpop.permute.xlu1 %448 }
  0xce   : > { %v506_v9 = vmul.f32 %v980_v55, %v449_v4  ;;  %v445_v10 = vpop.permute.xlu0 %444  ;;  %v430_v4 = vadd.f32 %v414_v29, %v333_v62 }
  0xcf   : > { %v505_v14 = vmul.f32 %v980_v55, %v445_v10  ;;  %v477_v54 = vpop.permute.xlu2 %476  ;;  %v431_v10 = vadd.f32 %v415_v60, %v334_v1 }
  0xd0   : > { %v999_v16 = vadd.f32 %v506_v9, %v425_v12  ;;  %v513_v50 = vmul.f32 %v980_v55, %v477_v54  ;;  %v432_v12 = vadd.f32 %v416_v0, %v335_v44  ;;  %v338_v54 = vmul.f32 %v977_v53, %v964_v35 }
  0xd1   : > { %v1001_v17 = vadd.f32 %v505_v14, %v424_v6 }
  0xd2   : > { %v547_v20 = vsel %vm543_vm1, %v999_v16, 0.0  ;;  %v1053_v32 = vadd.f32 %v513_v50, %v432_v12 }
  0xd3   : > { %v545_v30 = vsel %vm543_vm1, %v1001_v17, 0.0 }
  0xd4   : > { %v546_v41 = vadd.f32 %v545_v30, %v544_v26  ;;  %v561_v26 = vsel %vm543_vm1, %v1053_v32, 0.0 }
  0xd5   : > { %v457_v33 = vpop.permute.xlu1 %456 }
  0xd6   : > { %v548_v43 = vadd.f32 %v547_v20, %v546_v41  ;;  %v508_v45 = vmul.f32 %v980_v55, %v457_v33  ;;  %v465_v46 = vpop.permute.xlu0 %464  ;;  %v336_v41 = vmul.f32 %v977_v53, %v958_v31  ;;  %v337_v31 = vmul.f32 %v977_v53, %v948_v22 }
  0xd7   : > { %v510_v36 = vmul.f32 %v980_v55, %v465_v46 }
  0xd8   : > { %v1026_v56 = vadd.f32 %v508_v45, %v427_v42  ;;  %v550_v57 = vadd.f32 %v549_v48, %v548_v43  ;;  %v392_v14 = vpop.permute.xlu2 %391  ;;  %v418_v45 = vmul.f32 %v973_v49, %v975_v51  ;;  %v339_v51 = vmul.f32 %v977_v53, %v962_v34 }
  0xd9   : > { %v1032_v59 = vadd.f32 %v510_v36, %v429_v52  ;;  %v419_v46 = vmul.f32 %v973_v49, %v392_v14 }
  0xda   : > { %v551_v58 = vsel %vm543_vm1, %v1026_v56, 0.0  ;;  %v434_v60 = vadd.f32 %v418_v45, %v337_v31 }
  0xdb   : > { %v552_v61 = vadd.f32 %v551_v58, %v550_v57  ;;  %v555_v6 = vsel %vm543_vm1, %v1032_v59, 0.0 }
  0xdd   : > { %v554_v2 = vadd.f32 %v553_v63, %v552_v61  ;;  %v469_v3 = vpop.permute.xlu1 %468  ;;  %v435_v61 = vadd.f32 %v419_v46, %v338_v54 }
  0xde   : > { %v511_v28 = vmul.f32 %v980_v55, %v469_v3  ;;  %v473_v9 = vpop.permute.xlu0 %472 }
  0xdf   : > { %v556_v11 = vadd.f32 %v555_v6, %v554_v2  ;;  %v512_v8 = vmul.f32 %v980_v55, %v473_v9  ;;  %v340_v9 = vmul.f32 %v977_v53, %v950_v25 }
  0xe0   : > { %v1049_v21 = vadd.f32 %v511_v28, %v430_v4  ;;  %v396_v39 = vpop.permute.xlu2 %395  ;;  %v876_v28 = vmov 0.0  }
  0xe1   : > { %v1051_v13 = vadd.f32 %v512_v8, %v431_v10  ;;  %v420_v57 = vmul.f32 %v973_v49, %v396_v39  ;;  %541 = vst.msk [vmem:[%s1087_s24] sm:$0x1] %vm540_vm2, %v876_v28 }
  0xe2   : > { %v557_v15 = vsel %vm543_vm1, %v1049_v21, 0.0  ;;  %542 = vst.msk [vmem:[%s1094_s27] sm:$0x1] %vm540_vm2, %v876_v28 }
  0xe3   : > { %v558_v18 = vadd.f32 %v557_v15, %v556_v11  ;;  %v559_v23 = vsel %vm543_vm1, %v1051_v13, 0.0  ;;  %v436_v22 = vadd.f32 %v420_v57, %v339_v51 }
  0xe5   : > { %v560_v24 = vadd.f32 %v559_v23, %v558_v18 }
  0xe6   : > { %v489_v43 = vpop.permute.xlu0 %488 }
  0xe7   : > { %v384_v30 = vpop.permute.xlu1 %383  ;;  %v562_v38 = vadd.f32 %v561_v26, %v560_v24  ;;  %v516_v29 = vmul.f32 %v980_v55, %v489_v43  ;;  %v341_v26 = vmul.f32 %v977_v53, %v966_v37 }
  0xe8   : > { %v417_v40 = vmul.f32 %v973_v49, %v384_v30 }
  0xe9   : > { %v493_v36 = vpop.permute.xlu2 %492  ;;  %v532_v0 = vadd.f32 %v516_v29, %v435_v61 }
  0xea   : > { %v433_v33 = vadd.f32 %v417_v40, %v336_v41  ;;  %v517_v62 = vmul.f32 %v980_v55, %v493_v36 }
  0xeb   : > { %v567_v34 = vsel %vm543_vm1, %v532_v0, 0.0 }
  0xec   : > { %v533_v44 = vadd.f32 %v517_v62, %v436_v22  ;;  %v680_v62 = vstv %s679_s29 }
  0xee   : > { %v569_v4 = vsel %vm543_vm1, %v533_v44, 0.0  ;;  %v501_v18 = vpop.permute.xlu0 %500 }
  0xef   : > { %v519_v25 = vmul.f32 %v980_v55, %v501_v18 }
  0xf0   : > { %v481_v20 = vpop.permute.xlu1 %480 }
  0xf1   : > { %v514_v19 = vmul.f32 %v980_v55, %v481_v20  ;;  %v497_v50 = vpop.permute.xlu2 %496 }
  0xf2   : > { %v518_v8 = vmul.f32 %v980_v55, %v497_v50 }
  0xf3   : > { %v1065_v42 = vadd.f32 %v514_v19, %v433_v33 }
  0xf5   : > { %v563_v48 = vsel %vm543_vm1, %v1065_v42, 0.0 }
  0xf6   : > { %v564_v52 = vadd.f32 %v563_v48, %v562_v38 }
  0xf8   : > { %v485_v58 = vpop.permute.xlu1 %484 }
  0xf9   : > { %v515_v63 = vmul.f32 %v980_v55, %v485_v58 }
  0xfb   : > { %v531_v1 = vadd.f32 %v515_v63, %v434_v60 }
  0xfd   : > { %v565_v35 = vsel %vm543_vm1, %v531_v1, 0.0 }
  0xfe   : > { %v566_v2 = vadd.f32 %v565_v35, %v564_v52 }
 0x100   : > { %v568_v3 = vadd.f32 %v567_v34, %v566_v2 }
 0x101   : > { %v400_v6 = vpop.permute.xlu1 %399 }
 0x102   : > { %v421_v10 = vmul.f32 %v973_v49, %v400_v6  ;;  %v570_v11 = vadd.f32 %v569_v4, %v568_v3 }
 0x104   : > { %v437_v12 = vadd.f32 %v421_v10, %v340_v9 }
 0x106   : > { %v534_v14 = vadd.f32 %v518_v8, %v437_v12 }
 0x108   : > { %v571_v15 = vsel %vm543_vm1, %v534_v14, 0.0 }
 0x109   : > { %v572_v23 = vadd.f32 %v571_v15, %v570_v11  ;;  %v404_v24 = vpop.permute.xlu1 %403 }
 0x10a   : > { %v422_v30 = vmul.f32 %v973_v49, %v404_v24 }
 0x10c   : > { %v438_v38 = vadd.f32 %v422_v30, %v341_v26 }
 0x10e   : > { %v1110_v39 = vadd.f32 %v519_v25, %v438_v38 }
 0x110   : > { %v573_v40 = vsel %vm543_vm1, %v1110_v39, 0.0 }
 0x111   : > { %v574_v41 = vadd.f32 %v573_v40, %v572_v23 }
 0x113   : > { %v575_v20 = vrot.slane %v574_v41, 4 }
 0x115   : > { %v576_v33 = vadd.f32 %v575_v20, %v574_v41 }
 0x117   : > { %v577_v19 = vrot.slane %v576_v33, 2 }
 0x119   : > { %v578_v43 = vadd.f32 %v577_v19, %v576_v33 }
 0x11b   : > { %v579_v45 = vrot.slane %v578_v43, 1 }
 0x11d   : > { %v580_v46 = vadd.f32 %v579_v45, %v578_v43 }
 0x11f   : > { %v588_v48 = vmul.f32 %v990_v5, %v580_v46 }
 0x121   : > { %v589_v37 = vsub.f32 %v992_v7, %v588_v48  ;;  %v590_v49 = vsub.f32 %v1001_v17, %v588_v48  ;;  %v591_v53 = vsub.f32 %v999_v16, %v588_v48  ;;  %v592_v55 = vsub.f32 %v1010_v27, %v588_v48 }
 0x122   : > { %v593_v36 = vsub.f32 %v1026_v56, %v588_v48  ;;  %v594_v52 = vsub.f32 %v1024_v47, %v588_v48  ;;  %v595_v31 = vsub.f32 %v1032_v59, %v588_v48  ;;  %v596_v54 = vsub.f32 %v1049_v21, %v588_v48 }
 0x123   : > { %v597_v57 = vsub.f32 %v1051_v13, %v588_v48  ;;  %v598_v5 = vsub.f32 %v1053_v32, %v588_v48  ;;  %v599_v7 = vsub.f32 %v1065_v42, %v588_v48  ;;  %v600_v17 = vsub.f32 %v531_v1, %v588_v48  ;;  %v661_v32 = vld [vmem:[%s1087_s24] sm:$0x1] }
 0x124   : > { %v601_v29 = vsub.f32 %v532_v0, %v588_v48  ;;  %v602_v16 = vsub.f32 %v533_v44, %v588_v48  ;;  %v603_v51 = vsub.f32 %v534_v14, %v588_v48  ;;  %v605_v27 = vmul.f32 %v589_v37, %v589_v37 }
 0x125   : > { %v606_v58 = vmul.f32 %v590_v49, %v590_v49  ;;  %v607_v47 = vmul.f32 %v591_v53, %v591_v53  ;;  %v608_v56 = vmul.f32 %v592_v55, %v592_v55  ;;  %v609_v42 = vmul.f32 %v593_v36, %v593_v36 }
 0x126   : > { %v621_v59 = vsel %vm543_vm1, %v605_v27, 0.0  ;;  %v610_v63 = vmul.f32 %v594_v52, %v594_v52  ;;  %v662_v0 = vsub.f32 %v588_v48, %v661_v32  ;;  %v611_v44 = vmul.f32 %v595_v31, %v595_v31 }
 0x127   : > { %v622_v21 = vsel %vm543_vm1, %v606_v58, 0.0  ;;  %v624_v60 = vsel %vm543_vm1, %v607_v47, 0.0  ;;  %v626_v22 = vsel %vm543_vm1, %v608_v56, 0.0  ;;  %v628_v35 = vsel %vm543_vm1, %v609_v42, 0.0 }
 0x128   : > { %v623_v13 = vadd.f32 %v622_v21, %v621_v59  ;;  %v681_v2 = vmul.f32 %v680_v62, %v662_v0  ;;  %v612_v3 = vmul.f32 %v596_v54, %v596_v54  ;;  %v630_v4 = vsel %vm543_vm1, %v610_v63, 0.0 }
 0x129   : > { %v613_v28 = vmul.f32 %v597_v57, %v597_v57  ;;  %v632_v9 = vsel %vm543_vm1, %v611_v44, 0.0  ;;  %v614_v11 = vmul.f32 %v598_v5, %v598_v5  ;;  %v615_v14 = vmul.f32 %v599_v7, %v599_v7 }
 0x12a   : > { %v625_v61 = vadd.f32 %v624_v60, %v623_v13  ;;  %v682_v50 = vadd.f32 %v681_v2, %v661_v32  ;;  %v634_v8 = vsel %vm543_vm1, %v612_v3, 0.0  ;;  %v616_v23 = vmul.f32 %v600_v17, %v600_v17 }
 0x12b   : > { %v636_v15 = vsel %vm543_vm1, %v613_v28, 0.0  ;;  %v638_v24 = vsel %vm543_vm1, %v614_v11, 0.0  ;;  %v617_v30 = vmul.f32 %v601_v29, %v601_v29  ;;  %v640_v25 = vsel %vm543_vm1, %v615_v14, 0.0 }
 0x12c   : > { %v627_v1 = vadd.f32 %v626_v22, %v625_v61  ;;  %684 = vst.msk [vmem:[%s1087_s24] sm:$0x1] %vm540_vm2, %v682_v50  ;;  %v604_v40 = vsub.f32 %v1110_v39, %v588_v48  ;;  %v618_v41 = vmul.f32 %v602_v16, %v602_v16  ;;  %v642_v20 = vsel %vm543_vm1, %v616_v23, 0.0  ;;  %v685_v16 = vld [vmem:[%s1094_s27] sm:$0x1] }
 0x12d   : > { %v619_v19 = vmul.f32 %v603_v51, %v603_v51  ;;  %v644_v43 = vsel %vm543_vm1, %v617_v30, 0.0  ;;  %v686_v57 = vmul.f32 %v662_v0, %v662_v0  ;;  %v688_v5 = vstv %s687_s30 }
 0x12e   : > { %v629_v34 = vadd.f32 %v628_v35, %v627_v1  ;;  %v620_v46 = vmul.f32 %v604_v40, %v604_v40  ;;  %v646_v37 = vsel %vm543_vm1, %v618_v41, 0.0 }
 0x12f   : > { %v648_v53 = vsel %vm543_vm1, %v619_v19, 0.0  ;;  %v689_v29 = vmul.f32 %v688_v5, %v686_v57 }
 0x130   : > { %v631_v6 = vadd.f32 %v630_v4, %v629_v34  ;;  %v650_v39 = vsel %vm543_vm1, %v620_v46, 0.0 }
 0x132   : > { %v633_v10 = vadd.f32 %v632_v9, %v631_v6 }
 0x134   : > { %v635_v12 = vadd.f32 %v634_v8, %v633_v10 }
 0x136   : > { %v637_v18 = vadd.f32 %v636_v15, %v635_v12 }
 0x138   : > { %v639_v26 = vadd.f32 %v638_v24, %v637_v18 }
 0x13a   : > { %v641_v38 = vadd.f32 %v640_v25, %v639_v26 }
 0x13c   : > { %v643_v33 = vadd.f32 %v642_v20, %v641_v38 }
 0x13e   : > { %v645_v45 = vadd.f32 %v644_v43, %v643_v33 }
 0x140   : > { %v647_v49 = vadd.f32 %v646_v37, %v645_v45 }
 0x142   : > { %v649_v55 = vadd.f32 %v648_v53, %v647_v49 }
 0x144   : > { %v651_v48 = vadd.f32 %v650_v39, %v649_v55 }
 0x146   : > { %v652_v36 = vrot.slane %v651_v48, 4 }
 0x148   : > { %v653_v52 = vadd.f32 %v652_v36, %v651_v48 }
 0x14a   : > { %v654_v31 = vrot.slane %v653_v52, 2 }
 0x14c   : > { %v655_v54 = vadd.f32 %v654_v31, %v653_v52 }
 0x14e   : > { %v656_v7 = vrot.slane %v655_v54, 1 }
 0x150   : > { %v657_v17 = vadd.f32 %v656_v7, %v655_v54 }
 0x152   : > { %v690_v51 = vadd.f32 %v689_v29, %v657_v17 }
 0x154   : > { %v691_v27 = vadd.f32 %v690_v51, %v685_v16 }
 0x156   : > { %692 = vst.msk [vmem:[%s1094_s27] sm:$0x1] %vm540_vm2, %v691_v27 }
 0x157 PF: > { %s14_s14 = sadd.s32 1, %s870_s14   ;;  %s1169_s12 = smov %s866_s13 }
 0x158   : > { %p11_p5 = scmp.ge.s32.totalorder %s14_s14, 4   ;;  %s1170_s13 = smov %s1172_s15 }
 0x15a   :  { %13 = sbr.rel (!%p11_p5) target bundleno = 2 (0x2), region = 74 }

// kernel: pointnet_segmenter_forward.9
= control target key start
LH: loop header
LB: loop body
LE: loop exit
PB: predicated region body
PF: predicated region fallthrough
CT: control target
= control target key end

     0   :  { %s1631_s17 = smov 0   ;;  %s1633_s18 = smov 0   ;;  %s2050_s0 = inlined_call_operand.vmem [shape: f32[2,128,3], index: 0, kind: input, shape index: {}]   ;;  %s2051_s1 = inlined_call_operand.vmem [shape: f32[3,32], index: 1, kind: input, shape index: {}]   ;;  %s2052_s2 = inlined_call_operand.vmem [shape: f32[1,32], index: 2, kind: input, shape index: {}]   ;;  %s2053_s3 = inlined_call_operand.vmem [shape: f32[1,32], index: 3, kind: input, shape index: {}]   ;;  %s2054_s4 = inlined_call_operand.vmem [shape: bf16[32,32], index: 4, kind: input, shape index: {}]   ;;  %s2055_s5 = inlined_call_operand.vmem [shape: f32[1,32], index: 5, kind: input, shape index: {}]   ;;  %s2056_s6 = inlined_call_operand.vmem [shape: f32[1,32], index: 6, kind: input, shape index: {}]   ;;  %s2057_s7 = inlined_call_operand.vmem [shape: bf16[32,128], index: 7, kind: input, shape index: {}]   ;;  %s2058_s8 = inlined_call_operand.vmem [shape: f32[2,1,128], index: 8, kind: output, shape index: {0}]   ;;  %s2059_s9 = inlined_call_operand.vmem [shape: f32[2,1,128], index: 9, kind: output, shape index: {1}]   ;;  %s2060_s10 = inlined_call_operand.vmem [shape: f32[2,1,128], index: 10, kind: output, shape index: {2}]   ;;  %s2061_s11 = inlined_call_operand.vmem [shape: f32[2,1,128], index: 11, kind: output, shape index: {3}]  }
   0x1   :  { %s1635_s19 = smov 0  }
   0x2 LB: > { %s41_s20 = sadd.s32 1, %s1558_s18  ;;  %p1417_p0 = scmp.ge.s32.totalorder %s1562_s19, 1  ;;  %s1562_s19 = sphi %s1635_s19, %s22_s19   ;;  %s1558_s18 = sphi %s1633_s18, %s2063_s18   ;;  %s1554_s17 = sphi %s1631_s17, %s2062_s17  }
   0x3   : > { %p43_p1 = scmp.ge.s32.totalorder %s41_s20, 2  ;;  %p382_p2 = scmp.lt.s32.totalorder %s1562_s19, 3 }
   0x5   : > { %s2065_s20 = smov (%p43_p1, %s41_s20), 0  ;;  %p383_p3 = pnand %p1417_p0, %p382_p2 }
   0x6   : > { %p440_p4 = scmp.lt.s32.totalorder (!%p383_p3), %s1554_s17, 1 }
   0x7   : > { %386 = sbr.rel (%p383_p3) target bundleno = 652 (0x28c), region = 52 }
   0xc   : > { %v1564_v0 = vmov 2   ;;  %v1565_v1 = vmov 1   ;;  %s2067_s17 = smov (!%p440_p4, %s1554_s17), 1  ;;  %v1566_v8 = vmov 0   ;;  %v1456_v25 = vld [vmem:[%s2054_s4 + $0x8] sm:$0xff]  ;;  %v1455_v27 = vld [vmem:[%s2054_s4] sm:$0xff] }
   0xd   : > { %1497 = vset.pattern.permute.xlu2 %v1564_v0  ;;  %1500 = vset.pattern.permute.xlu0 %v1565_v1  ;;  %s1454_s21 = sshll.u32 %s2067_s17, 7  ;;  %v487_v31 = vld [vmem:[%s2051_s1] sm:$0x7]  ;;  %vm859_vm0 = vcmask 261120   ;;  %s1941_s30 = scalar_lea.vmem %s2060_s10, %s2067_s17 }
   0xe   : > { %1496 = vset.pattern.permute.xlu1 %v1565_v1  ;;  %s1658_s24 = scalar_lea.vmem %s2050_s0, %s1454_s21  ;;  %890 = vmatpush.bf16.msra.mxu0 %v1456_v25  ;;  %v1725_v33 = vperm.slane %v487_v31, 1  ;;  %v1727_v34 = vperm.slane %v487_v31, 0  ;;  %v1729_v36 = vperm.slane %v487_v31, 2  ;;  %v1744_v48 = vld [vmem:[%s2052_s2] ss:$0 sm:$0xff]  ;;  %s1947_s14 = scalar_lea.vmem %s2061_s11, %s2067_s17 }
   0xf   : > { %v480_v2 = vld [vmem:[%s1658_s24 + $0x48] sm:$0xff]  ;;  %v471_v3 = vld [vmem:[%s1658_s24] sm:$0xff]  ;;  %v474_v5 = vld [vmem:[%s1658_s24 + $0x18] sm:$0xff]  ;;  %1459 = vmatpush.bf16.msra.mxu2 %v1456_v25  ;;  %s1953_s21 = scalar_lea.vmem %s2058_s8, %s2067_s17 }
  0x10   : > { %622 = vperm.xlu0 %1500, %v480_v2   ;;  %683 = vperm.xlu2 %1497, %v471_v3   ;;  %v472_v4 = vld [vmem:[%s1658_s24 + $0x8] sm:$0xff]  ;;  %v481_v6 = vld [vmem:[%s1658_s24 + $0x50] sm:$0xff]  ;;  %v479_v7 = vld [vmem:[%s1658_s24 + $0x40] sm:$0xff] }
  0x11   : > { %586 = vperm.xlu1 %1496, %v471_v3   ;;  %v473_v9 = vld [vmem:[%s1658_s24 + $0x10] sm:$0xff]  ;;  %v476_v10 = vld [vmem:[%s1658_s24 + $0x28] sm:$0xff]  ;;  %v482_v11 = vld [vmem:[%s1658_s24 + $0x58] sm:$0xff] }
  0x12   : > { %v483_v12 = vld [vmem:[%s1658_s24 + $0x60] sm:$0xff]  ;;  %v484_v14 = vld [vmem:[%s1658_s24 + $0x68] sm:$0xff]  ;;  %v477_v15 = vld [vmem:[%s1658_s24 + $0x30] sm:$0xff]  ;;  %891 = vmatpush.bf16.msra.mxu0 %v1455_v27 }
  0x13   : > { %v475_v13 = vld [vmem:[%s1658_s24 + $0x20] sm:$0xff]  ;;  %v478_v16 = vld [vmem:[%s1658_s24 + $0x38] sm:$0xff]  ;;  %v485_v18 = vld [vmem:[%s1658_s24 + $0x70] sm:$0xff]  ;;  %1460 = vmatpush.bf16.msra.mxu2 %v1455_v27 }
  0x14   : > { %v486_v30 = vld [vmem:[%s1658_s24 + $0x78] sm:$0xff]  ;;  %v1754_v57 = vld [vmem:[%s2053_s3] ss:$0 sm:$0xff]  ;;  %s1962_s24 = scalar_lea.vmem %s2059_s9, %s2067_s17 }
  0x18   : > { %1507 = vset.pattern.permute.xlu0 %v1564_v0  ;;  %687 = vperm.xlu2 %1497, %v472_v4  }
  0x19   : > { %590 = vperm.xlu1 %1496, %v472_v4   ;;  %695 = vperm.xlu0 %1507, %v474_v5  }
  0x20   : > { %1499 = vset.pattern.permute.xlu2 %v1565_v1 }
  0x21   : > { %1498 = vset.pattern.permute.xlu1 %v1566_v8  ;;  %723 = vperm.xlu0 %1507, %v481_v6  }
  0x22   : > { %618 = vperm.xlu2 %1499, %v479_v7   ;;  %535 = vperm.xlu1 %1498, %v480_v2  }
  0x29   : > { %1512 = vset.pattern.permute.xlu0 %v1566_v8 }
  0x2a   : > { %1502 = vset.pattern.permute.xlu2 %v1564_v0  ;;  %1501 = vset.pattern.permute.xlu1 %v1564_v0 }
  0x2b   : > { %490 = vperm.xlu0 %1512, %v471_v3   ;;  %719 = vperm.xlu2 %1502, %v480_v2  }
  0x2c   : > { %715 = vperm.xlu1 %1501, %v479_v7  }
  0x33   : > { %495 = vperm.xlu0 %1512, %v472_v4   ;;  %1504 = vset.pattern.permute.xlu2 %v1566_v8 }
  0x34   : > { %1503 = vset.pattern.permute.xlu1 %v1566_v8  ;;  %505 = vperm.xlu2 %1504, %v474_v5  }
  0x35   : > { %500 = vperm.xlu1 %1503, %v473_v9  }
  0x3b   : > { %530 = vperm.xlu0 %1512, %v479_v7  }
  0x3c   : > { %1506 = vset.pattern.permute.xlu2 %v1564_v0 }
  0x3d   : > { %1505 = vset.pattern.permute.xlu1 %v1565_v1  ;;  %691 = vperm.xlu2 %1506, %v473_v9  }
  0x3e   : > { %598 = vperm.xlu1 %1505, %v474_v5  }
  0x43   : > { %515 = vperm.xlu0 %1512, %v476_v10  }
  0x45   : > { %1509 = vset.pattern.permute.xlu2 %v1566_v8 }
  0x46   : > { %1508 = vset.pattern.permute.xlu1 %v1566_v8  ;;  %545 = vperm.xlu2 %1509, %v482_v11  }
  0x47   : > { %540 = vperm.xlu1 %1508, %v481_v6  }
  0x4b   : > { %550 = vperm.xlu0 %1512, %v483_v12  }
  0x4e   : > { %1511 = vset.pattern.permute.xlu2 %v1565_v1 }
  0x4f   : > { %1510 = vset.pattern.permute.xlu1 %v1565_v1  ;;  %630 = vperm.xlu2 %1511, %v482_v11  }
  0x50   : > { %626 = vperm.xlu1 %1510, %v481_v6  }
  0x53   : > { %1519 = vset.pattern.permute.xlu0 %v1565_v1 }
  0x54   : > { %594 = vperm.xlu0 %1519, %v473_v9  }
  0x57   : > { %1514 = vset.pattern.permute.xlu2 %v1566_v8 }
  0x58   : > { %1513 = vset.pattern.permute.xlu1 %v1564_v0  ;;  %510 = vperm.xlu2 %1514, %v475_v13  }
  0x59   : > { %727 = vperm.xlu1 %1513, %v482_v11  }
  0x5c   : > { %638 = vperm.xlu0 %1519, %v484_v14  }
  0x60   : > { %1516 = vset.pattern.permute.xlu2 %v1565_v1 }
  0x61   : > { %1515 = vset.pattern.permute.xlu1 %v1565_v1  ;;  %606 = vperm.xlu2 %1516, %v476_v10  }
  0x62   : > { %602 = vperm.xlu1 %1515, %v475_v13  }
  0x64   : > { %610 = vperm.xlu0 %1519, %v477_v15  }
  0x69   : > { %1518 = vset.pattern.permute.xlu2 %v1564_v0 }
  0x6a   : > { %1517 = vset.pattern.permute.xlu1 %v1564_v0  ;;  %703 = vperm.xlu2 %1518, %v476_v10   ;;  %v684_v17 = vpop.permute.xlu2 %683 }
  0x6b   : > { %699 = vperm.xlu1 %1517, %v475_v13   ;;  %v747_v42 = vmul.f32 %v1729_v36, %v684_v17 }
  0x6c   : > { %1528 = vset.pattern.permute.xlu0 %v1564_v0 }
  0x6d   : > { %711 = vperm.xlu0 %1528, %v478_v16  }
  0x72   : > { %1521 = vset.pattern.permute.xlu2 %v1565_v1  ;;  %v688_v19 = vpop.permute.xlu2 %687 }
  0x73   : > { %1520 = vset.pattern.permute.xlu1 %v1566_v8  ;;  %634 = vperm.xlu2 %1521, %v483_v12   ;;  %v748_v53 = vmul.f32 %v1729_v36, %v688_v19 }
  0x74   : > { %555 = vperm.xlu1 %1520, %v484_v14  }
  0x75   : > { %739 = vperm.xlu0 %1528, %v485_v18  }
  0x7b   : > { %1523 = vset.pattern.permute.xlu2 %v1564_v0 }
  0x7c   : > { %1522 = vset.pattern.permute.xlu1 %v1564_v0  ;;  %735 = vperm.xlu2 %1523, %v484_v14   ;;  %v1701_v22 = vpop.permute.xlu2 %618 }
  0x7d   : > { %731 = vperm.xlu1 %1522, %v483_v12   ;;  %v658_v63 = vmul.f32 %v1725_v33, %v1701_v22 }
  0x82   : > { %v623_v20 = vpop.permute.xlu0 %622 }
  0x83   : > { %v587_v21 = vpop.permute.xlu1 %586  ;;  %v659_v43 = vmul.f32 %v1725_v33, %v623_v20 }
  0x84   : > { %1525 = vset.pattern.permute.xlu2 %v1566_v8  ;;  %v650_v37 = vmul.f32 %v1725_v33, %v587_v21 }
  0x85   : > { %1524 = vset.pattern.permute.xlu1 %v1566_v8  ;;  %525 = vperm.xlu2 %1525, %v478_v16   ;;  %v720_v26 = vpop.permute.xlu2 %719 }
  0x86   : > { %520 = vperm.xlu1 %1524, %v477_v15   ;;  %v756_v50 = vmul.f32 %v1729_v36, %v720_v26 }
  0x8b   : > { %v591_v23 = vpop.permute.xlu1 %590  ;;  %v1705_v24 = vpop.permute.xlu0 %695 }
  0x8c   : > { %v651_v47 = vmul.f32 %v1725_v33, %v591_v23  ;;  %v750_v23 = vmul.f32 %v1729_v36, %v1705_v24 }
  0x8d   : > { %1527 = vset.pattern.permute.xlu2 %v1564_v0 }
  0x8e   : > { %1526 = vset.pattern.permute.xlu1 %v1565_v1  ;;  %707 = vperm.xlu2 %1527, %v477_v15   ;;  %v1722_v32 = vpop.permute.xlu2 %505 }
  0x8f   : > { %614 = vperm.xlu1 %1526, %v478_v16   ;;  %v572_v21 = vmul.f32 %v1727_v34, %v1722_v32 }
  0x93   : > { %v1715_v28 = vpop.permute.xlu0 %723 }
  0x94   : > { %v536_v29 = vpop.permute.xlu1 %535 }
  0x95   : > { %v578_v44 = vmul.f32 %v1727_v34, %v536_v29 }
  0x96   : > { %1530 = vset.pattern.permute.xlu2 %v1566_v8 }
  0x97   : > { %1529 = vset.pattern.permute.xlu1 %v1566_v8  ;;  %565 = vperm.xlu2 %1530, %v486_v30   ;;  %v1735_v41 = vpop.permute.xlu2 %691  ;;  %v675_v51 = vadd.f32 %v659_v43, %v578_v44 }
  0x98   : > { %560 = vperm.xlu1 %1529, %v485_v18  }
  0x99   : > { %v772_v58 = vadd.f32 %v756_v50, %v675_v51 }
  0x9b   : > { %v792_v2 = vmul.f32 %v1744_v48, %v772_v58 }
  0x9d   : > { %v491_v35 = vpop.permute.xlu0 %490  ;;  %v812_v11 = vadd.f32 %v1754_v57, %v792_v2 }
  0x9e   : > { %v569_v38 = vmul.f32 %v1727_v34, %v491_v35  ;;  %v716_v39 = vpop.permute.xlu1 %715  ;;  %v757_v35 = vmul.f32 %v1729_v36, %v1715_v28 }
  0x9f   : > { %1532 = vset.pattern.permute.xlu2 %v1565_v1  ;;  %v755_v3 = vmul.f32 %v1729_v36, %v716_v39  ;;  %v828_v16 = vmax.f32 %v812_v11, 0.0 }
  0xa0   : > { %v666_v40 = vadd.f32 %v650_v37, %v569_v38  ;;  %1531 = vset.pattern.permute.xlu1 %v1565_v1  ;;  %646 = vperm.xlu2 %1532, %v486_v30   ;;  %v546_v59 = vpop.permute.xlu2 %545 }
  0xa1   : > { %642 = vperm.xlu1 %1531, %v485_v18   ;;  %v580_v39 = vmul.f32 %v1727_v34, %v546_v59 }
  0xa2   : > { %v763_v45 = vadd.f32 %v747_v42, %v666_v40  ;;  %v749_v42 = vmul.f32 %v1729_v36, %v1735_v41 }
  0xa4   : > { %v783_v54 = vmul.f32 %v1744_v48, %v763_v45 }
  0xa5   : > { %v496_v46 = vpop.permute.xlu0 %495 }
  0xa6   : > { %v570_v49 = vmul.f32 %v1727_v34, %v496_v46  ;;  %v803_v61 = vadd.f32 %v1754_v57, %v783_v54 }
  0xa7   : > { %v501_v52 = vpop.permute.xlu1 %500 }
  0xa8   : > { %v667_v55 = vadd.f32 %v651_v47, %v570_v49  ;;  %v819_v6 = vmax.f32 %v803_v61, 0.0  ;;  %v571_v38 = vmul.f32 %v1727_v34, %v501_v52 }
  0xa9   : > { %1533 = vset.pattern.permute.xlu1 %v1564_v0  ;;  %v631_v12 = vpop.permute.xlu2 %630 }
  0xaa   : > { %v764_v56 = vadd.f32 %v748_v53, %v667_v55  ;;  %743 = vperm.xlu1 %1533, %v486_v30   ;;  %v661_v24 = vmul.f32 %v1725_v33, %v631_v12 }
  0xac   : > { %v784_v60 = vmul.f32 %v1744_v48, %v764_v56  ;;  %v677_v28 = vadd.f32 %v661_v24, %v580_v39 }
  0xad   : > { %v531_v62 = vpop.permute.xlu0 %530 }
  0xae   : > { %v577_v1 = vmul.f32 %v1727_v34, %v531_v62  ;;  %v804_v0 = vadd.f32 %v1754_v57, %v784_v60 }
  0xb0   : > { %v674_v4 = vadd.f32 %v658_v63, %v577_v1  ;;  %v599_v5 = vpop.permute.xlu1 %598  ;;  %v820_v7 = vmax.f32 %v804_v0, 0.0 }
  0xb1   : > { %v653_v19 = vmul.f32 %v1725_v33, %v599_v5 }
  0xb2   : > { %v771_v8 = vadd.f32 %v755_v3, %v674_v4  ;;  %v835_v9 = vpack.c.bf16 %v820_v7, %v819_v6  ;;  %v511_v22 = vpop.permute.xlu2 %510 }
  0xb3   : > { %v669_v25 = vadd.f32 %v653_v19, %v572_v21 }
  0xb4   : > { %v791_v10 = vmul.f32 %v1744_v48, %v771_v8  ;;  %1428 = vmatmul.msk.bf16.vlgmr.msra.gmra.mxu0 %vm859_vm0, %v835_v9  ;;  %v573_v8 = vmul.f32 %v1727_v34, %v511_v22 }
  0xb5   : > { %v516_v13 = vpop.permute.xlu0 %515  ;;  %v766_v30 = vadd.f32 %v750_v23, %v669_v25 }
  0xb6   : > { %v811_v14 = vadd.f32 %v1754_v57, %v791_v10  ;;  %v574_v59 = vmul.f32 %v1727_v34, %v516_v13 }
  0xb7   : > { %v786_v43 = vmul.f32 %v1744_v48, %v766_v30 }
  0xb8   : > { %v827_v15 = vmax.f32 %v811_v14, 0.0 }
  0xb9   : > { %v541_v17 = vpop.permute.xlu1 %540  ;;  %v806_v52 = vadd.f32 %v1754_v57, %v786_v43 }
  0xba   : > { %v839_v18 = vpack.c.bf16 %v828_v16, %v827_v15  ;;  %v579_v27 = vmul.f32 %v1727_v34, %v541_v17 }
  0xbb   : > { %v607_v44 = vpop.permute.xlu2 %606  ;;  %v822_v58 = vmax.f32 %v806_v52, 0.0 }
  0xbc   : > { %1432 = vmatmul.msk.bf16.vlgmr.msra.gmra.mxu2 %vm859_vm0, %v839_v18  ;;  %v655_v60 = vmul.f32 %v1725_v33, %v607_v44 }
  0xbd   : > { %v1770_v20 = vpop.permute.xlu0 %550 }
  0xbe   : > { %v671_v3 = vadd.f32 %v655_v60, %v574_v59 }
  0xc2   : > { %v627_v26 = vpop.permute.xlu1 %626 }
  0xc3   : > { %v660_v29 = vmul.f32 %v1725_v33, %v627_v26 }
  0xc4   : > { %v704_v62 = vpop.permute.xlu2 %703 }
  0xc5   : > { %v676_v31 = vadd.f32 %v660_v29, %v579_v27  ;;  %v752_v4 = vmul.f32 %v1729_v36, %v704_v62 }
  0xc6   : > { %v595_v37 = vpop.permute.xlu0 %594 }
  0xc7   : > { %v652_v32 = vmul.f32 %v1725_v33, %v595_v37  ;;  %v773_v40 = vadd.f32 %v757_v35, %v676_v31  ;;  %v768_v6 = vadd.f32 %v752_v4, %v671_v3  ;;  %v581_v31 = vmul.f32 %v1727_v34, %v1770_v20 }
  0xc9   : > { %v668_v45 = vadd.f32 %v652_v32, %v571_v38  ;;  %v793_v49 = vmul.f32 %v1744_v48, %v773_v40  ;;  %v788_v11 = vmul.f32 %v1744_v48, %v768_v6 }
  0xcb   : > { %v765_v46 = vadd.f32 %v749_v42, %v668_v45  ;;  %v728_v47 = vpop.permute.xlu1 %727  ;;  %v813_v55 = vadd.f32 %v1754_v57, %v793_v49  ;;  %v808_v17 = vadd.f32 %v1754_v57, %v788_v11 }
  0xcc   : > { %v758_v50 = vmul.f32 %v1729_v36, %v728_v47 }
  0xcd   : > { %v785_v51 = vmul.f32 %v1744_v48, %v765_v46  ;;  %v829_v0 = vmax.f32 %v813_v55, 0.0  ;;  %v635_v9 = vpop.permute.xlu2 %634  ;;  %v824_v25 = vmax.f32 %v808_v17, 0.0 }
  0xce   : > { %v774_v53 = vadd.f32 %v758_v50, %v677_v28  ;;  %v639_v16 = vpop.permute.xlu0 %638  ;;  %v662_v35 = vmul.f32 %v1725_v33, %v635_v9 }
  0xcf   : > { %v805_v54 = vadd.f32 %v1754_v57, %v785_v51  ;;  %v663_v19 = vmul.f32 %v1725_v33, %v639_v16 }
  0xd0   : > { %v794_v41 = vmul.f32 %v1744_v48, %v774_v53  ;;  %v678_v39 = vadd.f32 %v662_v35, %v581_v31 }
  0xd1   : > { %v821_v56 = vmax.f32 %v805_v54, 0.0 }
  0xd2   : > { %v814_v61 = vadd.f32 %v1754_v57, %v794_v41 }
  0xd3   : > { %v836_v63 = vpack.c.bf16 %v822_v58, %v821_v56 }
  0xd4   : > { %v603_v1 = vpop.permute.xlu1 %602  ;;  %v830_v2 = vmax.f32 %v814_v61, 0.0 }
  0xd5   : > { %1429 = vmatmul.msk.bf16.gmra.mxu0 %vm859_vm0, %v836_v63  ;;  %v654_v7 = vmul.f32 %v1725_v33, %v603_v1 }
  0xd6   : > { %v840_v5 = vpack.c.bf16 %v830_v2, %v829_v0  ;;  %v736_v21 = vpop.permute.xlu2 %735  ;;  %v611_v46 = vpop.permute.xlu0 %610 }
  0xd7   : > { %v670_v12 = vadd.f32 %v654_v7, %v573_v8  ;;  %v760_v27 = vmul.f32 %v1729_v36, %v736_v21  ;;  %v656_v51 = vmul.f32 %v1725_v33, %v611_v46 }
  0xd8   : > { %1433 = vmatmul.msk.bf16.gmra.mxu2 %vm859_vm0, %v840_v5 }
  0xdd   : > { %v700_v10 = vpop.permute.xlu1 %699 }
  0xde   : > { %v751_v13 = vmul.f32 %v1729_v36, %v700_v10 }
  0xdf   : > { %v526_v32 = vpop.permute.xlu2 %525  ;;  %v712_v41 = vpop.permute.xlu0 %711 }
  0xe0   : > { %v767_v14 = vadd.f32 %v751_v13, %v670_v12  ;;  %v576_v58 = vmul.f32 %v1727_v34, %v526_v32  ;;  %v754_v60 = vmul.f32 %v1729_v36, %v712_v41 }
  0xe2   : > { %v787_v15 = vmul.f32 %v1744_v48, %v767_v14 }
  0xe4   : > { %v807_v18 = vadd.f32 %v1754_v57, %v787_v15 }
  0xe6   : > { %v556_v23 = vpop.permute.xlu1 %555  ;;  %v823_v22 = vmax.f32 %v807_v18, 0.0  ;;  %v1458_v18 = vld [vmem:[%s2057_s7 + $0x8] sm:$0xff] }
  0xe7   : > { %v582_v26 = vmul.f32 %v1727_v34, %v556_v23  ;;  %v740_v8 = vpop.permute.xlu0 %739  ;;  %1043 = vmatpush.bf16.msra.mxu1 %v1458_v18  ;;  %1461 = vmatpush.bf16.msra.mxu3 %v1458_v18 }
  0xe8   : > { %v837_v29 = vpack.c.bf16 %v824_v25, %v823_v22  ;;  %v708_v50 = vpop.permute.xlu2 %707  ;;  %v761_v12 = vmul.f32 %v1729_v36, %v740_v8  ;;  %v1457_v25 = vld [vmem:[%s2057_s7] sm:$0xff] }
  0xe9   : > { %v679_v30 = vadd.f32 %v663_v19, %v582_v26  ;;  %v753_v54 = vmul.f32 %v1729_v36, %v708_v50 }
  0xea   : > { %1430 = vmatmul.msk.bf16.gmra.mxu0 %vm859_vm0, %v837_v29 }
  0xeb   : > { %v776_v37 = vadd.f32 %v760_v27, %v679_v30  ;;  %1044 = vmatpush.bf16.msra.mxu1 %v1457_v25  ;;  %1462 = vmatpush.bf16.msra.mxu3 %v1457_v25 }
  0xed   : > { %v796_v24 = vmul.f32 %v1744_v48, %v776_v37 }
  0xef   : > { %v732_v38 = vpop.permute.xlu1 %731  ;;  %v816_v44 = vadd.f32 %v1754_v57, %v796_v24 }
  0xf0   : > { %v759_v40 = vmul.f32 %v1729_v36, %v732_v38 }
  0xf1   : > { %v832_v28 = vmax.f32 %v816_v44, 0.0  ;;  %v566_v4 = vpop.permute.xlu2 %565 }
  0xf2   : > { %v775_v42 = vadd.f32 %v759_v40, %v678_v39  ;;  %v584_v15 = vmul.f32 %v1727_v34, %v566_v4 }
  0xf4   : > { %v795_v43 = vmul.f32 %v1744_v48, %v775_v42 }
  0xf6   : > { %v815_v45 = vadd.f32 %v1754_v57, %v795_v43 }
  0xf8   : > { %v521_v47 = vpop.permute.xlu1 %520  ;;  %v831_v20 = vmax.f32 %v815_v45, 0.0 }
  0xf9   : > { %v575_v49 = vmul.f32 %v1727_v34, %v521_v47 }
  0xfa   : > { %v841_v52 = vpack.c.bf16 %v832_v28, %v831_v20  ;;  %v647_v13 = vpop.permute.xlu2 %646 }
  0xfb   : > { %v672_v53 = vadd.f32 %v656_v51, %v575_v49  ;;  %v665_v16 = vmul.f32 %v1725_v33, %v647_v13 }
  0xfc   : > { %1434 = vmatmul.msk.bf16.gmra.mxu2 %vm859_vm0, %v841_v52 }
  0xfd   : > { %v769_v55 = vadd.f32 %v753_v54, %v672_v53  ;;  %v681_v21 = vadd.f32 %v665_v16, %v584_v15 }
  0xff   : > { %v789_v61 = vmul.f32 %v1744_v48, %v769_v55 }
 0x101   : > { %v615_v56 = vpop.permute.xlu1 %614  ;;  %v809_v0 = vadd.f32 %v1754_v57, %v789_v61 }
 0x102   : > { %v657_v59 = vmul.f32 %v1725_v33, %v615_v56 }
 0x103   : > { %v825_v5 = vmax.f32 %v809_v0, 0.0 }
 0x104   : > { %v673_v62 = vadd.f32 %v657_v59, %v576_v58 }
 0x106   : > { %v770_v63 = vadd.f32 %v754_v60, %v673_v62 }
 0x108   : > { %v790_v1 = vmul.f32 %v1744_v48, %v770_v63 }
 0x10a   : > { %v561_v2 = vpop.permute.xlu1 %560  ;;  %v810_v3 = vadd.f32 %v1754_v57, %v790_v1 }
 0x10b   : > { %v583_v10 = vmul.f32 %v1727_v34, %v561_v2 }
 0x10c   : > { %v826_v6 = vmax.f32 %v810_v3, 0.0 }
 0x10e   : > { %v838_v7 = vpack.c.bf16 %v826_v6, %v825_v5 }
 0x110   : > { %1431 = vmatmul.msk.bf16.gmra.mxu0 %vm859_vm0, %v838_v7 }
 0x113   : > { %v643_v9 = vpop.permute.xlu1 %642 }
 0x114   : > { %v664_v11 = vmul.f32 %v1725_v33, %v643_v9 }
 0x116   : > { %v680_v14 = vadd.f32 %v664_v11, %v583_v10 }
 0x118   : > { %v777_v17 = vadd.f32 %v761_v12, %v680_v14 }
 0x11a   : > { %v797_v23 = vmul.f32 %v1744_v48, %v777_v17 }
 0x11c   : > { %v744_v19 = vpop.permute.xlu1 %743  ;;  %v817_v26 = vadd.f32 %v1754_v57, %v797_v23 }
 0x11d   : > { %v762_v22 = vmul.f32 %v1729_v36, %v744_v19  ;;  %v1851_v36 = vld [vmem:[%s2055_s5] ss:$0 sm:$0xff] }
 0x11e   : > { %v833_v29 = vmax.f32 %v817_v26, 0.0 }
 0x11f   : > { %v778_v34 = vadd.f32 %v762_v22, %v681_v21 }
 0x121   : > { %v798_v33 = vmul.f32 %v1744_v48, %v778_v34  ;;  %v1857_v48 = vld [vmem:[%s2056_s6] ss:$0 sm:$0xff] }
 0x123   : > { %v818_v27 = vadd.f32 %v1754_v57, %v798_v33 }
 0x125   : > { %v834_v30 = vmax.f32 %v818_v27, 0.0 }
 0x127   : > { %v842_v31 = vpack.c.bf16 %v834_v30, %v833_v29 }
 0x129   : > { %1435 = vmatmul.msk.bf16.gmra.mxu2 %vm859_vm0, %v842_v31 }
 0x131   : > { %v893_v35 = vpop.f32.mrf.mxu0 }
 0x132   : > { %v937_v37 = vmul.f32 %v1851_v36, %v893_v35 }
 0x134   : > { %v957_v57 = vadd.f32 %v1857_v48, %v937_v37 }
 0x136   : > { %v973_v24 = vmax.f32 %v957_v57, 0.0 }
 0x139   : > { %v895_v38 = vpop.f32.mrf.mxu0 }
 0x13a   : > { %v938_v32 = vmul.f32 %v1851_v36, %v895_v38 }
 0x13c   : > { %v958_v39 = vadd.f32 %v1857_v48, %v938_v32 }
 0x13e   : > { %v974_v40 = vmax.f32 %v958_v39, 0.0 }
 0x13f   : > { %v913_v42 = vpop.f32.mrf.mxu2 }
 0x140   : > { %v989_v43 = vpack.c.bf16 %v974_v40, %v973_v24  ;;  %v945_v44 = vmul.f32 %v1851_v36, %v913_v42 }
 0x142   : > { %1444 = vmatmul.msk.bf16.vlgmr.msra.gmra.mxu1 %vm859_vm0, %v989_v43  ;;  %v965_v46 = vadd.f32 %v1857_v48, %v945_v44 }
 0x144   : > { %v981_v28 = vmax.f32 %v965_v46, 0.0  ;;  %v1567_v46 = vmov 128.0  }
 0x145   : > { %1538 = vrcp.f32 %v1567_v46 }
 0x147   : > { %v915_v45 = vpop.f32.mrf.mxu2 }
 0x148   : > { %v946_v47 = vmul.f32 %v1851_v36, %v915_v45 }
 0x14a   : > { %v966_v20 = vadd.f32 %v1857_v48, %v946_v47 }
 0x14c   : > { %v982_v49 = vmax.f32 %v966_v20, 0.0  ;;  %v1539_v20 = vpop.eup %1538 }
 0x14d   : > { %vm1118_vm1 = vweird.f32 %v1539_v20 }
 0x14e   : > { %v993_v50 = vpack.c.bf16 %v982_v49, %v981_v28  ;;  %v1114_v28 = vmul.f32 128.0, %v1539_v20 }
 0x150   : > { %1448 = vmatmul.msk.bf16.vlgmr.msra.gmra.mxu3 %vm859_vm0, %v993_v50  ;;  %v1115_v49 = vsub.f32 1.0, %v1114_v28 }
 0x152   : > { %v898_v51 = vpop.f32.mrf.mxu0  ;;  %v1116_v50 = vmul.f32 %v1539_v20, %v1115_v49 }
 0x153   : > { %v939_v52 = vmul.f32 %v1851_v36, %v898_v51 }
 0x155   : > { %v959_v54 = vadd.f32 %v1857_v48, %v939_v52 }
 0x157   : > { %v975_v58 = vmax.f32 %v959_v54, 0.0 }
 0x15a   : > { %v900_v53 = vpop.f32.mrf.mxu0 }
 0x15b   : > { %v940_v41 = vmul.f32 %v1851_v36, %v900_v53  ;;  %v918_v55 = vpop.f32.mrf.mxu2 }
 0x15c   : > { %v947_v60 = vmul.f32 %v1851_v36, %v918_v55 }
 0x15d   : > { %v960_v56 = vadd.f32 %v1857_v48, %v940_v41 }
 0x15e   : > { %v967_v63 = vadd.f32 %v1857_v48, %v947_v60 }
 0x15f   : > { %v976_v59 = vmax.f32 %v960_v56, 0.0 }
 0x160   : > { %v983_v3 = vmax.f32 %v967_v63, 0.0 }
 0x161   : > { %v990_v61 = vpack.c.bf16 %v976_v59, %v975_v58 }
 0x163   : > { %v920_v62 = vpop.f32.mrf.mxu2  ;;  %1445 = vmatmul.msk.bf16.gmra.mxu1 %vm859_vm0, %v990_v61 }
 0x164   : > { %v948_v1 = vmul.f32 %v1851_v36, %v920_v62 }
 0x166   : > { %v968_v0 = vadd.f32 %v1857_v48, %v948_v1 }
 0x167   : > { %v903_v2 = vpop.f32.mrf.mxu0 }
 0x168   : > { %v984_v4 = vmax.f32 %v968_v0, 0.0  ;;  %v941_v6 = vmul.f32 %v1851_v36, %v903_v2 }
 0x16a   : > { %v994_v5 = vpack.c.bf16 %v984_v4, %v983_v3  ;;  %v961_v8 = vadd.f32 %v1857_v48, %v941_v6 }
 0x16c   : > { %1449 = vmatmul.msk.bf16.gmra.mxu3 %vm859_vm0, %v994_v5  ;;  %v977_v11 = vmax.f32 %v961_v8, 0.0 }
 0x16f   : > { %v905_v7 = vpop.f32.mrf.mxu0 }
 0x170   : > { %v942_v9 = vmul.f32 %v1851_v36, %v905_v7  ;;  %v1568_v7 = vmov -inf  }
 0x171   : > { %1211 = vst [vmem:[%s1941_s30] sm:$0x1] %v1568_v7 }
 0x172   : > { %v962_v10 = vadd.f32 %v1857_v48, %v942_v9  ;;  %v1569_v9 = vmov inf  }
 0x173   : > { %1212 = vst [vmem:[%s1947_s14] sm:$0x1] %v1569_v9 }
 0x174   : > { %v978_v12 = vmax.f32 %v962_v10, 0.0  ;;  %v1570_v10 = vmov 0.0  }
 0x175   : > { %1090 = vst [vmem:[%s1953_s21] sm:$0x1] %v1570_v10 }
 0x176   : > { %v991_v13 = vpack.c.bf16 %v978_v12, %v977_v11  ;;  %1091 = vst [vmem:[%s1962_s24] sm:$0x1] %v1570_v10 }
 0x178   : > { %1446 = vmatmul.msk.bf16.gmra.mxu1 %vm859_vm0, %v991_v13 }
 0x17f   : > { %v923_v14 = vpop.f32.mrf.mxu2 }
 0x180   : > { %v949_v15 = vmul.f32 %v1851_v36, %v923_v14 }
 0x182   : > { %v969_v17 = vadd.f32 %v1857_v48, %v949_v15 }
 0x184   : > { %v985_v21 = vmax.f32 %v969_v17, 0.0 }
 0x187   : > { %v925_v16 = vpop.f32.mrf.mxu2 }
 0x188   : > { %v950_v18 = vmul.f32 %v1851_v36, %v925_v16 }
 0x18a   : > { %v970_v19 = vadd.f32 %v1857_v48, %v950_v18 }
 0x18c   : > { %v986_v23 = vmax.f32 %v970_v19, 0.0 }
 0x18d   : > { %v908_v22 = vpop.f32.mrf.mxu0 }
 0x18e   : > { %v995_v25 = vpack.c.bf16 %v986_v23, %v985_v21  ;;  %v943_v34 = vmul.f32 %v1851_v36, %v908_v22 }
 0x190   : > { %1450 = vmatmul.msk.bf16.gmra.mxu3 %vm859_vm0, %v995_v25  ;;  %v963_v26 = vadd.f32 %v1857_v48, %v943_v34 }
 0x192   : > { %v979_v30 = vmax.f32 %v963_v26, 0.0 }
 0x195   : > { %v910_v33 = vpop.f32.mrf.mxu0 }
 0x196   : > { %v944_v27 = vmul.f32 %v1851_v36, %v910_v33 }
 0x198   : > { %v964_v29 = vadd.f32 %v1857_v48, %v944_v27 }
 0x19a   : > { %v980_v31 = vmax.f32 %v964_v29, 0.0 }
 0x19c   : > { %v992_v35 = vpack.c.bf16 %v980_v31, %v979_v30 }
 0x19e   : > { %1447 = vmatmul.msk.bf16.gmra.mxu1 %vm859_vm0, %v992_v35 }
 0x1ac   : > { %v928_v37 = vpop.f32.mrf.mxu2 }
 0x1ad   : > { %v951_v38 = vmul.f32 %v1851_v36, %v928_v37 }
 0x1af   : > { %v971_v32 = vadd.f32 %v1857_v48, %v951_v38 }
 0x1b1   : > { %v987_v40 = vmax.f32 %v971_v32, 0.0 }
 0x1b4   : > { %v930_v57 = vpop.f32.mrf.mxu2 }
 0x1b5   : > { %v952_v39 = vmul.f32 %v1851_v36, %v930_v57  ;;  %v1117_v36 = vadd.f32 %v1539_v20, %v1116_v50 }
 0x1b7   : > { %v972_v24 = vadd.f32 %v1857_v48, %v952_v39  ;;  %v1906_v51 = vsel %vm1118_vm1, %v1539_v20, %v1117_v36 }
 0x1b8   : > { %1463 = vpush %v1906_v51 }
 0x1b9   : > { %v988_v42 = vmax.f32 %v972_v24, 0.0 }
 0x1bb   : > { %v996_v43 = vpack.c.bf16 %v988_v42, %v987_v40 }
 0x1bd   : > { %1451 = vmatmul.msk.bf16.gmra.mxu3 %vm859_vm0, %v996_v43 }
 0x1bf   : > { %v1898_v44 = vpop.f32.mrf.mxu1 }
 0x1c7   : > { %v1900_v45 = vpop.f32.mrf.mxu1 }
 0x1c8   : > { %v1092_v58 = vadd.f32 %v1900_v45, %v1898_v44 }
 0x1d3   : > { %v1909_v52 = vpop.f32.mrf.mxu3 }
 0x1db   : > { %v1913_v54 = vpop.f32.mrf.mxu3 }
 0x1e0   : > { %v1902_v47 = vpop.f32.mrf.mxu1 }
 0x1e1   : > { %v1093_v59 = vadd.f32 %v1092_v58, %v1902_v47 }
 0x1e8   : > { %v1904_v48 = vpop.f32.mrf.mxu1 }
 0x1e9   : > { %v1094_v60 = vadd.f32 %v1093_v59, %v1904_v48  ;;  %s2012_s17 = spop %1463 }
 0x1ea   : > { %s1195_s25 = smul.f32 128.0, %s2012_s17 }
 0x1ec   : > { %s1202_s26 = smul.f32 0.0, %s1195_s25 }
 0x1ef   : > { %v1917_v55 = vpop.f32.mrf.mxu3 }
 0x1f5   : > { %v1911_v53 = vpop.f32.mrf.mxu1 }
 0x1f6   : > { %v1095_v62 = vadd.f32 %v1094_v60, %v1911_v53  ;;  %v1214_v15 = vmax.f32 %v1898_v44, %v1911_v53  ;;  %v1238_v17 = vmin.f32 %v1898_v44, %v1911_v53 }
 0x1f7   : > { %v1925_v61 = vpop.f32.mrf.mxu3 }
 0x1f8   : > { %v1218_v34 = vmax.f32 %v1214_v15, %v1909_v52  ;;  %v1242_v26 = vmin.f32 %v1238_v17, %v1909_v52 }
 0x1fd   : > { %v1915_v41 = vpop.f32.mrf.mxu1 }
 0x1fe   : > { %v1096_v63 = vadd.f32 %v1095_v62, %v1915_v41  ;;  %v1215_v12 = vmax.f32 %v1900_v45, %v1915_v41  ;;  %v1239_v13 = vmin.f32 %v1900_v45, %v1915_v41 }
 0x200   : > { %v1219_v22 = vmax.f32 %v1215_v12, %v1913_v54  ;;  %v1243_v25 = vmin.f32 %v1239_v13, %v1913_v54 }
 0x213   : > { %v1933_v3 = vpop.f32.mrf.mxu3 }
 0x214   : > { %v1222_v57 = vmax.f32 %v1218_v34, %v1933_v3  ;;  %v1246_v32 = vmin.f32 %v1242_v26, %v1933_v3  ;;  %v1237_v34 = vld [vmem:[%s1947_s14] sm:$0x1] }
 0x21b   : > { %v1919_v56 = vpop.f32.mrf.mxu1  ;;  %v1955_v6 = vpop.f32.mrf.mxu3 }
 0x21c   : > { %v1097_v0 = vadd.f32 %v1096_v63, %v1919_v56  ;;  %v1216_v18 = vmax.f32 %v1902_v47, %v1919_v56  ;;  %v1240_v19 = vmin.f32 %v1902_v47, %v1919_v56  ;;  %v1223_v27 = vmax.f32 %v1219_v22, %v1955_v6  ;;  %v1177_v22 = vld [vmem:[%s1953_s21] sm:$0x1] }
 0x21d   : > { %v1247_v29 = vmin.f32 %v1243_v25, %v1955_v6 }
 0x21e   : > { %v1220_v30 = vmax.f32 %v1216_v18, %v1917_v55  ;;  %v1244_v31 = vmin.f32 %v1240_v19, %v1917_v55  ;;  %v1226_v20 = vmax.f32 %v1222_v57, %v1223_v27 }
 0x21f   : > { %v1250_v28 = vmin.f32 %v1246_v32, %v1247_v29 }
 0x223   : > { %v1929_v1 = vpop.f32.mrf.mxu1 }
 0x224   : > { %v1098_v2 = vadd.f32 %v1097_v0, %v1929_v1  ;;  %v1217_v21 = vmax.f32 %v1904_v48, %v1929_v1  ;;  %v1241_v23 = vmin.f32 %v1904_v48, %v1929_v1 }
 0x226   : > { %v1099_v4 = vadd.f32 %v1098_v2, %v1909_v52  ;;  %v1221_v37 = vmax.f32 %v1217_v21, %v1925_v61  ;;  %v1245_v38 = vmin.f32 %v1241_v23, %v1925_v61 }
 0x228   : > { %v1100_v5 = vadd.f32 %v1099_v4, %v1913_v54 }
 0x22a   : > { %v1101_v8 = vadd.f32 %v1100_v5, %v1917_v55 }
 0x22c   : > { %v1102_v11 = vadd.f32 %v1101_v8, %v1925_v61 }
 0x22e   : > { %v1103_v16 = vadd.f32 %v1102_v11, %v1933_v3 }
 0x230   : > { %v1104_v33 = vadd.f32 %v1103_v16, %v1955_v6 }
 0x240   : > { %v1973_v14 = vpop.f32.mrf.mxu3 }
 0x241   : > { %v1105_v35 = vadd.f32 %v1104_v33, %v1973_v14  ;;  %v1224_v39 = vmax.f32 %v1220_v30, %v1973_v14  ;;  %v1248_v40 = vmin.f32 %v1244_v31, %v1973_v14  ;;  %v1196_v33 = vstv %s1195_s25 }
 0x248   : > { %v2003_v24 = vpop.f32.mrf.mxu3 }
 0x249   : > { %v1106_v42 = vadd.f32 %v1105_v35, %v2003_v24  ;;  %v1225_v43 = vmax.f32 %v1221_v37, %v2003_v24  ;;  %v1249_v46 = vmin.f32 %v1245_v38, %v2003_v24 }
 0x24b   : > { %v1107_v49 = vrot.slane %v1106_v42, 4  ;;  %v1227_v50 = vmax.f32 %v1224_v39, %v1225_v43  ;;  %v1251_v36 = vmin.f32 %v1248_v40, %v1249_v46 }
 0x24d   : > { %v1108_v58 = vadd.f32 %v1107_v49, %v1106_v42  ;;  %v1228_v59 = vmax.f32 %v1226_v20, %v1227_v50  ;;  %v1252_v60 = vmin.f32 %v1250_v28, %v1251_v36 }
 0x24f   : > { %v1109_v62 = vrot.slane %v1108_v58, 2  ;;  %v1229_v63 = vrot.slane %v1228_v59, 4  ;;  %v1253_v0 = vrot.slane %v1252_v60, 4 }
 0x251   : > { %v1110_v2 = vadd.f32 %v1109_v62, %v1108_v58  ;;  %v1230_v4 = vmax.f32 %v1228_v59, %v1229_v63  ;;  %v1254_v5 = vmin.f32 %v1252_v60, %v1253_v0 }
 0x253   : > { %v1111_v7 = vrot.slane %v1110_v2, 1  ;;  %v1231_v9 = vrot.slane %v1230_v4, 2  ;;  %v1255_v10 = vrot.slane %v1254_v5, 2 }
 0x255   : > { %v1112_v8 = vadd.f32 %v1111_v7, %v1110_v2  ;;  %v1232_v15 = vmax.f32 %v1230_v4, %v1231_v9  ;;  %v1256_v16 = vmin.f32 %v1254_v5, %v1255_v10 }
 0x257   : > { %v1120_v11 = vmul.f32 %v1906_v51, %v1112_v8  ;;  %v1233_v21 = vrot.slane %v1232_v15, 1  ;;  %v1257_v23 = vrot.slane %v1256_v16, 1 }
 0x259   : > { %v1121_v12 = vsub.f32 %v1898_v44, %v1120_v11  ;;  %v1122_v13 = vsub.f32 %v1900_v45, %v1120_v11  ;;  %v1123_v17 = vsub.f32 %v1902_v47, %v1120_v11  ;;  %v1124_v51 = vsub.f32 %v1904_v48, %v1120_v11  ;;  %v1213_v45 = vld [vmem:[%s1941_s30] sm:$0x1] }
 0x25a   : > { %v1125_v44 = vsub.f32 %v1911_v53, %v1120_v11  ;;  %v1234_v27 = vmax.f32 %v1232_v15, %v1233_v21  ;;  %v1258_v47 = vmin.f32 %v1256_v16, %v1257_v23  ;;  %v1178_v29 = vsub.f32 %v1120_v11, %v1177_v22 }
 0x25b   : > { %v1137_v18 = vmul.f32 %v1121_v12, %v1121_v12  ;;  %v1138_v19 = vmul.f32 %v1122_v13, %v1122_v13  ;;  %v1139_v25 = vmul.f32 %v1123_v17, %v1123_v17  ;;  %v1126_v30 = vsub.f32 %v1915_v41, %v1120_v11 }
 0x25c   : > { %v1140_v31 = vmul.f32 %v1124_v51, %v1124_v51  ;;  %v1235_v48 = vmax.f32 %v1213_v45, %v1234_v27  ;;  %v1259_v37 = vmin.f32 %v1237_v34, %v1258_v47  ;;  %v1197_v38 = vmul.f32 %v1196_v33, %v1178_v29 }
 0x25d   : > { %v1153_v26 = vadd.f32 %v1138_v19, %v1137_v18  ;;  %v1127_v53 = vsub.f32 %v1919_v56, %v1120_v11  ;;  %v1141_v57 = vmul.f32 %v1125_v44, %v1125_v44  ;;  %v1128_v40 = vsub.f32 %v1929_v1, %v1120_v11 }
 0x25e   : > { %1236 = vst [vmem:[%s1941_s30] sm:$0x1] %v1235_v48  ;;  %v1198_v39 = vadd.f32 %v1197_v38, %v1177_v22  ;;  %v1142_v42 = vmul.f32 %v1126_v30, %v1126_v30  ;;  %v1129_v46 = vsub.f32 %v1909_v52, %v1120_v11  ;;  %v1130_v28 = vsub.f32 %v1913_v54, %v1120_v11 }
 0x25f   : > { %v1154_v35 = vadd.f32 %v1153_v26, %v1139_v25  ;;  %1260 = vst [vmem:[%s1947_s14] sm:$0x1] %v1259_v37  ;;  %v1143_v41 = vmul.f32 %v1127_v53, %v1127_v53  ;;  %v1144_v49 = vmul.f32 %v1128_v40, %v1128_v40  ;;  %v1131_v56 = vsub.f32 %v1917_v55, %v1120_v11 }
 0x260   : > { %1199 = vst [vmem:[%s1953_s21] sm:$0x1] %v1198_v39  ;;  %v1145_v36 = vmul.f32 %v1129_v46, %v1129_v46  ;;  %v1132_v59 = vsub.f32 %v1925_v61, %v1120_v11  ;;  %v1146_v60 = vmul.f32 %v1130_v28, %v1130_v28  ;;  %v1133_v1 = vsub.f32 %v1933_v3, %v1120_v11 }
 0x261   : > { %v1155_v32 = vadd.f32 %v1154_v35, %v1140_v31  ;;  %v1147_v63 = vmul.f32 %v1131_v56, %v1131_v56  ;;  %v1134_v52 = vsub.f32 %v1955_v6, %v1120_v11  ;;  %v1135_v54 = vsub.f32 %v1973_v14, %v1120_v11 }
 0x262   : > { %v1148_v2 = vmul.f32 %v1132_v59, %v1132_v59  ;;  %v1149_v5 = vmul.f32 %v1133_v1, %v1133_v1  ;;  %v1136_v55 = vsub.f32 %v2003_v24, %v1120_v11  ;;  %v1201_v14 = vmul.f32 %v1178_v29, %v1178_v29  ;;  %v1200_v11 = vld [vmem:[%s1962_s24] sm:$0x1] }
 0x263   : > { %v1156_v43 = vadd.f32 %v1155_v32, %v1141_v57  ;;  %v1150_v8 = vmul.f32 %v1134_v52, %v1134_v52  ;;  %v1151_v61 = vmul.f32 %v1135_v54, %v1135_v54  ;;  %v1203_v18 = vstv %s1202_s26 }
 0x264   : > { %v1152_v12 = vmul.f32 %v1136_v55, %v1136_v55  ;;  %v1204_v24 = vmul.f32 %v1203_v18, %v1201_v14 }
 0x265   : > { %v1157_v20 = vadd.f32 %v1156_v43, %v1142_v42 }
 0x267   : > { %v1158_v50 = vadd.f32 %v1157_v20, %v1143_v41 }
 0x269   : > { %v1159_v58 = vadd.f32 %v1158_v50, %v1144_v49 }
 0x26b   : > { %v1160_v62 = vadd.f32 %v1159_v58, %v1145_v36 }
 0x26d   : > { %v1161_v0 = vadd.f32 %v1160_v62, %v1146_v60 }
 0x26f   : > { %v1162_v4 = vadd.f32 %v1161_v0, %v1147_v63 }
 0x271   : > { %v1163_v7 = vadd.f32 %v1162_v4, %v1148_v2 }
 0x273   : > { %v1164_v9 = vadd.f32 %v1163_v7, %v1149_v5 }
 0x275   : > { %v1165_v10 = vadd.f32 %v1164_v9, %v1150_v8 }
 0x277   : > { %v1166_v3 = vadd.f32 %v1165_v10, %v1151_v61 }
 0x279   : > { %v1167_v13 = vadd.f32 %v1166_v3, %v1152_v12 }
 0x27b   : > { %v1168_v15 = vrot.slane %v1167_v13, 4 }
 0x27d   : > { %v1169_v6 = vadd.f32 %v1168_v15, %v1167_v13 }
 0x27f   : > { %v1170_v16 = vrot.slane %v1169_v6, 2 }
 0x281   : > { %v1171_v17 = vadd.f32 %v1170_v16, %v1169_v6 }
 0x283   : > { %v1172_v19 = vrot.slane %v1171_v17, 1 }
 0x285   : > { %v1173_v21 = vadd.f32 %v1172_v19, %v1171_v17 }
 0x287   : > { %v1205_v23 = vadd.f32 %v1204_v24, %v1173_v21 }
 0x289   : > { %v1206_v51 = vadd.f32 %v1205_v23, %v1200_v11 }
 0x28b   : > { %1207 = vst [vmem:[%s1962_s24] sm:$0x1] %v1206_v51 }
 0x28c PF: > { %s22_s19 = sadd.s32 1, %s1562_s19   ;;  %s2062_s17 = smov %s1558_s18 }
 0x28d   : > { %p19_p5 = scmp.ge.s32.totalorder %s22_s19, 4   ;;  %s2063_s18 = smov %s2065_s20 }
 0x28f   :  { %21 = sbr.rel (!%p19_p5) target bundleno = 2 (0x2), region = 126 }

// kernel: pointnet_segmenter_forward.10
= control target key start
LH: loop header
LB: loop body
LE: loop exit
PB: predicated region body
PF: predicated region fallthrough
CT: control target
= control target key end

     0   :  { %s1218_s24 = smov 0   ;;  %s1220_s25 = smov 0   ;;  %s1485_s0 = inlined_call_operand.vmem [shape: f32[2,128,3], index: 0, kind: input, shape index: {}]   ;;  %s1486_s1 = inlined_call_operand.vmem [shape: f32[3,32], index: 1, kind: input, shape index: {}]   ;;  %s1487_s2 = inlined_call_operand.vmem [shape: f32[1,32], index: 2, kind: input, shape index: {}]   ;;  %s1488_s3 = inlined_call_operand.vmem [shape: f32[1,32], index: 3, kind: input, shape index: {}]   ;;  %s1489_s4 = inlined_call_operand.vmem [shape: bf16[32,128], index: 4, kind: input, shape index: {}]   ;;  %s1490_s5 = inlined_call_operand.vmem [shape: f32[2,1,128], index: 5, kind: input, shape index: {}]   ;;  %s1491_s6 = inlined_call_operand.vmem [shape: f32[2,1,128], index: 6, kind: output, shape index: {0}]   ;;  %s1492_s7 = inlined_call_operand.vmem [shape: f32[2,1,128], index: 7, kind: output, shape index: {1}]  }
   0x1   :  { %s1222_s26 = smov 0  }
   0x2 LB: > { %s37_s27 = sadd.s32 1, %s1167_s25  ;;  %p1048_p0 = scmp.ge.s32.totalorder %s1171_s26, 1  ;;  %s1171_s26 = sphi %s1222_s26, %s18_s26   ;;  %s1167_s25 = sphi %s1220_s25, %s1494_s25   ;;  %s1163_s24 = sphi %s1218_s24, %s1493_s24  }
   0x3   : > { %p39_p1 = scmp.ge.s32.totalorder %s37_s27, 2  ;;  %p282_p2 = scmp.lt.s32.totalorder %s1171_s26, 3 }
   0x5   : > { %s1496_s27 = smov (%p39_p1, %s37_s27), 0  ;;  %p283_p3 = pnand %p1048_p0, %p282_p2 }
   0x6   : > { %p327_p4 = scmp.lt.s32.totalorder (!%p283_p3), %s1163_s24, 1 }
   0x7   : > { %286 = sbr.rel (%p283_p3) target bundleno = 512 (0x200), region = 44 }
   0xc   : > { %v1173_v0 = vmov 1   ;;  %v1174_v1 = vmov 2   ;;  %s1498_s24 = smov (!%p327_p4, %s1163_s24), 1  ;;  %v1175_v7 = vmov 0   ;;  %v1071_v23 = vld [vmem:[%s1489_s4 + $0x8] sm:$0xff]  ;;  %v1070_v25 = vld [vmem:[%s1489_s4] sm:$0xff] }
   0xd   : > { %1113 = vset.pattern.permute.xlu0 %v1173_v0  ;;  %1109 = vset.pattern.permute.xlu1 %v1173_v0  ;;  %s1069_s28 = sshll.u32 %s1498_s24, 7  ;;  %s339_s8 = scalar_lea.vmem %s1490_s5, %s1498_s24  ;;  %v367_v28 = vld [vmem:[%s1486_s1] sm:$0x7]  ;;  %vm743_vm0 = vcmask 261120  }
   0xe   : > { %1110 = vset.pattern.permute.xlu2 %v1174_v1  ;;  %s1249_s11 = scalar_lea.vmem %s1485_s0, %s1069_s28  ;;  %774 = vmatpush.bf16.msra.mxu0 %v1071_v23  ;;  %v1316_v30 = vperm.slane %v367_v28, 1  ;;  %v1318_v31 = vperm.slane %v367_v28, 0  ;;  %v1320_v33 = vperm.slane %v367_v28, 2  ;;  %v1330_v40 = vld [vmem:[%s1487_s2] ss:$0 sm:$0xff]  ;;  %s1455_s30 = scalar_lea.vmem %s1491_s6, %s1498_s24 }
   0xf   : > { %v356_v2 = vld [vmem:[%s1249_s11 + $0x28] sm:$0xff]  ;;  %v351_v3 = vld [vmem:[%s1249_s11] sm:$0xff]  ;;  %v354_v10 = vld [vmem:[%s1249_s11 + $0x18] sm:$0xff]  ;;  %1073 = vmatpush.bf16.msra.mxu2 %v1071_v23  ;;  %1072 = vmatpush.bf16.msra.mxu1 %v1071_v23  ;;  %s1461_s10 = scalar_lea.vmem %s1492_s7, %s1498_s24 }
  0x10   : > { %486 = vperm.xlu0 %1113, %v356_v2   ;;  %466 = vperm.xlu1 %1109, %v351_v3   ;;  %v363_v4 = vld [vmem:[%s1249_s11 + $0x60] sm:$0xff]  ;;  %v352_v5 = vld [vmem:[%s1249_s11 + $0x8] sm:$0xff]  ;;  %v1268_v11 = vld [vmem:[%s1249_s11 + $0x50] sm:$0xff] }
  0x11   : > { %563 = vperm.xlu2 %1110, %v351_v3   ;;  %v355_v6 = vld [vmem:[%s1249_s11 + $0x20] sm:$0xff]  ;;  %v360_v9 = vld [vmem:[%s1249_s11 + $0x48] sm:$0xff]  ;;  %v353_v12 = vld [vmem:[%s1249_s11 + $0x10] sm:$0xff]  ;;  %1074 = vmatpush.bf16.msra.mxu3 %v1071_v23 }
  0x12   : > { %v359_v8 = vld [vmem:[%s1249_s11 + $0x40] sm:$0xff]  ;;  %v364_v13 = vld [vmem:[%s1249_s11 + $0x68] sm:$0xff]  ;;  %v358_v14 = vld [vmem:[%s1249_s11 + $0x38] sm:$0xff]  ;;  %775 = vmatpush.bf16.msra.mxu0 %v1070_v25 }
  0x13   : > { %v357_v16 = vld [vmem:[%s1249_s11 + $0x30] sm:$0xff]  ;;  %v362_v20 = vld [vmem:[%s1249_s11 + $0x58] sm:$0xff]  ;;  %1076 = vmatpush.bf16.msra.mxu2 %v1070_v25  ;;  %1075 = vmatpush.bf16.msra.mxu1 %v1070_v25  ;;  %v1343_v50 = vld [vmem:[%s1488_s3] ss:$0 sm:$0xff] }
  0x14   : > { %v1292_v19 = vld [vmem:[%s1249_s11 + $0x70] sm:$0xff]  ;;  %v366_v46 = vld [vmem:[%s1249_s11 + $0x78] sm:$0xff] }
  0x15   : > { %1077 = vmatpush.bf16.msra.mxu3 %v1070_v25 }
  0x18   : > { %514 = vperm.xlu0 %1113, %v363_v4   ;;  %470 = vperm.xlu1 %1109, %v352_v5  }
  0x19   : > { %567 = vperm.xlu2 %1110, %v352_v5  }
  0x20   : > { %1124 = vset.pattern.permute.xlu0 %v1175_v7  ;;  %1111 = vset.pattern.permute.xlu1 %v1175_v7 }
  0x21   : > { %370 = vperm.xlu0 %1124, %v351_v3   ;;  %1112 = vset.pattern.permute.xlu2 %v1173_v0 }
  0x22   : > { %395 = vperm.xlu1 %1111, %v356_v2   ;;  %482 = vperm.xlu2 %1112, %v355_v6  }
  0x29   : > { %375 = vperm.xlu0 %1124, %v352_v5  }
  0x2a   : > { %410 = vperm.xlu1 %1111, %v359_v8   ;;  %1114 = vset.pattern.permute.xlu2 %v1175_v7 }
  0x2b   : > { %415 = vperm.xlu2 %1114, %v360_v9  }
  0x31   : > { %390 = vperm.xlu0 %1124, %v355_v6  }
  0x32   : > { %1115 = vset.pattern.permute.xlu1 %v1173_v0 }
  0x33   : > { %498 = vperm.xlu1 %1115, %v359_v8   ;;  %1116 = vset.pattern.permute.xlu2 %v1173_v0 }
  0x34   : > { %502 = vperm.xlu2 %1116, %v360_v9  }
  0x39   : > { %385 = vperm.xlu0 %1124, %v354_v10  }
  0x3b   : > { %1117 = vset.pattern.permute.xlu1 %v1174_v1 }
  0x3c   : > { %583 = vperm.xlu1 %1117, %v356_v2   ;;  %1118 = vset.pattern.permute.xlu2 %v1174_v1 }
  0x3d   : > { %595 = vperm.xlu2 %1118, %v359_v8  }
  0x41   : > { %420 = vperm.xlu0 %1124, %v1268_v11  }
  0x44   : > { %599 = vperm.xlu1 %1117, %v360_v9  }
  0x45   : > { %1119 = vset.pattern.permute.xlu2 %v1175_v7 }
  0x46   : > { %380 = vperm.xlu2 %1119, %v353_v12  }
  0x49   : > { %1132 = vset.pattern.permute.xlu0 %v1174_v1 }
  0x4a   : > { %579 = vperm.xlu0 %1132, %v355_v6  }
  0x4c   : > { %1120 = vset.pattern.permute.xlu1 %v1173_v0 }
  0x4d   : > { %474 = vperm.xlu1 %1120, %v353_v12  }
  0x4e   : > { %1121 = vset.pattern.permute.xlu2 %v1173_v0 }
  0x4f   : > { %478 = vperm.xlu2 %1121, %v354_v10  }
  0x52   : > { %615 = vperm.xlu0 %1132, %v364_v13  }
  0x55   : > { %1122 = vset.pattern.permute.xlu1 %v1175_v7 }
  0x56   : > { %430 = vperm.xlu1 %1122, %v363_v4  }
  0x57   : > { %1123 = vset.pattern.permute.xlu2 %v1175_v7 }
  0x58   : > { %435 = vperm.xlu2 %1123, %v364_v13  }
  0x5a   : > { %591 = vperm.xlu0 %1132, %v358_v14  }
  0x5e   : > { %1125 = vset.pattern.permute.xlu1 %v1173_v0 }
  0x5f   : > { %518 = vperm.xlu1 %1125, %v364_v13  }
  0x60   : > { %1126 = vset.pattern.permute.xlu2 %v1174_v1 }
  0x61   : > { %571 = vperm.xlu2 %1126, %v353_v12  }
  0x62   : > { %1139 = vset.pattern.permute.xlu0 %v1173_v0 }
  0x63   : > { %522 = vperm.xlu0 %1139, %v1292_v19  }
  0x67   : > { %1127 = vset.pattern.permute.xlu1 %v1174_v1 }
  0x68   : > { %575 = vperm.xlu1 %1127, %v354_v10  }
  0x69   : > { %611 = vperm.xlu2 %1126, %v363_v4  }
  0x6b   : > { %v564_v15 = vpop.permute.xlu2 %563  ;;  %1143 = vset.pattern.permute.xlu0 %v1174_v1 }
  0x6c   : > { %v627_v39 = vmul.f32 %v1320_v33, %v564_v15 }
  0x70   : > { %1128 = vset.pattern.permute.xlu1 %v1175_v7 }
  0x71   : > { %400 = vperm.xlu1 %1128, %v357_v16   ;;  %1129 = vset.pattern.permute.xlu2 %v1175_v7 }
  0x72   : > { %405 = vperm.xlu2 %1129, %v358_v14  }
  0x73   : > { %v568_v17 = vpop.permute.xlu2 %567 }
  0x74   : > { %v628_v47 = vmul.f32 %v1320_v33, %v568_v17 }
  0x79   : > { %1130 = vset.pattern.permute.xlu1 %v1173_v0 }
  0x7a   : > { %490 = vperm.xlu1 %1130, %v357_v16   ;;  %1131 = vset.pattern.permute.xlu2 %v1173_v0 }
  0x7b   : > { %494 = vperm.xlu2 %1131, %v358_v14  }
  0x7c   : > { %v1289_v18 = vpop.permute.xlu2 %482 }
  0x82   : > { %1133 = vset.pattern.permute.xlu1 %v1175_v7  ;;  %v467_v21 = vpop.permute.xlu1 %466  ;;  %v1297_v22 = vpop.permute.xlu0 %486 }
  0x83   : > { %425 = vperm.xlu1 %1133, %v362_v20   ;;  %506 = vperm.xlu2 %1131, %v1268_v11   ;;  %v530_v34 = vmul.f32 %v1316_v30, %v467_v21  ;;  %v535_v5 = vmul.f32 %v1316_v30, %v1297_v22  ;;  %v534_v21 = vmul.f32 %v1316_v30, %v1289_v18 }
  0x85   : > { %v1303_v24 = vpop.permute.xlu2 %415 }
  0x8a   : > { %v471_v26 = vpop.permute.xlu1 %470  ;;  %v1309_v27 = vpop.permute.xlu0 %514 }
  0x8b   : > { %1134 = vset.pattern.permute.xlu1 %v1173_v0  ;;  %1135 = vset.pattern.permute.xlu2 %v1174_v1  ;;  %v531_v43 = vmul.f32 %v1316_v30, %v471_v26 }
  0x8c   : > { %510 = vperm.xlu1 %1134, %v362_v20   ;;  %587 = vperm.xlu2 %1135, %v357_v16  }
  0x8e   : > { %v503_v29 = vpop.permute.xlu2 %502 }
  0x8f   : > { %v539_v9 = vmul.f32 %v1316_v30, %v503_v29 }
  0x93   : > { %v371_v32 = vpop.permute.xlu0 %370 }
  0x94   : > { %v449_v35 = vmul.f32 %v1318_v31, %v371_v32  ;;  %1136 = vset.pattern.permute.xlu1 %v1174_v1  ;;  %v396_v36 = vpop.permute.xlu1 %395  ;;  %607 = vperm.xlu2 %1135, %v362_v20  }
  0x95   : > { %603 = vperm.xlu1 %1136, %v1268_v11   ;;  %v454_v8 = vmul.f32 %v1318_v31, %v396_v36 }
  0x96   : > { %v546_v37 = vadd.f32 %v530_v34, %v449_v35 }
  0x97   : > { %v596_v38 = vpop.permute.xlu2 %595  ;;  %v551_v14 = vadd.f32 %v535_v5, %v454_v8 }
  0x98   : > { %v643_v41 = vadd.f32 %v627_v39, %v546_v37 }
  0x9a   : > { %v663_v48 = vmul.f32 %v1330_v40, %v643_v41 }
  0x9b   : > { %v376_v42 = vpop.permute.xlu0 %375 }
  0x9c   : > { %v450_v44 = vmul.f32 %v1318_v31, %v376_v42  ;;  %v411_v45 = vpop.permute.xlu1 %410  ;;  %1138 = vset.pattern.permute.xlu2 %v1175_v7  ;;  %v683_v54 = vadd.f32 %v1343_v50, %v663_v48 }
  0x9d   : > { %1137 = vset.pattern.permute.xlu1 %v1175_v7  ;;  %445 = vperm.xlu2 %1138, %v366_v46   ;;  %v457_v2 = vmul.f32 %v1318_v31, %v411_v45  ;;  %v458_v7 = vmul.f32 %v1318_v31, %v1303_v24 }
  0x9e   : > { %v547_v49 = vadd.f32 %v531_v43, %v450_v44  ;;  %440 = vperm.xlu1 %1137, %v1292_v19   ;;  %v699_v58 = vmax.f32 %v683_v54, 0.0 }
  0xa0   : > { %v644_v51 = vadd.f32 %v628_v47, %v547_v49  ;;  %v1345_v52 = vpop.permute.xlu2 %380 }
  0xa1   : > { %v451_v54 = vmul.f32 %v1318_v31, %v1345_v52 }
  0xa2   : > { %v664_v53 = vmul.f32 %v1330_v40, %v644_v51 }
  0xa3   : > { %v391_v55 = vpop.permute.xlu0 %390 }
  0xa4   : > { %v684_v56 = vadd.f32 %v1343_v50, %v664_v53  ;;  %v453_v17 = vmul.f32 %v1318_v31, %v391_v55 }
  0xa5   : > { %v499_v57 = vpop.permute.xlu1 %498  ;;  %1141 = vset.pattern.permute.xlu2 %v1174_v1 }
  0xa6   : > { %1140 = vset.pattern.permute.xlu1 %v1173_v0  ;;  %v700_v59 = vmax.f32 %v684_v56, 0.0  ;;  %619 = vperm.xlu2 %1141, %v1292_v19   ;;  %v538_v62 = vmul.f32 %v1316_v30, %v499_v57  ;;  %v635_v0 = vmul.f32 %v1320_v33, %v596_v38  ;;  %v550_v26 = vadd.f32 %v534_v21, %v453_v17 }
  0xa7   : > { %526 = vperm.xlu1 %1140, %v366_v46  }
  0xa8   : > { %v715_v60 = vpack.c.bf16 %v700_v59, %v699_v58  ;;  %v554_v4 = vadd.f32 %v538_v62, %v457_v2 }
  0xa9   : > { %v1353_v61 = vpop.permute.xlu2 %478 }
  0xaa   : > { %1059 = vmatmul.msk.bf16.vlgmr.msra.gmra.mxu0 %vm743_vm0, %v715_v60  ;;  %v651_v10 = vadd.f32 %v635_v0, %v554_v4  ;;  %v533_v5 = vmul.f32 %v1316_v30, %v1353_v61 }
  0xab   : > { %v1357_v63 = vpop.permute.xlu0 %385 }
  0xac   : > { %v671_v15 = vmul.f32 %v1330_v40, %v651_v10  ;;  %v452_v52 = vmul.f32 %v1318_v31, %v1357_v63 }
  0xae   : > { %v584_v3 = vpop.permute.xlu1 %583  ;;  %v691_v24 = vadd.f32 %v1343_v50, %v671_v15 }
  0xaf   : > { %1142 = vset.pattern.permute.xlu1 %v1174_v1  ;;  %v632_v12 = vmul.f32 %v1320_v33, %v584_v3  ;;  %v555_v1 = vadd.f32 %v539_v9, %v458_v7 }
  0xb0   : > { %623 = vperm.xlu1 %1142, %v366_v46   ;;  %v707_v36 = vmax.f32 %v691_v24, 0.0  ;;  %v542_v46 = vmul.f32 %v1316_v30, %v1309_v27 }
  0xb1   : > { %v648_v19 = vadd.f32 %v632_v12, %v551_v14 }
  0xb2   : > { %v436_v6 = vpop.permute.xlu2 %435 }
  0xb3   : > { %v1368_v11 = vpop.permute.xlu0 %420  ;;  %v668_v28 = vmul.f32 %v1330_v40, %v648_v19  ;;  %v462_v57 = vmul.f32 %v1318_v31, %v436_v6 }
  0xb5   : > { %v688_v39 = vadd.f32 %v1343_v50, %v668_v28 }
  0xb6   : > { %v600_v13 = vpop.permute.xlu1 %599 }
  0xb7   : > { %v636_v16 = vmul.f32 %v1320_v33, %v600_v13  ;;  %v704_v44 = vmax.f32 %v688_v39, 0.0  ;;  %v549_v13 = vadd.f32 %v533_v5, %v452_v52 }
  0xb9   : > { %v652_v20 = vadd.f32 %v636_v16, %v555_v1 }
  0xbb   : > { %v672_v22 = vmul.f32 %v1330_v40, %v652_v20  ;;  %v572_v23 = vpop.permute.xlu2 %571 }
  0xbc   : > { %v580_v25 = vpop.permute.xlu0 %579  ;;  %v629_v62 = vmul.f32 %v1320_v33, %v572_v23 }
  0xbd   : > { %v631_v29 = vmul.f32 %v1320_v33, %v580_v25  ;;  %v692_v32 = vadd.f32 %v1343_v50, %v672_v22 }
  0xbf   : > { %v647_v34 = vadd.f32 %v631_v29, %v550_v26  ;;  %v475_v35 = vpop.permute.xlu1 %474  ;;  %v708_v37 = vmax.f32 %v692_v32, 0.0 }
  0xc0   : > { %v532_v55 = vmul.f32 %v1316_v30, %v475_v35 }
  0xc1   : > { %v667_v38 = vmul.f32 %v1330_v40, %v647_v34  ;;  %v719_v18 = vpack.c.bf16 %v708_v37, %v707_v36 }
  0xc2   : > { %v548_v2 = vadd.f32 %v532_v55, %v451_v54 }
  0xc3   : > { %1063 = vmatmul.msk.bf16.vlgmr.msra.gmra.mxu2 %vm743_vm0, %v719_v18  ;;  %v687_v41 = vadd.f32 %v1343_v50, %v667_v38  ;;  %v612_v42 = vpop.permute.xlu2 %611 }
  0xc4   : > { %v639_v49 = vmul.f32 %v1320_v33, %v612_v42  ;;  %v616_v56 = vpop.permute.xlu0 %615  ;;  %v645_v6 = vadd.f32 %v629_v62, %v548_v2 }
  0xc5   : > { %v703_v43 = vmax.f32 %v687_v41, 0.0  ;;  %v640_v60 = vmul.f32 %v1320_v33, %v616_v56 }
  0xc6   : > { %v665_v14 = vmul.f32 %v1330_v40, %v645_v6 }
  0xc7   : > { %v717_v45 = vpack.c.bf16 %v704_v44, %v703_v43 }
  0xc8   : > { %v431_v47 = vpop.permute.xlu1 %430  ;;  %v685_v19 = vadd.f32 %v1343_v50, %v665_v14 }
  0xc9   : > { %v461_v48 = vmul.f32 %v1318_v31, %v431_v47  ;;  %1061 = vmatmul.msk.bf16.vlgmr.msra.gmra.mxu1 %vm743_vm0, %v717_v45 }
  0xca   : > { %v701_v26 = vmax.f32 %v685_v19, 0.0 }
  0xcb   : > { %v558_v51 = vadd.f32 %v542_v46, %v461_v48 }
  0xcc   : > { %v406_v53 = vpop.permute.xlu2 %405  ;;  %v592_v24 = vpop.permute.xlu0 %591 }
  0xcd   : > { %v655_v58 = vadd.f32 %v639_v49, %v558_v51  ;;  %v456_v20 = vmul.f32 %v1318_v31, %v406_v53  ;;  %v634_v34 = vmul.f32 %v1320_v33, %v592_v24 }
  0xcf   : > { %v675_v3 = vmul.f32 %v1330_v40, %v655_v58 }
  0xd1   : > { %v519_v59 = vpop.permute.xlu1 %518  ;;  %v695_v9 = vadd.f32 %v1343_v50, %v675_v3 }
  0xd2   : > { %v543_v27 = vmul.f32 %v1316_v30, %v519_v59  ;;  %v459_v59 = vmul.f32 %v1318_v31, %v1368_v11 }
  0xd3   : > { %v711_v15 = vmax.f32 %v695_v9, 0.0 }
  0xd4   : > { %v559_v0 = vadd.f32 %v543_v27, %v462_v57 }
  0xd5   : > { %v495_v8 = vpop.permute.xlu2 %494 }
  0xd6   : > { %v656_v4 = vadd.f32 %v640_v60, %v559_v0  ;;  %v537_v21 = vmul.f32 %v1316_v30, %v495_v8 }
  0xd8   : > { %v676_v7 = vmul.f32 %v1330_v40, %v656_v4  ;;  %v553_v29 = vadd.f32 %v537_v21, %v456_v20 }
  0xda   : > { %v576_v10 = vpop.permute.xlu1 %575  ;;  %v696_v12 = vadd.f32 %v1343_v50, %v676_v7  ;;  %v650_v35 = vadd.f32 %v634_v34, %v553_v29 }
  0xdb   : > { %v630_v1 = vmul.f32 %v1320_v33, %v576_v10 }
  0xdc   : > { %v712_v16 = vmax.f32 %v696_v12, 0.0  ;;  %v670_v39 = vmul.f32 %v1330_v40, %v650_v35  ;;  %v523_v12 = vpop.permute.xlu0 %522 }
  0xdd   : > { %v646_v63 = vadd.f32 %v630_v1, %v549_v13  ;;  %v507_v23 = vpop.permute.xlu2 %506  ;;  %v544_v13 = vmul.f32 %v1316_v30, %v523_v12 }
  0xde   : > { %v721_v17 = vpack.c.bf16 %v712_v16, %v711_v15  ;;  %v690_v44 = vadd.f32 %v1343_v50, %v670_v39  ;;  %v540_v27 = vmul.f32 %v1316_v30, %v507_v23 }
  0xdf   : > { %v666_v61 = vmul.f32 %v1330_v40, %v646_v63 }
  0xe0   : > { %1065 = vmatmul.msk.bf16.vlgmr.msra.gmra.mxu3 %vm743_vm0, %v721_v17  ;;  %v706_v48 = vmax.f32 %v690_v44, 0.0  ;;  %v556_v2 = vadd.f32 %v540_v27, %v459_v59 }
  0xe1   : > { %v686_v22 = vadd.f32 %v1343_v50, %v666_v61 }
  0xe3   : > { %v401_v25 = vpop.permute.xlu1 %400  ;;  %v702_v28 = vmax.f32 %v686_v22, 0.0 }
  0xe4   : > { %v455_v38 = vmul.f32 %v1318_v31, %v401_v25 }
  0xe5   : > { %v716_v32 = vpack.c.bf16 %v702_v28, %v701_v26 }
  0xe6   : > { %v588_v36 = vpop.permute.xlu2 %587 }
  0xe7   : > { %1060 = vmatmul.msk.bf16.gmra.mxu0 %vm743_vm0, %v716_v32  ;;  %v633_v41 = vmul.f32 %v1320_v33, %v588_v36 }
  0xec   : > { %v491_v37 = vpop.permute.xlu1 %490 }
  0xed   : > { %v536_v18 = vmul.f32 %v1316_v30, %v491_v37 }
  0xee   : > { %v608_v53 = vpop.permute.xlu2 %607 }
  0xef   : > { %v552_v42 = vadd.f32 %v536_v18, %v455_v38  ;;  %v638_v57 = vmul.f32 %v1320_v33, %v608_v53 }
  0xf1   : > { %v649_v43 = vadd.f32 %v633_v41, %v552_v42 }
  0xf3   : > { %v669_v45 = vmul.f32 %v1330_v40, %v649_v43  ;;  %v1144_v43 = vld [vmem:[%s339_s8] ss:$0 sm:$0xff] }
  0xf5   : > { %v426_v46 = vpop.permute.xlu1 %425  ;;  %v689_v47 = vadd.f32 %v1343_v50, %v669_v45 }
  0xf6   : > { %v460_v55 = vmul.f32 %v1318_v31, %v426_v46 }
  0xf7   : > { %v705_v49 = vmax.f32 %v689_v47, 0.0  ;;  %v446_v6 = vpop.permute.xlu2 %445 }
  0xf8   : > { %v464_v17 = vmul.f32 %v1318_v31, %v446_v6 }
  0xf9   : > { %v718_v51 = vpack.c.bf16 %v706_v48, %v705_v49 }
  0xfb   : > { %1062 = vmatmul.msk.bf16.gmra.mxu1 %vm743_vm0, %v718_v51 }
  0xfe   : > { %v511_v54 = vpop.permute.xlu1 %510 }
  0xff   : > { %v541_v56 = vmul.f32 %v1316_v30, %v511_v54 }
 0x100   : > { %v620_v1 = vpop.permute.xlu2 %619 }
 0x101   : > { %v557_v58 = vadd.f32 %v541_v56, %v460_v55  ;;  %v641_v63 = vmul.f32 %v1320_v33, %v620_v1 }
 0x103   : > { %v654_v60 = vadd.f32 %v638_v57, %v557_v58 }
 0x105   : > { %v674_v3 = vmul.f32 %v1330_v40, %v654_v60 }
 0x107   : > { %v604_v62 = vpop.permute.xlu1 %603  ;;  %v694_v5 = vadd.f32 %v1343_v50, %v674_v3 }
 0x108   : > { %v637_v0 = vmul.f32 %v1320_v33, %v604_v62 }
 0x109   : > { %v710_v11 = vmax.f32 %v694_v5, 0.0 }
 0x10a   : > { %v653_v4 = vadd.f32 %v637_v0, %v556_v2 }
 0x10c   : > { %v673_v52 = vmul.f32 %v1330_v40, %v653_v4 }
 0x10e   : > { %v693_v7 = vadd.f32 %v1343_v50, %v673_v52 }
 0x110   : > { %v441_v8 = vpop.permute.xlu1 %440  ;;  %v709_v9 = vmax.f32 %v693_v7, 0.0 }
 0x111   : > { %v463_v14 = vmul.f32 %v1318_v31, %v441_v8  ;;  %v1176_v31 = vmov 128.0   ;;  %v1177_v8 = vmov 0.0  }
 0x112   : > { %v720_v10 = vpack.c.bf16 %v710_v11, %v709_v9  ;;  %1147 = vrcp.f32 %v1176_v31  ;;  %821 = vst [vmem:[%s1455_s30] sm:$0x1] %v1177_v8 }
 0x113   : > { %v560_v16 = vadd.f32 %v544_v13, %v463_v14  ;;  %822 = vst [vmem:[%s1461_s10] sm:$0x1] %v1177_v8 }
 0x114   : > { %1064 = vmatmul.msk.bf16.gmra.mxu2 %vm743_vm0, %v720_v10 }
 0x115   : > { %v657_v61 = vadd.f32 %v641_v63, %v560_v16 }
 0x117   : > { %v677_v21 = vmul.f32 %v1330_v40, %v657_v61 }
 0x119   : > { %v527_v15 = vpop.permute.xlu1 %526  ;;  %v697_v26 = vadd.f32 %v1343_v50, %v677_v21 }
 0x11a   : > { %v545_v19 = vmul.f32 %v1316_v30, %v527_v15  ;;  %v1148_v30 = vpop.eup %1147 }
 0x11b   : > { %v713_v29 = vmax.f32 %v697_v26, 0.0  ;;  %v845_v35 = vmul.f32 128.0, %v1148_v30  ;;  %vm849_vm1 = vweird.f32 %v1148_v30 }
 0x11c   : > { %v561_v22 = vadd.f32 %v545_v19, %v464_v17 }
 0x11d   : > { %v846_v36 = vsub.f32 1.0, %v845_v35 }
 0x11f   : > { %v847_v37 = vmul.f32 %v1148_v30, %v846_v36 }
 0x121   : > { %v848_v38 = vadd.f32 %v1148_v30, %v847_v37  ;;  %v908_v37 = vld [vmem:[%s1455_s30] sm:$0x1] }
 0x122   : > { %v624_v20 = vpop.permute.xlu1 %623 }
 0x123   : > { %v642_v23 = vmul.f32 %v1320_v33, %v624_v20 }
 0x125   : > { %v658_v24 = vadd.f32 %v642_v23, %v561_v22 }
 0x127   : > { %v678_v25 = vmul.f32 %v1330_v40, %v658_v24  ;;  %v777_v33 = vpop.f32.mrf.mxu0  ;;  %v850_v40 = vsel %vm849_vm1, %v1148_v30, %v848_v38 }
 0x128   : > { %1078 = vpush %v850_v40  ;;  %v778_v46 = vadd.f32 %v1144_v43, %v777_v33 }
 0x129   : > { %v698_v28 = vadd.f32 %v1343_v50, %v678_v25 }
 0x12b   : > { %v714_v32 = vmax.f32 %v698_v28, 0.0 }
 0x12d   : > { %v722_v34 = vpack.c.bf16 %v714_v32, %v713_v29 }
 0x12f   : > { %1066 = vmatmul.msk.bf16.gmra.mxu3 %vm743_vm0, %v722_v34  ;;  %v779_v18 = vpop.f32.mrf.mxu0 }
 0x130   : > { %v780_v44 = vadd.f32 %v1144_v43, %v779_v18 }
 0x132   : > { %v823_v49 = vadd.f32 %v780_v44, %v778_v46 }
 0x146   : > { %v787_v39 = vpop.f32.mrf.mxu1  ;;  %v797_v42 = vpop.f32.mrf.mxu2 }
 0x147   : > { %v788_v56 = vadd.f32 %v1144_v43, %v787_v39  ;;  %v798_v52 = vadd.f32 %v1144_v43, %v797_v42 }
 0x14e   : > { %v789_v41 = vpop.f32.mrf.mxu1  ;;  %v799_v54 = vpop.f32.mrf.mxu2 }
 0x14f   : > { %v790_v59 = vadd.f32 %v1144_v43, %v789_v41  ;;  %v800_v9 = vadd.f32 %v1144_v43, %v799_v54 }
 0x159   : > { %s1465_s24 = spop %1078 }
 0x15a   : > { %s926_s11 = smul.f32 128.0, %s1465_s24 }
 0x15c   : > { %v927_v38 = vstv %s926_s11  ;;  %s933_s12 = smul.f32 0.0, %s926_s11 }
 0x163   : > { %v807_v60 = vpop.f32.mrf.mxu3 }
 0x164   : > { %v782_v50 = vpop.f32.mrf.mxu0  ;;  %v808_v15 = vadd.f32 %v1144_v43, %v807_v60 }
 0x165   : > { %v783_v47 = vadd.f32 %v1144_v43, %v782_v50 }
 0x167   : > { %v824_v53 = vadd.f32 %v823_v49, %v783_v47 }
 0x16b   : > { %v809_v6 = vpop.f32.mrf.mxu3 }
 0x16c   : > { %v784_v45 = vpop.f32.mrf.mxu0  ;;  %v810_v63 = vadd.f32 %v1144_v43, %v809_v6 }
 0x16d   : > { %v785_v51 = vadd.f32 %v1144_v43, %v784_v45 }
 0x16f   : > { %v825_v55 = vadd.f32 %v824_v53, %v785_v51 }
 0x171   : > { %v826_v57 = vadd.f32 %v825_v55, %v788_v56 }
 0x173   : > { %v827_v2 = vadd.f32 %v826_v57, %v790_v59 }
 0x178   : > { %v792_v48 = vpop.f32.mrf.mxu1 }
 0x179   : > { %v793_v27 = vadd.f32 %v1144_v43, %v792_v48 }
 0x17b   : > { %v828_v0 = vadd.f32 %v827_v2, %v793_v27 }
 0x180   : > { %v794_v58 = vpop.f32.mrf.mxu1 }
 0x181   : > { %v795_v3 = vadd.f32 %v1144_v43, %v794_v58 }
 0x183   : > { %v829_v4 = vadd.f32 %v828_v0, %v795_v3 }
 0x185   : > { %v830_v5 = vadd.f32 %v829_v4, %v798_v52 }
 0x187   : > { %v831_v10 = vadd.f32 %v830_v5, %v800_v9 }
 0x197   : > { %v802_v62 = vpop.f32.mrf.mxu2 }
 0x198   : > { %v803_v11 = vadd.f32 %v1144_v43, %v802_v62 }
 0x19a   : > { %v832_v13 = vadd.f32 %v831_v10, %v803_v11 }
 0x19f   : > { %v804_v7 = vpop.f32.mrf.mxu2 }
 0x1a0   : > { %v805_v12 = vadd.f32 %v1144_v43, %v804_v7 }
 0x1a2   : > { %v833_v14 = vadd.f32 %v832_v13, %v805_v12 }
 0x1a4   : > { %v834_v16 = vadd.f32 %v833_v14, %v808_v15 }
 0x1a6   : > { %v835_v61 = vadd.f32 %v834_v16, %v810_v63 }
 0x1b2   : > { %v812_v1 = vpop.f32.mrf.mxu3 }
 0x1b3   : > { %v813_v17 = vadd.f32 %v1144_v43, %v812_v1 }
 0x1b5   : > { %v836_v20 = vadd.f32 %v835_v61, %v813_v17 }
 0x1ba   : > { %v814_v19 = vpop.f32.mrf.mxu3 }
 0x1bb   : > { %v815_v21 = vadd.f32 %v1144_v43, %v814_v19 }
 0x1bd   : > { %v837_v22 = vadd.f32 %v836_v20, %v815_v21 }
 0x1bf   : > { %v838_v23 = vrot.slane %v837_v22, 4 }
 0x1c1   : > { %v839_v24 = vadd.f32 %v838_v23, %v837_v22 }
 0x1c3   : > { %v840_v25 = vrot.slane %v839_v24, 2 }
 0x1c5   : > { %v841_v26 = vadd.f32 %v840_v25, %v839_v24 }
 0x1c7   : > { %v842_v28 = vrot.slane %v841_v26, 1 }
 0x1c9   : > { %v843_v29 = vadd.f32 %v842_v28, %v841_v26  ;;  %v931_v28 = vld [vmem:[%s1461_s10] sm:$0x1] }
 0x1cb   : > { %v851_v32 = vmul.f32 %v850_v40, %v843_v29 }
 0x1cd   : > { %v852_v34 = vsub.f32 %v778_v46, %v851_v32  ;;  %v853_v31 = vsub.f32 %v780_v44, %v851_v32  ;;  %v854_v30 = vsub.f32 %v783_v47, %v851_v32  ;;  %v855_v33 = vsub.f32 %v785_v51, %v851_v32 }
 0x1ce   : > { %v856_v18 = vsub.f32 %v788_v56, %v851_v32  ;;  %v909_v41 = vsub.f32 %v851_v32, %v908_v37  ;;  %v857_v40 = vsub.f32 %v790_v59, %v851_v32  ;;  %v858_v45 = vsub.f32 %v793_v27, %v851_v32 }
 0x1cf   : > { %v868_v35 = vmul.f32 %v852_v34, %v852_v34  ;;  %v869_v36 = vmul.f32 %v853_v31, %v853_v31  ;;  %v870_v39 = vmul.f32 %v854_v30, %v854_v30  ;;  %v871_v42 = vmul.f32 %v855_v33, %v855_v33 }
 0x1d0   : > { %v928_v44 = vmul.f32 %v927_v38, %v909_v41  ;;  %v872_v46 = vmul.f32 %v856_v18, %v856_v18  ;;  %v859_v47 = vsub.f32 %v795_v3, %v851_v32  ;;  %v873_v53 = vmul.f32 %v857_v40, %v857_v40 }
 0x1d1   : > { %v884_v50 = vadd.f32 %v869_v36, %v868_v35  ;;  %v860_v51 = vsub.f32 %v798_v52, %v851_v32  ;;  %v874_v55 = vmul.f32 %v858_v45, %v858_v45  ;;  %v861_v58 = vsub.f32 %v800_v9, %v851_v32 }
 0x1d2   : > { %v929_v49 = vadd.f32 %v928_v44, %v908_v37  ;;  %v875_v56 = vmul.f32 %v859_v47, %v859_v47  ;;  %v862_v62 = vsub.f32 %v803_v11, %v851_v32  ;;  %v863_v0 = vsub.f32 %v805_v12, %v851_v32 }
 0x1d3   : > { %v885_v43 = vadd.f32 %v884_v50, %v870_v39  ;;  %v876_v2 = vmul.f32 %v860_v51, %v860_v51  ;;  %v877_v4 = vmul.f32 %v861_v58, %v861_v58  ;;  %v864_v27 = vsub.f32 %v808_v15, %v851_v32 }
 0x1d4   : > { %930 = vst [vmem:[%s1455_s30] sm:$0x1] %v929_v49  ;;  %v878_v6 = vmul.f32 %v862_v62, %v862_v62  ;;  %v865_v8 = vsub.f32 %v810_v63, %v851_v32  ;;  %v879_v3 = vmul.f32 %v863_v0, %v863_v0  ;;  %v866_v13 = vsub.f32 %v813_v17, %v851_v32 }
 0x1d5   : > { %v886_v48 = vadd.f32 %v885_v43, %v871_v42  ;;  %v880_v52 = vmul.f32 %v864_v27, %v864_v27  ;;  %v867_v1 = vsub.f32 %v815_v21, %v851_v32  ;;  %v932_v24 = vmul.f32 %v909_v41, %v909_v41 }
 0x1d6   : > { %v881_v9 = vmul.f32 %v865_v8, %v865_v8  ;;  %v882_v11 = vmul.f32 %v866_v13, %v866_v13  ;;  %v934_v17 = vstv %s933_s12 }
 0x1d7   : > { %v887_v54 = vadd.f32 %v886_v48, %v872_v46  ;;  %v883_v19 = vmul.f32 %v867_v1, %v867_v1  ;;  %v935_v21 = vmul.f32 %v934_v17, %v932_v24 }
 0x1d9   : > { %v888_v57 = vadd.f32 %v887_v54, %v873_v53 }
 0x1db   : > { %v889_v60 = vadd.f32 %v888_v57, %v874_v55 }
 0x1dd   : > { %v890_v59 = vadd.f32 %v889_v60, %v875_v56 }
 0x1df   : > { %v891_v5 = vadd.f32 %v890_v59, %v876_v2 }
 0x1e1   : > { %v892_v7 = vadd.f32 %v891_v5, %v877_v4 }
 0x1e3   : > { %v893_v10 = vadd.f32 %v892_v7, %v878_v6 }
 0x1e5   : > { %v894_v14 = vadd.f32 %v893_v10, %v879_v3 }
 0x1e7   : > { %v895_v16 = vadd.f32 %v894_v14, %v880_v52 }
 0x1e9   : > { %v896_v61 = vadd.f32 %v895_v16, %v881_v9 }
 0x1eb   : > { %v897_v12 = vadd.f32 %v896_v61, %v882_v11 }
 0x1ed   : > { %v898_v20 = vadd.f32 %v897_v12, %v883_v19 }
 0x1ef   : > { %v899_v15 = vrot.slane %v898_v20, 4 }
 0x1f1   : > { %v900_v22 = vadd.f32 %v899_v15, %v898_v20 }
 0x1f3   : > { %v901_v63 = vrot.slane %v900_v22, 2 }
 0x1f5   : > { %v902_v23 = vadd.f32 %v901_v63, %v900_v22 }
 0x1f7   : > { %v903_v25 = vrot.slane %v902_v23, 1 }
 0x1f9   : > { %v904_v26 = vadd.f32 %v903_v25, %v902_v23 }
 0x1fb   : > { %v936_v29 = vadd.f32 %v935_v21, %v904_v26 }
 0x1fd   : > { %v937_v32 = vadd.f32 %v936_v29, %v931_v28 }
 0x1ff   : > { %938 = vst [vmem:[%s1461_s10] sm:$0x1] %v937_v32 }
 0x200 PF: > { %s18_s26 = sadd.s32 1, %s1171_s26   ;;  %s1493_s24 = smov %s1167_s25 }
 0x201   : > { %p15_p5 = scmp.ge.s32.totalorder %s18_s26, 4   ;;  %s1494_s25 = smov %s1496_s27 }
 0x203   :  { %17 = sbr.rel (!%p15_p5) target bundleno = 2 (0x2), region = 93 }

// kernel: pointnet_segmenter_forward.12
= control target key start
LH: loop header
LB: loop body
LE: loop exit
PB: predicated region body
PF: predicated region fallthrough
CT: control target
= control target key end

     0   :  { %s1873_s25 = smov 0   ;;  %s1875_s26 = smov 0   ;;  %s2361_s0 = inlined_call_operand.vmem [shape: f32[2,128,3], index: 0, kind: input, shape index: {}]   ;;  %s2362_s1 = inlined_call_operand.vmem [shape: f32[3,32], index: 1, kind: input, shape index: {}]   ;;  %s2363_s2 = inlined_call_operand.vmem [shape: f32[1,32], index: 2, kind: input, shape index: {}]   ;;  %s2364_s3 = inlined_call_operand.vmem [shape: f32[1,32], index: 3, kind: input, shape index: {}]   ;;  %s2365_s4 = inlined_call_operand.vmem [shape: bf16[32,128], index: 4, kind: input, shape index: {}]   ;;  %s2366_s5 = inlined_call_operand.vmem [shape: f32[2,1,128], index: 5, kind: input, shape index: {}]   ;;  %s2367_s6 = inlined_call_operand.vmem [shape: f32[1,128], index: 6, kind: input, shape index: {}]   ;;  %s2368_s7 = inlined_call_operand.vmem [shape: f32[1,128], index: 7, kind: input, shape index: {}]   ;;  %s2369_s8 = inlined_call_operand.vmem [shape: bf16[128,64], index: 8, kind: input, shape index: {}]   ;;  %s2370_s9 = inlined_call_operand.vmem [shape: f32[1,64], index: 9, kind: input, shape index: {}]   ;;  %s2371_s10 = inlined_call_operand.vmem [shape: f32[1,64], index: 10, kind: input, shape index: {}]   ;;  %s2372_s11 = inlined_call_operand.vmem [shape: bf16[64,32], index: 11, kind: input, shape index: {}]   ;;  %s2373_s12 = inlined_call_operand.vmem [shape: f32[2,1,32], index: 12, kind: output, shape index: {0}]   ;;  %s2374_s13 = inlined_call_operand.vmem [shape: f32[2,1,32], index: 13, kind: output, shape index: {1}]  }
   0x1   :  { %s1877_s27 = smov 0  }
   0x2 LB: > { %s43_s28 = sadd.s32 1, %s1792_s26  ;;  %p1591_p0 = scmp.ge.s32.totalorder %s1796_s27, 1  ;;  %s1796_s27 = sphi %s1877_s27, %s24_s27   ;;  %s1792_s26 = sphi %s1875_s26, %s2376_s26   ;;  %s1788_s25 = sphi %s1873_s25, %s2375_s25  }
   0x3   : > { %p45_p1 = scmp.ge.s32.totalorder %s43_s28, 2  ;;  %p432_p2 = scmp.lt.s32.totalorder %s1796_s27, 3 }
   0x5   : > { %s2378_s28 = smov (%p45_p1, %s43_s28), 0  ;;  %p433_p3 = pnand %p1591_p0, %p432_p2 }
   0x6   : > { %p489_p4 = scmp.lt.s32.totalorder (!%p433_p3), %s1788_s25, 1 }
   0x7   : > { %436 = sbr.rel (%p433_p3) target bundleno = 796 (0x31c), region = 68 }
   0xc   : > { %v1798_v0 = vmov 1   ;;  %v1799_v1 = vmov 0   ;;  %s2380_s25 = smov (!%p489_p4, %s1788_s25), 1  ;;  %v1800_v2 = vmov 2   ;;  %v1670_v18 = vld [vmem:[%s2365_s4 + $0x8] sm:$0xff]  ;;  %v1669_v19 = vld [vmem:[%s2365_s4] sm:$0xff] }
   0xd   : > { %1727 = vset.pattern.permute.xlu1 %v1798_v0  ;;  %1726 = vset.pattern.permute.xlu0 %v1799_v1  ;;  %s1668_s29 = sshll.u32 %s2380_s25, 7  ;;  %s501_s15 = scalar_lea.vmem %s2366_s5, %s2380_s25  ;;  %v529_v22 = vld [vmem:[%s2362_s1] sm:$0x7]  ;;  %vm905_vm0 = vcmask 261120   ;;  %vm1252_vm1 = vcmask 523264   ;;  %vm1330_vm3 = vcmask 253952  }
   0xe   : > { %1728 = vset.pattern.permute.xlu2 %v1800_v2  ;;  %s1904_s18 = scalar_lea.vmem %s2361_s0, %s1668_s29  ;;  %936 = vmatpush.bf16.msra.mxu0 %v1670_v18  ;;  %v1960_v23 = vperm.slane %v529_v22, 1  ;;  %v1962_v24 = vperm.slane %v529_v22, 0  ;;  %v1964_v25 = vperm.slane %v529_v22, 2  ;;  %v1974_v33 = vld [vmem:[%s2363_s2] ss:$0 sm:$0xff]  ;;  %s2273_s14 = scalar_lea.vmem %s2373_s12, %s2380_s25 }
   0xf   : > { %v513_v3 = vld [vmem:[%s1904_s18] sm:$0xff]  ;;  %v514_v4 = vld [vmem:[%s1904_s18 + $0x8] sm:$0xff]  ;;  %v515_v5 = vld [vmem:[%s1904_s18 + $0x10] sm:$0xff] }
  0x10   : > { %628 = vperm.xlu1 %1727, %v513_v3   ;;  %532 = vperm.xlu0 %1726, %v513_v3   ;;  %v516_v6 = vld [vmem:[%s1904_s18 + $0x18] sm:$0xff]  ;;  %v517_v7 = vld [vmem:[%s1904_s18 + $0x20] sm:$0xff]  ;;  %v518_v8 = vld [vmem:[%s1904_s18 + $0x28] sm:$0xff] }
  0x11   : > { %725 = vperm.xlu2 %1728, %v513_v3   ;;  %v519_v9 = vld [vmem:[%s1904_s18 + $0x30] sm:$0xff]  ;;  %v520_v10 = vld [vmem:[%s1904_s18 + $0x38] sm:$0xff]  ;;  %v522_v11 = vld [vmem:[%s1904_s18 + $0x48] sm:$0xff] }
  0x12   : > { %v523_v12 = vld [vmem:[%s1904_s18 + $0x50] sm:$0xff]  ;;  %v521_v13 = vld [vmem:[%s1904_s18 + $0x40] sm:$0xff]  ;;  %v524_v14 = vld [vmem:[%s1904_s18 + $0x58] sm:$0xff]  ;;  %937 = vmatpush.bf16.msra.mxu0 %v1669_v19 }
  0x13   : > { %v525_v15 = vld [vmem:[%s1904_s18 + $0x60] sm:$0xff]  ;;  %v526_v16 = vld [vmem:[%s1904_s18 + $0x68] sm:$0xff]  ;;  %v1952_v20 = vld [vmem:[%s1904_s18 + $0x70] sm:$0xff] }
  0x14   : > { %v1984_v43 = vld [vmem:[%s2364_s3] ss:$0 sm:$0xff]  ;;  %v528_v53 = vld [vmem:[%s1904_s18 + $0x78] sm:$0xff]  ;;  %s2279_s18 = scalar_lea.vmem %s2374_s13, %s2380_s25 }
  0x18   : > { %632 = vperm.xlu1 %1727, %v514_v4   ;;  %537 = vperm.xlu0 %1726, %v514_v4  }
  0x19   : > { %729 = vperm.xlu2 %1728, %v514_v4  }
  0x20   : > { %1729 = vset.pattern.permute.xlu1 %v1799_v1  ;;  %542 = vperm.xlu0 %1726, %v515_v5  }
  0x21   : > { %547 = vperm.xlu1 %1729, %v516_v6   ;;  %1730 = vset.pattern.permute.xlu2 %v1798_v0 }
  0x22   : > { %636 = vperm.xlu2 %1730, %v515_v5  }
  0x28   : > { %1731 = vset.pattern.permute.xlu0 %v1798_v0 }
  0x29   : > { %1732 = vset.pattern.permute.xlu1 %v1800_v2  ;;  %640 = vperm.xlu0 %1731, %v516_v6  }
  0x2a   : > { %733 = vperm.xlu1 %1732, %v515_v5   ;;  %1733 = vset.pattern.permute.xlu2 %v1800_v2 }
  0x2b   : > { %737 = vperm.xlu2 %1733, %v516_v6  }
  0x31   : > { %644 = vperm.xlu0 %1731, %v517_v7  }
  0x32   : > { %1734 = vset.pattern.permute.xlu1 %v1799_v1 }
  0x33   : > { %552 = vperm.xlu1 %1734, %v517_v7   ;;  %1735 = vset.pattern.permute.xlu2 %v1799_v1 }
  0x34   : > { %557 = vperm.xlu2 %1735, %v518_v8  }
  0x39   : > { %1738 = vset.pattern.permute.xlu0 %v1800_v2 }
  0x3a   : > { %745 = vperm.xlu0 %1738, %v518_v8  }
  0x3b   : > { %1736 = vset.pattern.permute.xlu1 %v1798_v0 }
  0x3c   : > { %648 = vperm.xlu1 %1736, %v518_v8   ;;  %1737 = vset.pattern.permute.xlu2 %v1800_v2 }
  0x3d   : > { %741 = vperm.xlu2 %1737, %v517_v7  }
  0x42   : > { %749 = vperm.xlu0 %1738, %v519_v9  }
  0x44   : > { %1739 = vset.pattern.permute.xlu1 %v1799_v1 }
  0x45   : > { %562 = vperm.xlu1 %1739, %v519_v9   ;;  %1740 = vset.pattern.permute.xlu2 %v1799_v1 }
  0x46   : > { %567 = vperm.xlu2 %1740, %v520_v10  }
  0x4a   : > { %1745 = vset.pattern.permute.xlu0 %v1799_v1 }
  0x4b   : > { %577 = vperm.xlu0 %1745, %v522_v11  }
  0x4d   : > { %1741 = vset.pattern.permute.xlu1 %v1798_v0 }
  0x4e   : > { %652 = vperm.xlu1 %1741, %v519_v9   ;;  %1742 = vset.pattern.permute.xlu2 %v1798_v0 }
  0x4f   : > { %656 = vperm.xlu2 %1742, %v520_v10  }
  0x53   : > { %582 = vperm.xlu0 %1745, %v523_v12  }
  0x56   : > { %1743 = vset.pattern.permute.xlu1 %v1800_v2 }
  0x57   : > { %753 = vperm.xlu1 %1743, %v520_v10   ;;  %1744 = vset.pattern.permute.xlu2 %v1799_v1 }
  0x58   : > { %572 = vperm.xlu2 %1744, %v521_v13  }
  0x5b   : > { %1752 = vset.pattern.permute.xlu0 %v1798_v0 }
  0x5c   : > { %672 = vperm.xlu0 %1752, %v524_v14  }
  0x5f   : > { %1746 = vset.pattern.permute.xlu1 %v1798_v0 }
  0x60   : > { %660 = vperm.xlu1 %1746, %v521_v13   ;;  %1747 = vset.pattern.permute.xlu2 %v1798_v0 }
  0x61   : > { %664 = vperm.xlu2 %1747, %v522_v11  }
  0x64   : > { %676 = vperm.xlu0 %1752, %v525_v15  }
  0x68   : > { %1748 = vset.pattern.permute.xlu1 %v1800_v2 }
  0x69   : > { %757 = vperm.xlu1 %1748, %v521_v13   ;;  %1749 = vset.pattern.permute.xlu2 %v1800_v2 }
  0x6a   : > { %761 = vperm.xlu2 %1749, %v522_v11  }
  0x6b   : > { %v726_v17 = vpop.permute.xlu2 %725 }
  0x6c   : > { %1759 = vset.pattern.permute.xlu0 %v1800_v2  ;;  %v789_v31 = vmul.f32 %v1964_v25, %v726_v17 }
  0x6d   : > { %777 = vperm.xlu0 %1759, %v526_v16  }
  0x71   : > { %1750 = vset.pattern.permute.xlu1 %v1799_v1 }
  0x72   : > { %587 = vperm.xlu1 %1750, %v524_v14   ;;  %1751 = vset.pattern.permute.xlu2 %v1798_v0 }
  0x73   : > { %668 = vperm.xlu2 %1751, %v523_v12   ;;  %v730_v21 = vpop.permute.xlu2 %729 }
  0x74   : > { %v790_v41 = vmul.f32 %v1964_v25, %v730_v21 }
  0x75   : > { %781 = vperm.xlu0 %1759, %v1952_v20  }
  0x7a   : > { %1753 = vset.pattern.permute.xlu1 %v1800_v2 }
  0x7b   : > { %765 = vperm.xlu1 %1753, %v523_v12   ;;  %1754 = vset.pattern.permute.xlu2 %v1800_v2 }
  0x7c   : > { %769 = vperm.xlu2 %1754, %v524_v14   ;;  %v637_v26 = vpop.permute.xlu2 %636 }
  0x7d   : > { %v694_v54 = vmul.f32 %v1960_v23, %v637_v26 }
  0x82   : > { %v629_v27 = vpop.permute.xlu1 %628  ;;  %v533_v28 = vpop.permute.xlu0 %532 }
  0x83   : > { %v692_v29 = vmul.f32 %v1960_v23, %v629_v27  ;;  %v611_v30 = vmul.f32 %v1962_v24, %v533_v28  ;;  %1755 = vset.pattern.permute.xlu1 %v1799_v1 }
  0x84   : > { %592 = vperm.xlu1 %1755, %v525_v15   ;;  %1756 = vset.pattern.permute.xlu2 %v1799_v1 }
  0x85   : > { %v708_v32 = vadd.f32 %v692_v29, %v611_v30  ;;  %597 = vperm.xlu2 %1756, %v526_v16   ;;  %v738_v39 = vpop.permute.xlu2 %737 }
  0x86   : > { %v792_v60 = vmul.f32 %v1964_v25, %v738_v39 }
  0x87   : > { %v805_v34 = vadd.f32 %v789_v31, %v708_v32 }
  0x89   : > { %v825_v40 = vmul.f32 %v1974_v33, %v805_v34 }
  0x8a   : > { %v633_v35 = vpop.permute.xlu1 %632  ;;  %v538_v36 = vpop.permute.xlu0 %537 }
  0x8b   : > { %v693_v37 = vmul.f32 %v1960_v23, %v633_v35  ;;  %v612_v38 = vmul.f32 %v1962_v24, %v538_v36  ;;  %v845_v46 = vadd.f32 %v1984_v43, %v825_v40 }
  0x8c   : > { %1757 = vset.pattern.permute.xlu1 %v1798_v0 }
  0x8d   : > { %v709_v42 = vadd.f32 %v693_v37, %v612_v38  ;;  %680 = vperm.xlu1 %1757, %v526_v16   ;;  %1758 = vset.pattern.permute.xlu2 %v1800_v2  ;;  %v861_v50 = vmax.f32 %v845_v46, 0.0 }
  0x8e   : > { %773 = vperm.xlu2 %1758, %v525_v15   ;;  %v558_v52 = vpop.permute.xlu2 %557 }
  0x8f   : > { %v806_v44 = vadd.f32 %v790_v41, %v709_v42  ;;  %v616_v22 = vmul.f32 %v1962_v24, %v558_v52 }
  0x91   : > { %v826_v45 = vmul.f32 %v1974_v33, %v806_v44 }
  0x92   : > { %v543_v47 = vpop.permute.xlu0 %542 }
  0x93   : > { %v548_v48 = vpop.permute.xlu1 %547  ;;  %v846_v49 = vadd.f32 %v1984_v43, %v826_v45  ;;  %v613_v55 = vmul.f32 %v1962_v24, %v543_v47 }
  0x94   : > { %v614_v59 = vmul.f32 %v1962_v24, %v548_v48 }
  0x95   : > { %1760 = vset.pattern.permute.xlu1 %v1799_v1  ;;  %v862_v51 = vmax.f32 %v846_v49, 0.0  ;;  %v710_v57 = vadd.f32 %v694_v54, %v613_v55 }
  0x96   : > { %602 = vperm.xlu1 %1760, %v1952_v20   ;;  %1761 = vset.pattern.permute.xlu2 %v1799_v1 }
  0x97   : > { %v877_v56 = vpack.c.bf16 %v862_v51, %v861_v50  ;;  %607 = vperm.xlu2 %1761, %v528_v53   ;;  %v742_v4 = vpop.permute.xlu2 %741 }
  0x98   : > { %v793_v18 = vmul.f32 %v1964_v25, %v742_v4 }
  0x99   : > { %1602 = vmatmul.msk.bf16.vlgmr.msra.gmra.mxu0 %vm905_vm0, %v877_v56 }
  0x9b   : > { %v641_v58 = vpop.permute.xlu0 %640 }
  0x9c   : > { %v695_v61 = vmul.f32 %v1960_v23, %v641_v58  ;;  %v734_v62 = vpop.permute.xlu1 %733 }
  0x9d   : > { %v791_v63 = vmul.f32 %v1964_v25, %v734_v62 }
  0x9e   : > { %v711_v1 = vadd.f32 %v695_v61, %v614_v59  ;;  %1762 = vset.pattern.permute.xlu1 %v1798_v0 }
  0x9f   : > { %v807_v3 = vadd.f32 %v791_v63, %v710_v57  ;;  %684 = vperm.xlu1 %1762, %v1952_v20   ;;  %1763 = vset.pattern.permute.xlu2 %v1798_v0 }
  0xa0   : > { %v808_v5 = vadd.f32 %v792_v60, %v711_v1  ;;  %688 = vperm.xlu2 %1763, %v528_v53   ;;  %v568_v0 = vpop.permute.xlu2 %567 }
  0xa1   : > { %v827_v6 = vmul.f32 %v1974_v33, %v807_v3  ;;  %v618_v48 = vmul.f32 %v1962_v24, %v568_v0 }
  0xa2   : > { %v828_v7 = vmul.f32 %v1974_v33, %v808_v5 }
  0xa3   : > { %v645_v8 = vpop.permute.xlu0 %644  ;;  %v847_v9 = vadd.f32 %v1984_v43, %v827_v6 }
  0xa4   : > { %v848_v10 = vadd.f32 %v1984_v43, %v828_v7  ;;  %v696_v12 = vmul.f32 %v1960_v23, %v645_v8 }
  0xa5   : > { %v553_v11 = vpop.permute.xlu1 %552  ;;  %v863_v13 = vmax.f32 %v847_v9, 0.0 }
  0xa6   : > { %v615_v14 = vmul.f32 %v1962_v24, %v553_v11  ;;  %v864_v15 = vmax.f32 %v848_v10, 0.0 }
  0xa7   : > { %1764 = vset.pattern.permute.xlu1 %v1800_v2 }
  0xa8   : > { %785 = vperm.xlu1 %1764, %v528_v53   ;;  %v878_v16 = vpack.c.bf16 %v864_v15, %v863_v13  ;;  %v712_v17 = vadd.f32 %v696_v12, %v615_v14 }
  0xa9   : > { %v657_v29 = vpop.permute.xlu2 %656 }
  0xaa   : > { %1603 = vmatmul.msk.bf16.gmra.mxu0 %vm905_vm0, %v878_v16  ;;  %v809_v20 = vadd.f32 %v793_v18, %v712_v17  ;;  %v699_v49 = vmul.f32 %v1960_v23, %v657_v29 }
  0xac   : > { %v746_v19 = vpop.permute.xlu0 %745  ;;  %v829_v28 = vmul.f32 %v1974_v33, %v809_v20  ;;  %v715_v52 = vadd.f32 %v699_v49, %v618_v48  ;;  %v1675_v49 = vld [vmem:[%s2369_s8 + $0x20] sm:$0xff] }
  0xad   : > { %v794_v27 = vmul.f32 %v1964_v25, %v746_v19 }
  0xae   : > { %v649_v21 = vpop.permute.xlu1 %648  ;;  %v849_v32 = vadd.f32 %v1984_v43, %v829_v28 }
  0xaf   : > { %v697_v26 = vmul.f32 %v1960_v23, %v649_v21 }
  0xb0   : > { %v865_v36 = vmax.f32 %v849_v32, 0.0 }
  0xb1   : > { %v713_v2 = vadd.f32 %v697_v26, %v616_v22 }
  0xb2   : > { %v573_v39 = vpop.permute.xlu2 %572 }
  0xb3   : > { %v810_v30 = vadd.f32 %v794_v27, %v713_v2  ;;  %v619_v11 = vmul.f32 %v1962_v24, %v573_v39 }
  0xb4   : > { %v750_v40 = vpop.permute.xlu0 %749 }
  0xb5   : > { %v830_v31 = vmul.f32 %v1974_v33, %v810_v30  ;;  %v795_v45 = vmul.f32 %v1964_v25, %v750_v40 }
  0xb7   : > { %v563_v34 = vpop.permute.xlu1 %562  ;;  %v850_v35 = vadd.f32 %v1984_v43, %v830_v31  ;;  %v1678_v31 = vld [vmem:[%s2369_s8 + $0x38] sm:$0xff] }
  0xb8   : > { %v617_v42 = vmul.f32 %v1962_v24, %v563_v34  ;;  %1107 = vmatpush.bf16.msra.mxu1 %v1678_v31  ;;  %1683 = vmatpush.bf16.msra.mxu3 %v1678_v31 }
  0xb9   : > { %v866_v37 = vmax.f32 %v850_v35, 0.0 }
  0xbb   : > { %v879_v38 = vpack.c.bf16 %v866_v37, %v865_v36  ;;  %v665_v47 = vpop.permute.xlu2 %664  ;;  %v1677_v36 = vld [vmem:[%s2369_s8 + $0x30] sm:$0xff] }
  0xbc   : > { %v701_v58 = vmul.f32 %v1960_v23, %v665_v47  ;;  %1108 = vmatpush.bf16.msra.mxu1 %v1677_v36  ;;  %1684 = vmatpush.bf16.msra.mxu3 %v1677_v36 }
  0xbd   : > { %1604 = vmatmul.msk.bf16.gmra.mxu0 %vm905_vm0, %v879_v38  ;;  %v578_v56 = vpop.permute.xlu0 %577 }
  0xbe   : > { %v620_v59 = vmul.f32 %v1962_v24, %v578_v56 }
  0xc0   : > { %v653_v41 = vpop.permute.xlu1 %652  ;;  %v717_v1 = vadd.f32 %v701_v58, %v620_v59 }
  0xc1   : > { %v698_v44 = vmul.f32 %v1960_v23, %v653_v41 }
  0xc3   : > { %v714_v46 = vadd.f32 %v698_v44, %v617_v42  ;;  %v1676_v44 = vld [vmem:[%s2369_s8 + $0x28] sm:$0xff] }
  0xc4   : > { %v762_v61 = vpop.permute.xlu2 %761  ;;  %1109 = vmatpush.bf16.msra.mxu1 %v1676_v44  ;;  %1685 = vmatpush.bf16.msra.mxu3 %v1676_v44 }
  0xc5   : > { %v811_v50 = vadd.f32 %v795_v45, %v714_v46  ;;  %v798_v3 = vmul.f32 %v1964_v25, %v762_v61  ;;  %v583_v8 = vpop.permute.xlu0 %582 }
  0xc6   : > { %v621_v32 = vmul.f32 %v1962_v24, %v583_v8  ;;  %v1671_v8 = vld [vmem:[%s2369_s8] sm:$0xff] }
  0xc7   : > { %v831_v53 = vmul.f32 %v1974_v33, %v811_v50  ;;  %v814_v7 = vadd.f32 %v798_v3, %v717_v1 }
  0xc8   : > { %1110 = vmatpush.bf16.msra.mxu1 %v1675_v49  ;;  %1686 = vmatpush.bf16.msra.mxu3 %v1675_v49 }
  0xc9   : > { %v754_v51 = vpop.permute.xlu1 %753  ;;  %v851_v60 = vadd.f32 %v1984_v43, %v831_v53  ;;  %v834_v12 = vmul.f32 %v1974_v33, %v814_v7 }
  0xca   : > { %v796_v54 = vmul.f32 %v1964_v25, %v754_v51 }
  0xcb   : > { %v867_v4 = vmax.f32 %v851_v60, 0.0  ;;  %v854_v16 = vadd.f32 %v1984_v43, %v834_v12  ;;  %v1673_v60 = vld [vmem:[%s2369_s8 + $0x10] sm:$0xff] }
  0xcc   : > { %v812_v55 = vadd.f32 %v796_v54, %v715_v52 }
  0xcd   : > { %v669_v10 = vpop.permute.xlu2 %668  ;;  %v870_v20 = vmax.f32 %v854_v16, 0.0 }
  0xce   : > { %v832_v57 = vmul.f32 %v1974_v33, %v812_v55  ;;  %v673_v18 = vpop.permute.xlu0 %672  ;;  %v702_v34 = vmul.f32 %v1960_v23, %v669_v10 }
  0xcf   : > { %v703_v21 = vmul.f32 %v1960_v23, %v673_v18 }
  0xd0   : > { %v852_v62 = vadd.f32 %v1984_v43, %v832_v57  ;;  %v718_v39 = vadd.f32 %v702_v34, %v621_v32  ;;  %v1674_v57 = vld [vmem:[%s2369_s8 + $0x18] sm:$0xff]  ;;  %v2105_v32 = vld [vmem:[%s2367_s6] ss:$0 sm:$0xff] }
  0xd1   : > { %1111 = vmatpush.bf16.msra.mxu1 %v1674_v57  ;;  %1687 = vmatpush.bf16.msra.mxu3 %v1674_v57 }
  0xd2   : > { %v661_v63 = vpop.permute.xlu1 %660  ;;  %v868_v5 = vmax.f32 %v852_v62, 0.0 }
  0xd3   : > { %v700_v9 = vmul.f32 %v1960_v23, %v661_v63 }
  0xd4   : > { %v880_v6 = vpack.c.bf16 %v868_v5, %v867_v4  ;;  %v1672_v5 = vld [vmem:[%s2369_s8 + $0x8] sm:$0xff] }
  0xd5   : > { %v716_v14 = vadd.f32 %v700_v9, %v619_v11  ;;  %1112 = vmatpush.bf16.msra.mxu1 %v1673_v60  ;;  %1688 = vmatpush.bf16.msra.mxu3 %v1673_v60 }
  0xd6   : > { %1605 = vmatmul.msk.bf16.gmra.mxu0 %vm905_vm0, %v880_v6  ;;  %v770_v22 = vpop.permute.xlu2 %769  ;;  %v677_v47 = vpop.permute.xlu0 %676 }
  0xd7   : > { %v800_v2 = vmul.f32 %v1964_v25, %v770_v22  ;;  %v704_v51 = vmul.f32 %v1960_v23, %v677_v47 }
  0xd9   : > { %1113 = vmatpush.bf16.msra.mxu1 %v1672_v5  ;;  %1689 = vmatpush.bf16.msra.mxu3 %v1672_v5 }
  0xdb   : > { %v758_v13 = vpop.permute.xlu1 %757 }
  0xdc   : > { %v797_v15 = vmul.f32 %v1964_v25, %v758_v13 }
  0xdd   : > { %1114 = vmatpush.bf16.msra.mxu1 %v1671_v8  ;;  %1690 = vmatpush.bf16.msra.mxu3 %v1671_v8 }
  0xde   : > { %v813_v0 = vadd.f32 %v797_v15, %v716_v14 }
  0xdf   : > { %v598_v38 = vpop.permute.xlu2 %597  ;;  %v778_v61 = vpop.permute.xlu0 %777 }
  0xe0   : > { %v833_v17 = vmul.f32 %v1974_v33, %v813_v0  ;;  %v624_v1 = vmul.f32 %v1962_v24, %v598_v38  ;;  %v802_v4 = vmul.f32 %v1964_v25, %v778_v61 }
  0xe2   : > { %v853_v19 = vadd.f32 %v1984_v43, %v833_v17 }
  0xe4   : > { %v588_v26 = vpop.permute.xlu1 %587  ;;  %v869_v27 = vmax.f32 %v853_v19, 0.0 }
  0xe5   : > { %v622_v28 = vmul.f32 %v1962_v24, %v588_v26  ;;  %v2096_v26 = vld [vmem:[%s501_s15] ss:$0 sm:$0xff] }
  0xe6   : > { %v881_v29 = vpack.c.bf16 %v870_v20, %v869_v27 }
  0xe7   : > { %v719_v30 = vadd.f32 %v703_v21, %v622_v28  ;;  %v782_v19 = vpop.permute.xlu0 %781 }
  0xe8   : > { %1606 = vmatmul.msk.bf16.gmra.mxu0 %vm905_vm0, %v881_v29  ;;  %v774_v55 = vpop.permute.xlu2 %773  ;;  %v803_v27 = vmul.f32 %v1964_v25, %v782_v19 }
  0xe9   : > { %v816_v35 = vadd.f32 %v800_v2, %v719_v30  ;;  %v801_v59 = vmul.f32 %v1964_v25, %v774_v55 }
  0xeb   : > { %v836_v40 = vmul.f32 %v1974_v33, %v816_v35 }
  0xed   : > { %v766_v37 = vpop.permute.xlu1 %765  ;;  %v856_v46 = vadd.f32 %v1984_v43, %v836_v40 }
  0xee   : > { %v799_v41 = vmul.f32 %v1964_v25, %v766_v37 }
  0xef   : > { %v872_v53 = vmax.f32 %v856_v46, 0.0 }
  0xf0   : > { %v815_v42 = vadd.f32 %v799_v41, %v718_v39 }
  0xf1   : > { %v608_v14 = vpop.permute.xlu2 %607 }
  0xf2   : > { %v835_v45 = vmul.f32 %v1974_v33, %v815_v42  ;;  %v626_v2 = vmul.f32 %v1962_v24, %v608_v14 }
  0xf4   : > { %v855_v48 = vadd.f32 %v1984_v43, %v835_v45 }
  0xf6   : > { %v593_v50 = vpop.permute.xlu1 %592  ;;  %v871_v52 = vmax.f32 %v855_v48, 0.0 }
  0xf7   : > { %v623_v54 = vmul.f32 %v1962_v24, %v593_v50 }
  0xf8   : > { %v882_v56 = vpack.c.bf16 %v872_v53, %v871_v52 }
  0xf9   : > { %v720_v58 = vadd.f32 %v704_v51, %v623_v54 }
  0xfa   : > { %1607 = vmatmul.msk.bf16.gmra.mxu0 %vm905_vm0, %v882_v56  ;;  %v689_v21 = vpop.permute.xlu2 %688 }
  0xfb   : > { %v817_v62 = vadd.f32 %v801_v59, %v720_v58  ;;  %v707_v29 = vmul.f32 %v1960_v23, %v689_v21 }
  0xfd   : > { %v837_v6 = vmul.f32 %v1974_v33, %v817_v62  ;;  %v723_v35 = vadd.f32 %v707_v29, %v626_v2 }
  0xff   : > { %v681_v63 = vpop.permute.xlu1 %680  ;;  %v857_v11 = vadd.f32 %v1984_v43, %v837_v6 }
 0x100   : > { %v705_v3 = vmul.f32 %v1960_v23, %v681_v63 }
 0x101   : > { %v873_v15 = vmax.f32 %v857_v11, 0.0 }
 0x102   : > { %v721_v7 = vadd.f32 %v705_v3, %v624_v1 }
 0x104   : > { %v818_v9 = vadd.f32 %v802_v4, %v721_v7 }
 0x106   : > { %v838_v10 = vmul.f32 %v1974_v33, %v818_v9 }
 0x108   : > { %v603_v12 = vpop.permute.xlu1 %602  ;;  %v858_v13 = vadd.f32 %v1984_v43, %v838_v10 }
 0x109   : > { %v625_v18 = vmul.f32 %v1962_v24, %v603_v12 }
 0x10a   : > { %v874_v0 = vmax.f32 %v858_v13, 0.0 }
 0x10c   : > { %v883_v16 = vpack.c.bf16 %v874_v0, %v873_v15 }
 0x10e   : > { %1608 = vmatmul.msk.bf16.gmra.mxu0 %vm905_vm0, %v883_v16 }
 0x111   : > { %v685_v17 = vpop.permute.xlu1 %684 }
 0x112   : > { %v706_v20 = vmul.f32 %v1960_v23, %v685_v17  ;;  %v2113_v23 = vld [vmem:[%s2368_s7] ss:$0 sm:$0xff] }
 0x114   : > { %v722_v22 = vadd.f32 %v706_v20, %v625_v18 }
 0x116   : > { %v939_v28 = vpop.f32.mrf.mxu0  ;;  %v819_v30 = vadd.f32 %v803_v27, %v722_v22 }
 0x117   : > { %v940_v31 = vadd.f32 %v2096_v26, %v939_v28 }
 0x118   : > { %v839_v36 = vmul.f32 %v1974_v33, %v819_v30 }
 0x119   : > { %v983_v38 = vmul.f32 %v2105_v32, %v940_v31 }
 0x11a   : > { %v786_v34 = vpop.permute.xlu1 %785  ;;  %v859_v42 = vadd.f32 %v1984_v43, %v839_v36 }
 0x11b   : > { %v804_v37 = vmul.f32 %v1964_v25, %v786_v34  ;;  %v1003_v25 = vadd.f32 %v2113_v23, %v983_v38 }
 0x11c   : > { %v875_v46 = vmax.f32 %v859_v42, 0.0 }
 0x11d   : > { %v820_v39 = vadd.f32 %v804_v37, %v723_v35  ;;  %v1019_v50 = vmax.f32 %v1003_v25, 0.0 }
 0x11e   : > { %v941_v24 = vpop.f32.mrf.mxu0 }
 0x11f   : > { %v840_v40 = vmul.f32 %v1974_v33, %v820_v39  ;;  %v942_v41 = vadd.f32 %v2096_v26, %v941_v24 }
 0x121   : > { %v984_v44 = vmul.f32 %v2105_v32, %v942_v41  ;;  %v860_v45 = vadd.f32 %v1984_v43, %v840_v40 }
 0x123   : > { %v876_v47 = vmax.f32 %v860_v45, 0.0  ;;  %v1004_v48 = vadd.f32 %v2113_v23, %v984_v44 }
 0x125   : > { %v884_v49 = vpack.c.bf16 %v876_v47, %v875_v46  ;;  %v1020_v51 = vmax.f32 %v1004_v48, 0.0  ;;  %v1682_v46 = vld [vmem:[%s2372_s11 + $0x18] sm:$0xff]  ;;  %v1681_v48 = vld [vmem:[%s2372_s11 + $0x10] sm:$0xff] }
 0x126   : > { %1281 = vmatpush.bf16.msra.mxu2 %v1682_v46  ;;  %1691 = vmatpush.bf16.msrb.mxu3 %v1682_v46 }
 0x127   : > { %v944_v52 = vpop.f32.mrf.mxu0  ;;  %1609 = vmatmul.msk.bf16.gmra.mxu0 %vm905_vm0, %v884_v49  ;;  %v1035_v33 = vpack.c.bf16 %v1020_v51, %v1019_v50  ;;  %v1680_v51 = vld [vmem:[%s2372_s11 + $0x8] sm:$0xff] }
 0x128   : > { %v945_v53 = vadd.f32 %v2096_v26, %v944_v52 }
 0x129   : > { %1115 = vmatmul.bf16.vlgmr.msra.gmra.mxu1 %v1035_v33  ;;  %v1679_v33 = vld [vmem:[%s2372_s11] sm:$0xff] }
 0x12a   : > { %v985_v54 = vmul.f32 %v2105_v32, %v945_v53  ;;  %1282 = vmatpush.bf16.msra.mxu2 %v1681_v48  ;;  %1692 = vmatpush.bf16.msrb.mxu3 %v1681_v48 }
 0x12c   : > { %v1005_v57 = vadd.f32 %v2113_v23, %v985_v54 }
 0x12e   : > { %v1021_v59 = vmax.f32 %v1005_v57, 0.0  ;;  %1283 = vmatpush.bf16.msra.mxu2 %v1680_v51  ;;  %1693 = vmatpush.bf16.msrb.mxu3 %v1680_v51 }
 0x12f   : > { %v946_v55 = vpop.f32.mrf.mxu0 }
 0x130   : > { %v947_v43 = vadd.f32 %v2096_v26, %v946_v55 }
 0x132   : > { %v986_v56 = vmul.f32 %v2105_v32, %v947_v43  ;;  %1284 = vmatpush.bf16.msra.mxu2 %v1679_v33  ;;  %1694 = vmatpush.bf16.msrb.mxu3 %v1679_v33 }
 0x134   : > { %v1006_v58 = vadd.f32 %v2113_v23, %v986_v56 }
 0x136   : > { %v1022_v60 = vmax.f32 %v1006_v58, 0.0 }
 0x138   : > { %v1036_v61 = vpack.c.bf16 %v1022_v60, %v1021_v59 }
 0x13a   : > { %v949_v62 = vpop.f32.mrf.mxu0  ;;  %1120 = vmatmul.bf16.gmra.mxu1 %v1036_v61 }
 0x13b   : > { %v950_v63 = vadd.f32 %v2096_v26, %v949_v62 }
 0x13d   : > { %v987_v1 = vmul.f32 %v2105_v32, %v950_v63  ;;  %v2175_v63 = vld [vmem:[%s2370_s9] ss:$0 sm:$0xff] }
 0x13f   : > { %v1007_v6 = vadd.f32 %v2113_v23, %v987_v1 }
 0x141   : > { %v1023_v8 = vmax.f32 %v1007_v6, 0.0 }
 0x142   : > { %v951_v3 = vpop.f32.mrf.mxu0 }
 0x143   : > { %v952_v4 = vadd.f32 %v2096_v26, %v951_v3 }
 0x145   : > { %v988_v5 = vmul.f32 %v2105_v32, %v952_v4  ;;  %v2182_v4 = vld [vmem:[%s2371_s10] ss:$0 sm:$0xff] }
 0x147   : > { %v1008_v7 = vadd.f32 %v2113_v23, %v988_v5 }
 0x149   : > { %v1024_v9 = vmax.f32 %v1008_v7, 0.0 }
 0x14b   : > { %v1037_v10 = vpack.c.bf16 %v1024_v9, %v1023_v8 }
 0x14d   : > { %1125 = vmatmul.bf16.gmra.mxu1 %v1037_v10 }
 0x153   : > { %v954_v11 = vpop.f32.mrf.mxu0 }
 0x154   : > { %v955_v12 = vadd.f32 %v2096_v26, %v954_v11 }
 0x156   : > { %v989_v13 = vmul.f32 %v2105_v32, %v955_v12 }
 0x158   : > { %v1009_v16 = vadd.f32 %v2113_v23, %v989_v13 }
 0x15a   : > { %v1025_v18 = vmax.f32 %v1009_v16, 0.0 }
 0x15b   : > { %v956_v14 = vpop.f32.mrf.mxu0 }
 0x15c   : > { %v957_v15 = vadd.f32 %v2096_v26, %v956_v14 }
 0x15e   : > { %v990_v0 = vmul.f32 %v2105_v32, %v957_v15 }
 0x160   : > { %v1010_v17 = vadd.f32 %v2113_v23, %v990_v0 }
 0x162   : > { %v1026_v19 = vmax.f32 %v1010_v17, 0.0 }
 0x164   : > { %v1038_v20 = vpack.c.bf16 %v1026_v19, %v1025_v18 }
 0x165   : > { %v959_v21 = vpop.f32.mrf.mxu0 }
 0x166   : > { %1130 = vmatmul.bf16.gmra.mxu1 %v1038_v20  ;;  %v960_v22 = vadd.f32 %v2096_v26, %v959_v21 }
 0x168   : > { %v991_v27 = vmul.f32 %v2105_v32, %v960_v22 }
 0x16a   : > { %v1011_v30 = vadd.f32 %v2113_v23, %v991_v27 }
 0x16c   : > { %v1027_v34 = vmax.f32 %v1011_v30, 0.0 }
 0x16d   : > { %v961_v28 = vpop.f32.mrf.mxu0 }
 0x16e   : > { %v962_v2 = vadd.f32 %v2096_v26, %v961_v28 }
 0x170   : > { %v992_v29 = vmul.f32 %v2105_v32, %v962_v2 }
 0x172   : > { %v1012_v31 = vadd.f32 %v2113_v23, %v992_v29 }
 0x174   : > { %v1028_v35 = vmax.f32 %v1012_v31, 0.0 }
 0x176   : > { %v1039_v36 = vpack.c.bf16 %v1028_v35, %v1027_v34 }
 0x177   : > { %v964_v37 = vpop.f32.mrf.mxu0 }
 0x178   : > { %1135 = vmatmul.bf16.gmra.mxu1 %v1039_v36  ;;  %v965_v38 = vadd.f32 %v2096_v26, %v964_v37 }
 0x17a   : > { %v993_v39 = vmul.f32 %v2105_v32, %v965_v38 }
 0x17c   : > { %v1013_v42 = vadd.f32 %v2113_v23, %v993_v39 }
 0x17e   : > { %v1029_v45 = vmax.f32 %v1013_v42, 0.0 }
 0x17f   : > { %v966_v24 = vpop.f32.mrf.mxu0 }
 0x180   : > { %v967_v40 = vadd.f32 %v2096_v26, %v966_v24 }
 0x182   : > { %v994_v41 = vmul.f32 %v2105_v32, %v967_v40 }
 0x184   : > { %v1014_v44 = vadd.f32 %v2113_v23, %v994_v41 }
 0x186   : > { %v1030_v25 = vmax.f32 %v1014_v44, 0.0 }
 0x188   : > { %v1040_v47 = vpack.c.bf16 %v1030_v25, %v1029_v45 }
 0x18a   : > { %1140 = vmatmul.bf16.gmra.mxu1 %v1040_v47 }
 0x18b   : > { %v969_v49 = vpop.f32.mrf.mxu0 }
 0x18c   : > { %v970_v50 = vadd.f32 %v2096_v26, %v969_v49 }
 0x18e   : > { %v995_v52 = vmul.f32 %v2105_v32, %v970_v50 }
 0x190   : > { %v1015_v43 = vadd.f32 %v2113_v23, %v995_v52 }
 0x192   : > { %v1031_v57 = vmax.f32 %v1015_v43, 0.0 }
 0x193   : > { %v971_v53 = vpop.f32.mrf.mxu0 }
 0x194   : > { %v972_v54 = vadd.f32 %v2096_v26, %v971_v53 }
 0x196   : > { %v996_v55 = vmul.f32 %v2105_v32, %v972_v54 }
 0x198   : > { %v1016_v56 = vadd.f32 %v2113_v23, %v996_v55 }
 0x19a   : > { %v1032_v58 = vmax.f32 %v1016_v56, 0.0 }
 0x19c   : > { %v1041_v59 = vpack.c.bf16 %v1032_v58, %v1031_v57 }
 0x19e   : > { %1145 = vmatmul.bf16.vlgmr.msra.gmra.mxu3 %v1041_v59 }
 0x1a4   : > { %v974_v60 = vpop.f32.mrf.mxu0 }
 0x1a5   : > { %v975_v62 = vadd.f32 %v2096_v26, %v974_v60 }
 0x1a6   : > { %v1116_v61 = vpop.f32.mrf.mxu1 }
 0x1a7   : > { %v997_v1 = vmul.f32 %v2105_v32, %v975_v62  ;;  %v1160_v3 = vmul.f32 %v2175_v63, %v1116_v61 }
 0x1a9   : > { %v1180_v8 = vadd.f32 %v2182_v4, %v1160_v3  ;;  %v1017_v11 = vadd.f32 %v2113_v23, %v997_v1 }
 0x1ab   : > { %v1196_v14 = vmax.f32 %v1180_v8, 0.0  ;;  %v1033_v0 = vmax.f32 %v1017_v11, 0.0 }
 0x1ac   : > { %v976_v5 = vpop.f32.mrf.mxu0 }
 0x1ad   : > { %v977_v6 = vadd.f32 %v2096_v26, %v976_v5 }
 0x1ae   : > { %v1118_v7 = vpop.f32.mrf.mxu1 }
 0x1af   : > { %v998_v9 = vmul.f32 %v2105_v32, %v977_v6  ;;  %v1161_v10 = vmul.f32 %v2175_v63, %v1118_v7 }
 0x1b1   : > { %v1181_v12 = vadd.f32 %v2182_v4, %v1161_v10  ;;  %v1018_v13 = vadd.f32 %v2113_v23, %v998_v9 }
 0x1b3   : > { %v1197_v15 = vmax.f32 %v1181_v12, 0.0  ;;  %v1034_v16 = vmax.f32 %v1018_v13, 0.0 }
 0x1b5   : > { %v1042_v17 = vpack.c.bf16 %v1034_v16, %v1033_v0  ;;  %v1212_v26 = vpack.c.bf16 %v1197_v15, %v1196_v14 }
 0x1b7   : > { %v1121_v18 = vpop.f32.mrf.mxu1  ;;  %1150 = vmatmul.bf16.gmra.mxu3 %v1042_v17  ;;  %1658 = vmatmul.msk.bf16.vlgmr.msra.gmra.mxu2 %vm1252_vm1, %v1212_v26 }
 0x1b8   : > { %v1162_v32 = vmul.f32 %v2175_v63, %v1121_v18 }
 0x1ba   : > { %v1182_v20 = vadd.f32 %v2182_v4, %v1162_v32 }
 0x1bc   : > { %v1198_v22 = vmax.f32 %v1182_v20, 0.0 }
 0x1bf   : > { %v1123_v19 = vpop.f32.mrf.mxu1 }
 0x1c0   : > { %v1163_v21 = vmul.f32 %v2175_v63, %v1123_v19 }
 0x1c2   : > { %v1183_v23 = vadd.f32 %v2182_v4, %v1163_v21 }
 0x1c4   : > { %v1199_v27 = vmax.f32 %v1183_v23, 0.0 }
 0x1c6   : > { %v1213_v28 = vpack.c.bf16 %v1199_v27, %v1198_v22  ;;  %v1801_v22 = vmov 128.0  }
 0x1c7   : > { %1772 = vrcp.f32 %v1801_v22 }
 0x1c8   : > { %1659 = vmatmul.msk.bf16.gmra.mxu2 %vm1252_vm1, %v1213_v28 }
 0x1ca   : > { %v1126_v2 = vpop.f32.mrf.mxu1 }
 0x1cb   : > { %v1164_v29 = vmul.f32 %v2175_v63, %v1126_v2 }
 0x1cd   : > { %v1184_v31 = vadd.f32 %v2182_v4, %v1164_v29 }
 0x1cf   : > { %v1200_v36 = vmax.f32 %v1184_v31, 0.0 }
 0x1d2   : > { %v1128_v30 = vpop.f32.mrf.mxu1 }
 0x1d3   : > { %v1165_v34 = vmul.f32 %v2175_v63, %v1128_v30 }
 0x1d5   : > { %v1185_v35 = vadd.f32 %v2182_v4, %v1165_v34 }
 0x1d7   : > { %v1201_v37 = vmax.f32 %v1185_v35, 0.0 }
 0x1d9   : > { %v1214_v38 = vpack.c.bf16 %v1201_v37, %v1200_v36 }
 0x1db   : > { %1660 = vmatmul.msk.bf16.gmra.mxu2 %vm1252_vm1, %v1214_v38 }
 0x1e3   : > { %v1131_v39 = vpop.f32.mrf.mxu1 }
 0x1e4   : > { %v1166_v24 = vmul.f32 %v2175_v63, %v1131_v39 }
 0x1e6   : > { %v1186_v41 = vadd.f32 %v2182_v4, %v1166_v24 }
 0x1e8   : > { %v1202_v45 = vmax.f32 %v1186_v41, 0.0 }
 0x1eb   : > { %v1133_v40 = vpop.f32.mrf.mxu1 }
 0x1ec   : > { %v1167_v42 = vmul.f32 %v2175_v63, %v1133_v40 }
 0x1ee   : > { %v1187_v44 = vadd.f32 %v2182_v4, %v1167_v42 }
 0x1f0   : > { %v1203_v25 = vmax.f32 %v1187_v44, 0.0 }
 0x1f2   : > { %v1215_v46 = vpack.c.bf16 %v1203_v25, %v1202_v45 }
 0x1f4   : > { %1661 = vmatmul.msk.bf16.gmra.mxu2 %vm1252_vm1, %v1215_v46 }
 0x1f5   : > { %v1136_v47 = vpop.f32.mrf.mxu1 }
 0x1f6   : > { %v1168_v48 = vmul.f32 %v2175_v63, %v1136_v47 }
 0x1f8   : > { %v1188_v50 = vadd.f32 %v2182_v4, %v1168_v48 }
 0x1fa   : > { %v1204_v33 = vmax.f32 %v1188_v50, 0.0 }
 0x1fd   : > { %v1138_v49 = vpop.f32.mrf.mxu1 }
 0x1fe   : > { %v1169_v51 = vmul.f32 %v2175_v63, %v1138_v49 }
 0x200   : > { %v1189_v52 = vadd.f32 %v2182_v4, %v1169_v51 }
 0x202   : > { %v1205_v53 = vmax.f32 %v1189_v52, 0.0 }
 0x204   : > { %v1216_v54 = vpack.c.bf16 %v1205_v53, %v1204_v33 }
 0x206   : > { %1662 = vmatmul.msk.bf16.gmra.mxu2 %vm1252_vm1, %v1216_v54  ;;  %v1802_v54 = vmov 0.0  }
 0x207   : > { %v1141_v55 = vpop.f32.mrf.mxu1  ;;  %1331 = vst.msk [vmem:[%s2273_s14] sm:$0x1] %vm1330_vm3, %v1802_v54 }
 0x208   : > { %v1170_v43 = vmul.f32 %v2175_v63, %v1141_v55  ;;  %1332 = vst.msk [vmem:[%s2279_s18] sm:$0x1] %vm1330_vm3, %v1802_v54 }
 0x20a   : > { %v1190_v57 = vadd.f32 %v2182_v4, %v1170_v43 }
 0x20c   : > { %v1206_v60 = vmax.f32 %v1190_v57, 0.0 }
 0x20f   : > { %v1143_v56 = vpop.f32.mrf.mxu1 }
 0x210   : > { %v1171_v58 = vmul.f32 %v2175_v63, %v1143_v56 }
 0x212   : > { %v1191_v59 = vadd.f32 %v2182_v4, %v1171_v58 }
 0x214   : > { %v1207_v61 = vmax.f32 %v1191_v59, 0.0 }
 0x216   : > { %v1217_v62 = vpack.c.bf16 %v1207_v61, %v1206_v60 }
 0x218   : > { %1663 = vmatmul.msk.bf16.gmra.mxu2 %vm1252_vm1, %v1217_v62 }
 0x221   : > { %v1146_v1 = vpop.f32.mrf.mxu3 }
 0x222   : > { %v1172_v3 = vmul.f32 %v2175_v63, %v1146_v1 }
 0x224   : > { %v1192_v6 = vadd.f32 %v2182_v4, %v1172_v3 }
 0x226   : > { %v1208_v9 = vmax.f32 %v1192_v6, 0.0 }
 0x229   : > { %v1148_v5 = vpop.f32.mrf.mxu3 }
 0x22a   : > { %v1173_v7 = vmul.f32 %v2175_v63, %v1148_v5 }
 0x22c   : > { %v1193_v8 = vadd.f32 %v2182_v4, %v1173_v7 }
 0x22e   : > { %v1209_v10 = vmax.f32 %v1193_v8, 0.0 }
 0x230   : > { %v1218_v11 = vpack.c.bf16 %v1209_v10, %v1208_v9 }
 0x232   : > { %1664 = vmatmul.msk.bf16.gmra.mxu2 %vm1252_vm1, %v1218_v11 }
 0x23a   : > { %v1151_v12 = vpop.f32.mrf.mxu3  ;;  %v2227_v32 = vpop.f32.mrf.mxu2 }
 0x23b   : > { %v1174_v13 = vmul.f32 %v2175_v63, %v1151_v12  ;;  %v1333_v39 = vsel %vm905_vm0, %v2227_v32, 0.0 }
 0x23d   : > { %v1194_v15 = vadd.f32 %v2182_v4, %v1174_v13 }
 0x23f   : > { %v1210_v17 = vmax.f32 %v1194_v15, 0.0 }
 0x242   : > { %v1153_v14 = vpop.f32.mrf.mxu3  ;;  %v2229_v19 = vpop.f32.mrf.mxu2 }
 0x243   : > { %v1175_v0 = vmul.f32 %v2175_v63, %v1153_v14  ;;  %v1334_v38 = vsel %vm905_vm0, %v2229_v19, 0.0 }
 0x244   : > { %v1335_v40 = vadd.f32 %v1334_v38, %v1333_v39  ;;  %v1450_v39 = vld [vmem:[%s2273_s14] sm:$0x1] }
 0x245   : > { %v1195_v16 = vadd.f32 %v2182_v4, %v1175_v0  ;;  %v1773_v4 = vpop.eup %1772 }
 0x246   : > { %v1371_v27 = vmul.f32 128.0, %v1773_v4  ;;  %vm1375_vm2 = vweird.f32 %v1773_v4 }
 0x247   : > { %v1211_v26 = vmax.f32 %v1195_v16, 0.0 }
 0x248   : > { %v1372_v2 = vsub.f32 1.0, %v1371_v27 }
 0x249   : > { %v1219_v18 = vpack.c.bf16 %v1211_v26, %v1210_v17 }
 0x24a   : > { %v1373_v29 = vmul.f32 %v1773_v4, %v1372_v2 }
 0x24b   : > { %1665 = vmatmul.msk.bf16.vlgmr.msrb.gmra.mxu3 %vm1252_vm1, %v1219_v18  ;;  %v2231_v20 = vpop.f32.mrf.mxu2 }
 0x24c   : > { %v1374_v30 = vadd.f32 %v1773_v4, %v1373_v29  ;;  %v1336_v24 = vsel %vm905_vm0, %v2231_v20, 0.0 }
 0x24d   : > { %v1337_v44 = vadd.f32 %v1336_v24, %v1335_v40 }
 0x24e   : > { %v1376_v31 = vsel %vm1375_vm2, %v1773_v4, %v1374_v30 }
 0x24f   : > { %1695 = vpush %v1376_v31 }
 0x253   : > { %v2233_v21 = vpop.f32.mrf.mxu2 }
 0x254   : > { %v1338_v42 = vsel %vm905_vm0, %v2233_v21, 0.0 }
 0x255   : > { %v1339_v25 = vadd.f32 %v1338_v42, %v1337_v44 }
 0x25e   : > { %v2235_v23 = vpop.f32.mrf.mxu2 }
 0x25f   : > { %v1340_v45 = vsel %vm905_vm0, %v2235_v23, 0.0 }
 0x260   : > { %v1341_v47 = vadd.f32 %v1340_v45, %v1339_v25 }
 0x266   : > { %v2237_v63 = vpop.f32.mrf.mxu2 }
 0x267   : > { %v1342_v46 = vsel %vm905_vm0, %v2237_v63, 0.0 }
 0x268   : > { %v1343_v49 = vadd.f32 %v1342_v46, %v1341_v47 }
 0x277   : > { %v2239_v28 = vpop.f32.mrf.mxu2 }
 0x278   : > { %v1344_v48 = vsel %vm905_vm0, %v2239_v28, 0.0 }
 0x279   : > { %v1345_v52 = vadd.f32 %v1344_v48, %v1343_v49 }
 0x27f   : > { %v2241_v34 = vpop.f32.mrf.mxu2 }
 0x280   : > { %v1346_v51 = vsel %vm905_vm0, %v2241_v34, 0.0  ;;  %s2311_s25 = spop %1695 }
 0x281   : > { %v1347_v53 = vadd.f32 %v1346_v51, %v1345_v52  ;;  %s1468_s19 = smul.f32 128.0, %s2311_s25 }
 0x283   : > { %v1469_v44 = vstv %s1468_s19  ;;  %s1476_s20 = smul.f32 0.0, %s1468_s19 }
 0x289   : > { %v2243_v35 = vpop.f32.mrf.mxu2 }
 0x28a   : > { %v1348_v33 = vsel %vm905_vm0, %v2243_v35, 0.0 }
 0x28b   : > { %v1349_v43 = vadd.f32 %v1348_v33, %v1347_v53 }
 0x291   : > { %v2245_v36 = vpop.f32.mrf.mxu2 }
 0x292   : > { %v1350_v55 = vsel %vm905_vm0, %v2245_v36, 0.0 }
 0x293   : > { %v1351_v57 = vadd.f32 %v1350_v55, %v1349_v43 }
 0x29b   : > { %v2247_v37 = vpop.f32.mrf.mxu2 }
 0x29c   : > { %v1352_v56 = vsel %vm905_vm0, %v2247_v37, 0.0 }
 0x29d   : > { %v1353_v59 = vadd.f32 %v1352_v56, %v1351_v57 }
 0x2a3   : > { %v2255_v41 = vpop.f32.mrf.mxu2 }
 0x2a4   : > { %v1354_v58 = vsel %vm905_vm0, %v2255_v41, 0.0 }
 0x2a5   : > { %v1355_v1 = vadd.f32 %v1354_v58, %v1353_v59 }
 0x2b5   : > { %v2265_v50 = vpop.f32.mrf.mxu2 }
 0x2b6   : > { %v1356_v62 = vsel %vm905_vm0, %v2265_v50, 0.0 }
 0x2b7   : > { %v1357_v5 = vadd.f32 %v1356_v62, %v1355_v1 }
 0x2bd   : > { %v2293_v60 = vpop.f32.mrf.mxu2 }
 0x2be   : > { %v1358_v3 = vsel %vm905_vm0, %v2293_v60, 0.0 }
 0x2bf   : > { %v1359_v7 = vadd.f32 %v1358_v3, %v1357_v5 }
 0x2ce   : > { %v2295_v61 = vpop.f32.mrf.mxu3 }
 0x2cf   : > { %v1360_v6 = vsel %vm905_vm0, %v2295_v61, 0.0 }
 0x2d0   : > { %v1361_v8 = vadd.f32 %v1360_v6, %v1359_v7 }
 0x2d6   : > { %v2303_v9 = vpop.f32.mrf.mxu3 }
 0x2d7   : > { %v1362_v10 = vsel %vm905_vm0, %v2303_v9, 0.0 }
 0x2d8   : > { %v1363_v11 = vadd.f32 %v1362_v10, %v1361_v8 }
 0x2da   : > { %v1364_v12 = vrot.slane %v1363_v11, 4 }
 0x2dc   : > { %v1365_v13 = vadd.f32 %v1364_v12, %v1363_v11 }
 0x2de   : > { %v1366_v14 = vrot.slane %v1365_v13, 2 }
 0x2e0   : > { %v1367_v15 = vadd.f32 %v1366_v14, %v1365_v13 }
 0x2e2   : > { %v1368_v0 = vrot.slane %v1367_v15, 1 }
 0x2e4   : > { %v1369_v16 = vadd.f32 %v1368_v0, %v1367_v15 }
 0x2e6   : > { %v1377_v17 = vmul.f32 %v1376_v31, %v1369_v16 }
 0x2e8   : > { %v1378_v26 = vsub.f32 %v2227_v32, %v1377_v17  ;;  %v1379_v18 = vsub.f32 %v2229_v19, %v1377_v17  ;;  %v1380_v22 = vsub.f32 %v2231_v20, %v1377_v17  ;;  %v1381_v4 = vsub.f32 %v2233_v21, %v1377_v17 }
 0x2e9   : > { %v1382_v29 = vsub.f32 %v2235_v23, %v1377_v17  ;;  %v1383_v31 = vsub.f32 %v2237_v63, %v1377_v17  ;;  %v1384_v21 = vsub.f32 %v2239_v28, %v1377_v17  ;;  %v1385_v23 = vsub.f32 %v2241_v34, %v1377_v17 }
 0x2ea   : > { %v1394_v27 = vmul.f32 %v1378_v26, %v1378_v26  ;;  %v1395_v2 = vmul.f32 %v1379_v18, %v1379_v18  ;;  %v1396_v30 = vmul.f32 %v1380_v22, %v1380_v22  ;;  %v1397_v38 = vmul.f32 %v1381_v4, %v1381_v4 }
 0x2eb   : > { %v1398_v24 = vmul.f32 %v1382_v29, %v1382_v29  ;;  %v1399_v45 = vmul.f32 %v1383_v31, %v1383_v31  ;;  %v1451_v25 = vsub.f32 %v1377_v17, %v1450_v39  ;;  %v1386_v47 = vsub.f32 %v2243_v35, %v1377_v17 }
 0x2ec   : > { %v1410_v32 = vsel %vm905_vm0, %v1394_v27, 0.0  ;;  %v1411_v19 = vsel %vm905_vm0, %v1395_v2, 0.0  ;;  %v1413_v40 = vsel %vm905_vm0, %v1396_v30, 0.0  ;;  %v1415_v63 = vsel %vm905_vm0, %v1397_v38, 0.0 }
 0x2ed   : > { %v1412_v20 = vadd.f32 %v1411_v19, %v1410_v32  ;;  %v1400_v48 = vmul.f32 %v1384_v21, %v1384_v21  ;;  %v1417_v49 = vsel %vm905_vm0, %v1398_v24, 0.0  ;;  %v1470_v28 = vmul.f32 %v1469_v44, %v1451_v25 }
 0x2ee   : > { %v1387_v52 = vsub.f32 %v2245_v36, %v1377_v17  ;;  %v1401_v33 = vmul.f32 %v1385_v23, %v1385_v23  ;;  %v1419_v53 = vsel %vm905_vm0, %v1399_v45, 0.0  ;;  %v1388_v55 = vsub.f32 %v2247_v37, %v1377_v17 }
 0x2ef   : > { %v1414_v42 = vadd.f32 %v1413_v40, %v1412_v20  ;;  %v1471_v54 = vadd.f32 %v1470_v28, %v1450_v39  ;;  %v1402_v43 = vmul.f32 %v1386_v47, %v1386_v47  ;;  %v1421_v56 = vsel %vm905_vm0, %v1400_v48, 0.0  ;;  %v1474_v39 = vld [vmem:[%s2279_s18] sm:$0x1] }
 0x2f0   : > { %v1389_v57 = vsub.f32 %v2255_v41, %v1377_v17  ;;  %v1403_v58 = vmul.f32 %v1387_v52, %v1387_v52  ;;  %v1423_v59 = vsel %vm905_vm0, %v1401_v33, 0.0  ;;  %v1390_v36 = vsub.f32 %v2265_v50, %v1377_v17 }
 0x2f1   : > { %v1416_v46 = vadd.f32 %v1415_v63, %v1414_v42  ;;  %1473 = vst.msk [vmem:[%s2273_s14] sm:$0x1] %vm1330_vm3, %v1471_v54  ;;  %v1404_v1 = vmul.f32 %v1388_v55, %v1388_v55  ;;  %v1425_v3 = vsel %vm905_vm0, %v1402_v43, 0.0  ;;  %v1391_v37 = vsub.f32 %v2293_v60, %v1377_v17 }
 0x2f2   : > { %v1405_v6 = vmul.f32 %v1389_v57, %v1389_v57  ;;  %v1427_v7 = vsel %vm905_vm0, %v1403_v58, 0.0  ;;  %v1392_v10 = vsub.f32 %v2295_v61, %v1377_v17  ;;  %v1406_v11 = vmul.f32 %v1390_v36, %v1390_v36 }
 0x2f3   : > { %v1418_v51 = vadd.f32 %v1417_v49, %v1416_v46  ;;  %v1429_v41 = vsel %vm905_vm0, %v1404_v1, 0.0  ;;  %v1393_v13 = vsub.f32 %v2303_v9, %v1377_v17  ;;  %v1407_v50 = vmul.f32 %v1391_v37, %v1391_v37 }
 0x2f4   : > { %v1431_v14 = vsel %vm905_vm0, %v1405_v6, 0.0  ;;  %v1408_v0 = vmul.f32 %v1392_v10, %v1392_v10  ;;  %v1433_v60 = vsel %vm905_vm0, %v1406_v11, 0.0  ;;  %v1475_v31 = vmul.f32 %v1451_v25, %v1451_v25 }
 0x2f5   : > { %v1420_v34 = vadd.f32 %v1419_v53, %v1418_v51  ;;  %v1409_v26 = vmul.f32 %v1393_v13, %v1393_v13  ;;  %v1435_v18 = vsel %vm905_vm0, %v1407_v50, 0.0  ;;  %v1477_v38 = vstv %s1476_s20 }
 0x2f6   : > { %v1437_v22 = vsel %vm905_vm0, %v1408_v0, 0.0  ;;  %v1478_v20 = vmul.f32 %v1477_v38, %v1475_v31 }
 0x2f7   : > { %v1422_v35 = vadd.f32 %v1421_v56, %v1420_v34  ;;  %v1439_v9 = vsel %vm905_vm0, %v1409_v26, 0.0 }
 0x2f9   : > { %v1424_v62 = vadd.f32 %v1423_v59, %v1422_v35 }
 0x2fb   : > { %v1426_v5 = vadd.f32 %v1425_v3, %v1424_v62 }
 0x2fd   : > { %v1428_v8 = vadd.f32 %v1427_v7, %v1426_v5 }
 0x2ff   : > { %v1430_v12 = vadd.f32 %v1429_v41, %v1428_v8 }
 0x301   : > { %v1432_v15 = vadd.f32 %v1431_v14, %v1430_v12 }
 0x303   : > { %v1434_v16 = vadd.f32 %v1433_v60, %v1432_v15 }
 0x305   : > { %v1436_v61 = vadd.f32 %v1435_v18, %v1434_v16 }
 0x307   : > { %v1438_v4 = vadd.f32 %v1437_v22, %v1436_v61 }
 0x309   : > { %v1440_v17 = vadd.f32 %v1439_v9, %v1438_v4 }
 0x30b   : > { %v1441_v27 = vrot.slane %v1440_v17, 4 }
 0x30d   : > { %v1442_v2 = vadd.f32 %v1441_v27, %v1440_v17 }
 0x30f   : > { %v1443_v29 = vrot.slane %v1442_v2, 2 }
 0x311   : > { %v1444_v30 = vadd.f32 %v1443_v29, %v1442_v2 }
 0x313   : > { %v1445_v32 = vrot.slane %v1444_v30, 1 }
 0x315   : > { %v1446_v19 = vadd.f32 %v1445_v32, %v1444_v30 }
 0x317   : > { %v1479_v21 = vadd.f32 %v1478_v20, %v1446_v19 }
 0x319   : > { %v1480_v24 = vadd.f32 %v1479_v21, %v1474_v39 }
 0x31b   : > { %1481 = vst.msk [vmem:[%s2279_s18] sm:$0x1] %vm1330_vm3, %v1480_v24 }
 0x31c PF: > { %s24_s27 = sadd.s32 1, %s1796_s27   ;;  %s2375_s25 = smov %s1792_s26 }
 0x31d   : > { %p21_p5 = scmp.ge.s32.totalorder %s24_s27, 4   ;;  %s2376_s26 = smov %s2378_s28 }
 0x31f   :  { %23 = sbr.rel (!%p21_p5) target bundleno = 2 (0x2), region = 117 }

// kernel: pointnet_segmenter_forward.13
= control target key start
LH: loop header
LB: loop body
LE: loop exit
PB: predicated region body
PF: predicated region fallthrough
CT: control target
= control target key end

     0   :  { %s1997_s21 = smov 0   ;;  %s1999_s22 = smov 0   ;;  %s2460_s0 = inlined_call_operand.vmem [shape: f32[2,128,3], index: 0, kind: input, shape index: {}]   ;;  %s2461_s1 = inlined_call_operand.vmem [shape: f32[3,32], index: 1, kind: input, shape index: {}]   ;;  %s2462_s2 = inlined_call_operand.vmem [shape: f32[1,32], index: 2, kind: input, shape index: {}]   ;;  %s2463_s3 = inlined_call_operand.vmem [shape: f32[1,32], index: 3, kind: input, shape index: {}]   ;;  %s2464_s4 = inlined_call_operand.vmem [shape: bf16[32,128], index: 4, kind: input, shape index: {}]   ;;  %s2465_s5 = inlined_call_operand.vmem [shape: f32[2,1,128], index: 5, kind: input, shape index: {}]   ;;  %s2466_s6 = inlined_call_operand.vmem [shape: f32[1,128], index: 6, kind: input, shape index: {}]   ;;  %s2467_s7 = inlined_call_operand.vmem [shape: f32[1,128], index: 7, kind: input, shape index: {}]   ;;  %s2468_s8 = inlined_call_operand.vmem [shape: bf16[128,64], index: 8, kind: input, shape index: {}]   ;;  %s2469_s9 = inlined_call_operand.vmem [shape: f32[1,64], index: 9, kind: input, shape index: {}]   ;;  %s2470_s10 = inlined_call_operand.vmem [shape: f32[1,64], index: 10, kind: input, shape index: {}]   ;;  %s2471_s11 = inlined_call_operand.vmem [shape: bf16[64,32], index: 11, kind: input, shape index: {}]   ;;  %s2472_s12 = inlined_call_operand.vmem [shape: f32[1,32], index: 12, kind: input, shape index: {}]   ;;  %s2473_s13 = inlined_call_operand.vmem [shape: f32[1,32], index: 13, kind: input, shape index: {}]   ;;  %s2474_s14 = inlined_call_operand.vmem [shape: bf16[32,4], index: 14, kind: input, shape index: {}]   ;;  %s2475_s15 = inlined_call_operand.vmem [shape: f32[1,1,4], index: 15, kind: input, shape index: {}]   ;;  %s2476_s16 = inlined_call_operand.vmem [shape: f32[2,128,4], index: 16, kind: output, shape index: {}]  }
   0x1   :  { %2477 = sst [smem:[#allocation2_spill]] %s2460_s0  ;;  %s2001_s23 = smov 0  }
   0x2 LB: > { %s45_s24 = sadd.s32 1, %s1903_s22  ;;  %p1688_p0 = scmp.ge.s32.totalorder %s1907_s23, 1  ;;  %s1907_s23 = sphi %s2001_s23, %s26_s23   ;;  %s1903_s22 = sphi %s1999_s22, %s2480_s22   ;;  %s1899_s21 = sphi %s1997_s21, %s2479_s21  }
   0x3   : > { %p47_p1 = scmp.ge.s32.totalorder %s45_s24, 2  ;;  %p504_p2 = scmp.lt.s32.totalorder %s1907_s23, 3 }
   0x5   : > { %s2482_s24 = smov (%p47_p1, %s45_s24), 0  ;;  %p505_p3 = pnand %p1688_p0, %p504_p2 }
   0x6   : > { %p569_p4 = scmp.lt.s32.totalorder (!%p505_p3), %s1899_s21, 1  ;;  %s2478_s0 = sld [smem:[#allocation2_spill]] (!%p505_p3) }
   0x7   : > { %508 = sbr.rel (%p505_p3) target bundleno = 872 (0x368), region = 84 }
   0xc   : > { %v1909_v0 = vmov 1   ;;  %v1910_v1 = vmov 0   ;;  %s2484_s21 = smov (!%p569_p4, %s1899_s21), 1  ;;  %v1911_v2 = vmov 2   ;;  %v1786_v18 = vld [vmem:[%s2464_s4 + $0x8] sm:$0xff]  ;;  %v1785_v19 = vld [vmem:[%s2464_s4] sm:$0xff] }
   0xd   : > { %1837 = vset.pattern.permute.xlu1 %v1909_v0  ;;  %1836 = vset.pattern.permute.xlu0 %v1910_v1  ;;  %s1783_s25 = sshll.u32 %s2484_s21, 7  ;;  %s581_s28 = scalar_lea.vmem %s2465_s5, %s2484_s21  ;;  %v611_v22 = vld [vmem:[%s2461_s1] sm:$0x7]  ;;  %vm987_vm0 = vcmask 261120   ;;  %vm1334_vm1 = vcmask 523264   ;;  %vm1565_vm2 = vcmask 31744  }
   0xe   : > { %1838 = vset.pattern.permute.xlu2 %v1911_v2  ;;  %s2030_s17 = scalar_lea.vmem %s2478_s0, %s1783_s25  ;;  %1018 = vmatpush.bf16.msra.mxu0 %v1786_v18  ;;  %v2086_v23 = vperm.slane %v611_v22, 1  ;;  %v2088_v24 = vperm.slane %v611_v22, 0  ;;  %v2090_v25 = vperm.slane %v611_v22, 2  ;;  %v2100_v33 = vld [vmem:[%s2462_s2] ss:$0 sm:$0xff]  ;;  %s2417_s18 = scalar_lea.vmem %s2476_s16, %s1783_s25 }
   0xf   : > { %v595_v3 = vld [vmem:[%s2030_s17] sm:$0xff]  ;;  %v596_v4 = vld [vmem:[%s2030_s17 + $0x8] sm:$0xff]  ;;  %v597_v5 = vld [vmem:[%s2030_s17 + $0x10] sm:$0xff] }
  0x10   : > { %710 = vperm.xlu1 %1837, %v595_v3   ;;  %614 = vperm.xlu0 %1836, %v595_v3   ;;  %v598_v6 = vld [vmem:[%s2030_s17 + $0x18] sm:$0xff]  ;;  %v599_v7 = vld [vmem:[%s2030_s17 + $0x20] sm:$0xff]  ;;  %v600_v8 = vld [vmem:[%s2030_s17 + $0x28] sm:$0xff] }
  0x11   : > { %807 = vperm.xlu2 %1838, %v595_v3   ;;  %v601_v9 = vld [vmem:[%s2030_s17 + $0x30] sm:$0xff]  ;;  %v602_v10 = vld [vmem:[%s2030_s17 + $0x38] sm:$0xff]  ;;  %v604_v11 = vld [vmem:[%s2030_s17 + $0x48] sm:$0xff] }
  0x12   : > { %v605_v12 = vld [vmem:[%s2030_s17 + $0x50] sm:$0xff]  ;;  %v603_v13 = vld [vmem:[%s2030_s17 + $0x40] sm:$0xff]  ;;  %v606_v14 = vld [vmem:[%s2030_s17 + $0x58] sm:$0xff]  ;;  %1019 = vmatpush.bf16.msra.mxu0 %v1785_v19 }
  0x13   : > { %v607_v15 = vld [vmem:[%s2030_s17 + $0x60] sm:$0xff]  ;;  %v608_v16 = vld [vmem:[%s2030_s17 + $0x68] sm:$0xff]  ;;  %v2078_v20 = vld [vmem:[%s2030_s17 + $0x70] sm:$0xff] }
  0x14   : > { %v2110_v43 = vld [vmem:[%s2463_s3] ss:$0 sm:$0xff]  ;;  %v610_v53 = vld [vmem:[%s2030_s17 + $0x78] sm:$0xff] }
  0x18   : > { %714 = vperm.xlu1 %1837, %v596_v4   ;;  %619 = vperm.xlu0 %1836, %v596_v4  }
  0x19   : > { %811 = vperm.xlu2 %1838, %v596_v4  }
  0x20   : > { %1839 = vset.pattern.permute.xlu1 %v1910_v1  ;;  %624 = vperm.xlu0 %1836, %v597_v5  }
  0x21   : > { %629 = vperm.xlu1 %1839, %v598_v6   ;;  %1840 = vset.pattern.permute.xlu2 %v1909_v0 }
  0x22   : > { %718 = vperm.xlu2 %1840, %v597_v5  }
  0x28   : > { %1841 = vset.pattern.permute.xlu0 %v1909_v0 }
  0x29   : > { %1842 = vset.pattern.permute.xlu1 %v1911_v2  ;;  %722 = vperm.xlu0 %1841, %v598_v6  }
  0x2a   : > { %815 = vperm.xlu1 %1842, %v597_v5   ;;  %1843 = vset.pattern.permute.xlu2 %v1911_v2 }
  0x2b   : > { %819 = vperm.xlu2 %1843, %v598_v6  }
  0x31   : > { %726 = vperm.xlu0 %1841, %v599_v7  }
  0x32   : > { %1844 = vset.pattern.permute.xlu1 %v1910_v1 }
  0x33   : > { %634 = vperm.xlu1 %1844, %v599_v7   ;;  %1845 = vset.pattern.permute.xlu2 %v1910_v1 }
  0x34   : > { %639 = vperm.xlu2 %1845, %v600_v8  }
  0x39   : > { %1848 = vset.pattern.permute.xlu0 %v1911_v2 }
  0x3a   : > { %827 = vperm.xlu0 %1848, %v600_v8  }
  0x3b   : > { %1846 = vset.pattern.permute.xlu1 %v1909_v0 }
  0x3c   : > { %730 = vperm.xlu1 %1846, %v600_v8   ;;  %1847 = vset.pattern.permute.xlu2 %v1911_v2 }
  0x3d   : > { %823 = vperm.xlu2 %1847, %v599_v7  }
  0x42   : > { %831 = vperm.xlu0 %1848, %v601_v9  }
  0x44   : > { %1849 = vset.pattern.permute.xlu1 %v1910_v1 }
  0x45   : > { %644 = vperm.xlu1 %1849, %v601_v9   ;;  %1850 = vset.pattern.permute.xlu2 %v1910_v1 }
  0x46   : > { %649 = vperm.xlu2 %1850, %v602_v10  }
  0x4a   : > { %1855 = vset.pattern.permute.xlu0 %v1910_v1 }
  0x4b   : > { %659 = vperm.xlu0 %1855, %v604_v11  }
  0x4d   : > { %1851 = vset.pattern.permute.xlu1 %v1909_v0 }
  0x4e   : > { %734 = vperm.xlu1 %1851, %v601_v9   ;;  %1852 = vset.pattern.permute.xlu2 %v1909_v0 }
  0x4f   : > { %738 = vperm.xlu2 %1852, %v602_v10  }
  0x53   : > { %664 = vperm.xlu0 %1855, %v605_v12  }
  0x56   : > { %1853 = vset.pattern.permute.xlu1 %v1911_v2 }
  0x57   : > { %835 = vperm.xlu1 %1853, %v602_v10   ;;  %1854 = vset.pattern.permute.xlu2 %v1910_v1 }
  0x58   : > { %654 = vperm.xlu2 %1854, %v603_v13  }
  0x5b   : > { %1862 = vset.pattern.permute.xlu0 %v1909_v0 }
  0x5c   : > { %754 = vperm.xlu0 %1862, %v606_v14  }
  0x5f   : > { %1856 = vset.pattern.permute.xlu1 %v1909_v0 }
  0x60   : > { %742 = vperm.xlu1 %1856, %v603_v13   ;;  %1857 = vset.pattern.permute.xlu2 %v1909_v0 }
  0x61   : > { %746 = vperm.xlu2 %1857, %v604_v11  }
  0x64   : > { %758 = vperm.xlu0 %1862, %v607_v15  }
  0x68   : > { %1858 = vset.pattern.permute.xlu1 %v1911_v2 }
  0x69   : > { %839 = vperm.xlu1 %1858, %v603_v13   ;;  %1859 = vset.pattern.permute.xlu2 %v1911_v2 }
  0x6a   : > { %843 = vperm.xlu2 %1859, %v604_v11  }
  0x6b   : > { %v808_v17 = vpop.permute.xlu2 %807 }
  0x6c   : > { %1869 = vset.pattern.permute.xlu0 %v1911_v2  ;;  %v871_v31 = vmul.f32 %v2090_v25, %v808_v17 }
  0x6d   : > { %859 = vperm.xlu0 %1869, %v608_v16  }
  0x71   : > { %1860 = vset.pattern.permute.xlu1 %v1910_v1 }
  0x72   : > { %669 = vperm.xlu1 %1860, %v606_v14   ;;  %1861 = vset.pattern.permute.xlu2 %v1909_v0 }
  0x73   : > { %750 = vperm.xlu2 %1861, %v605_v12   ;;  %v812_v21 = vpop.permute.xlu2 %811 }
  0x74   : > { %v872_v41 = vmul.f32 %v2090_v25, %v812_v21 }
  0x75   : > { %863 = vperm.xlu0 %1869, %v2078_v20  }
  0x7a   : > { %1863 = vset.pattern.permute.xlu1 %v1911_v2 }
  0x7b   : > { %847 = vperm.xlu1 %1863, %v605_v12   ;;  %1864 = vset.pattern.permute.xlu2 %v1911_v2 }
  0x7c   : > { %851 = vperm.xlu2 %1864, %v606_v14   ;;  %v719_v26 = vpop.permute.xlu2 %718 }
  0x7d   : > { %v776_v54 = vmul.f32 %v2086_v23, %v719_v26 }
  0x82   : > { %v711_v27 = vpop.permute.xlu1 %710  ;;  %v615_v28 = vpop.permute.xlu0 %614 }
  0x83   : > { %v774_v29 = vmul.f32 %v2086_v23, %v711_v27  ;;  %v693_v30 = vmul.f32 %v2088_v24, %v615_v28  ;;  %1865 = vset.pattern.permute.xlu1 %v1910_v1 }
  0x84   : > { %674 = vperm.xlu1 %1865, %v607_v15   ;;  %1866 = vset.pattern.permute.xlu2 %v1910_v1 }
  0x85   : > { %v790_v32 = vadd.f32 %v774_v29, %v693_v30  ;;  %679 = vperm.xlu2 %1866, %v608_v16   ;;  %v820_v39 = vpop.permute.xlu2 %819 }
  0x86   : > { %v874_v60 = vmul.f32 %v2090_v25, %v820_v39 }
  0x87   : > { %v887_v34 = vadd.f32 %v871_v31, %v790_v32 }
  0x89   : > { %v907_v40 = vmul.f32 %v2100_v33, %v887_v34 }
  0x8a   : > { %v715_v35 = vpop.permute.xlu1 %714  ;;  %v620_v36 = vpop.permute.xlu0 %619 }
  0x8b   : > { %v775_v37 = vmul.f32 %v2086_v23, %v715_v35  ;;  %v694_v38 = vmul.f32 %v2088_v24, %v620_v36  ;;  %v927_v46 = vadd.f32 %v2110_v43, %v907_v40  ;;  %v1793_v35 = vld [vmem:[%s2468_s8 + $0x30] sm:$0xff] }
  0x8c   : > { %1867 = vset.pattern.permute.xlu1 %v1909_v0 }
  0x8d   : > { %v791_v42 = vadd.f32 %v775_v37, %v694_v38  ;;  %762 = vperm.xlu1 %1867, %v608_v16   ;;  %1868 = vset.pattern.permute.xlu2 %v1911_v2  ;;  %v943_v50 = vmax.f32 %v927_v46, 0.0  ;;  %v1794_v16 = vld [vmem:[%s2468_s8 + $0x38] sm:$0xff] }
  0x8e   : > { %855 = vperm.xlu2 %1868, %v607_v15   ;;  %v640_v52 = vpop.permute.xlu2 %639  ;;  %1189 = vmatpush.bf16.msrb.mxu0 %v1794_v16 }
  0x8f   : > { %v888_v44 = vadd.f32 %v872_v41, %v791_v42  ;;  %1801 = vmatpush.bf16.msra.mxu1 %v1794_v16  ;;  %v698_v26 = vmul.f32 %v2088_v24, %v640_v52 }
  0x91   : > { %v908_v45 = vmul.f32 %v2100_v33, %v888_v44 }
  0x92   : > { %v625_v47 = vpop.permute.xlu0 %624  ;;  %1190 = vmatpush.bf16.msrb.mxu0 %v1793_v35 }
  0x93   : > { %v630_v48 = vpop.permute.xlu1 %629  ;;  %v928_v49 = vadd.f32 %v2110_v43, %v908_v45  ;;  %v695_v55 = vmul.f32 %v2088_v24, %v625_v47  ;;  %1802 = vmatpush.bf16.msra.mxu1 %v1793_v35  ;;  %v1790_v35 = vld [vmem:[%s2468_s8 + $0x18] sm:$0xff] }
  0x94   : > { %v696_v59 = vmul.f32 %v2088_v24, %v630_v48 }
  0x95   : > { %1870 = vset.pattern.permute.xlu1 %v1910_v1  ;;  %v944_v51 = vmax.f32 %v928_v49, 0.0  ;;  %v792_v57 = vadd.f32 %v776_v54, %v695_v55 }
  0x96   : > { %684 = vperm.xlu1 %1870, %v2078_v20   ;;  %1871 = vset.pattern.permute.xlu2 %v1910_v1 }
  0x97   : > { %v959_v56 = vpack.c.bf16 %v944_v51, %v943_v50  ;;  %689 = vperm.xlu2 %1871, %v610_v53   ;;  %v824_v4 = vpop.permute.xlu2 %823 }
  0x98   : > { %v875_v19 = vmul.f32 %v2090_v25, %v824_v4 }
  0x99   : > { %1701 = vmatmul.msk.bf16.vlgmr.msra.gmra.mxu0 %vm987_vm0, %v959_v56 }
  0x9b   : > { %v723_v58 = vpop.permute.xlu0 %722 }
  0x9c   : > { %v777_v61 = vmul.f32 %v2086_v23, %v723_v58  ;;  %v816_v62 = vpop.permute.xlu1 %815 }
  0x9d   : > { %v873_v63 = vmul.f32 %v2090_v25, %v816_v62 }
  0x9e   : > { %v793_v1 = vadd.f32 %v777_v61, %v696_v59  ;;  %1872 = vset.pattern.permute.xlu1 %v1909_v0 }
  0x9f   : > { %v889_v3 = vadd.f32 %v873_v63, %v792_v57  ;;  %766 = vperm.xlu1 %1872, %v2078_v20   ;;  %1873 = vset.pattern.permute.xlu2 %v1909_v0  ;;  %v1792_v57 = vld [vmem:[%s2468_s8 + $0x28] sm:$0xff] }
  0xa0   : > { %v890_v5 = vadd.f32 %v874_v60, %v793_v1  ;;  %770 = vperm.xlu2 %1873, %v610_v53   ;;  %v650_v0 = vpop.permute.xlu2 %649  ;;  %1191 = vmatpush.bf16.msrb.mxu0 %v1792_v57 }
  0xa1   : > { %v909_v6 = vmul.f32 %v2100_v33, %v889_v3  ;;  %v700_v50 = vmul.f32 %v2088_v24, %v650_v0  ;;  %1803 = vmatpush.bf16.msra.mxu1 %v1792_v57 }
  0xa2   : > { %v910_v7 = vmul.f32 %v2100_v33, %v890_v5 }
  0xa3   : > { %v727_v8 = vpop.permute.xlu0 %726  ;;  %v929_v9 = vadd.f32 %v2110_v43, %v909_v6 }
  0xa4   : > { %v930_v10 = vadd.f32 %v2110_v43, %v910_v7  ;;  %v778_v12 = vmul.f32 %v2086_v23, %v727_v8 }
  0xa5   : > { %v635_v11 = vpop.permute.xlu1 %634  ;;  %v945_v13 = vmax.f32 %v929_v9, 0.0 }
  0xa6   : > { %v697_v14 = vmul.f32 %v2088_v24, %v635_v11  ;;  %v946_v15 = vmax.f32 %v930_v10, 0.0 }
  0xa7   : > { %1874 = vset.pattern.permute.xlu1 %v1911_v2 }
  0xa8   : > { %867 = vperm.xlu1 %1874, %v610_v53   ;;  %v960_v17 = vpack.c.bf16 %v946_v15, %v945_v13  ;;  %v794_v18 = vadd.f32 %v778_v12, %v697_v14  ;;  %v1791_v14 = vld [vmem:[%s2468_s8 + $0x20] sm:$0xff] }
  0xa9   : > { %v739_v30 = vpop.permute.xlu2 %738  ;;  %1192 = vmatpush.bf16.msrb.mxu0 %v1791_v14  ;;  %1804 = vmatpush.bf16.msra.mxu1 %v1791_v14 }
  0xaa   : > { %1702 = vmatmul.msk.bf16.gmra.mxu0 %vm987_vm0, %v960_v17  ;;  %v891_v21 = vadd.f32 %v875_v19, %v794_v18  ;;  %v781_v51 = vmul.f32 %v2086_v23, %v739_v30 }
  0xac   : > { %v828_v20 = vpop.permute.xlu0 %827  ;;  %v911_v28 = vmul.f32 %v2100_v33, %v891_v21  ;;  %v797_v54 = vadd.f32 %v781_v51, %v700_v50 }
  0xad   : > { %v876_v27 = vmul.f32 %v2090_v25, %v828_v20  ;;  %1805 = vmatpush.bf16.msra.mxu1 %v1790_v35  ;;  %1193 = vmatpush.bf16.msrb.mxu0 %v1790_v35 }
  0xae   : > { %v731_v22 = vpop.permute.xlu1 %730  ;;  %v931_v34 = vadd.f32 %v2110_v43, %v911_v28 }
  0xaf   : > { %v779_v2 = vmul.f32 %v2086_v23, %v731_v22 }
  0xb0   : > { %v947_v38 = vmax.f32 %v931_v34, 0.0 }
  0xb1   : > { %v795_v29 = vadd.f32 %v779_v2, %v698_v26 }
  0xb2   : > { %v655_v41 = vpop.permute.xlu2 %654 }
  0xb3   : > { %v892_v31 = vadd.f32 %v876_v27, %v795_v29  ;;  %v701_v15 = vmul.f32 %v2088_v24, %v655_v41 }
  0xb4   : > { %v832_v42 = vpop.permute.xlu0 %831 }
  0xb5   : > { %v912_v32 = vmul.f32 %v2100_v33, %v892_v31  ;;  %v877_v47 = vmul.f32 %v2090_v25, %v832_v42 }
  0xb7   : > { %v645_v36 = vpop.permute.xlu1 %644  ;;  %v932_v37 = vadd.f32 %v2110_v43, %v912_v32 }
  0xb8   : > { %v699_v45 = vmul.f32 %v2088_v24, %v645_v36 }
  0xb9   : > { %v948_v39 = vmax.f32 %v932_v37, 0.0 }
  0xbb   : > { %v961_v40 = vpack.c.bf16 %v948_v39, %v947_v38  ;;  %v747_v49 = vpop.permute.xlu2 %746 }
  0xbc   : > { %v783_v61 = vmul.f32 %v2086_v23, %v747_v49 }
  0xbd   : > { %1703 = vmatmul.msk.bf16.gmra.mxu0 %vm987_vm0, %v961_v40  ;;  %v660_v59 = vpop.permute.xlu0 %659 }
  0xbe   : > { %v702_v62 = vmul.f32 %v2088_v24, %v660_v59 }
  0xc0   : > { %v735_v44 = vpop.permute.xlu1 %734  ;;  %v799_v5 = vadd.f32 %v783_v61, %v702_v62  ;;  %v1789_v61 = vld [vmem:[%s2468_s8 + $0x10] sm:$0xff] }
  0xc1   : > { %v780_v46 = vmul.f32 %v2086_v23, %v735_v44  ;;  %1194 = vmatpush.bf16.msrb.mxu0 %v1789_v61  ;;  %1806 = vmatpush.bf16.msra.mxu1 %v1789_v61 }
  0xc3   : > { %v796_v48 = vadd.f32 %v780_v46, %v699_v45 }
  0xc4   : > { %v844_v1 = vpop.permute.xlu2 %843 }
  0xc5   : > { %v893_v52 = vadd.f32 %v877_v47, %v796_v48  ;;  %v880_v6 = vmul.f32 %v2090_v25, %v844_v1  ;;  %v665_v11 = vpop.permute.xlu0 %664 }
  0xc6   : > { %v703_v37 = vmul.f32 %v2088_v24, %v665_v11 }
  0xc7   : > { %v913_v55 = vmul.f32 %v2100_v33, %v893_v52  ;;  %v896_v10 = vadd.f32 %v880_v6, %v799_v5 }
  0xc9   : > { %v836_v53 = vpop.permute.xlu1 %835  ;;  %v933_v63 = vadd.f32 %v2110_v43, %v913_v55  ;;  %v916_v0 = vmul.f32 %v2100_v33, %v896_v10 }
  0xca   : > { %v878_v56 = vmul.f32 %v2090_v25, %v836_v53 }
  0xcb   : > { %v949_v7 = vmax.f32 %v933_v63, 0.0  ;;  %v936_v20 = vadd.f32 %v2110_v43, %v916_v0 }
  0xcc   : > { %v894_v58 = vadd.f32 %v878_v56, %v797_v54 }
  0xcd   : > { %v751_v13 = vpop.permute.xlu2 %750  ;;  %v952_v2 = vmax.f32 %v936_v20, 0.0  ;;  %v1787_v20 = vld [vmem:[%s2468_s8] sm:$0xff] }
  0xce   : > { %v914_v60 = vmul.f32 %v2100_v33, %v894_v58  ;;  %v755_v22 = vpop.permute.xlu0 %754  ;;  %v784_v38 = vmul.f32 %v2086_v23, %v751_v13 }
  0xcf   : > { %v785_v27 = vmul.f32 %v2086_v23, %v755_v22 }
  0xd0   : > { %v934_v3 = vadd.f32 %v2110_v43, %v914_v60  ;;  %v800_v42 = vadd.f32 %v784_v38, %v703_v37 }
  0xd2   : > { %v743_v4 = vpop.permute.xlu1 %742  ;;  %v950_v8 = vmax.f32 %v934_v3, 0.0 }
  0xd3   : > { %v782_v12 = vmul.f32 %v2086_v23, %v743_v4 }
  0xd4   : > { %v962_v9 = vpack.c.bf16 %v950_v8, %v949_v7 }
  0xd5   : > { %v798_v17 = vadd.f32 %v782_v12, %v701_v15  ;;  %v1788_v15 = vld [vmem:[%s2468_s8 + $0x8] sm:$0xff] }
  0xd6   : > { %1704 = vmatmul.msk.bf16.gmra.mxu0 %vm987_vm0, %v962_v9  ;;  %v852_v28 = vpop.permute.xlu2 %851  ;;  %v759_v49 = vpop.permute.xlu0 %758  ;;  %1807 = vmatpush.bf16.msra.mxu1 %v1788_v15 }
  0xd7   : > { %v882_v32 = vmul.f32 %v2090_v25, %v852_v28  ;;  %v786_v52 = vmul.f32 %v2086_v23, %v759_v49  ;;  %1195 = vmatpush.bf16.msrb.mxu0 %v1788_v15 }
  0xda   : > { %1808 = vmatpush.bf16.msra.mxu1 %v1787_v20 }
  0xdb   : > { %v840_v16 = vpop.permute.xlu1 %839  ;;  %1196 = vmatpush.bf16.msrb.mxu0 %v1787_v20 }
  0xdc   : > { %v879_v18 = vmul.f32 %v2090_v25, %v840_v16 }
  0xde   : > { %v895_v19 = vadd.f32 %v879_v18, %v798_v17 }
  0xdf   : > { %v680_v41 = vpop.permute.xlu2 %679  ;;  %v860_v60 = vpop.permute.xlu0 %859 }
  0xe0   : > { %v915_v21 = vmul.f32 %v2100_v33, %v895_v19  ;;  %v706_v1 = vmul.f32 %v2088_v24, %v680_v41  ;;  %v884_v4 = vmul.f32 %v2090_v25, %v860_v60 }
  0xe2   : > { %v935_v26 = vadd.f32 %v2110_v43, %v915_v21 }
  0xe4   : > { %v670_v29 = vpop.permute.xlu1 %669  ;;  %v951_v30 = vmax.f32 %v935_v26, 0.0 }
  0xe5   : > { %v704_v31 = vmul.f32 %v2088_v24, %v670_v29 }
  0xe6   : > { %v963_v34 = vpack.c.bf16 %v952_v2, %v951_v30 }
  0xe7   : > { %v801_v36 = vadd.f32 %v785_v27, %v704_v31  ;;  %v864_v18 = vpop.permute.xlu0 %863 }
  0xe8   : > { %1705 = vmatmul.msk.bf16.gmra.mxu0 %vm987_vm0, %v963_v34  ;;  %v856_v56 = vpop.permute.xlu2 %855  ;;  %v885_v26 = vmul.f32 %v2090_v25, %v864_v18 }
  0xe9   : > { %v898_v39 = vadd.f32 %v882_v32, %v801_v36  ;;  %v883_v59 = vmul.f32 %v2090_v25, %v856_v56 }
  0xeb   : > { %v918_v44 = vmul.f32 %v2100_v33, %v898_v39 }
  0xed   : > { %v848_v40 = vpop.permute.xlu1 %847  ;;  %v938_v48 = vadd.f32 %v2110_v43, %v918_v44 }
  0xee   : > { %v881_v45 = vmul.f32 %v2090_v25, %v848_v40 }
  0xef   : > { %v954_v54 = vmax.f32 %v938_v48, 0.0 }
  0xf0   : > { %v897_v46 = vadd.f32 %v881_v45, %v800_v42 }
  0xf1   : > { %v690_v12 = vpop.permute.xlu2 %689 }
  0xf2   : > { %v917_v47 = vmul.f32 %v2100_v33, %v897_v46  ;;  %v708_v27 = vmul.f32 %v2088_v24, %v690_v12 }
  0xf4   : > { %v937_v50 = vadd.f32 %v2110_v43, %v917_v47  ;;  %v2246_v47 = vld [vmem:[%s2467_s7] ss:$0 sm:$0xff] }
  0xf6   : > { %v675_v51 = vpop.permute.xlu1 %674  ;;  %v953_v53 = vmax.f32 %v937_v50, 0.0 }
  0xf7   : > { %v705_v55 = vmul.f32 %v2088_v24, %v675_v51 }
  0xf8   : > { %v964_v57 = vpack.c.bf16 %v954_v54, %v953_v53 }
  0xf9   : > { %v802_v58 = vadd.f32 %v786_v52, %v705_v55 }
  0xfa   : > { %1706 = vmatmul.msk.bf16.gmra.mxu0 %vm987_vm0, %v964_v57  ;;  %v771_v21 = vpop.permute.xlu2 %770 }
  0xfb   : > { %v899_v62 = vadd.f32 %v883_v59, %v802_v58  ;;  %v789_v28 = vmul.f32 %v2086_v23, %v771_v21 }
  0xfd   : > { %v919_v5 = vmul.f32 %v2100_v33, %v899_v62  ;;  %v805_v31 = vadd.f32 %v789_v28, %v708_v27 }
  0xff   : > { %v763_v63 = vpop.permute.xlu1 %762  ;;  %v939_v9 = vadd.f32 %v2110_v43, %v919_v5 }
 0x100   : > { %v787_v3 = vmul.f32 %v2086_v23, %v763_v63 }
 0x101   : > { %v955_v13 = vmax.f32 %v939_v9, 0.0 }
 0x102   : > { %v803_v6 = vadd.f32 %v787_v3, %v706_v1 }
 0x104   : > { %v900_v7 = vadd.f32 %v884_v4, %v803_v6 }
 0x106   : > { %v920_v8 = vmul.f32 %v2100_v33, %v900_v7 }
 0x108   : > { %v685_v10 = vpop.permute.xlu1 %684  ;;  %v940_v11 = vadd.f32 %v2110_v43, %v920_v8 }
 0x109   : > { %v707_v17 = vmul.f32 %v2088_v24, %v685_v10 }
 0x10a   : > { %v956_v14 = vmax.f32 %v940_v11, 0.0 }
 0x10c   : > { %v965_v0 = vpack.c.bf16 %v956_v14, %v955_v13 }
 0x10e   : > { %1707 = vmatmul.msk.bf16.gmra.mxu0 %vm987_vm0, %v965_v0 }
 0x111   : > { %v767_v16 = vpop.permute.xlu1 %766 }
 0x112   : > { %v788_v19 = vmul.f32 %v2086_v23, %v767_v16  ;;  %v2230_v23 = vld [vmem:[%s581_s28] ss:$0 sm:$0xff] }
 0x114   : > { %v804_v22 = vadd.f32 %v788_v19, %v707_v17 }
 0x116   : > { %v1021_v2 = vpop.f32.mrf.mxu0  ;;  %v901_v29 = vadd.f32 %v885_v26, %v804_v22 }
 0x118   : > { %v921_v32 = vmul.f32 %v2100_v33, %v901_v29 }
 0x11a   : > { %v868_v30 = vpop.permute.xlu1 %867  ;;  %v941_v38 = vadd.f32 %v2110_v43, %v921_v32 }
 0x11b   : > { %v886_v34 = vmul.f32 %v2090_v25, %v868_v30  ;;  %v1022_v25 = vadd.f32 %v2230_v23, %v1021_v2 }
 0x11c   : > { %v957_v24 = vmax.f32 %v941_v38, 0.0 }
 0x11d   : > { %v902_v35 = vadd.f32 %v886_v34, %v805_v31 }
 0x11e   : > { %v1023_v36 = vpop.f32.mrf.mxu0 }
 0x11f   : > { %v922_v37 = vmul.f32 %v2100_v33, %v902_v35  ;;  %v1024_v41 = vadd.f32 %v2230_v23, %v1023_v36  ;;  %v2237_v33 = vld [vmem:[%s2466_s6] ss:$0 sm:$0xff] }
 0x120   : > { %v1065_v46 = vmul.f32 %v2237_v33, %v1022_v25 }
 0x121   : > { %v942_v39 = vadd.f32 %v2110_v43, %v922_v37  ;;  %v1066_v43 = vmul.f32 %v2237_v33, %v1024_v41 }
 0x122   : > { %v1085_v50 = vadd.f32 %v2246_v47, %v1065_v46 }
 0x123   : > { %v958_v40 = vmax.f32 %v942_v39, 0.0  ;;  %v1086_v48 = vadd.f32 %v2246_v47, %v1066_v43 }
 0x124   : > { %v1101_v56 = vmax.f32 %v1085_v50, 0.0  ;;  %v1798_v50 = vld [vmem:[%s2471_s11 + $0x18] sm:$0xff] }
 0x125   : > { %v966_v42 = vpack.c.bf16 %v958_v40, %v957_v24  ;;  %v1102_v53 = vmax.f32 %v1086_v48, 0.0  ;;  %1363 = vmatpush.bf16.msra.mxu2 %v1798_v50 }
 0x127   : > { %v1026_v44 = vpop.f32.mrf.mxu0  ;;  %1708 = vmatmul.msk.bf16.gmra.mxu0 %vm987_vm0, %v966_v42  ;;  %v1117_v58 = vpack.c.bf16 %v1102_v53, %v1101_v56 }
 0x128   : > { %v1027_v45 = vadd.f32 %v2230_v23, %v1026_v44 }
 0x12a   : > { %v1067_v49 = vmul.f32 %v2237_v33, %v1027_v45 }
 0x12c   : > { %v1087_v55 = vadd.f32 %v2246_v47, %v1067_v49 }
 0x12e   : > { %v1103_v59 = vmax.f32 %v1087_v55, 0.0 }
 0x12f   : > { %v1028_v51 = vpop.f32.mrf.mxu0 }
 0x130   : > { %v1029_v52 = vadd.f32 %v2230_v23, %v1028_v51 }
 0x132   : > { %v1068_v54 = vmul.f32 %v2237_v33, %v1029_v52 }
 0x134   : > { %v1088_v57 = vadd.f32 %v2246_v47, %v1068_v54  ;;  %v1797_v54 = vld [vmem:[%s2471_s11 + $0x10] sm:$0xff] }
 0x135   : > { %1364 = vmatpush.bf16.msra.mxu2 %v1797_v54 }
 0x136   : > { %v1104_v60 = vmax.f32 %v1088_v57, 0.0 }
 0x137   : > { %1197 = vmatmul.bf16.vlgmr.msrb.gmra.mxu0 %v1117_v58  ;;  %v1796_v58 = vld [vmem:[%s2471_s11 + $0x8] sm:$0xff] }
 0x138   : > { %v1118_v61 = vpack.c.bf16 %v1104_v60, %v1103_v59  ;;  %v1795_v59 = vld [vmem:[%s2471_s11] sm:$0xff] }
 0x139   : > { %1365 = vmatpush.bf16.msra.mxu2 %v1796_v58 }
 0x13a   : > { %v1031_v62 = vpop.f32.mrf.mxu0  ;;  %1202 = vmatmul.bf16.vlgmr.msra.gmra.mxu1 %v1118_v61 }
 0x13b   : > { %v1032_v63 = vadd.f32 %v2230_v23, %v1031_v62 }
 0x13d   : > { %v1069_v1 = vmul.f32 %v2237_v33, %v1032_v63  ;;  %1366 = vmatpush.bf16.msra.mxu2 %v1795_v59 }
 0x13f   : > { %v1089_v6 = vadd.f32 %v2246_v47, %v1069_v1 }
 0x141   : > { %v1105_v8 = vmax.f32 %v1089_v6, 0.0 }
 0x142   : > { %v1033_v3 = vpop.f32.mrf.mxu0 }
 0x143   : > { %v1034_v4 = vadd.f32 %v2230_v23, %v1033_v3 }
 0x145   : > { %v1070_v5 = vmul.f32 %v2237_v33, %v1034_v4 }
 0x147   : > { %v1090_v7 = vadd.f32 %v2246_v47, %v1070_v5 }
 0x149   : > { %v1106_v9 = vmax.f32 %v1090_v7, 0.0 }
 0x14b   : > { %v1119_v10 = vpack.c.bf16 %v1106_v9, %v1105_v8  ;;  %v2306_v9 = vld [vmem:[%s2469_s9] ss:$0 sm:$0xff] }
 0x14d   : > { %1207 = vmatmul.bf16.gmra.mxu1 %v1119_v10 }
 0x153   : > { %v1036_v11 = vpop.f32.mrf.mxu0 }
 0x154   : > { %v1037_v12 = vadd.f32 %v2230_v23, %v1036_v11 }
 0x156   : > { %v1071_v13 = vmul.f32 %v2237_v33, %v1037_v12 }
 0x158   : > { %v1091_v16 = vadd.f32 %v2246_v47, %v1071_v13 }
 0x15a   : > { %v1107_v18 = vmax.f32 %v1091_v16, 0.0 }
 0x15b   : > { %v1038_v14 = vpop.f32.mrf.mxu0 }
 0x15c   : > { %v1039_v15 = vadd.f32 %v2230_v23, %v1038_v14 }
 0x15e   : > { %v1072_v0 = vmul.f32 %v2237_v33, %v1039_v15 }
 0x160   : > { %v1092_v17 = vadd.f32 %v2246_v47, %v1072_v0 }
 0x162   : > { %v1108_v19 = vmax.f32 %v1092_v17, 0.0 }
 0x164   : > { %v1120_v20 = vpack.c.bf16 %v1108_v19, %v1107_v18 }
 0x165   : > { %v1041_v21 = vpop.f32.mrf.mxu0 }
 0x166   : > { %1212 = vmatmul.bf16.gmra.mxu1 %v1120_v20  ;;  %v1042_v22 = vadd.f32 %v2230_v23, %v1041_v21 }
 0x168   : > { %v1073_v26 = vmul.f32 %v2237_v33, %v1042_v22 }
 0x16a   : > { %v1093_v29 = vadd.f32 %v2246_v47, %v1073_v26 }
 0x16c   : > { %v1109_v31 = vmax.f32 %v1093_v29, 0.0 }
 0x16d   : > { %v1043_v2 = vpop.f32.mrf.mxu0 }
 0x16e   : > { %v1044_v27 = vadd.f32 %v2230_v23, %v1043_v2 }
 0x170   : > { %v1074_v28 = vmul.f32 %v2237_v33, %v1044_v27 }
 0x172   : > { %v1094_v30 = vadd.f32 %v2246_v47, %v1074_v28 }
 0x174   : > { %v1110_v32 = vmax.f32 %v1094_v30, 0.0 }
 0x176   : > { %v1121_v34 = vpack.c.bf16 %v1110_v32, %v1109_v31 }
 0x177   : > { %v1046_v35 = vpop.f32.mrf.mxu0 }
 0x178   : > { %1217 = vmatmul.bf16.gmra.mxu1 %v1121_v34  ;;  %v1047_v36 = vadd.f32 %v2230_v23, %v1046_v35 }
 0x17a   : > { %v1075_v37 = vmul.f32 %v2237_v33, %v1047_v36 }
 0x17c   : > { %v1095_v40 = vadd.f32 %v2246_v47, %v1075_v37 }
 0x17e   : > { %v1111_v42 = vmax.f32 %v1095_v40, 0.0 }
 0x17f   : > { %v1048_v38 = vpop.f32.mrf.mxu0 }
 0x180   : > { %v1049_v39 = vadd.f32 %v2230_v23, %v1048_v38 }
 0x182   : > { %v1076_v24 = vmul.f32 %v2237_v33, %v1049_v39 }
 0x184   : > { %v1096_v41 = vadd.f32 %v2246_v47, %v1076_v24 }
 0x186   : > { %v1112_v25 = vmax.f32 %v1096_v41, 0.0 }
 0x188   : > { %v1122_v44 = vpack.c.bf16 %v1112_v25, %v1111_v42 }
 0x18a   : > { %1222 = vmatmul.bf16.gmra.mxu1 %v1122_v44 }
 0x18b   : > { %v1051_v43 = vpop.f32.mrf.mxu0 }
 0x18c   : > { %v1052_v45 = vadd.f32 %v2230_v23, %v1051_v43 }
 0x18e   : > { %v1077_v46 = vmul.f32 %v2237_v33, %v1052_v45 }
 0x190   : > { %v1097_v52 = vadd.f32 %v2246_v47, %v1077_v46 }
 0x192   : > { %v1113_v55 = vmax.f32 %v1097_v52, 0.0 }
 0x193   : > { %v1053_v48 = vpop.f32.mrf.mxu0 }
 0x194   : > { %v1054_v49 = vadd.f32 %v2230_v23, %v1053_v48 }
 0x196   : > { %v1078_v51 = vmul.f32 %v2237_v33, %v1054_v49 }
 0x198   : > { %v1098_v53 = vadd.f32 %v2246_v47, %v1078_v51 }
 0x19a   : > { %v1114_v56 = vmax.f32 %v1098_v53, 0.0 }
 0x19c   : > { %v1123_v57 = vpack.c.bf16 %v1114_v56, %v1113_v55 }
 0x19e   : > { %1227 = vmatmul.bf16.gmra.mxu1 %v1123_v57 }
 0x1a4   : > { %v1056_v60 = vpop.f32.mrf.mxu0 }
 0x1a5   : > { %v1057_v61 = vadd.f32 %v2230_v23, %v1056_v60 }
 0x1a7   : > { %v1079_v62 = vmul.f32 %v2237_v33, %v1057_v61 }
 0x1a9   : > { %v1099_v4 = vadd.f32 %v2246_v47, %v1079_v62 }
 0x1ab   : > { %v1115_v6 = vmax.f32 %v1099_v4, 0.0 }
 0x1ac   : > { %v1058_v63 = vpop.f32.mrf.mxu0 }
 0x1ad   : > { %v1059_v1 = vadd.f32 %v2230_v23, %v1058_v63  ;;  %v2312_v23 = vld [vmem:[%s2470_s10] ss:$0 sm:$0xff] }
 0x1af   : > { %v1080_v3 = vmul.f32 %v2237_v33, %v1059_v1 }
 0x1b1   : > { %v1100_v5 = vadd.f32 %v2246_v47, %v1080_v3 }
 0x1b3   : > { %v1116_v7 = vmax.f32 %v1100_v5, 0.0 }
 0x1b4   : > { %v1198_v8 = vpop.f32.mrf.mxu0 }
 0x1b5   : > { %v1124_v10 = vpack.c.bf16 %v1116_v7, %v1115_v6  ;;  %v1242_v12 = vmul.f32 %v2306_v9, %v1198_v8 }
 0x1b7   : > { %1232 = vmatmul.bf16.gmra.mxu1 %v1124_v10  ;;  %v1203_v11 = vpop.f32.mrf.mxu1  ;;  %v1262_v47 = vadd.f32 %v2312_v23, %v1242_v12 }
 0x1b8   : > { %v1244_v19 = vmul.f32 %v2306_v9, %v1203_v11  ;;  %v1800_v11 = vld [vmem:[%s2474_s14 + $0x8] sm:$0xff] }
 0x1b9   : > { %v1278_v15 = vmax.f32 %v1262_v47, 0.0  ;;  %1522 = vmatpush.bf16.msra.mxu3 %v1800_v11 }
 0x1ba   : > { %v1264_v22 = vadd.f32 %v2312_v23, %v1244_v19 }
 0x1bc   : > { %v1200_v33 = vpop.f32.mrf.mxu0  ;;  %v1280_v2 = vmax.f32 %v1264_v22, 0.0  ;;  %v2368_v22 = vld [vmem:[%s2473_s13] ss:$0 sm:$0xff] }
 0x1bd   : > { %v1243_v13 = vmul.f32 %v2306_v9, %v1200_v33  ;;  %v1799_v33 = vld [vmem:[%s2474_s14] sm:$0xff] }
 0x1be   : > { %1523 = vmatpush.bf16.msra.mxu3 %v1799_v33 }
 0x1bf   : > { %v1263_v14 = vadd.f32 %v2312_v23, %v1243_v13  ;;  %v1205_v16 = vpop.f32.mrf.mxu1 }
 0x1c0   : > { %v1245_v18 = vmul.f32 %v2306_v9, %v1205_v16 }
 0x1c1   : > { %v1279_v0 = vmax.f32 %v1263_v14, 0.0 }
 0x1c2   : > { %v1265_v21 = vadd.f32 %v2312_v23, %v1245_v18 }
 0x1c3   : > { %v1294_v17 = vpack.c.bf16 %v1279_v0, %v1278_v15 }
 0x1c4   : > { %v1281_v26 = vmax.f32 %v1265_v21, 0.0 }
 0x1c5   : > { %1757 = vmatmul.msk.bf16.vlgmr.msra.gmra.mxu2 %vm1334_vm1, %v1294_v17 }
 0x1c6   : > { %v1295_v27 = vpack.c.bf16 %v1281_v26, %v1280_v2 }
 0x1ca   : > { %v1208_v20 = vpop.f32.mrf.mxu1 }
 0x1cb   : > { %v1246_v30 = vmul.f32 %v2306_v9, %v1208_v20  ;;  %v2362_v20 = vld [vmem:[%s2472_s12] ss:$0 sm:$0xff] }
 0x1cd   : > { %v1266_v32 = vadd.f32 %v2312_v23, %v1246_v30 }
 0x1cf   : > { %v1282_v35 = vmax.f32 %v1266_v32, 0.0 }
 0x1d2   : > { %v1210_v28 = vpop.f32.mrf.mxu1 }
 0x1d3   : > { %v1247_v29 = vmul.f32 %v2306_v9, %v1210_v28 }
 0x1d5   : > { %1758 = vmatmul.msk.bf16.gmra.mxu2 %vm1334_vm1, %v1295_v27  ;;  %v1267_v31 = vadd.f32 %v2312_v23, %v1247_v29 }
 0x1d7   : > { %v1283_v34 = vmax.f32 %v1267_v31, 0.0 }
 0x1d9   : > { %v1296_v37 = vpack.c.bf16 %v1283_v34, %v1282_v35 }
 0x1e3   : > { %v1213_v36 = vpop.f32.mrf.mxu1 }
 0x1e4   : > { %v1248_v38 = vmul.f32 %v2306_v9, %v1213_v36 }
 0x1e5   : > { %1759 = vmatmul.msk.bf16.gmra.mxu2 %vm1334_vm1, %v1296_v37 }
 0x1e6   : > { %v1268_v24 = vadd.f32 %v2312_v23, %v1248_v38 }
 0x1e8   : > { %v1284_v42 = vmax.f32 %v1268_v24, 0.0 }
 0x1eb   : > { %v1215_v39 = vpop.f32.mrf.mxu1 }
 0x1ec   : > { %v1249_v40 = vmul.f32 %v2306_v9, %v1215_v39 }
 0x1ee   : > { %v1269_v41 = vadd.f32 %v2312_v23, %v1249_v40 }
 0x1f0   : > { %v1285_v25 = vmax.f32 %v1269_v41, 0.0 }
 0x1f2   : > { %v1297_v44 = vpack.c.bf16 %v1285_v25, %v1284_v42 }
 0x1f5   : > { %v1218_v43 = vpop.f32.mrf.mxu1  ;;  %1760 = vmatmul.msk.bf16.gmra.mxu2 %vm1334_vm1, %v1297_v44 }
 0x1f6   : > { %v1250_v45 = vmul.f32 %v2306_v9, %v1218_v43 }
 0x1f8   : > { %v1270_v48 = vadd.f32 %v2312_v23, %v1250_v45 }
 0x1fa   : > { %v1286_v51 = vmax.f32 %v1270_v48, 0.0 }
 0x1fd   : > { %v1220_v46 = vpop.f32.mrf.mxu1 }
 0x1fe   : > { %v1251_v49 = vmul.f32 %v2306_v9, %v1220_v46 }
 0x200   : > { %v1271_v50 = vadd.f32 %v2312_v23, %v1251_v49 }
 0x202   : > { %v1287_v52 = vmax.f32 %v1271_v50, 0.0 }
 0x204   : > { %v1298_v53 = vpack.c.bf16 %v1287_v52, %v1286_v51 }
 0x206   : > { %1761 = vmatmul.msk.bf16.gmra.mxu2 %vm1334_vm1, %v1298_v53 }
 0x207   : > { %v1223_v54 = vpop.f32.mrf.mxu1 }
 0x208   : > { %v1252_v55 = vmul.f32 %v2306_v9, %v1223_v54 }
 0x20a   : > { %v1272_v57 = vadd.f32 %v2312_v23, %v1252_v55 }
 0x20c   : > { %v1288_v60 = vmax.f32 %v1272_v57, 0.0 }
 0x20f   : > { %v1225_v56 = vpop.f32.mrf.mxu1 }
 0x210   : > { %v1253_v58 = vmul.f32 %v2306_v9, %v1225_v56 }
 0x212   : > { %v1273_v59 = vadd.f32 %v2312_v23, %v1253_v58 }
 0x214   : > { %v1289_v61 = vmax.f32 %v1273_v59, 0.0 }
 0x216   : > { %v1299_v62 = vpack.c.bf16 %v1289_v61, %v1288_v60 }
 0x218   : > { %1762 = vmatmul.msk.bf16.gmra.mxu2 %vm1334_vm1, %v1299_v62 }
 0x21b   : > { %v1228_v63 = vpop.f32.mrf.mxu1 }
 0x21c   : > { %v1254_v1 = vmul.f32 %v2306_v9, %v1228_v63 }
 0x21e   : > { %v1274_v4 = vadd.f32 %v2312_v23, %v1254_v1 }
 0x220   : > { %v1290_v7 = vmax.f32 %v1274_v4, 0.0 }
 0x223   : > { %v1230_v3 = vpop.f32.mrf.mxu1 }
 0x224   : > { %v1255_v5 = vmul.f32 %v2306_v9, %v1230_v3 }
 0x226   : > { %v1275_v6 = vadd.f32 %v2312_v23, %v1255_v5 }
 0x228   : > { %v1291_v8 = vmax.f32 %v1275_v6, 0.0 }
 0x22a   : > { %v1300_v10 = vpack.c.bf16 %v1291_v8, %v1290_v7 }
 0x22c   : > { %1763 = vmatmul.msk.bf16.gmra.mxu2 %vm1334_vm1, %v1300_v10 }
 0x234   : > { %v1233_v12 = vpop.f32.mrf.mxu1 }
 0x235   : > { %v1256_v47 = vmul.f32 %v2306_v9, %v1233_v12 }
 0x237   : > { %v1276_v14 = vadd.f32 %v2312_v23, %v1256_v47 }
 0x239   : > { %v1292_v16 = vmax.f32 %v1276_v14, 0.0 }
 0x23c   : > { %v1235_v13 = vpop.f32.mrf.mxu1 }
 0x23d   : > { %v1257_v15 = vmul.f32 %v2306_v9, %v1235_v13 }
 0x23f   : > { %v1277_v0 = vadd.f32 %v2312_v23, %v1257_v15 }
 0x241   : > { %v1293_v17 = vmax.f32 %v1277_v0, 0.0 }
 0x243   : > { %v1301_v18 = vpack.c.bf16 %v1293_v17, %v1292_v16 }
 0x245   : > { %1764 = vmatmul.msk.bf16.gmra.mxu2 %vm1334_vm1, %v1301_v18 }
 0x248   : > { %v1368_v19 = vpop.f32.mrf.mxu2 }
 0x249   : > { %v1412_v21 = vmul.f32 %v2362_v20, %v1368_v19 }
 0x24b   : > { %v1432_v23 = vadd.f32 %v2368_v22, %v1412_v21 }
 0x24d   : > { %v1448_v27 = vmax.f32 %v1432_v23, 0.0 }
 0x250   : > { %v1370_v9 = vpop.f32.mrf.mxu2 }
 0x251   : > { %v1413_v26 = vmul.f32 %v2362_v20, %v1370_v9 }
 0x253   : > { %v1433_v2 = vadd.f32 %v2368_v22, %v1413_v26 }
 0x255   : > { %v1449_v28 = vmax.f32 %v1433_v2, 0.0 }
 0x257   : > { %v1464_v29 = vpack.c.bf16 %v1449_v28, %v1448_v27 }
 0x258   : > { %v1373_v30 = vpop.f32.mrf.mxu2 }
 0x259   : > { %1773 = vmatmul.msk.bf16.vlgmr.msra.gmra.mxu3 %vm987_vm0, %v1464_v29  ;;  %v1414_v31 = vmul.f32 %v2362_v20, %v1373_v30 }
 0x25b   : > { %v1434_v34 = vadd.f32 %v2368_v22, %v1414_v31  ;;  %v1884_v31 = vld [vmem:[%s2475_s15] ss:$0 sm:$0xff] }
 0x25d   : > { %v1450_v37 = vmax.f32 %v1434_v34, 0.0 }
 0x260   : > { %v1375_v32 = vpop.f32.mrf.mxu2 }
 0x261   : > { %v1415_v35 = vmul.f32 %v2362_v20, %v1375_v32 }
 0x263   : > { %v1435_v36 = vadd.f32 %v2368_v22, %v1415_v35 }
 0x265   : > { %v1451_v38 = vmax.f32 %v1435_v36, 0.0 }
 0x267   : > { %v1465_v39 = vpack.c.bf16 %v1451_v38, %v1450_v37 }
 0x268   : > { %v1378_v24 = vpop.f32.mrf.mxu2 }
 0x269   : > { %1774 = vmatmul.msk.bf16.gmra.mxu3 %vm987_vm0, %v1465_v39  ;;  %v1416_v40 = vmul.f32 %v2362_v20, %v1378_v24 }
 0x26b   : > { %v1436_v42 = vadd.f32 %v2368_v22, %v1416_v40 }
 0x26d   : > { %v1452_v43 = vmax.f32 %v1436_v42, 0.0 }
 0x270   : > { %v1380_v41 = vpop.f32.mrf.mxu2 }
 0x271   : > { %v1417_v25 = vmul.f32 %v2362_v20, %v1380_v41 }
 0x273   : > { %v1437_v44 = vadd.f32 %v2368_v22, %v1417_v25 }
 0x275   : > { %v1453_v45 = vmax.f32 %v1437_v44, 0.0 }
 0x277   : > { %v1466_v46 = vpack.c.bf16 %v1453_v45, %v1452_v43 }
 0x278   : > { %v1383_v48 = vpop.f32.mrf.mxu2 }
 0x279   : > { %1775 = vmatmul.msk.bf16.gmra.mxu3 %vm987_vm0, %v1466_v46  ;;  %v1418_v49 = vmul.f32 %v2362_v20, %v1383_v48 }
 0x27b   : > { %v1438_v51 = vadd.f32 %v2368_v22, %v1418_v49 }
 0x27d   : > { %v1454_v54 = vmax.f32 %v1438_v51, 0.0 }
 0x280   : > { %v1385_v50 = vpop.f32.mrf.mxu2 }
 0x281   : > { %v1419_v52 = vmul.f32 %v2362_v20, %v1385_v50 }
 0x283   : > { %v1439_v53 = vadd.f32 %v2368_v22, %v1419_v52 }
 0x285   : > { %v1455_v55 = vmax.f32 %v1439_v53, 0.0 }
 0x287   : > { %v1467_v56 = vpack.c.bf16 %v1455_v55, %v1454_v54 }
 0x289   : > { %v1388_v57 = vpop.f32.mrf.mxu2  ;;  %1776 = vmatmul.msk.bf16.gmra.mxu3 %vm987_vm0, %v1467_v56 }
 0x28a   : > { %v1420_v58 = vmul.f32 %v2362_v20, %v1388_v57 }
 0x28c   : > { %v1440_v60 = vadd.f32 %v2368_v22, %v1420_v58 }
 0x28e   : > { %v1456_v63 = vmax.f32 %v1440_v60, 0.0 }
 0x291   : > { %v1390_v59 = vpop.f32.mrf.mxu2 }
 0x292   : > { %v1421_v61 = vmul.f32 %v2362_v20, %v1390_v59 }
 0x294   : > { %v1441_v62 = vadd.f32 %v2368_v22, %v1421_v61 }
 0x296   : > { %v1457_v1 = vmax.f32 %v1441_v62, 0.0 }
 0x298   : > { %v1468_v3 = vpack.c.bf16 %v1457_v1, %v1456_v63 }
 0x29a   : > { %1777 = vmatmul.msk.bf16.gmra.mxu3 %vm987_vm0, %v1468_v3 }
 0x29b   : > { %v1393_v4 = vpop.f32.mrf.mxu2 }
 0x29c   : > { %v1422_v5 = vmul.f32 %v2362_v20, %v1393_v4 }
 0x29e   : > { %v1442_v7 = vadd.f32 %v2368_v22, %v1422_v5 }
 0x2a0   : > { %v1458_v11 = vmax.f32 %v1442_v7, 0.0 }
 0x2a3   : > { %v1395_v6 = vpop.f32.mrf.mxu2 }
 0x2a4   : > { %v1423_v8 = vmul.f32 %v2362_v20, %v1395_v6 }
 0x2a6   : > { %v1443_v10 = vadd.f32 %v2368_v22, %v1423_v8 }
 0x2a8   : > { %v1459_v12 = vmax.f32 %v1443_v10, 0.0 }
 0x2aa   : > { %v1469_v33 = vpack.c.bf16 %v1459_v12, %v1458_v11 }
 0x2ac   : > { %1778 = vmatmul.msk.bf16.gmra.mxu3 %vm987_vm0, %v1469_v33 }
 0x2af   : > { %v1398_v47 = vpop.f32.mrf.mxu2 }
 0x2b0   : > { %v1424_v13 = vmul.f32 %v2362_v20, %v1398_v47 }
 0x2b2   : > { %v1444_v15 = vadd.f32 %v2368_v22, %v1424_v13 }
 0x2b4   : > { %v1460_v17 = vmax.f32 %v1444_v15, 0.0 }
 0x2b7   : > { %v1400_v14 = vpop.f32.mrf.mxu2 }
 0x2b8   : > { %v1425_v0 = vmul.f32 %v2362_v20, %v1400_v14 }
 0x2ba   : > { %v1445_v16 = vadd.f32 %v2368_v22, %v1425_v0 }
 0x2bc   : > { %v1461_v18 = vmax.f32 %v1445_v16, 0.0 }
 0x2be   : > { %v1470_v19 = vpack.c.bf16 %v1461_v18, %v1460_v17 }
 0x2c0   : > { %1779 = vmatmul.msk.bf16.gmra.mxu3 %vm987_vm0, %v1470_v19 }
 0x2c8   : > { %v1403_v21 = vpop.f32.mrf.mxu2 }
 0x2c9   : > { %v1426_v9 = vmul.f32 %v2362_v20, %v1403_v21 }
 0x2cb   : > { %v1446_v26 = vadd.f32 %v2368_v22, %v1426_v9 }
 0x2cd   : > { %v1462_v28 = vmax.f32 %v1446_v26, 0.0 }
 0x2d0   : > { %v1405_v23 = vpop.f32.mrf.mxu2 }
 0x2d1   : > { %v1427_v2 = vmul.f32 %v2362_v20, %v1405_v23 }
 0x2d3   : > { %v1447_v27 = vadd.f32 %v2368_v22, %v1427_v2 }
 0x2d5   : > { %v1463_v29 = vmax.f32 %v1447_v27, 0.0 }
 0x2d7   : > { %v1471_v30 = vpack.c.bf16 %v1463_v29, %v1462_v28 }
 0x2d9   : > { %1780 = vmatmul.msk.bf16.gmra.mxu3 %vm987_vm0, %v1471_v30 }
 0x2dc   : > { %v1525_v20 = vpop.f32.mrf.mxu3 }
 0x2dd   : > { %v1526_v22 = vadd.f32 %v1884_v31, %v1525_v20 }
 0x2df   : > { %1566 = vst.msk [vmem:[%s2417_s18] sm:$0xff] %vm1565_vm2, %v1526_v22 }
 0x2e4   : > { %v1527_v32 = vpop.f32.mrf.mxu3 }
 0x2e5   : > { %v1528_v34 = vadd.f32 %v1884_v31, %v1527_v32 }
 0x2e7   : > { %1567 = vst.msk [vmem:[%s2417_s18 + $0x8] sm:$0xff] %vm1565_vm2, %v1528_v34 }
 0x2ec   : > { %v1530_v35 = vpop.f32.mrf.mxu3 }
 0x2ed   : > { %v1531_v36 = vadd.f32 %v1884_v31, %v1530_v35 }
 0x2ef   : > { %1568 = vst.msk [vmem:[%s2417_s18 + $0x10] sm:$0xff] %vm1565_vm2, %v1531_v36 }
 0x2f4   : > { %v1532_v37 = vpop.f32.mrf.mxu3 }
 0x2f5   : > { %v1533_v38 = vadd.f32 %v1884_v31, %v1532_v37 }
 0x2f7   : > { %1569 = vst.msk [vmem:[%s2417_s18 + $0x18] sm:$0xff] %vm1565_vm2, %v1533_v38 }
 0x2fc   : > { %v1535_v39 = vpop.f32.mrf.mxu3 }
 0x2fd   : > { %v1536_v24 = vadd.f32 %v1884_v31, %v1535_v39 }
 0x2ff   : > { %1570 = vst.msk [vmem:[%s2417_s18 + $0x20] sm:$0xff] %vm1565_vm2, %v1536_v24 }
 0x304   : > { %v1537_v40 = vpop.f32.mrf.mxu3 }
 0x305   : > { %v1538_v41 = vadd.f32 %v1884_v31, %v1537_v40 }
 0x307   : > { %1571 = vst.msk [vmem:[%s2417_s18 + $0x28] sm:$0xff] %vm1565_vm2, %v1538_v41 }
 0x30c   : > { %v1540_v42 = vpop.f32.mrf.mxu3 }
 0x30d   : > { %v1541_v25 = vadd.f32 %v1884_v31, %v1540_v42 }
 0x30f   : > { %1572 = vst.msk [vmem:[%s2417_s18 + $0x30] sm:$0xff] %vm1565_vm2, %v1541_v25 }
 0x314   : > { %v1542_v44 = vpop.f32.mrf.mxu3 }
 0x315   : > { %v1543_v43 = vadd.f32 %v1884_v31, %v1542_v44 }
 0x317   : > { %1573 = vst.msk [vmem:[%s2417_s18 + $0x38] sm:$0xff] %vm1565_vm2, %v1543_v43 }
 0x31d   : > { %v1545_v45 = vpop.f32.mrf.mxu3 }
 0x31e   : > { %v1546_v46 = vadd.f32 %v1884_v31, %v1545_v45 }
 0x320   : > { %1574 = vst.msk [vmem:[%s2417_s18 + $0x40] sm:$0xff] %vm1565_vm2, %v1546_v46 }
 0x325   : > { %v1547_v48 = vpop.f32.mrf.mxu3 }
 0x326   : > { %v1548_v49 = vadd.f32 %v1884_v31, %v1547_v48 }
 0x328   : > { %1575 = vst.msk [vmem:[%s2417_s18 + $0x48] sm:$0xff] %vm1565_vm2, %v1548_v49 }
 0x32f   : > { %v1550_v50 = vpop.f32.mrf.mxu3 }
 0x330   : > { %v1551_v51 = vadd.f32 %v1884_v31, %v1550_v50 }
 0x332   : > { %1576 = vst.msk [vmem:[%s2417_s18 + $0x50] sm:$0xff] %vm1565_vm2, %v1551_v51 }
 0x337   : > { %v1552_v52 = vpop.f32.mrf.mxu3 }
 0x338   : > { %v1553_v53 = vadd.f32 %v1884_v31, %v1552_v52 }
 0x33a   : > { %1577 = vst.msk [vmem:[%s2417_s18 + $0x58] sm:$0xff] %vm1565_vm2, %v1553_v53 }
 0x343   : > { %v1555_v54 = vpop.f32.mrf.mxu3 }
 0x344   : > { %v1556_v55 = vadd.f32 %v1884_v31, %v1555_v54 }
 0x346   : > { %1578 = vst.msk [vmem:[%s2417_s18 + $0x60] sm:$0xff] %vm1565_vm2, %v1556_v55 }
 0x34b   : > { %v1557_v56 = vpop.f32.mrf.mxu3 }
 0x34c   : > { %v1558_v57 = vadd.f32 %v1884_v31, %v1557_v56 }
 0x34e   : > { %1579 = vst.msk [vmem:[%s2417_s18 + $0x68] sm:$0xff] %vm1565_vm2, %v1558_v57 }
 0x35c   : > { %v1560_v58 = vpop.f32.mrf.mxu3 }
 0x35d   : > { %v1561_v59 = vadd.f32 %v1884_v31, %v1560_v58 }
 0x35f   : > { %1580 = vst.msk [vmem:[%s2417_s18 + $0x70] sm:$0xff] %vm1565_vm2, %v1561_v59 }
 0x364   : > { %v1562_v60 = vpop.f32.mrf.mxu3 }
 0x365   : > { %v1563_v61 = vadd.f32 %v1884_v31, %v1562_v60 }
 0x367   : > { %1581 = vst.msk [vmem:[%s2417_s18 + $0x78] sm:$0xff] %vm1565_vm2, %v1563_v61 }
 0x368 PF: > { %s26_s23 = sadd.s32 1, %s1907_s23   ;;  %s2479_s21 = smov %s1903_s22 }
 0x369   : > { %p23_p5 = scmp.ge.s32.totalorder %s26_s23, 4   ;;  %s2480_s22 = smov %s2482_s24 }
 0x36b   :  { %25 = sbr.rel (!%p23_p5) target bundleno = 2 (0x2), region = 117 }

// kernel: pointnet_segmenter_forward.11
= control target key start
LH: loop header
LB: loop body
LE: loop exit
PB: predicated region body
PF: predicated region fallthrough
CT: control target
= control target key end

     0   :  { %s1576_s13 = smov 0   ;;  %s1578_s14 = smov 0   ;;  %s1990_s0 = inlined_call_operand.vmem [shape: f32[2,128,3], index: 0, kind: input, shape index: {}]   ;;  %s1991_s1 = inlined_call_operand.vmem [shape: f32[3,32], index: 1, kind: input, shape index: {}]   ;;  %s1992_s2 = inlined_call_operand.vmem [shape: f32[1,32], index: 2, kind: input, shape index: {}]   ;;  %s1993_s3 = inlined_call_operand.vmem [shape: f32[1,32], index: 3, kind: input, shape index: {}]   ;;  %s1994_s4 = inlined_call_operand.vmem [shape: bf16[32,128], index: 4, kind: input, shape index: {}]   ;;  %s1995_s5 = inlined_call_operand.vmem [shape: f32[2,1,128], index: 5, kind: input, shape index: {}]   ;;  %s1996_s6 = inlined_call_operand.vmem [shape: f32[1,128], index: 6, kind: input, shape index: {}]   ;;  %s1997_s7 = inlined_call_operand.vmem [shape: f32[1,128], index: 7, kind: input, shape index: {}]   ;;  %s1998_s8 = inlined_call_operand.vmem [shape: bf16[128,64], index: 8, kind: input, shape index: {}]   ;;  %s1999_s9 = inlined_call_operand.vmem [shape: f32[2,1,64], index: 9, kind: output, shape index: {0}]   ;;  %s2000_s10 = inlined_call_operand.vmem [shape: f32[2,1,64], index: 10, kind: output, shape index: {1}]  }
   0x1   :  { %s1580_s15 = smov 0  }
   0x2 LB: > { %s40_s16 = sadd.s32 1, %s1510_s14  ;;  %p1341_p0 = scmp.ge.s32.totalorder %s1514_s15, 1  ;;  %s1514_s15 = sphi %s1580_s15, %s21_s15   ;;  %s1510_s14 = sphi %s1578_s14, %s2002_s14   ;;  %s1506_s13 = sphi %s1576_s13, %s2001_s13  }
   0x3   : > { %p42_p1 = scmp.ge.s32.totalorder %s40_s16, 2  ;;  %p357_p2 = scmp.lt.s32.totalorder %s1514_s15, 3 }
   0x5   : > { %s2004_s16 = smov (%p42_p1, %s40_s16), 0  ;;  %p358_p3 = pnand %p1341_p0, %p357_p2 }
   0x6   : > { %p408_p4 = scmp.lt.s32.totalorder (!%p358_p3), %s1506_s13, 1 }
   0x7   : > { %361 = sbr.rel (%p358_p3) target bundleno = 654 (0x28e), region = 56 }
   0xc   : > { %v1516_v0 = vmov 1   ;;  %v1517_v1 = vmov 0   ;;  %s2006_s13 = smov (!%p408_p4, %s1506_s13), 1  ;;  %v1518_v2 = vmov 2   ;;  %v1396_v18 = vld [vmem:[%s1994_s4 + $0x8] sm:$0xff]  ;;  %v1395_v19 = vld [vmem:[%s1994_s4] sm:$0xff] }
   0xd   : > { %1447 = vset.pattern.permute.xlu1 %v1516_v0  ;;  %1446 = vset.pattern.permute.xlu0 %v1517_v1  ;;  %s1394_s17 = sshll.u32 %s2006_s13, 7  ;;  %s420_s20 = scalar_lea.vmem %s1995_s5, %s2006_s13  ;;  %v448_v22 = vld [vmem:[%s1991_s1] sm:$0x7]  ;;  %vm824_vm0 = vcmask 261120   ;;  %vm1082_vm2 = vcmask 523264   ;;  %vm1079_vm3 = vcmask 516096  }
   0xe   : > { %1448 = vset.pattern.permute.xlu2 %v1518_v2  ;;  %s1607_s23 = scalar_lea.vmem %s1990_s0, %s1394_s17  ;;  %855 = vmatpush.bf16.msra.mxu0 %v1396_v18  ;;  %v1663_v23 = vperm.slane %v448_v22, 1  ;;  %v1665_v24 = vperm.slane %v448_v22, 0  ;;  %v1667_v25 = vperm.slane %v448_v22, 2  ;;  %v1677_v33 = vld [vmem:[%s1992_s2] ss:$0 sm:$0xff]  ;;  %s1905_s27 = scalar_lea.vmem %s1999_s9, %s2006_s13 }
   0xf   : > { %v432_v3 = vld [vmem:[%s1607_s23] sm:$0xff]  ;;  %v433_v4 = vld [vmem:[%s1607_s23 + $0x8] sm:$0xff]  ;;  %v434_v5 = vld [vmem:[%s1607_s23 + $0x10] sm:$0xff]  ;;  %1405 = vmatpush.bf16.msra.mxu3 %v1396_v18  ;;  %s1913_s30 = scalar_lea.vmem %s2000_s10, %s2006_s13 }
  0x10   : > { %547 = vperm.xlu1 %1447, %v432_v3   ;;  %451 = vperm.xlu0 %1446, %v432_v3   ;;  %v435_v6 = vld [vmem:[%s1607_s23 + $0x18] sm:$0xff]  ;;  %v436_v7 = vld [vmem:[%s1607_s23 + $0x20] sm:$0xff]  ;;  %v437_v8 = vld [vmem:[%s1607_s23 + $0x28] sm:$0xff] }
  0x11   : > { %644 = vperm.xlu2 %1448, %v432_v3   ;;  %v438_v9 = vld [vmem:[%s1607_s23 + $0x30] sm:$0xff]  ;;  %v439_v10 = vld [vmem:[%s1607_s23 + $0x38] sm:$0xff]  ;;  %v441_v11 = vld [vmem:[%s1607_s23 + $0x48] sm:$0xff] }
  0x12   : > { %v442_v12 = vld [vmem:[%s1607_s23 + $0x50] sm:$0xff]  ;;  %v440_v13 = vld [vmem:[%s1607_s23 + $0x40] sm:$0xff]  ;;  %v443_v14 = vld [vmem:[%s1607_s23 + $0x58] sm:$0xff]  ;;  %856 = vmatpush.bf16.msra.mxu0 %v1395_v19 }
  0x13   : > { %v444_v15 = vld [vmem:[%s1607_s23 + $0x60] sm:$0xff]  ;;  %v445_v16 = vld [vmem:[%s1607_s23 + $0x68] sm:$0xff]  ;;  %v1655_v20 = vld [vmem:[%s1607_s23 + $0x70] sm:$0xff]  ;;  %1406 = vmatpush.bf16.msra.mxu3 %v1395_v19 }
  0x14   : > { %v1687_v43 = vld [vmem:[%s1993_s3] ss:$0 sm:$0xff]  ;;  %v447_v53 = vld [vmem:[%s1607_s23 + $0x78] sm:$0xff] }
  0x18   : > { %551 = vperm.xlu1 %1447, %v433_v4   ;;  %456 = vperm.xlu0 %1446, %v433_v4  }
  0x19   : > { %648 = vperm.xlu2 %1448, %v433_v4  }
  0x20   : > { %1449 = vset.pattern.permute.xlu1 %v1517_v1  ;;  %461 = vperm.xlu0 %1446, %v434_v5  }
  0x21   : > { %466 = vperm.xlu1 %1449, %v435_v6   ;;  %1450 = vset.pattern.permute.xlu2 %v1516_v0 }
  0x22   : > { %555 = vperm.xlu2 %1450, %v434_v5  }
  0x28   : > { %1451 = vset.pattern.permute.xlu0 %v1516_v0 }
  0x29   : > { %1452 = vset.pattern.permute.xlu1 %v1518_v2  ;;  %559 = vperm.xlu0 %1451, %v435_v6  }
  0x2a   : > { %652 = vperm.xlu1 %1452, %v434_v5   ;;  %1453 = vset.pattern.permute.xlu2 %v1518_v2 }
  0x2b   : > { %656 = vperm.xlu2 %1453, %v435_v6  }
  0x31   : > { %563 = vperm.xlu0 %1451, %v436_v7  }
  0x32   : > { %1454 = vset.pattern.permute.xlu1 %v1517_v1 }
  0x33   : > { %471 = vperm.xlu1 %1454, %v436_v7   ;;  %1455 = vset.pattern.permute.xlu2 %v1517_v1 }
  0x34   : > { %476 = vperm.xlu2 %1455, %v437_v8  }
  0x39   : > { %1458 = vset.pattern.permute.xlu0 %v1518_v2 }
  0x3a   : > { %664 = vperm.xlu0 %1458, %v437_v8  }
  0x3b   : > { %1456 = vset.pattern.permute.xlu1 %v1516_v0 }
  0x3c   : > { %567 = vperm.xlu1 %1456, %v437_v8   ;;  %1457 = vset.pattern.permute.xlu2 %v1518_v2 }
  0x3d   : > { %660 = vperm.xlu2 %1457, %v436_v7  }
  0x42   : > { %668 = vperm.xlu0 %1458, %v438_v9  }
  0x44   : > { %1459 = vset.pattern.permute.xlu1 %v1517_v1 }
  0x45   : > { %481 = vperm.xlu1 %1459, %v438_v9   ;;  %1460 = vset.pattern.permute.xlu2 %v1517_v1 }
  0x46   : > { %486 = vperm.xlu2 %1460, %v439_v10  }
  0x4a   : > { %1465 = vset.pattern.permute.xlu0 %v1517_v1 }
  0x4b   : > { %496 = vperm.xlu0 %1465, %v441_v11  }
  0x4d   : > { %1461 = vset.pattern.permute.xlu1 %v1516_v0 }
  0x4e   : > { %571 = vperm.xlu1 %1461, %v438_v9   ;;  %1462 = vset.pattern.permute.xlu2 %v1516_v0 }
  0x4f   : > { %575 = vperm.xlu2 %1462, %v439_v10  }
  0x53   : > { %501 = vperm.xlu0 %1465, %v442_v12  }
  0x56   : > { %1463 = vset.pattern.permute.xlu1 %v1518_v2 }
  0x57   : > { %672 = vperm.xlu1 %1463, %v439_v10   ;;  %1464 = vset.pattern.permute.xlu2 %v1517_v1 }
  0x58   : > { %491 = vperm.xlu2 %1464, %v440_v13  }
  0x5b   : > { %1472 = vset.pattern.permute.xlu0 %v1516_v0 }
  0x5c   : > { %591 = vperm.xlu0 %1472, %v443_v14  }
  0x5f   : > { %1466 = vset.pattern.permute.xlu1 %v1516_v0 }
  0x60   : > { %579 = vperm.xlu1 %1466, %v440_v13   ;;  %1467 = vset.pattern.permute.xlu2 %v1516_v0 }
  0x61   : > { %583 = vperm.xlu2 %1467, %v441_v11  }
  0x64   : > { %595 = vperm.xlu0 %1472, %v444_v15  }
  0x68   : > { %1468 = vset.pattern.permute.xlu1 %v1518_v2 }
  0x69   : > { %676 = vperm.xlu1 %1468, %v440_v13   ;;  %1469 = vset.pattern.permute.xlu2 %v1518_v2 }
  0x6a   : > { %680 = vperm.xlu2 %1469, %v441_v11  }
  0x6b   : > { %v645_v17 = vpop.permute.xlu2 %644 }
  0x6c   : > { %1479 = vset.pattern.permute.xlu0 %v1518_v2  ;;  %v708_v31 = vmul.f32 %v1667_v25, %v645_v17 }
  0x6d   : > { %696 = vperm.xlu0 %1479, %v445_v16  }
  0x71   : > { %1470 = vset.pattern.permute.xlu1 %v1517_v1 }
  0x72   : > { %506 = vperm.xlu1 %1470, %v443_v14   ;;  %1471 = vset.pattern.permute.xlu2 %v1516_v0 }
  0x73   : > { %587 = vperm.xlu2 %1471, %v442_v12   ;;  %v649_v21 = vpop.permute.xlu2 %648 }
  0x74   : > { %v709_v41 = vmul.f32 %v1667_v25, %v649_v21 }
  0x75   : > { %700 = vperm.xlu0 %1479, %v1655_v20  }
  0x7a   : > { %1473 = vset.pattern.permute.xlu1 %v1518_v2 }
  0x7b   : > { %684 = vperm.xlu1 %1473, %v442_v12   ;;  %1474 = vset.pattern.permute.xlu2 %v1518_v2 }
  0x7c   : > { %688 = vperm.xlu2 %1474, %v443_v14   ;;  %v556_v26 = vpop.permute.xlu2 %555 }
  0x7d   : > { %v613_v54 = vmul.f32 %v1663_v23, %v556_v26 }
  0x82   : > { %v548_v27 = vpop.permute.xlu1 %547  ;;  %v452_v28 = vpop.permute.xlu0 %451 }
  0x83   : > { %v611_v29 = vmul.f32 %v1663_v23, %v548_v27  ;;  %v530_v30 = vmul.f32 %v1665_v24, %v452_v28  ;;  %1475 = vset.pattern.permute.xlu1 %v1517_v1 }
  0x84   : > { %511 = vperm.xlu1 %1475, %v444_v15   ;;  %1476 = vset.pattern.permute.xlu2 %v1517_v1 }
  0x85   : > { %v627_v32 = vadd.f32 %v611_v29, %v530_v30  ;;  %516 = vperm.xlu2 %1476, %v445_v16   ;;  %v657_v39 = vpop.permute.xlu2 %656 }
  0x86   : > { %v711_v60 = vmul.f32 %v1667_v25, %v657_v39 }
  0x87   : > { %v724_v34 = vadd.f32 %v708_v31, %v627_v32 }
  0x89   : > { %v744_v40 = vmul.f32 %v1677_v33, %v724_v34 }
  0x8a   : > { %v552_v35 = vpop.permute.xlu1 %551  ;;  %v457_v36 = vpop.permute.xlu0 %456 }
  0x8b   : > { %v612_v37 = vmul.f32 %v1663_v23, %v552_v35  ;;  %v531_v38 = vmul.f32 %v1665_v24, %v457_v36  ;;  %v764_v46 = vadd.f32 %v1687_v43, %v744_v40 }
  0x8c   : > { %1477 = vset.pattern.permute.xlu1 %v1516_v0 }
  0x8d   : > { %v628_v42 = vadd.f32 %v612_v37, %v531_v38  ;;  %599 = vperm.xlu1 %1477, %v445_v16   ;;  %1478 = vset.pattern.permute.xlu2 %v1518_v2  ;;  %v780_v50 = vmax.f32 %v764_v46, 0.0 }
  0x8e   : > { %692 = vperm.xlu2 %1478, %v444_v15   ;;  %v477_v52 = vpop.permute.xlu2 %476 }
  0x8f   : > { %v725_v44 = vadd.f32 %v709_v41, %v628_v42  ;;  %v535_v22 = vmul.f32 %v1665_v24, %v477_v52 }
  0x91   : > { %v745_v45 = vmul.f32 %v1677_v33, %v725_v44 }
  0x92   : > { %v462_v47 = vpop.permute.xlu0 %461 }
  0x93   : > { %v467_v48 = vpop.permute.xlu1 %466  ;;  %v765_v49 = vadd.f32 %v1687_v43, %v745_v45  ;;  %v532_v55 = vmul.f32 %v1665_v24, %v462_v47 }
  0x94   : > { %v533_v59 = vmul.f32 %v1665_v24, %v467_v48 }
  0x95   : > { %1480 = vset.pattern.permute.xlu1 %v1517_v1  ;;  %v781_v51 = vmax.f32 %v765_v49, 0.0  ;;  %v629_v57 = vadd.f32 %v613_v54, %v532_v55 }
  0x96   : > { %521 = vperm.xlu1 %1480, %v1655_v20   ;;  %1481 = vset.pattern.permute.xlu2 %v1517_v1 }
  0x97   : > { %v796_v56 = vpack.c.bf16 %v781_v51, %v780_v50  ;;  %526 = vperm.xlu2 %1481, %v447_v53   ;;  %v661_v4 = vpop.permute.xlu2 %660 }
  0x98   : > { %v712_v18 = vmul.f32 %v1667_v25, %v661_v4 }
  0x99   : > { %1352 = vmatmul.msk.bf16.vlgmr.msra.gmra.mxu0 %vm824_vm0, %v796_v56 }
  0x9b   : > { %v560_v58 = vpop.permute.xlu0 %559 }
  0x9c   : > { %v614_v61 = vmul.f32 %v1663_v23, %v560_v58  ;;  %v653_v62 = vpop.permute.xlu1 %652 }
  0x9d   : > { %v710_v63 = vmul.f32 %v1667_v25, %v653_v62 }
  0x9e   : > { %v630_v1 = vadd.f32 %v614_v61, %v533_v59  ;;  %1482 = vset.pattern.permute.xlu1 %v1516_v0 }
  0x9f   : > { %v726_v3 = vadd.f32 %v710_v63, %v629_v57  ;;  %603 = vperm.xlu1 %1482, %v1655_v20   ;;  %1483 = vset.pattern.permute.xlu2 %v1516_v0 }
  0xa0   : > { %v727_v5 = vadd.f32 %v711_v60, %v630_v1  ;;  %607 = vperm.xlu2 %1483, %v447_v53   ;;  %v487_v0 = vpop.permute.xlu2 %486 }
  0xa1   : > { %v746_v6 = vmul.f32 %v1677_v33, %v726_v3  ;;  %v537_v48 = vmul.f32 %v1665_v24, %v487_v0 }
  0xa2   : > { %v747_v7 = vmul.f32 %v1677_v33, %v727_v5 }
  0xa3   : > { %v564_v8 = vpop.permute.xlu0 %563  ;;  %v766_v9 = vadd.f32 %v1687_v43, %v746_v6 }
  0xa4   : > { %v767_v10 = vadd.f32 %v1687_v43, %v747_v7  ;;  %v615_v12 = vmul.f32 %v1663_v23, %v564_v8 }
  0xa5   : > { %v472_v11 = vpop.permute.xlu1 %471  ;;  %v782_v13 = vmax.f32 %v766_v9, 0.0 }
  0xa6   : > { %v534_v14 = vmul.f32 %v1665_v24, %v472_v11  ;;  %v783_v15 = vmax.f32 %v767_v10, 0.0 }
  0xa7   : > { %1484 = vset.pattern.permute.xlu1 %v1518_v2 }
  0xa8   : > { %704 = vperm.xlu1 %1484, %v447_v53   ;;  %v797_v16 = vpack.c.bf16 %v783_v15, %v782_v13  ;;  %v631_v17 = vadd.f32 %v615_v12, %v534_v14 }
  0xa9   : > { %v576_v29 = vpop.permute.xlu2 %575 }
  0xaa   : > { %1353 = vmatmul.msk.bf16.gmra.mxu0 %vm824_vm0, %v797_v16  ;;  %v728_v20 = vadd.f32 %v712_v18, %v631_v17  ;;  %v618_v49 = vmul.f32 %v1663_v23, %v576_v29 }
  0xac   : > { %v665_v19 = vpop.permute.xlu0 %664  ;;  %v748_v28 = vmul.f32 %v1677_v33, %v728_v20  ;;  %v634_v52 = vadd.f32 %v618_v49, %v537_v48  ;;  %v1401_v49 = vld [vmem:[%s1998_s8 + $0x20] sm:$0xff] }
  0xad   : > { %v713_v27 = vmul.f32 %v1667_v25, %v665_v19 }
  0xae   : > { %v568_v21 = vpop.permute.xlu1 %567  ;;  %v768_v32 = vadd.f32 %v1687_v43, %v748_v28 }
  0xaf   : > { %v616_v26 = vmul.f32 %v1663_v23, %v568_v21 }
  0xb0   : > { %v784_v36 = vmax.f32 %v768_v32, 0.0 }
  0xb1   : > { %v632_v2 = vadd.f32 %v616_v26, %v535_v22 }
  0xb2   : > { %v492_v39 = vpop.permute.xlu2 %491 }
  0xb3   : > { %v729_v30 = vadd.f32 %v713_v27, %v632_v2  ;;  %v538_v11 = vmul.f32 %v1665_v24, %v492_v39 }
  0xb4   : > { %v669_v40 = vpop.permute.xlu0 %668 }
  0xb5   : > { %v749_v31 = vmul.f32 %v1677_v33, %v729_v30  ;;  %v714_v45 = vmul.f32 %v1667_v25, %v669_v40 }
  0xb7   : > { %v482_v34 = vpop.permute.xlu1 %481  ;;  %v769_v35 = vadd.f32 %v1687_v43, %v749_v31  ;;  %v1404_v31 = vld [vmem:[%s1998_s8 + $0x38] sm:$0xff] }
  0xb8   : > { %v536_v42 = vmul.f32 %v1665_v24, %v482_v34  ;;  %1026 = vmatpush.bf16.msra.mxu1 %v1404_v31  ;;  %1407 = vmatpush.bf16.msra.mxu2 %v1404_v31 }
  0xb9   : > { %v785_v37 = vmax.f32 %v769_v35, 0.0 }
  0xbb   : > { %v798_v38 = vpack.c.bf16 %v785_v37, %v784_v36  ;;  %v584_v47 = vpop.permute.xlu2 %583  ;;  %v1403_v36 = vld [vmem:[%s1998_s8 + $0x30] sm:$0xff] }
  0xbc   : > { %v620_v58 = vmul.f32 %v1663_v23, %v584_v47  ;;  %1027 = vmatpush.bf16.msra.mxu1 %v1403_v36  ;;  %1408 = vmatpush.bf16.msra.mxu2 %v1403_v36 }
  0xbd   : > { %1354 = vmatmul.msk.bf16.gmra.mxu0 %vm824_vm0, %v798_v38  ;;  %v497_v56 = vpop.permute.xlu0 %496 }
  0xbe   : > { %v539_v59 = vmul.f32 %v1665_v24, %v497_v56 }
  0xc0   : > { %v572_v41 = vpop.permute.xlu1 %571  ;;  %v636_v1 = vadd.f32 %v620_v58, %v539_v59 }
  0xc1   : > { %v617_v44 = vmul.f32 %v1663_v23, %v572_v41 }
  0xc3   : > { %v633_v46 = vadd.f32 %v617_v44, %v536_v42  ;;  %v1402_v44 = vld [vmem:[%s1998_s8 + $0x28] sm:$0xff] }
  0xc4   : > { %v681_v61 = vpop.permute.xlu2 %680  ;;  %1028 = vmatpush.bf16.msra.mxu1 %v1402_v44  ;;  %1409 = vmatpush.bf16.msra.mxu2 %v1402_v44 }
  0xc5   : > { %v730_v50 = vadd.f32 %v714_v45, %v633_v46  ;;  %v717_v3 = vmul.f32 %v1667_v25, %v681_v61  ;;  %v502_v8 = vpop.permute.xlu0 %501 }
  0xc6   : > { %v540_v32 = vmul.f32 %v1665_v24, %v502_v8  ;;  %v1397_v8 = vld [vmem:[%s1998_s8] sm:$0xff] }
  0xc7   : > { %v750_v53 = vmul.f32 %v1677_v33, %v730_v50  ;;  %v733_v7 = vadd.f32 %v717_v3, %v636_v1 }
  0xc8   : > { %1029 = vmatpush.bf16.msra.mxu1 %v1401_v49  ;;  %1410 = vmatpush.bf16.msra.mxu2 %v1401_v49 }
  0xc9   : > { %v673_v51 = vpop.permute.xlu1 %672  ;;  %v770_v60 = vadd.f32 %v1687_v43, %v750_v53  ;;  %v753_v12 = vmul.f32 %v1677_v33, %v733_v7 }
  0xca   : > { %v715_v54 = vmul.f32 %v1667_v25, %v673_v51 }
  0xcb   : > { %v786_v4 = vmax.f32 %v770_v60, 0.0  ;;  %v773_v16 = vadd.f32 %v1687_v43, %v753_v12  ;;  %v1399_v60 = vld [vmem:[%s1998_s8 + $0x10] sm:$0xff] }
  0xcc   : > { %v731_v55 = vadd.f32 %v715_v54, %v634_v52 }
  0xcd   : > { %v588_v10 = vpop.permute.xlu2 %587  ;;  %v789_v20 = vmax.f32 %v773_v16, 0.0 }
  0xce   : > { %v751_v57 = vmul.f32 %v1677_v33, %v731_v55  ;;  %v592_v18 = vpop.permute.xlu0 %591  ;;  %v621_v34 = vmul.f32 %v1663_v23, %v588_v10 }
  0xcf   : > { %v622_v21 = vmul.f32 %v1663_v23, %v592_v18 }
  0xd0   : > { %v771_v62 = vadd.f32 %v1687_v43, %v751_v57  ;;  %v637_v39 = vadd.f32 %v621_v34, %v540_v32  ;;  %v1400_v57 = vld [vmem:[%s1998_s8 + $0x18] sm:$0xff]  ;;  %v1808_v32 = vld [vmem:[%s1996_s6] ss:$0 sm:$0xff] }
  0xd1   : > { %1030 = vmatpush.bf16.msra.mxu1 %v1400_v57  ;;  %1411 = vmatpush.bf16.msra.mxu2 %v1400_v57 }
  0xd2   : > { %v580_v63 = vpop.permute.xlu1 %579  ;;  %v787_v5 = vmax.f32 %v771_v62, 0.0 }
  0xd3   : > { %v619_v9 = vmul.f32 %v1663_v23, %v580_v63 }
  0xd4   : > { %v799_v6 = vpack.c.bf16 %v787_v5, %v786_v4  ;;  %v1398_v5 = vld [vmem:[%s1998_s8 + $0x8] sm:$0xff] }
  0xd5   : > { %v635_v14 = vadd.f32 %v619_v9, %v538_v11  ;;  %1031 = vmatpush.bf16.msra.mxu1 %v1399_v60  ;;  %1412 = vmatpush.bf16.msra.mxu2 %v1399_v60 }
  0xd6   : > { %1355 = vmatmul.msk.bf16.gmra.mxu0 %vm824_vm0, %v799_v6  ;;  %v689_v22 = vpop.permute.xlu2 %688  ;;  %v596_v47 = vpop.permute.xlu0 %595 }
  0xd7   : > { %v719_v2 = vmul.f32 %v1667_v25, %v689_v22  ;;  %v623_v51 = vmul.f32 %v1663_v23, %v596_v47 }
  0xd9   : > { %1032 = vmatpush.bf16.msra.mxu1 %v1398_v5  ;;  %1413 = vmatpush.bf16.msra.mxu2 %v1398_v5 }
  0xdb   : > { %v677_v13 = vpop.permute.xlu1 %676 }
  0xdc   : > { %v716_v15 = vmul.f32 %v1667_v25, %v677_v13 }
  0xdd   : > { %1033 = vmatpush.bf16.msra.mxu1 %v1397_v8  ;;  %1414 = vmatpush.bf16.msra.mxu2 %v1397_v8 }
  0xde   : > { %v732_v0 = vadd.f32 %v716_v15, %v635_v14 }
  0xdf   : > { %v517_v38 = vpop.permute.xlu2 %516  ;;  %v697_v61 = vpop.permute.xlu0 %696 }
  0xe0   : > { %v752_v17 = vmul.f32 %v1677_v33, %v732_v0  ;;  %v543_v1 = vmul.f32 %v1665_v24, %v517_v38  ;;  %v721_v4 = vmul.f32 %v1667_v25, %v697_v61 }
  0xe2   : > { %v772_v19 = vadd.f32 %v1687_v43, %v752_v17 }
  0xe4   : > { %v507_v26 = vpop.permute.xlu1 %506  ;;  %v788_v27 = vmax.f32 %v772_v19, 0.0 }
  0xe5   : > { %v541_v28 = vmul.f32 %v1665_v24, %v507_v26  ;;  %v1799_v26 = vld [vmem:[%s420_s20] ss:$0 sm:$0xff] }
  0xe6   : > { %v800_v29 = vpack.c.bf16 %v789_v20, %v788_v27 }
  0xe7   : > { %v638_v30 = vadd.f32 %v622_v21, %v541_v28  ;;  %v701_v19 = vpop.permute.xlu0 %700 }
  0xe8   : > { %1356 = vmatmul.msk.bf16.gmra.mxu0 %vm824_vm0, %v800_v29  ;;  %v693_v55 = vpop.permute.xlu2 %692  ;;  %v722_v27 = vmul.f32 %v1667_v25, %v701_v19 }
  0xe9   : > { %v735_v35 = vadd.f32 %v719_v2, %v638_v30  ;;  %v720_v59 = vmul.f32 %v1667_v25, %v693_v55 }
  0xeb   : > { %v755_v40 = vmul.f32 %v1677_v33, %v735_v35 }
  0xed   : > { %v685_v37 = vpop.permute.xlu1 %684  ;;  %v775_v46 = vadd.f32 %v1687_v43, %v755_v40 }
  0xee   : > { %v718_v41 = vmul.f32 %v1667_v25, %v685_v37 }
  0xef   : > { %v791_v53 = vmax.f32 %v775_v46, 0.0 }
  0xf0   : > { %v734_v42 = vadd.f32 %v718_v41, %v637_v39 }
  0xf1   : > { %v527_v14 = vpop.permute.xlu2 %526 }
  0xf2   : > { %v754_v45 = vmul.f32 %v1677_v33, %v734_v42  ;;  %v545_v2 = vmul.f32 %v1665_v24, %v527_v14 }
  0xf4   : > { %v774_v48 = vadd.f32 %v1687_v43, %v754_v45 }
  0xf6   : > { %v512_v50 = vpop.permute.xlu1 %511  ;;  %v790_v52 = vmax.f32 %v774_v48, 0.0 }
  0xf7   : > { %v542_v54 = vmul.f32 %v1665_v24, %v512_v50 }
  0xf8   : > { %v801_v56 = vpack.c.bf16 %v791_v53, %v790_v52 }
  0xf9   : > { %v639_v58 = vadd.f32 %v623_v51, %v542_v54 }
  0xfa   : > { %1357 = vmatmul.msk.bf16.vlgmr.msra.gmra.mxu3 %vm824_vm0, %v801_v56  ;;  %v608_v21 = vpop.permute.xlu2 %607 }
  0xfb   : > { %v736_v62 = vadd.f32 %v720_v59, %v639_v58  ;;  %v626_v29 = vmul.f32 %v1663_v23, %v608_v21 }
  0xfd   : > { %v756_v6 = vmul.f32 %v1677_v33, %v736_v62  ;;  %v642_v35 = vadd.f32 %v626_v29, %v545_v2 }
  0xff   : > { %v600_v63 = vpop.permute.xlu1 %599  ;;  %v776_v11 = vadd.f32 %v1687_v43, %v756_v6 }
 0x100   : > { %v624_v3 = vmul.f32 %v1663_v23, %v600_v63 }
 0x101   : > { %v792_v15 = vmax.f32 %v776_v11, 0.0 }
 0x102   : > { %v640_v7 = vadd.f32 %v624_v3, %v543_v1 }
 0x104   : > { %v737_v9 = vadd.f32 %v721_v4, %v640_v7 }
 0x106   : > { %v757_v10 = vmul.f32 %v1677_v33, %v737_v9 }
 0x108   : > { %v522_v12 = vpop.permute.xlu1 %521  ;;  %v777_v13 = vadd.f32 %v1687_v43, %v757_v10 }
 0x109   : > { %v544_v18 = vmul.f32 %v1665_v24, %v522_v12 }
 0x10a   : > { %v793_v0 = vmax.f32 %v777_v13, 0.0 }
 0x10c   : > { %v802_v16 = vpack.c.bf16 %v793_v0, %v792_v15 }
 0x10e   : > { %1358 = vmatmul.msk.bf16.gmra.mxu3 %vm824_vm0, %v802_v16 }
 0x111   : > { %v604_v17 = vpop.permute.xlu1 %603 }
 0x112   : > { %v625_v20 = vmul.f32 %v1663_v23, %v604_v17  ;;  %v1816_v23 = vld [vmem:[%s1997_s7] ss:$0 sm:$0xff] }
 0x114   : > { %v641_v22 = vadd.f32 %v625_v20, %v544_v18 }
 0x116   : > { %v858_v28 = vpop.f32.mrf.mxu0  ;;  %v738_v30 = vadd.f32 %v722_v27, %v641_v22 }
 0x117   : > { %v859_v31 = vadd.f32 %v1799_v26, %v858_v28 }
 0x118   : > { %v758_v36 = vmul.f32 %v1677_v33, %v738_v30 }
 0x119   : > { %v902_v38 = vmul.f32 %v1808_v32, %v859_v31 }
 0x11a   : > { %v705_v34 = vpop.permute.xlu1 %704  ;;  %v778_v42 = vadd.f32 %v1687_v43, %v758_v36 }
 0x11b   : > { %v723_v37 = vmul.f32 %v1667_v25, %v705_v34  ;;  %v922_v25 = vadd.f32 %v1816_v23, %v902_v38 }
 0x11c   : > { %v794_v46 = vmax.f32 %v778_v42, 0.0 }
 0x11d   : > { %v739_v39 = vadd.f32 %v723_v37, %v642_v35  ;;  %v938_v50 = vmax.f32 %v922_v25, 0.0 }
 0x11e   : > { %v860_v24 = vpop.f32.mrf.mxu0 }
 0x11f   : > { %v759_v40 = vmul.f32 %v1677_v33, %v739_v39  ;;  %v861_v41 = vadd.f32 %v1799_v26, %v860_v24 }
 0x121   : > { %v903_v44 = vmul.f32 %v1808_v32, %v861_v41  ;;  %v779_v45 = vadd.f32 %v1687_v43, %v759_v40 }
 0x123   : > { %v795_v47 = vmax.f32 %v779_v45, 0.0  ;;  %v923_v48 = vadd.f32 %v1816_v23, %v903_v44 }
 0x125   : > { %v803_v49 = vpack.c.bf16 %v795_v47, %v794_v46  ;;  %v939_v51 = vmax.f32 %v923_v48, 0.0 }
 0x127   : > { %v863_v52 = vpop.f32.mrf.mxu0  ;;  %1359 = vmatmul.msk.bf16.gmra.mxu3 %vm824_vm0, %v803_v49  ;;  %v954_v33 = vpack.c.bf16 %v939_v51, %v938_v50 }
 0x128   : > { %v864_v53 = vadd.f32 %v1799_v26, %v863_v52 }
 0x129   : > { %1034 = vmatmul.bf16.vlgmr.msra.gmra.mxu1 %v954_v33 }
 0x12a   : > { %v904_v54 = vmul.f32 %v1808_v32, %v864_v53 }
 0x12c   : > { %v924_v57 = vadd.f32 %v1816_v23, %v904_v54 }
 0x12e   : > { %v940_v59 = vmax.f32 %v924_v57, 0.0 }
 0x12f   : > { %v865_v55 = vpop.f32.mrf.mxu0 }
 0x130   : > { %v866_v43 = vadd.f32 %v1799_v26, %v865_v55 }
 0x132   : > { %v905_v56 = vmul.f32 %v1808_v32, %v866_v43 }
 0x134   : > { %v925_v58 = vadd.f32 %v1816_v23, %v905_v56 }
 0x136   : > { %v941_v60 = vmax.f32 %v925_v58, 0.0 }
 0x138   : > { %v955_v61 = vpack.c.bf16 %v941_v60, %v940_v59 }
 0x13a   : > { %v868_v62 = vpop.f32.mrf.mxu0  ;;  %1039 = vmatmul.bf16.gmra.mxu1 %v955_v61 }
 0x13b   : > { %v869_v63 = vadd.f32 %v1799_v26, %v868_v62 }
 0x13d   : > { %v906_v1 = vmul.f32 %v1808_v32, %v869_v63 }
 0x13f   : > { %v926_v6 = vadd.f32 %v1816_v23, %v906_v1 }
 0x141   : > { %v942_v8 = vmax.f32 %v926_v6, 0.0  ;;  %v1519_v6 = vmov 128.0  }
 0x142   : > { %v870_v3 = vpop.f32.mrf.mxu0  ;;  %1490 = vrcp.f32 %v1519_v6 }
 0x143   : > { %v871_v4 = vadd.f32 %v1799_v26, %v870_v3 }
 0x145   : > { %v907_v5 = vmul.f32 %v1808_v32, %v871_v4 }
 0x147   : > { %v927_v7 = vadd.f32 %v1816_v23, %v907_v5 }
 0x149   : > { %v943_v9 = vmax.f32 %v927_v7, 0.0 }
 0x14b   : > { %v956_v10 = vpack.c.bf16 %v943_v9, %v942_v8  ;;  %v1491_v8 = vpop.eup %1490 }
 0x14c   : > { %v1121_v9 = vmul.f32 128.0, %v1491_v8  ;;  %vm1125_vm1 = vweird.f32 %v1491_v8 }
 0x14d   : > { %1044 = vmatmul.bf16.gmra.mxu1 %v956_v10 }
 0x14e   : > { %v1122_v10 = vsub.f32 1.0, %v1121_v9 }
 0x153   : > { %v873_v11 = vpop.f32.mrf.mxu0 }
 0x154   : > { %v874_v12 = vadd.f32 %v1799_v26, %v873_v11 }
 0x156   : > { %v908_v13 = vmul.f32 %v1808_v32, %v874_v12 }
 0x158   : > { %v928_v16 = vadd.f32 %v1816_v23, %v908_v13 }
 0x15a   : > { %v944_v18 = vmax.f32 %v928_v16, 0.0 }
 0x15b   : > { %v875_v14 = vpop.f32.mrf.mxu0 }
 0x15c   : > { %v876_v15 = vadd.f32 %v1799_v26, %v875_v14 }
 0x15e   : > { %v909_v0 = vmul.f32 %v1808_v32, %v876_v15 }
 0x160   : > { %v929_v17 = vadd.f32 %v1816_v23, %v909_v0 }
 0x162   : > { %v945_v19 = vmax.f32 %v929_v17, 0.0 }
 0x164   : > { %v957_v20 = vpack.c.bf16 %v945_v19, %v944_v18 }
 0x165   : > { %v878_v21 = vpop.f32.mrf.mxu0 }
 0x166   : > { %1049 = vmatmul.bf16.gmra.mxu1 %v957_v20  ;;  %v879_v22 = vadd.f32 %v1799_v26, %v878_v21 }
 0x168   : > { %v910_v27 = vmul.f32 %v1808_v32, %v879_v22 }
 0x16a   : > { %v930_v30 = vadd.f32 %v1816_v23, %v910_v27 }
 0x16c   : > { %v946_v34 = vmax.f32 %v930_v30, 0.0 }
 0x16d   : > { %v880_v28 = vpop.f32.mrf.mxu0 }
 0x16e   : > { %v881_v2 = vadd.f32 %v1799_v26, %v880_v28 }
 0x170   : > { %v911_v29 = vmul.f32 %v1808_v32, %v881_v2 }
 0x172   : > { %v931_v31 = vadd.f32 %v1816_v23, %v911_v29 }
 0x174   : > { %v947_v35 = vmax.f32 %v931_v31, 0.0 }
 0x176   : > { %v958_v36 = vpack.c.bf16 %v947_v35, %v946_v34 }
 0x178   : > { %1054 = vmatmul.bf16.vlgmr.msra.gmra.mxu2 %v958_v36 }
 0x17d   : > { %v883_v37 = vpop.f32.mrf.mxu3 }
 0x17e   : > { %v884_v38 = vadd.f32 %v1799_v26, %v883_v37 }
 0x180   : > { %v912_v39 = vmul.f32 %v1808_v32, %v884_v38 }
 0x182   : > { %v932_v42 = vadd.f32 %v1816_v23, %v912_v39 }
 0x184   : > { %v948_v45 = vmax.f32 %v932_v42, 0.0  ;;  %v1520_v42 = vmov 0.0  }
 0x185   : > { %v885_v24 = vpop.f32.mrf.mxu3  ;;  %1080 = vst.msk [vmem:[%s1905_s27] sm:$0x1] %vm1079_vm3, %v1520_v42 }
 0x186   : > { %v886_v40 = vadd.f32 %v1799_v26, %v885_v24  ;;  %1081 = vst.msk [vmem:[%s1913_s30] sm:$0x1] %vm1079_vm3, %v1520_v42 }
 0x188   : > { %v913_v41 = vmul.f32 %v1808_v32, %v886_v40 }
 0x18a   : > { %v933_v44 = vadd.f32 %v1816_v23, %v913_v41 }
 0x18c   : > { %v949_v25 = vmax.f32 %v933_v44, 0.0 }
 0x18e   : > { %v959_v46 = vpack.c.bf16 %v949_v25, %v948_v45 }
 0x190   : > { %1059 = vmatmul.bf16.gmra.mxu2 %v959_v46 }
 0x191   : > { %v888_v47 = vpop.f32.mrf.mxu3 }
 0x192   : > { %v889_v48 = vadd.f32 %v1799_v26, %v888_v47 }
 0x194   : > { %v914_v49 = vmul.f32 %v1808_v32, %v889_v48 }
 0x196   : > { %v934_v33 = vadd.f32 %v1816_v23, %v914_v49 }
 0x198   : > { %v950_v54 = vmax.f32 %v934_v33, 0.0 }
 0x199   : > { %v890_v50 = vpop.f32.mrf.mxu3 }
 0x19a   : > { %v891_v51 = vadd.f32 %v1799_v26, %v890_v50 }
 0x19c   : > { %v915_v52 = vmul.f32 %v1808_v32, %v891_v51 }
 0x19e   : > { %v935_v53 = vadd.f32 %v1816_v23, %v915_v52 }
 0x1a0   : > { %v951_v55 = vmax.f32 %v935_v53, 0.0 }
 0x1a2   : > { %v960_v43 = vpack.c.bf16 %v951_v55, %v950_v54 }
 0x1a4   : > { %1064 = vmatmul.bf16.gmra.mxu2 %v960_v43 }
 0x1a6   : > { %v1868_v5 = vpop.f32.mrf.mxu1 }
 0x1a7   : > { %v1083_v20 = vsel %vm1082_vm2, %v1868_v5, 0.0 }
 0x1aa   : > { %v893_v56 = vpop.f32.mrf.mxu3 }
 0x1ab   : > { %v894_v57 = vadd.f32 %v1799_v26, %v893_v56 }
 0x1ad   : > { %v916_v58 = vmul.f32 %v1808_v32, %v894_v57 }
 0x1ae   : > { %v1870_v7 = vpop.f32.mrf.mxu1 }
 0x1af   : > { %v936_v62 = vadd.f32 %v1816_v23, %v916_v58  ;;  %v1084_v19 = vsel %vm1082_vm2, %v1870_v7, 0.0 }
 0x1b0   : > { %v1085_v22 = vadd.f32 %v1084_v19, %v1083_v20 }
 0x1b1   : > { %v952_v1 = vmax.f32 %v936_v62, 0.0 }
 0x1b2   : > { %v895_v59 = vpop.f32.mrf.mxu3 }
 0x1b3   : > { %v896_v60 = vadd.f32 %v1799_v26, %v895_v59  ;;  %v1123_v26 = vmul.f32 %v1491_v8, %v1122_v10 }
 0x1b5   : > { %v917_v61 = vmul.f32 %v1808_v32, %v896_v60  ;;  %v1124_v11 = vadd.f32 %v1491_v8, %v1123_v26 }
 0x1b7   : > { %v937_v63 = vadd.f32 %v1816_v23, %v917_v61  ;;  %v1872_v32 = vpop.f32.mrf.mxu1  ;;  %v1126_v12 = vsel %vm1125_vm1, %v1491_v8, %v1124_v11 }
 0x1b8   : > { %1415 = vpush %v1126_v12  ;;  %v1086_v21 = vsel %vm1082_vm2, %v1872_v32, 0.0 }
 0x1b9   : > { %v953_v3 = vmax.f32 %v937_v63, 0.0  ;;  %v1087_v2 = vadd.f32 %v1086_v21, %v1085_v22  ;;  %v1200_v21 = vld [vmem:[%s1905_s27] sm:$0x1] }
 0x1bb   : > { %v961_v4 = vpack.c.bf16 %v953_v3, %v952_v1 }
 0x1bd   : > { %1069 = vmatmul.bf16.gmra.mxu2 %v961_v4 }
 0x1bf   : > { %v1042_v13 = vpop.f32.mrf.mxu1 }
 0x1c0   : > { %v1088_v28 = vsel %vm1082_vm2, %v1042_v13, 0.0 }
 0x1c1   : > { %v1089_v30 = vadd.f32 %v1088_v28, %v1087_v2 }
 0x1ca   : > { %v1045_v15 = vpop.f32.mrf.mxu1 }
 0x1cb   : > { %v1090_v29 = vsel %vm1082_vm2, %v1045_v15, 0.0 }
 0x1cc   : > { %v1091_v34 = vadd.f32 %v1090_v29, %v1089_v30 }
 0x1d2   : > { %v1880_v16 = vpop.f32.mrf.mxu1 }
 0x1d3   : > { %v1092_v31 = vsel %vm1082_vm2, %v1880_v16, 0.0 }
 0x1d4   : > { %v1093_v37 = vadd.f32 %v1092_v31, %v1091_v34 }
 0x1e3   : > { %v1884_v18 = vpop.f32.mrf.mxu1 }
 0x1e4   : > { %v1094_v36 = vsel %vm1082_vm2, %v1884_v18, 0.0 }
 0x1e5   : > { %v1095_v39 = vadd.f32 %v1094_v36, %v1093_v37 }
 0x1e9   : > { %s1942_s13 = spop %1415 }
 0x1ea   : > { %s1218_s11 = smul.f32 128.0, %s1942_s13 }
 0x1eb   : > { %v1052_v35 = vpop.f32.mrf.mxu1 }
 0x1ec   : > { %v1096_v38 = vsel %vm1082_vm2, %v1052_v35, 0.0  ;;  %v1219_v2 = vstv %s1218_s11  ;;  %s1226_s12 = smul.f32 0.0, %s1218_s11 }
 0x1ed   : > { %v1097_v41 = vadd.f32 %v1096_v38, %v1095_v39 }
 0x1fb   : > { %v1874_v23 = vpop.f32.mrf.mxu2 }
 0x1fc   : > { %v1098_v40 = vsel %vm1082_vm2, %v1874_v23, 0.0 }
 0x1fd   : > { %v1099_v45 = vadd.f32 %v1098_v40, %v1097_v41 }
 0x203   : > { %v1876_v14 = vpop.f32.mrf.mxu2 }
 0x204   : > { %v1100_v44 = vsel %vm1082_vm2, %v1876_v14, 0.0 }
 0x205   : > { %v1101_v46 = vadd.f32 %v1100_v44, %v1099_v45 }
 0x213   : > { %v1878_v0 = vpop.f32.mrf.mxu2 }
 0x214   : > { %v1102_v25 = vsel %vm1082_vm2, %v1878_v0, 0.0 }
 0x215   : > { %v1103_v48 = vadd.f32 %v1102_v25, %v1101_v46 }
 0x21b   : > { %v1882_v17 = vpop.f32.mrf.mxu2 }
 0x21c   : > { %v1104_v47 = vsel %vm1082_vm2, %v1882_v17, 0.0 }
 0x21d   : > { %v1105_v51 = vadd.f32 %v1104_v47, %v1103_v48 }
 0x227   : > { %v1892_v27 = vpop.f32.mrf.mxu2 }
 0x228   : > { %v1106_v50 = vsel %vm1082_vm2, %v1892_v27, 0.0 }
 0x229   : > { %v1107_v33 = vadd.f32 %v1106_v50, %v1105_v51 }
 0x22f   : > { %v1907_v24 = vpop.f32.mrf.mxu2 }
 0x230   : > { %v1108_v52 = vsel %vm1082_vm2, %v1907_v24, 0.0 }
 0x231   : > { %v1109_v54 = vadd.f32 %v1108_v52, %v1107_v33 }
 0x240   : > { %v1927_v49 = vpop.f32.mrf.mxu2 }
 0x241   : > { %v1110_v53 = vsel %vm1082_vm2, %v1927_v49, 0.0 }
 0x242   : > { %v1111_v55 = vadd.f32 %v1110_v53, %v1109_v54 }
 0x248   : > { %v1935_v43 = vpop.f32.mrf.mxu2 }
 0x249   : > { %v1112_v56 = vsel %vm1082_vm2, %v1935_v43, 0.0 }
 0x24a   : > { %v1113_v57 = vadd.f32 %v1112_v56, %v1111_v55 }
 0x24c   : > { %v1114_v58 = vrot.slane %v1113_v57, 4 }
 0x24e   : > { %v1115_v59 = vadd.f32 %v1114_v58, %v1113_v57 }
 0x250   : > { %v1116_v60 = vrot.slane %v1115_v59, 2 }
 0x252   : > { %v1117_v61 = vadd.f32 %v1116_v60, %v1115_v59 }
 0x254   : > { %v1118_v62 = vrot.slane %v1117_v61, 1 }
 0x256   : > { %v1119_v63 = vadd.f32 %v1118_v62, %v1117_v61 }
 0x258   : > { %v1127_v1 = vmul.f32 %v1126_v12, %v1119_v63 }
 0x25a   : > { %v1128_v3 = vsub.f32 %v1868_v5, %v1127_v1  ;;  %v1129_v4 = vsub.f32 %v1870_v7, %v1127_v1  ;;  %v1130_v6 = vsub.f32 %v1872_v32, %v1127_v1  ;;  %v1131_v8 = vsub.f32 %v1042_v13, %v1127_v1 }
 0x25b   : > { %v1132_v26 = vsub.f32 %v1045_v15, %v1127_v1  ;;  %v1133_v19 = vsub.f32 %v1880_v16, %v1127_v1  ;;  %v1134_v32 = vsub.f32 %v1884_v18, %v1127_v1  ;;  %v1135_v15 = vsub.f32 %v1052_v35, %v1127_v1 }
 0x25c   : > { %v1144_v9 = vmul.f32 %v1128_v3, %v1128_v3  ;;  %v1145_v10 = vmul.f32 %v1129_v4, %v1129_v4  ;;  %v1146_v11 = vmul.f32 %v1130_v6, %v1130_v6  ;;  %v1147_v12 = vmul.f32 %v1131_v8, %v1131_v8 }
 0x25d   : > { %v1148_v13 = vmul.f32 %v1132_v26, %v1132_v26  ;;  %v1149_v29 = vmul.f32 %v1133_v19, %v1133_v19  ;;  %v1201_v16 = vsub.f32 %v1127_v1, %v1200_v21  ;;  %v1136_v34 = vsub.f32 %v1874_v23, %v1127_v1 }
 0x25e   : > { %v1160_v20 = vsel %vm1082_vm2, %v1144_v9, 0.0  ;;  %v1161_v5 = vsel %vm1082_vm2, %v1145_v10, 0.0  ;;  %v1163_v22 = vsel %vm1082_vm2, %v1146_v11, 0.0  ;;  %v1165_v30 = vsel %vm1082_vm2, %v1147_v12, 0.0 }
 0x25f   : > { %v1162_v7 = vadd.f32 %v1161_v5, %v1160_v20  ;;  %v1150_v36 = vmul.f32 %v1134_v32, %v1134_v32  ;;  %v1167_v37 = vsel %vm1082_vm2, %v1148_v13, 0.0  ;;  %v1220_v38 = vmul.f32 %v1219_v2, %v1201_v16 }
 0x260   : > { %v1137_v39 = vsub.f32 %v1876_v14, %v1127_v1  ;;  %v1151_v40 = vmul.f32 %v1135_v15, %v1135_v15  ;;  %v1169_v41 = vsel %vm1082_vm2, %v1149_v29, 0.0  ;;  %v1138_v44 = vsub.f32 %v1878_v0, %v1127_v1 }
 0x261   : > { %v1164_v28 = vadd.f32 %v1163_v22, %v1162_v7  ;;  %v1221_v42 = vadd.f32 %v1220_v38, %v1200_v21  ;;  %v1152_v45 = vmul.f32 %v1136_v34, %v1136_v34  ;;  %v1171_v25 = vsel %vm1082_vm2, %v1150_v36, 0.0  ;;  %v1224_v21 = vld [vmem:[%s1913_s30] sm:$0x1] }
 0x262   : > { %v1139_v46 = vsub.f32 %v1882_v17, %v1127_v1  ;;  %v1153_v47 = vmul.f32 %v1137_v39, %v1137_v39  ;;  %v1173_v48 = vsel %vm1082_vm2, %v1151_v40, 0.0  ;;  %v1140_v14 = vsub.f32 %v1892_v27, %v1127_v1 }
 0x263   : > { %v1166_v31 = vadd.f32 %v1165_v30, %v1164_v28  ;;  %1223 = vst.msk [vmem:[%s1905_s27] sm:$0x1] %vm1079_vm3, %v1221_v42  ;;  %v1154_v51 = vmul.f32 %v1138_v44, %v1138_v44  ;;  %v1175_v52 = vsel %vm1082_vm2, %v1152_v45, 0.0  ;;  %v1141_v0 = vsub.f32 %v1907_v24, %v1127_v1 }
 0x264   : > { %v1155_v53 = vmul.f32 %v1139_v46, %v1139_v46  ;;  %v1177_v54 = vsel %vm1082_vm2, %v1153_v47, 0.0  ;;  %v1142_v56 = vsub.f32 %v1927_v49, %v1127_v1  ;;  %v1156_v57 = vmul.f32 %v1140_v14, %v1140_v14 }
 0x265   : > { %v1168_v18 = vadd.f32 %v1167_v37, %v1166_v31  ;;  %v1179_v17 = vsel %vm1082_vm2, %v1154_v51, 0.0  ;;  %v1143_v59 = vsub.f32 %v1935_v43, %v1127_v1  ;;  %v1157_v27 = vmul.f32 %v1141_v0, %v1141_v0 }
 0x266   : > { %v1181_v60 = vsel %vm1082_vm2, %v1155_v53, 0.0  ;;  %v1158_v62 = vmul.f32 %v1142_v56, %v1142_v56  ;;  %v1183_v24 = vsel %vm1082_vm2, %v1156_v57, 0.0  ;;  %v1225_v19 = vmul.f32 %v1201_v16, %v1201_v16 }
 0x267   : > { %v1170_v35 = vadd.f32 %v1169_v41, %v1168_v18  ;;  %v1159_v3 = vmul.f32 %v1143_v59, %v1143_v59  ;;  %v1185_v4 = vsel %vm1082_vm2, %v1157_v27, 0.0  ;;  %v1227_v12 = vstv %s1226_s12 }
 0x268   : > { %v1187_v6 = vsel %vm1082_vm2, %v1158_v62, 0.0  ;;  %v1228_v7 = vmul.f32 %v1227_v12, %v1225_v19 }
 0x269   : > { %v1172_v23 = vadd.f32 %v1171_v25, %v1170_v35  ;;  %v1189_v43 = vsel %vm1082_vm2, %v1159_v3, 0.0 }
 0x26b   : > { %v1174_v50 = vadd.f32 %v1173_v48, %v1172_v23 }
 0x26d   : > { %v1176_v33 = vadd.f32 %v1175_v52, %v1174_v50 }
 0x26f   : > { %v1178_v55 = vadd.f32 %v1177_v54, %v1176_v33 }
 0x271   : > { %v1180_v58 = vadd.f32 %v1179_v17, %v1178_v55 }
 0x273   : > { %v1182_v61 = vadd.f32 %v1181_v60, %v1180_v58 }
 0x275   : > { %v1184_v63 = vadd.f32 %v1183_v24, %v1182_v61 }
 0x277   : > { %v1186_v49 = vadd.f32 %v1185_v4, %v1184_v63 }
 0x279   : > { %v1188_v8 = vadd.f32 %v1187_v6, %v1186_v49 }
 0x27b   : > { %v1190_v1 = vadd.f32 %v1189_v43, %v1188_v8 }
 0x27d   : > { %v1191_v9 = vrot.slane %v1190_v1, 4 }
 0x27f   : > { %v1192_v10 = vadd.f32 %v1191_v9, %v1190_v1 }
 0x281   : > { %v1193_v26 = vrot.slane %v1192_v10, 2 }
 0x283   : > { %v1194_v11 = vadd.f32 %v1193_v26, %v1192_v10 }
 0x285   : > { %v1195_v20 = vrot.slane %v1194_v11, 1 }
 0x287   : > { %v1196_v5 = vadd.f32 %v1195_v20, %v1194_v11 }
 0x289   : > { %v1229_v32 = vadd.f32 %v1228_v7, %v1196_v5 }
 0x28b   : > { %v1230_v13 = vadd.f32 %v1229_v32, %v1224_v21 }
 0x28d   : > { %1231 = vst.msk [vmem:[%s1913_s30] sm:$0x1] %vm1079_vm3, %v1230_v13 }
 0x28e PF: > { %s21_s15 = sadd.s32 1, %s1514_s15   ;;  %s2001_s13 = smov %s1510_s14 }
 0x28f   : > { %p18_p5 = scmp.ge.s32.totalorder %s21_s15, 4   ;;  %s2002_s14 = smov %s2004_s16 }
 0x291   :  { %20 = sbr.rel (!%p18_p5) target bundleno = 2 (0x2), region = 105 }

</bundles_post_ra>
